<compile_context>
chip_gen: v6e
topology: v6e:2x2x1
jax: 0.10.0
libtpu: 0.0.40
codegen_flags: <defaults>
</compile_context>

<pallas_src>
import math

import jax
import jax.numpy as jnp
from jax import lax
from jax.experimental import pallas as pl
from jax.experimental.pallas import tpu as pltpu


_LANE = 128
_SUBLANE = 8
_SMALL_INPUT_BYTES = 1 << 20       # below this, XLA's fused reduce wins outright
_TARGET_IN_BLOCK_BYTES = 4 << 20   # aim for ~4 MiB per-step input DMA (v7x roofline)
_BUDGET_CAP_BYTES = 40 << 20       # cap on planned double-buffered pipeline bytes


def _round_up(x: int, m: int) -> int:
    return (x + m - 1) // m * m


def _cdiv(a: int, b: int) -> int:
    return -(-a // b)


def _vmem_capacity_bytes() -> int:
    """Generation-aware VMEM size (64 MiB/TC on v7x, 128 MiB on v5e/v6e)."""
    try:
        return int(pltpu.get_tpu_info().vmem_capacity_bytes)
    except Exception:
        return 64 * 1024 * 1024  # conservative fallback (v7x per-TC figure)


def _make_reduce_kernel(n_reduce: int, itemsize: int):
    """Build a kernel reducing max over axis=1 (keepdim) of a (TB, R, THW) block."""
    # Dtype-aware strip: one packed sublane tile per strip (8 f32 / 16 bf16 / 32 i8).
    strip = max(_SUBLANE, (_SUBLANE * 4) // itemsize)
    n_full = n_reduce // strip
    rem = n_reduce - n_full * strip

    if n_full < 2:
        # Too few rows for a strip pass: single reduce over the block.
        def kernel(x_ref, o_ref):
            o_ref[...] = jnp.max(x_ref[...], axis=1, keepdims=True)
        return kernel

    def kernel(x_ref, o_ref):
        # Strip-wise elementwise max keeps the bulk of the reduce on the VPU
        # (4 VALU slots); only the final strip-row collapse hits the XLU.
        acc = x_ref[:, 0:strip, :]
        if n_full <= 8:
            # Short fixed trip count: static unroll.
            for s in range(1, n_full):
                acc = jnp.maximum(acc, x_ref[:, s * strip:(s + 1) * strip, :])
        else:
            # Long trip count: fori_loop keeps the accumulator's live range tight
            # instead of fully unrolling into a huge vreg-pressure chain.
            def body(s, a):
                start = pl.multiple_of(s * strip, strip)
                return jnp.maximum(a, x_ref[:, pl.ds(start, strip), :])
            acc = lax.fori_loop(1, n_full, body, acc)
        result = jnp.max(acc, axis=1, keepdims=True)
        if rem:
            tail = jnp.max(x_ref[:, n_full * strip:, :], axis=1, keepdims=True)
            result = jnp.maximum(result, tail)
        o_ref[...] = result

    return kernel


def global_max_pool(x: jax.Array) -> jax.Array:
    """Pallas equivalent of GlobalMaxPool.forward: max over dim=1, keepdim.

    Accepts any rank >= 3 input, e.g. (B, C, H, W) or (B, IM, C, H, W) as used
    inside FredoUNetMemory; everything after axis=1 is flattened to one
    lane-dense axis, tiled over the grid, and reshaped back afterwards.
    """
    if x.ndim < 3:
        raise ValueError("expected rank >= 3 input")
    B = x.shape[0]
    R = x.shape[1]
    trailing = x.shape[2:]
    L = math.prod(trailing)
    itemsize = jnp.dtype(x.dtype).itemsize
    total_bytes = B * R * L * itemsize

    # Tiny inputs: kernel launch + per-step overhead beats the HBM time of the
    # reduce itself; XLA's fused reduce wins there.
    if total_bytes < _SMALL_INPUT_BYTES or L < _LANE or R == 1:
        return jnp.max(x, axis=1, keepdims=True)

    x_flat = x.reshape(B, R, L)

    # ---- generation-aware block sizing --------------------------------------
    vmem_cap = _vmem_capacity_bytes()
    budget = min(vmem_cap // 2, _BUDGET_CAP_BYTES)   # 2 x (in + out) stays under this
    row_bytes = (R + 1) * itemsize                   # one lane column of in + out rows

    # Lane tile: multiple of 128 bounded by the pipeline budget.  No jnp.pad HBM
    # round trip: Pallas masks the ragged final lane block on store, and OOB
    # lanes can never contaminate valid lanes (reduce is strictly over axis 1).
    max_thw_budget = max(_LANE, (budget // (2 * row_bytes)) // _LANE * _LANE)
    if L % _LANE == 0:
        lane_extent = L
        thw = min(L, max_thw_budget)
    elif 2 * row_bytes * L <= budget:
        # Odd L that still fits as a single full-extent lane block: no padding.
        lane_extent = L
        thw = L
    else:
        # Rare: huge input with L not a 128 multiple; pad only to the next 128
        # multiple (sliced off below).
        lane_extent = _round_up(L, _LANE)
        x_flat = jnp.pad(x_flat, ((0, 0), (0, 0), (0, lane_extent - L)))
        thw = min(lane_extent, max_thw_budget)

    # Batch tile: grow tb until the per-step input block reaches ~4 MiB
    # (per-step overhead ~0.35 us ~= 1.1 MB of HBM time on v7x), staying under
    # the budget, with tb an exact divisor of B (no ragged batch blocks).
    tb_budget = max(1, budget // (2 * (R + 1) * thw * itemsize))
    tb_target = max(1, _cdiv(_TARGET_IN_BLOCK_BYTES, R * thw * itemsize))
    tb_want = max(1, min(B, tb_budget, tb_target))
    tb = max(d for d in range(1, tb_want + 1) if B % d == 0)

    grid_b = B // tb
    grid_hw = _cdiv(lane_extent, thw)

    # Megacore: never hand the whole problem to a single block -- v7x has two
    # TensorCores and "parallel" semantics only help with >= 2 blocks.
    if grid_b * grid_hw == 1:
        if lane_extent > _LANE:
            thw = max(_LANE, _round_up(_cdiv(lane_extent, 2), _LANE))
            grid_hw = _cdiv(lane_extent, thw)
        elif tb > 1:
            tb_want = max(1, tb // 2)
            tb = max(d for d in range(1, tb_want + 1) if B % d == 0)
            grid_b = B // tb

    pipeline_bytes = 2 * tb * (R + 1) * thw * itemsize  # double-buffered in + out
    vmem_limit = int(min(int(0.9 * vmem_cap),
                         max(16 << 20, pipeline_bytes + (8 << 20))))

    kernel = _make_reduce_kernel(R, itemsize)

    out_flat = pl.pallas_call(
        kernel,
        out_shape=jax.ShapeDtypeStruct((B, 1, lane_extent), x.dtype),
        grid_spec=pltpu.PrefetchScalarGridSpec(
            num_scalar_prefetch=0,
            grid=(grid_b, grid_hw),
            in_specs=[pl.BlockSpec((tb, R, thw), lambda b, t: (b, 0, t))],
            out_specs=pl.BlockSpec((tb, 1, thw), lambda b, t: (b, 0, t)),
        ),
        compiler_params=pltpu.CompilerParams(
            # Both grid axes are independent (the full reduce dim lives inside
            # every block) -> both can be megacore-sharded.
            dimension_semantics=("parallel", "parallel"),
            vmem_limit_bytes=vmem_limit,
        ),
        cost_estimate=pl.CostEstimate(
            flops=B * R * L,
            transcendentals=0,
            bytes_accessed=(B * R * L + B * L) * itemsize,
        ),
    )(x_flat)

    if lane_extent != L:
        out_flat = out_flat[:, :, :L]
    return out_flat.reshape((B, 1) + trailing)


if __name__ == "__main__":
    key = jax.random.PRNGKey(0)
    ks = jax.random.split(key, 6)

    def check(name, shape, k, dtype=jnp.float32):
        xx = jax.random.normal(k, shape, dtype=dtype)
        out = jax.block_until_ready(global_max_pool(xx))
        ref = jnp.max(xx, axis=1, keepdims=True)
        assert out.shape == ref.shape, (name, out.shape, ref.shape)
        assert jnp.allclose(out, ref), f"mismatch vs reference ({name})"

    # Tiny module-style shapes: dispatched to XLA's fused reduce (fallback path).
    check("4D tiny", (2, 4, 16, 16), ks[0])
    check("5D tiny", (2, 3, 4, 8, 8), ks[1])

    # Module-style feature-map shape (b, im, c, h, w) big enough for the Pallas
    # path; exercises the megacore lane split (grid (1, 2)).
    check("5D features", (2, 6, 64, 32, 32), ks[2])

    # Large reduce dim: strip-wise VPU reduce with a fori_loop accumulator.
    check("strip fori", (1, 96, 64, 12, 12), ks[3])

    # Odd L (not a 128 multiple), full-extent split into ragged masked blocks.
    check("odd L ragged", (1, 512, 8, 10, 10), ks[4])

    # bf16: dtype-aware strip size (16-row strips, packed sublanes).
    check("bf16", (1, 64, 32, 24, 24), ks[5], dtype=jnp.bfloat16)

    print("KERNEL_OK")
</pallas_src>

<mosaic_0001>
module attributes {stable_mosaic.version = 11 : i64} {
  func.func @kernel(%arg0: i32, %arg1: i32, %arg2: memref<2x6x32768xf32, #tpu.memory_space<vmem>>, %arg3: memref<2x1x32768xf32, #tpu.memory_space<vmem>>) attributes {dimension_semantics = [#tpu.dimension_semantics<parallel>, #tpu.dimension_semantics<parallel>], iteration_bounds = array<i64: 1, 2>, scalar_prefetch = 0 : i64, scratch_operands = 0 : i64, tpu.core_type = #tpu.core_type<tc>, window_params = [{transform_indices = @transform_0, window_bounds = array<i64: 2, 6, 32768>}, {transform_indices = @transform_1, window_bounds = array<i64: 2, 1, 32768>}]} {
    %c0 = arith.constant 0 : index
    %c0_0 = arith.constant 0 : index
    %c0_1 = arith.constant 0 : index
    %0 = vector.load %arg2[%c0, %c0_0, %c0_1] : memref<2x6x32768xf32, #tpu.memory_space<vmem>>, vector<2x6x32768xf32>
    %cst = arith.constant dense<0xFF800000> : vector<2x32768xf32>
    %1 = vector.multi_reduction <maximumf>, %0, %cst [1] : vector<2x6x32768xf32> to vector<2x32768xf32>
    %2 = vector.shape_cast %1 : vector<2x32768xf32> to vector<2x1x32768xf32>
    %c0_2 = arith.constant 0 : index
    %c0_3 = arith.constant 0 : index
    %c0_4 = arith.constant 0 : index
    %3 = vector.load %arg3[%c0_2, %c0_3, %c0_4] : memref<2x1x32768xf32, #tpu.memory_space<vmem>>, vector<2x1x32768xf32>
    tpu.vector_store %arg3[%c0_2, %c0_3, %c0_4], %2 {strides = array<i32>} : memref<2x1x32768xf32, #tpu.memory_space<vmem>>, vector<2x1x32768xf32>,
    return
  }
  func.func @transform_0(%arg0: i32, %arg1: i32) -> (i32, i32, i32) {
    %c0_i32 = arith.constant 0 : i32
    %c0_i32_0 = arith.constant 0 : i32
    return %arg0, %c0_i32, %arg1 : i32, i32, i32
  }
  func.func @transform_1(%arg0: i32, %arg1: i32) -> (i32, i32, i32) {
    %c0_i32 = arith.constant 0 : i32
    %c0_i32_0 = arith.constant 0 : i32
    return %arg0, %c0_i32, %arg1 : i32, i32, i32
  }
}

</mosaic_0001>

<bundles_post_ra>
// kernel: tpu_custom_call.1
= control target key start
LH: loop header
LB: loop body
LE: loop exit
PB: predicated region body
PF: predicated region fallthrough
CT: control target
= control target key end

     0   :  { %6 = vsyncpa [#allocation4], 0  ;;  %s13487_s0 = inlined_call_operand.vmem [shape: f32[2,6,65536], index: 0, kind: input, shape index: {}]   ;;  %s13488_s1 = inlined_call_operand.hbm [shape: f32[2,1,65536], index: 1, kind: output, shape index: {}]  }
   0x1   :  { %8 = vsyncpa [#allocation4 + $0x1], 0  ;;  %s9321_s6 = smov 0   ;;  %s9323_s7 = smov 0  }
   0x2   :  { %s9325_s8 = smov 0   ;;  %s9327_s9 = smov 0  }
   0x3   :  { %s9329_s10 = smov 0   ;;  %s9331_s11 = smov 0  }
   0x4 LB: > { %s9152_s12 = sadd.s32 4294967295, %s9304_s11   ;;  %s9153_s13 = sadd.s32 4294967294, %s9304_s11   ;;  %s9304_s11 = sphi %s9331_s11, %s14_s11   ;;  %s9300_s10 = sphi %s9329_s10, %s14447_s10   ;;  %s9296_s9 = sphi %s9327_s9, %s14446_s9   ;;  %s9292_s8 = sphi %s9325_s8, %s14445_s8   ;;  %s9288_s7 = sphi %s9323_s7, %s14444_s7   ;;  %s9284_s6 = sphi %s9321_s6, %s14443_s6  }
   0x5   : > { %s23_s14 = sadd.s32 1, %s9300_s10  ;;  %s35_s15 = sadd.s32 1, %s9292_s8 }
   0x6   : > { %p24_p0 = scmp.ge.s32.totalorder %s23_s14, 2  ;;  %p42_p1 = scmp.ne.s32.totalorder %s9292_s8, %s9288_s7 }
   0x7   : > { %p43_p2 = scmp.eq.s32.totalorder %s9304_s11, 0  ;;  %p74_p3 = scmp.eq.s32.totalorder %s9152_s12, 1 }
   0x8   : > { %s14449_s14 = smov (%p24_p0, %s23_s14), 0  ;;  %p79_p6 = scmp.ne.s32.totalorder %s9288_s7, %s9284_s6 }
   0x9   : > { %p44_p4 = por %p43_p2, %p42_p1  ;;  %p9360_p5 = por %p74_p3, %p42_p1 }
   0xa   : > { %s31_s17 = ssub.s32 %s9300_s10, %s14449_s14  ;;  %p80_p8 = scmp.eq.s32.totalorder %s9153_s13, 1 }
   0xb   : > { %p33_p7 = scmp.eq.s32.totalorder %s31_s17, 0  ;;  %p9155_p10 = scmp.ge.s32.totalorder %s9304_s11, 2 }
   0xc   : > { %p9371_p9 = por %p80_p8, %p79_p6 }
   0xd   : > { %s9369_s18 = scalar_select %p33_p7, %s9292_s8, %s35_s15  }
   0xe   : > { %96 = sbr.rel (%p9155_p10) target bundleno = 279 (0x117), region = 16 }
  0x13   : > { %99 = sbr.rel (!%p44_p4) target bundleno = 279 (0x117), region = 20  ;;  %s101_s20 = sand.u32 (%p44_p4), 1, %s9292_s8  }
  0x14   : > { %s9167_s21 = sshll.u32 (%p44_p4), %s9300_s10, 11  ;;  %s9156_s22 = sshll.u32 (%p44_p4), %s101_s20, 12 }
  0x15   : > { %s9383_s25 = scalar_lea.vmem (%p44_p4), %s13487_s0, %s9167_s21  ;;  %s9388_s26 = scalar_lea.vmem (%p44_p4), [#allocation2], %s9156_s22 }
  0x16   : > { %v122_v0 = vld [vmem:[%s9383_s25] sm:$0xff] (%p44_p4)  ;;  %v124_v1 = vld [vmem:[%s9383_s25 + $0x8] sm:$0xff] (%p44_p4)  ;;  %v126_v2 = vld [vmem:[%s9383_s25 + $0x10] sm:$0xff] (%p44_p4) }
  0x17   : > { %123 = vst [vmem:[%s9388_s26] sm:$0xff] (%p44_p4), %v122_v0  ;;  %125 = vst [vmem:[%s9388_s26 + $0x8] sm:$0xff] (%p44_p4), %v124_v1  ;;  %v128_v3 = vld [vmem:[%s9383_s25 + $0x18] sm:$0xff] (%p44_p4)  ;;  %v130_v4 = vld [vmem:[%s9383_s25 + $0x20] sm:$0xff] (%p44_p4) }
  0x18   : > { %127 = vst [vmem:[%s9388_s26 + $0x10] sm:$0xff] %v126_v2  ;;  %v132_v5 = vld [vmem:[%s9383_s25 + $0x28] sm:$0xff]  ;;  %129 = vst [vmem:[%s9388_s26 + $0x18] sm:$0xff] %v128_v3  ;;  %v134_v6 = vld [vmem:[%s9383_s25 + $0x30] sm:$0xff] }
  0x19   : > { %131 = vst [vmem:[%s9388_s26 + $0x20] sm:$0xff] %v130_v4  ;;  %133 = vst [vmem:[%s9388_s26 + $0x28] sm:$0xff] %v132_v5  ;;  %v136_v7 = vld [vmem:[%s9383_s25 + $0x38] sm:$0xff]  ;;  %v138_v8 = vld [vmem:[%s9383_s25 + $0x40] sm:$0xff] }
  0x1a   : > { %135 = vst [vmem:[%s9388_s26 + $0x30] sm:$0xff] %v134_v6  ;;  %137 = vst [vmem:[%s9388_s26 + $0x38] sm:$0xff] %v136_v7  ;;  %v140_v9 = vld [vmem:[%s9383_s25 + $0x48] sm:$0xff]  ;;  %v142_v10 = vld [vmem:[%s9383_s25 + $0x50] sm:$0xff] }
  0x1b   : > { %139 = vst [vmem:[%s9388_s26 + $0x40] sm:$0xff] %v138_v8  ;;  %v144_v11 = vld [vmem:[%s9383_s25 + $0x58] sm:$0xff]  ;;  %141 = vst [vmem:[%s9388_s26 + $0x48] sm:$0xff] %v140_v9  ;;  %v146_v12 = vld [vmem:[%s9383_s25 + $0x60] sm:$0xff] }
  0x1c   : > { %143 = vst [vmem:[%s9388_s26 + $0x50] sm:$0xff] %v142_v10  ;;  %145 = vst [vmem:[%s9388_s26 + $0x58] sm:$0xff] %v144_v11  ;;  %v148_v13 = vld [vmem:[%s9383_s25 + $0x68] sm:$0xff]  ;;  %v150_v14 = vld [vmem:[%s9383_s25 + $0x70] sm:$0xff] }
  0x1d   : > { %147 = vst [vmem:[%s9388_s26 + $0x60] sm:$0xff] %v146_v12  ;;  %149 = vst [vmem:[%s9388_s26 + $0x68] sm:$0xff] %v148_v13  ;;  %v152_v15 = vld [vmem:[%s9383_s25 + $0x78] sm:$0xff]  ;;  %v154_v16 = vld [vmem:[%s9383_s25 + $0x80] sm:$0xff] }
  0x1e   : > { %151 = vst [vmem:[%s9388_s26 + $0x70] sm:$0xff] %v150_v14  ;;  %v156_v17 = vld [vmem:[%s9383_s25 + $0x88] sm:$0xff]  ;;  %153 = vst [vmem:[%s9388_s26 + $0x78] sm:$0xff] %v152_v15  ;;  %v158_v18 = vld [vmem:[%s9383_s25 + $0x90] sm:$0xff] }
  0x1f   : > { %155 = vst [vmem:[%s9388_s26 + $0x80] sm:$0xff] %v154_v16  ;;  %157 = vst [vmem:[%s9388_s26 + $0x88] sm:$0xff] %v156_v17  ;;  %v160_v19 = vld [vmem:[%s9383_s25 + $0x98] sm:$0xff]  ;;  %v162_v20 = vld [vmem:[%s9383_s25 + $0xa0] sm:$0xff] }
  0x20   : > { %159 = vst [vmem:[%s9388_s26 + $0x90] sm:$0xff] %v158_v18  ;;  %161 = vst [vmem:[%s9388_s26 + $0x98] sm:$0xff] %v160_v19  ;;  %v164_v21 = vld [vmem:[%s9383_s25 + $0xa8] sm:$0xff]  ;;  %v166_v22 = vld [vmem:[%s9383_s25 + $0xb0] sm:$0xff] }
  0x21   : > { %163 = vst [vmem:[%s9388_s26 + $0xa0] sm:$0xff] %v162_v20  ;;  %v168_v23 = vld [vmem:[%s9383_s25 + $0xb8] sm:$0xff]  ;;  %165 = vst [vmem:[%s9388_s26 + $0xa8] sm:$0xff] %v164_v21  ;;  %v170_v24 = vld [vmem:[%s9383_s25 + $0xc0] sm:$0xff] }
  0x22   : > { %167 = vst [vmem:[%s9388_s26 + $0xb0] sm:$0xff] %v166_v22  ;;  %169 = vst [vmem:[%s9388_s26 + $0xb8] sm:$0xff] %v168_v23  ;;  %v172_v25 = vld [vmem:[%s9383_s25 + $0xc8] sm:$0xff]  ;;  %v174_v26 = vld [vmem:[%s9383_s25 + $0xd0] sm:$0xff] }
  0x23   : > { %171 = vst [vmem:[%s9388_s26 + $0xc0] sm:$0xff] %v170_v24  ;;  %173 = vst [vmem:[%s9388_s26 + $0xc8] sm:$0xff] %v172_v25  ;;  %v176_v27 = vld [vmem:[%s9383_s25 + $0xd8] sm:$0xff]  ;;  %v178_v28 = vld [vmem:[%s9383_s25 + $0xe0] sm:$0xff] }
  0x24   : > { %175 = vst [vmem:[%s9388_s26 + $0xd0] sm:$0xff] %v174_v26  ;;  %v180_v29 = vld [vmem:[%s9383_s25 + $0xe8] sm:$0xff]  ;;  %177 = vst [vmem:[%s9388_s26 + $0xd8] sm:$0xff] %v176_v27  ;;  %v182_v30 = vld [vmem:[%s9383_s25 + $0xf0] sm:$0xff] }
  0x25   : > { %179 = vst [vmem:[%s9388_s26 + $0xe0] sm:$0xff] %v178_v28  ;;  %181 = vst [vmem:[%s9388_s26 + $0xe8] sm:$0xff] %v180_v29  ;;  %v184_v31 = vld [vmem:[%s9383_s25 + $0xf8] sm:$0xff]  ;;  %v186_v32 = vld [vmem:[%s9383_s25 + $0x100] sm:$0xff] }
  0x26   : > { %183 = vst [vmem:[%s9388_s26 + $0xf0] sm:$0xff] %v182_v30  ;;  %185 = vst [vmem:[%s9388_s26 + $0xf8] sm:$0xff] %v184_v31  ;;  %v188_v33 = vld [vmem:[%s9383_s25 + $0x108] sm:$0xff]  ;;  %v190_v34 = vld [vmem:[%s9383_s25 + $0x110] sm:$0xff] }
  0x27   : > { %187 = vst [vmem:[%s9388_s26 + $0x100] sm:$0xff] %v186_v32  ;;  %v192_v35 = vld [vmem:[%s9383_s25 + $0x118] sm:$0xff]  ;;  %189 = vst [vmem:[%s9388_s26 + $0x108] sm:$0xff] %v188_v33  ;;  %v194_v36 = vld [vmem:[%s9383_s25 + $0x120] sm:$0xff] }
  0x28   : > { %191 = vst [vmem:[%s9388_s26 + $0x110] sm:$0xff] %v190_v34  ;;  %193 = vst [vmem:[%s9388_s26 + $0x118] sm:$0xff] %v192_v35  ;;  %v196_v37 = vld [vmem:[%s9383_s25 + $0x128] sm:$0xff]  ;;  %v198_v38 = vld [vmem:[%s9383_s25 + $0x130] sm:$0xff] }
  0x29   : > { %195 = vst [vmem:[%s9388_s26 + $0x120] sm:$0xff] %v194_v36  ;;  %197 = vst [vmem:[%s9388_s26 + $0x128] sm:$0xff] %v196_v37  ;;  %v200_v39 = vld [vmem:[%s9383_s25 + $0x138] sm:$0xff]  ;;  %v202_v40 = vld [vmem:[%s9383_s25 + $0x140] sm:$0xff] }
  0x2a   : > { %199 = vst [vmem:[%s9388_s26 + $0x130] sm:$0xff] %v198_v38  ;;  %v204_v41 = vld [vmem:[%s9383_s25 + $0x148] sm:$0xff]  ;;  %201 = vst [vmem:[%s9388_s26 + $0x138] sm:$0xff] %v200_v39  ;;  %v206_v42 = vld [vmem:[%s9383_s25 + $0x150] sm:$0xff] }
  0x2b   : > { %203 = vst [vmem:[%s9388_s26 + $0x140] sm:$0xff] %v202_v40  ;;  %205 = vst [vmem:[%s9388_s26 + $0x148] sm:$0xff] %v204_v41  ;;  %v208_v43 = vld [vmem:[%s9383_s25 + $0x158] sm:$0xff]  ;;  %v210_v44 = vld [vmem:[%s9383_s25 + $0x160] sm:$0xff] }
  0x2c   : > { %207 = vst [vmem:[%s9388_s26 + $0x150] sm:$0xff] %v206_v42  ;;  %209 = vst [vmem:[%s9388_s26 + $0x158] sm:$0xff] %v208_v43  ;;  %v212_v45 = vld [vmem:[%s9383_s25 + $0x168] sm:$0xff]  ;;  %v214_v46 = vld [vmem:[%s9383_s25 + $0x170] sm:$0xff] }
  0x2d   : > { %211 = vst [vmem:[%s9388_s26 + $0x160] sm:$0xff] %v210_v44  ;;  %v216_v47 = vld [vmem:[%s9383_s25 + $0x178] sm:$0xff]  ;;  %213 = vst [vmem:[%s9388_s26 + $0x168] sm:$0xff] %v212_v45  ;;  %v218_v48 = vld [vmem:[%s9383_s25 + $0x180] sm:$0xff] }
  0x2e   : > { %215 = vst [vmem:[%s9388_s26 + $0x170] sm:$0xff] %v214_v46  ;;  %217 = vst [vmem:[%s9388_s26 + $0x178] sm:$0xff] %v216_v47  ;;  %v220_v49 = vld [vmem:[%s9383_s25 + $0x188] sm:$0xff]  ;;  %v222_v50 = vld [vmem:[%s9383_s25 + $0x190] sm:$0xff] }
  0x2f   : > { %219 = vst [vmem:[%s9388_s26 + $0x180] sm:$0xff] %v218_v48  ;;  %221 = vst [vmem:[%s9388_s26 + $0x188] sm:$0xff] %v220_v49  ;;  %v224_v51 = vld [vmem:[%s9383_s25 + $0x198] sm:$0xff]  ;;  %v226_v52 = vld [vmem:[%s9383_s25 + $0x1a0] sm:$0xff] }
  0x30   : > { %223 = vst [vmem:[%s9388_s26 + $0x190] sm:$0xff] %v222_v50  ;;  %v228_v53 = vld [vmem:[%s9383_s25 + $0x1a8] sm:$0xff]  ;;  %225 = vst [vmem:[%s9388_s26 + $0x198] sm:$0xff] %v224_v51  ;;  %v230_v54 = vld [vmem:[%s9383_s25 + $0x1b0] sm:$0xff] }
  0x31   : > { %227 = vst [vmem:[%s9388_s26 + $0x1a0] sm:$0xff] %v226_v52  ;;  %229 = vst [vmem:[%s9388_s26 + $0x1a8] sm:$0xff] %v228_v53  ;;  %v232_v55 = vld [vmem:[%s9383_s25 + $0x1b8] sm:$0xff]  ;;  %v234_v56 = vld [vmem:[%s9383_s25 + $0x1c0] sm:$0xff] }
  0x32   : > { %231 = vst [vmem:[%s9388_s26 + $0x1b0] sm:$0xff] %v230_v54  ;;  %233 = vst [vmem:[%s9388_s26 + $0x1b8] sm:$0xff] %v232_v55  ;;  %v236_v57 = vld [vmem:[%s9383_s25 + $0x1c8] sm:$0xff]  ;;  %v238_v58 = vld [vmem:[%s9383_s25 + $0x1d0] sm:$0xff] }
  0x33   : > { %235 = vst [vmem:[%s9388_s26 + $0x1c0] sm:$0xff] %v234_v56  ;;  %v240_v59 = vld [vmem:[%s9383_s25 + $0x1d8] sm:$0xff]  ;;  %237 = vst [vmem:[%s9388_s26 + $0x1c8] sm:$0xff] %v236_v57  ;;  %v242_v60 = vld [vmem:[%s9383_s25 + $0x1e0] sm:$0xff] }
  0x34   : > { %239 = vst [vmem:[%s9388_s26 + $0x1d0] sm:$0xff] %v238_v58  ;;  %241 = vst [vmem:[%s9388_s26 + $0x1d8] sm:$0xff] %v240_v59  ;;  %v244_v61 = vld [vmem:[%s9383_s25 + $0x1e8] sm:$0xff]  ;;  %v246_v62 = vld [vmem:[%s9383_s25 + $0x1f0] sm:$0xff] }
  0x35   : > { %243 = vst [vmem:[%s9388_s26 + $0x1e0] sm:$0xff] %v242_v60  ;;  %245 = vst [vmem:[%s9388_s26 + $0x1e8] sm:$0xff] %v244_v61  ;;  %v248_v63 = vld [vmem:[%s9383_s25 + $0x1f8] sm:$0xff]  ;;  %v250_v0 = vld [vmem:[%s9383_s25 + $0x200] sm:$0xff] }
  0x36   : > { %247 = vst [vmem:[%s9388_s26 + $0x1f0] sm:$0xff] %v246_v62  ;;  %v252_v1 = vld [vmem:[%s9383_s25 + $0x208] sm:$0xff]  ;;  %249 = vst [vmem:[%s9388_s26 + $0x1f8] sm:$0xff] %v248_v63  ;;  %v254_v2 = vld [vmem:[%s9383_s25 + $0x210] sm:$0xff] }
  0x37   : > { %251 = vst [vmem:[%s9388_s26 + $0x200] sm:$0xff] %v250_v0  ;;  %253 = vst [vmem:[%s9388_s26 + $0x208] sm:$0xff] %v252_v1  ;;  %v256_v3 = vld [vmem:[%s9383_s25 + $0x218] sm:$0xff]  ;;  %v258_v4 = vld [vmem:[%s9383_s25 + $0x220] sm:$0xff] }
  0x38   : > { %255 = vst [vmem:[%s9388_s26 + $0x210] sm:$0xff] %v254_v2  ;;  %257 = vst [vmem:[%s9388_s26 + $0x218] sm:$0xff] %v256_v3  ;;  %v260_v5 = vld [vmem:[%s9383_s25 + $0x228] sm:$0xff]  ;;  %v262_v6 = vld [vmem:[%s9383_s25 + $0x230] sm:$0xff] }
  0x39   : > { %259 = vst [vmem:[%s9388_s26 + $0x220] sm:$0xff] %v258_v4  ;;  %v264_v7 = vld [vmem:[%s9383_s25 + $0x238] sm:$0xff]  ;;  %261 = vst [vmem:[%s9388_s26 + $0x228] sm:$0xff] %v260_v5  ;;  %v266_v8 = vld [vmem:[%s9383_s25 + $0x240] sm:$0xff] }
  0x3a   : > { %263 = vst [vmem:[%s9388_s26 + $0x230] sm:$0xff] %v262_v6  ;;  %265 = vst [vmem:[%s9388_s26 + $0x238] sm:$0xff] %v264_v7  ;;  %v268_v9 = vld [vmem:[%s9383_s25 + $0x248] sm:$0xff]  ;;  %v270_v10 = vld [vmem:[%s9383_s25 + $0x250] sm:$0xff] }
  0x3b   : > { %267 = vst [vmem:[%s9388_s26 + $0x240] sm:$0xff] %v266_v8  ;;  %269 = vst [vmem:[%s9388_s26 + $0x248] sm:$0xff] %v268_v9  ;;  %v272_v11 = vld [vmem:[%s9383_s25 + $0x258] sm:$0xff]  ;;  %v274_v12 = vld [vmem:[%s9383_s25 + $0x260] sm:$0xff] }
  0x3c   : > { %271 = vst [vmem:[%s9388_s26 + $0x250] sm:$0xff] %v270_v10  ;;  %v276_v13 = vld [vmem:[%s9383_s25 + $0x268] sm:$0xff]  ;;  %273 = vst [vmem:[%s9388_s26 + $0x258] sm:$0xff] %v272_v11  ;;  %v278_v14 = vld [vmem:[%s9383_s25 + $0x270] sm:$0xff] }
  0x3d   : > { %275 = vst [vmem:[%s9388_s26 + $0x260] sm:$0xff] %v274_v12  ;;  %277 = vst [vmem:[%s9388_s26 + $0x268] sm:$0xff] %v276_v13  ;;  %v280_v15 = vld [vmem:[%s9383_s25 + $0x278] sm:$0xff]  ;;  %v282_v16 = vld [vmem:[%s9383_s25 + $0x280] sm:$0xff] }
  0x3e   : > { %279 = vst [vmem:[%s9388_s26 + $0x270] sm:$0xff] %v278_v14  ;;  %281 = vst [vmem:[%s9388_s26 + $0x278] sm:$0xff] %v280_v15  ;;  %v284_v17 = vld [vmem:[%s9383_s25 + $0x288] sm:$0xff]  ;;  %v286_v18 = vld [vmem:[%s9383_s25 + $0x290] sm:$0xff] }
  0x3f   : > { %283 = vst [vmem:[%s9388_s26 + $0x280] sm:$0xff] %v282_v16  ;;  %v288_v19 = vld [vmem:[%s9383_s25 + $0x298] sm:$0xff]  ;;  %285 = vst [vmem:[%s9388_s26 + $0x288] sm:$0xff] %v284_v17  ;;  %v290_v20 = vld [vmem:[%s9383_s25 + $0x2a0] sm:$0xff] }
  0x40   : > { %287 = vst [vmem:[%s9388_s26 + $0x290] sm:$0xff] %v286_v18  ;;  %289 = vst [vmem:[%s9388_s26 + $0x298] sm:$0xff] %v288_v19  ;;  %v292_v21 = vld [vmem:[%s9383_s25 + $0x2a8] sm:$0xff]  ;;  %v294_v22 = vld [vmem:[%s9383_s25 + $0x2b0] sm:$0xff] }
  0x41   : > { %291 = vst [vmem:[%s9388_s26 + $0x2a0] sm:$0xff] %v290_v20  ;;  %293 = vst [vmem:[%s9388_s26 + $0x2a8] sm:$0xff] %v292_v21  ;;  %v296_v23 = vld [vmem:[%s9383_s25 + $0x2b8] sm:$0xff]  ;;  %v298_v24 = vld [vmem:[%s9383_s25 + $0x2c0] sm:$0xff] }
  0x42   : > { %295 = vst [vmem:[%s9388_s26 + $0x2b0] sm:$0xff] %v294_v22  ;;  %v300_v25 = vld [vmem:[%s9383_s25 + $0x2c8] sm:$0xff]  ;;  %297 = vst [vmem:[%s9388_s26 + $0x2b8] sm:$0xff] %v296_v23  ;;  %v302_v26 = vld [vmem:[%s9383_s25 + $0x2d0] sm:$0xff] }
  0x43   : > { %299 = vst [vmem:[%s9388_s26 + $0x2c0] sm:$0xff] %v298_v24  ;;  %301 = vst [vmem:[%s9388_s26 + $0x2c8] sm:$0xff] %v300_v25  ;;  %v304_v27 = vld [vmem:[%s9383_s25 + $0x2d8] sm:$0xff]  ;;  %v306_v28 = vld [vmem:[%s9383_s25 + $0x2e0] sm:$0xff] }
  0x44   : > { %303 = vst [vmem:[%s9388_s26 + $0x2d0] sm:$0xff] %v302_v26  ;;  %305 = vst [vmem:[%s9388_s26 + $0x2d8] sm:$0xff] %v304_v27  ;;  %v308_v29 = vld [vmem:[%s9383_s25 + $0x2e8] sm:$0xff]  ;;  %v310_v30 = vld [vmem:[%s9383_s25 + $0x2f0] sm:$0xff] }
  0x45   : > { %307 = vst [vmem:[%s9388_s26 + $0x2e0] sm:$0xff] %v306_v28  ;;  %v312_v31 = vld [vmem:[%s9383_s25 + $0x2f8] sm:$0xff]  ;;  %309 = vst [vmem:[%s9388_s26 + $0x2e8] sm:$0xff] %v308_v29  ;;  %v314_v32 = vld [vmem:[%s9383_s25 + $0x300] sm:$0xff] }
  0x46   : > { %311 = vst [vmem:[%s9388_s26 + $0x2f0] sm:$0xff] %v310_v30  ;;  %313 = vst [vmem:[%s9388_s26 + $0x2f8] sm:$0xff] %v312_v31  ;;  %v316_v33 = vld [vmem:[%s9383_s25 + $0x308] sm:$0xff]  ;;  %v318_v34 = vld [vmem:[%s9383_s25 + $0x310] sm:$0xff] }
  0x47   : > { %315 = vst [vmem:[%s9388_s26 + $0x300] sm:$0xff] %v314_v32  ;;  %317 = vst [vmem:[%s9388_s26 + $0x308] sm:$0xff] %v316_v33  ;;  %v320_v35 = vld [vmem:[%s9383_s25 + $0x318] sm:$0xff]  ;;  %v322_v36 = vld [vmem:[%s9383_s25 + $0x320] sm:$0xff] }
  0x48   : > { %319 = vst [vmem:[%s9388_s26 + $0x310] sm:$0xff] %v318_v34  ;;  %v324_v37 = vld [vmem:[%s9383_s25 + $0x328] sm:$0xff]  ;;  %321 = vst [vmem:[%s9388_s26 + $0x318] sm:$0xff] %v320_v35  ;;  %v326_v38 = vld [vmem:[%s9383_s25 + $0x330] sm:$0xff] }
  0x49   : > { %323 = vst [vmem:[%s9388_s26 + $0x320] sm:$0xff] %v322_v36  ;;  %325 = vst [vmem:[%s9388_s26 + $0x328] sm:$0xff] %v324_v37  ;;  %v328_v39 = vld [vmem:[%s9383_s25 + $0x338] sm:$0xff]  ;;  %v330_v40 = vld [vmem:[%s9383_s25 + $0x340] sm:$0xff] }
  0x4a   : > { %327 = vst [vmem:[%s9388_s26 + $0x330] sm:$0xff] %v326_v38  ;;  %329 = vst [vmem:[%s9388_s26 + $0x338] sm:$0xff] %v328_v39  ;;  %v332_v41 = vld [vmem:[%s9383_s25 + $0x348] sm:$0xff]  ;;  %v334_v42 = vld [vmem:[%s9383_s25 + $0x350] sm:$0xff] }
  0x4b   : > { %331 = vst [vmem:[%s9388_s26 + $0x340] sm:$0xff] %v330_v40  ;;  %v336_v43 = vld [vmem:[%s9383_s25 + $0x358] sm:$0xff]  ;;  %333 = vst [vmem:[%s9388_s26 + $0x348] sm:$0xff] %v332_v41  ;;  %v338_v44 = vld [vmem:[%s9383_s25 + $0x360] sm:$0xff] }
  0x4c   : > { %335 = vst [vmem:[%s9388_s26 + $0x350] sm:$0xff] %v334_v42  ;;  %337 = vst [vmem:[%s9388_s26 + $0x358] sm:$0xff] %v336_v43  ;;  %v340_v45 = vld [vmem:[%s9383_s25 + $0x368] sm:$0xff]  ;;  %v342_v46 = vld [vmem:[%s9383_s25 + $0x370] sm:$0xff] }
  0x4d   : > { %339 = vst [vmem:[%s9388_s26 + $0x360] sm:$0xff] %v338_v44  ;;  %341 = vst [vmem:[%s9388_s26 + $0x368] sm:$0xff] %v340_v45  ;;  %v344_v47 = vld [vmem:[%s9383_s25 + $0x378] sm:$0xff]  ;;  %v346_v48 = vld [vmem:[%s9383_s25 + $0x380] sm:$0xff] }
  0x4e   : > { %343 = vst [vmem:[%s9388_s26 + $0x370] sm:$0xff] %v342_v46  ;;  %v348_v49 = vld [vmem:[%s9383_s25 + $0x388] sm:$0xff]  ;;  %345 = vst [vmem:[%s9388_s26 + $0x378] sm:$0xff] %v344_v47  ;;  %v350_v50 = vld [vmem:[%s9383_s25 + $0x390] sm:$0xff] }
  0x4f   : > { %347 = vst [vmem:[%s9388_s26 + $0x380] sm:$0xff] %v346_v48  ;;  %349 = vst [vmem:[%s9388_s26 + $0x388] sm:$0xff] %v348_v49  ;;  %v352_v51 = vld [vmem:[%s9383_s25 + $0x398] sm:$0xff]  ;;  %v354_v52 = vld [vmem:[%s9383_s25 + $0x3a0] sm:$0xff] }
  0x50   : > { %351 = vst [vmem:[%s9388_s26 + $0x390] sm:$0xff] %v350_v50  ;;  %353 = vst [vmem:[%s9388_s26 + $0x398] sm:$0xff] %v352_v51  ;;  %v356_v53 = vld [vmem:[%s9383_s25 + $0x3a8] sm:$0xff]  ;;  %v358_v54 = vld [vmem:[%s9383_s25 + $0x3b0] sm:$0xff] }
  0x51   : > { %355 = vst [vmem:[%s9388_s26 + $0x3a0] sm:$0xff] %v354_v52  ;;  %v360_v55 = vld [vmem:[%s9383_s25 + $0x3b8] sm:$0xff]  ;;  %357 = vst [vmem:[%s9388_s26 + $0x3a8] sm:$0xff] %v356_v53  ;;  %v362_v56 = vld [vmem:[%s9383_s25 + $0x3c0] sm:$0xff] }
  0x52   : > { %359 = vst [vmem:[%s9388_s26 + $0x3b0] sm:$0xff] %v358_v54  ;;  %361 = vst [vmem:[%s9388_s26 + $0x3b8] sm:$0xff] %v360_v55  ;;  %v364_v57 = vld [vmem:[%s9383_s25 + $0x3c8] sm:$0xff]  ;;  %v366_v58 = vld [vmem:[%s9383_s25 + $0x3d0] sm:$0xff] }
  0x53   : > { %363 = vst [vmem:[%s9388_s26 + $0x3c0] sm:$0xff] %v362_v56  ;;  %365 = vst [vmem:[%s9388_s26 + $0x3c8] sm:$0xff] %v364_v57  ;;  %v368_v59 = vld [vmem:[%s9383_s25 + $0x3d8] sm:$0xff]  ;;  %v370_v60 = vld [vmem:[%s9383_s25 + $0x3e0] sm:$0xff] }
  0x54   : > { %367 = vst [vmem:[%s9388_s26 + $0x3d0] sm:$0xff] %v366_v58  ;;  %v372_v61 = vld [vmem:[%s9383_s25 + $0x3e8] sm:$0xff]  ;;  %369 = vst [vmem:[%s9388_s26 + $0x3d8] sm:$0xff] %v368_v59  ;;  %v374_v62 = vld [vmem:[%s9383_s25 + $0x3f0] sm:$0xff] }
  0x55   : > { %371 = vst [vmem:[%s9388_s26 + $0x3e0] sm:$0xff] %v370_v60  ;;  %373 = vst [vmem:[%s9388_s26 + $0x3e8] sm:$0xff] %v372_v61  ;;  %v376_v63 = vld [vmem:[%s9383_s25 + $0x3f8] sm:$0xff]  ;;  %v378_v0 = vld [vmem:[%s9383_s25 + $0x400] sm:$0xff] }
  0x56   : > { %375 = vst [vmem:[%s9388_s26 + $0x3f0] sm:$0xff] %v374_v62  ;;  %377 = vst [vmem:[%s9388_s26 + $0x3f8] sm:$0xff] %v376_v63  ;;  %v380_v1 = vld [vmem:[%s9383_s25 + $0x408] sm:$0xff]  ;;  %v382_v2 = vld [vmem:[%s9383_s25 + $0x410] sm:$0xff] }
  0x57   : > { %379 = vst [vmem:[%s9388_s26 + $0x400] sm:$0xff] %v378_v0  ;;  %v384_v3 = vld [vmem:[%s9383_s25 + $0x418] sm:$0xff]  ;;  %381 = vst [vmem:[%s9388_s26 + $0x408] sm:$0xff] %v380_v1  ;;  %v386_v4 = vld [vmem:[%s9383_s25 + $0x420] sm:$0xff] }
  0x58   : > { %383 = vst [vmem:[%s9388_s26 + $0x410] sm:$0xff] %v382_v2  ;;  %385 = vst [vmem:[%s9388_s26 + $0x418] sm:$0xff] %v384_v3  ;;  %v388_v5 = vld [vmem:[%s9383_s25 + $0x428] sm:$0xff]  ;;  %v390_v6 = vld [vmem:[%s9383_s25 + $0x430] sm:$0xff] }
  0x59   : > { %387 = vst [vmem:[%s9388_s26 + $0x420] sm:$0xff] %v386_v4  ;;  %389 = vst [vmem:[%s9388_s26 + $0x428] sm:$0xff] %v388_v5  ;;  %v392_v7 = vld [vmem:[%s9383_s25 + $0x438] sm:$0xff]  ;;  %v394_v8 = vld [vmem:[%s9383_s25 + $0x440] sm:$0xff] }
  0x5a   : > { %391 = vst [vmem:[%s9388_s26 + $0x430] sm:$0xff] %v390_v6  ;;  %v396_v9 = vld [vmem:[%s9383_s25 + $0x448] sm:$0xff]  ;;  %393 = vst [vmem:[%s9388_s26 + $0x438] sm:$0xff] %v392_v7  ;;  %v398_v10 = vld [vmem:[%s9383_s25 + $0x450] sm:$0xff] }
  0x5b   : > { %395 = vst [vmem:[%s9388_s26 + $0x440] sm:$0xff] %v394_v8  ;;  %397 = vst [vmem:[%s9388_s26 + $0x448] sm:$0xff] %v396_v9  ;;  %v400_v11 = vld [vmem:[%s9383_s25 + $0x458] sm:$0xff]  ;;  %v402_v12 = vld [vmem:[%s9383_s25 + $0x460] sm:$0xff] }
  0x5c   : > { %399 = vst [vmem:[%s9388_s26 + $0x450] sm:$0xff] %v398_v10  ;;  %401 = vst [vmem:[%s9388_s26 + $0x458] sm:$0xff] %v400_v11  ;;  %v404_v13 = vld [vmem:[%s9383_s25 + $0x468] sm:$0xff]  ;;  %v406_v14 = vld [vmem:[%s9383_s25 + $0x470] sm:$0xff] }
  0x5d   : > { %403 = vst [vmem:[%s9388_s26 + $0x460] sm:$0xff] %v402_v12  ;;  %v408_v15 = vld [vmem:[%s9383_s25 + $0x478] sm:$0xff]  ;;  %405 = vst [vmem:[%s9388_s26 + $0x468] sm:$0xff] %v404_v13  ;;  %v410_v16 = vld [vmem:[%s9383_s25 + $0x480] sm:$0xff] }
  0x5e   : > { %407 = vst [vmem:[%s9388_s26 + $0x470] sm:$0xff] %v406_v14  ;;  %409 = vst [vmem:[%s9388_s26 + $0x478] sm:$0xff] %v408_v15  ;;  %v412_v17 = vld [vmem:[%s9383_s25 + $0x488] sm:$0xff]  ;;  %v414_v18 = vld [vmem:[%s9383_s25 + $0x490] sm:$0xff] }
  0x5f   : > { %411 = vst [vmem:[%s9388_s26 + $0x480] sm:$0xff] %v410_v16  ;;  %413 = vst [vmem:[%s9388_s26 + $0x488] sm:$0xff] %v412_v17  ;;  %v416_v19 = vld [vmem:[%s9383_s25 + $0x498] sm:$0xff]  ;;  %v418_v20 = vld [vmem:[%s9383_s25 + $0x4a0] sm:$0xff] }
  0x60   : > { %415 = vst [vmem:[%s9388_s26 + $0x490] sm:$0xff] %v414_v18  ;;  %v420_v21 = vld [vmem:[%s9383_s25 + $0x4a8] sm:$0xff]  ;;  %417 = vst [vmem:[%s9388_s26 + $0x498] sm:$0xff] %v416_v19  ;;  %v422_v22 = vld [vmem:[%s9383_s25 + $0x4b0] sm:$0xff] }
  0x61   : > { %419 = vst [vmem:[%s9388_s26 + $0x4a0] sm:$0xff] %v418_v20  ;;  %421 = vst [vmem:[%s9388_s26 + $0x4a8] sm:$0xff] %v420_v21  ;;  %v424_v23 = vld [vmem:[%s9383_s25 + $0x4b8] sm:$0xff]  ;;  %v426_v24 = vld [vmem:[%s9383_s25 + $0x4c0] sm:$0xff] }
  0x62   : > { %423 = vst [vmem:[%s9388_s26 + $0x4b0] sm:$0xff] %v422_v22  ;;  %425 = vst [vmem:[%s9388_s26 + $0x4b8] sm:$0xff] %v424_v23  ;;  %v428_v25 = vld [vmem:[%s9383_s25 + $0x4c8] sm:$0xff]  ;;  %v430_v26 = vld [vmem:[%s9383_s25 + $0x4d0] sm:$0xff] }
  0x63   : > { %427 = vst [vmem:[%s9388_s26 + $0x4c0] sm:$0xff] %v426_v24  ;;  %v432_v27 = vld [vmem:[%s9383_s25 + $0x4d8] sm:$0xff]  ;;  %429 = vst [vmem:[%s9388_s26 + $0x4c8] sm:$0xff] %v428_v25  ;;  %v434_v28 = vld [vmem:[%s9383_s25 + $0x4e0] sm:$0xff] }
  0x64   : > { %431 = vst [vmem:[%s9388_s26 + $0x4d0] sm:$0xff] %v430_v26  ;;  %433 = vst [vmem:[%s9388_s26 + $0x4d8] sm:$0xff] %v432_v27  ;;  %v436_v29 = vld [vmem:[%s9383_s25 + $0x4e8] sm:$0xff]  ;;  %v438_v30 = vld [vmem:[%s9383_s25 + $0x4f0] sm:$0xff] }
  0x65   : > { %435 = vst [vmem:[%s9388_s26 + $0x4e0] sm:$0xff] %v434_v28  ;;  %437 = vst [vmem:[%s9388_s26 + $0x4e8] sm:$0xff] %v436_v29  ;;  %v440_v31 = vld [vmem:[%s9383_s25 + $0x4f8] sm:$0xff]  ;;  %v442_v32 = vld [vmem:[%s9383_s25 + $0x500] sm:$0xff] }
  0x66   : > { %439 = vst [vmem:[%s9388_s26 + $0x4f0] sm:$0xff] %v438_v30  ;;  %v444_v33 = vld [vmem:[%s9383_s25 + $0x508] sm:$0xff]  ;;  %441 = vst [vmem:[%s9388_s26 + $0x4f8] sm:$0xff] %v440_v31  ;;  %v446_v34 = vld [vmem:[%s9383_s25 + $0x510] sm:$0xff] }
  0x67   : > { %443 = vst [vmem:[%s9388_s26 + $0x500] sm:$0xff] %v442_v32  ;;  %445 = vst [vmem:[%s9388_s26 + $0x508] sm:$0xff] %v444_v33  ;;  %v448_v35 = vld [vmem:[%s9383_s25 + $0x518] sm:$0xff]  ;;  %v450_v36 = vld [vmem:[%s9383_s25 + $0x520] sm:$0xff] }
  0x68   : > { %447 = vst [vmem:[%s9388_s26 + $0x510] sm:$0xff] %v446_v34  ;;  %449 = vst [vmem:[%s9388_s26 + $0x518] sm:$0xff] %v448_v35  ;;  %v452_v37 = vld [vmem:[%s9383_s25 + $0x528] sm:$0xff]  ;;  %v454_v38 = vld [vmem:[%s9383_s25 + $0x530] sm:$0xff] }
  0x69   : > { %451 = vst [vmem:[%s9388_s26 + $0x520] sm:$0xff] %v450_v36  ;;  %v456_v39 = vld [vmem:[%s9383_s25 + $0x538] sm:$0xff]  ;;  %453 = vst [vmem:[%s9388_s26 + $0x528] sm:$0xff] %v452_v37  ;;  %v458_v40 = vld [vmem:[%s9383_s25 + $0x540] sm:$0xff] }
  0x6a   : > { %455 = vst [vmem:[%s9388_s26 + $0x530] sm:$0xff] %v454_v38  ;;  %457 = vst [vmem:[%s9388_s26 + $0x538] sm:$0xff] %v456_v39  ;;  %v460_v41 = vld [vmem:[%s9383_s25 + $0x548] sm:$0xff]  ;;  %v462_v42 = vld [vmem:[%s9383_s25 + $0x550] sm:$0xff] }
  0x6b   : > { %459 = vst [vmem:[%s9388_s26 + $0x540] sm:$0xff] %v458_v40  ;;  %461 = vst [vmem:[%s9388_s26 + $0x548] sm:$0xff] %v460_v41  ;;  %v464_v43 = vld [vmem:[%s9383_s25 + $0x558] sm:$0xff]  ;;  %v466_v44 = vld [vmem:[%s9383_s25 + $0x560] sm:$0xff] }
  0x6c   : > { %463 = vst [vmem:[%s9388_s26 + $0x550] sm:$0xff] %v462_v42  ;;  %v468_v45 = vld [vmem:[%s9383_s25 + $0x568] sm:$0xff]  ;;  %465 = vst [vmem:[%s9388_s26 + $0x558] sm:$0xff] %v464_v43  ;;  %v470_v46 = vld [vmem:[%s9383_s25 + $0x570] sm:$0xff] }
  0x6d   : > { %467 = vst [vmem:[%s9388_s26 + $0x560] sm:$0xff] %v466_v44  ;;  %469 = vst [vmem:[%s9388_s26 + $0x568] sm:$0xff] %v468_v45  ;;  %v472_v47 = vld [vmem:[%s9383_s25 + $0x578] sm:$0xff]  ;;  %v474_v48 = vld [vmem:[%s9383_s25 + $0x580] sm:$0xff] }
  0x6e   : > { %471 = vst [vmem:[%s9388_s26 + $0x570] sm:$0xff] %v470_v46  ;;  %473 = vst [vmem:[%s9388_s26 + $0x578] sm:$0xff] %v472_v47  ;;  %v476_v49 = vld [vmem:[%s9383_s25 + $0x588] sm:$0xff]  ;;  %v478_v50 = vld [vmem:[%s9383_s25 + $0x590] sm:$0xff] }
  0x6f   : > { %475 = vst [vmem:[%s9388_s26 + $0x580] sm:$0xff] %v474_v48  ;;  %v480_v51 = vld [vmem:[%s9383_s25 + $0x598] sm:$0xff]  ;;  %477 = vst [vmem:[%s9388_s26 + $0x588] sm:$0xff] %v476_v49  ;;  %v482_v52 = vld [vmem:[%s9383_s25 + $0x5a0] sm:$0xff] }
  0x70   : > { %479 = vst [vmem:[%s9388_s26 + $0x590] sm:$0xff] %v478_v50  ;;  %481 = vst [vmem:[%s9388_s26 + $0x598] sm:$0xff] %v480_v51  ;;  %v484_v53 = vld [vmem:[%s9383_s25 + $0x5a8] sm:$0xff]  ;;  %v486_v54 = vld [vmem:[%s9383_s25 + $0x5b0] sm:$0xff] }
  0x71   : > { %483 = vst [vmem:[%s9388_s26 + $0x5a0] sm:$0xff] %v482_v52  ;;  %485 = vst [vmem:[%s9388_s26 + $0x5a8] sm:$0xff] %v484_v53  ;;  %v488_v55 = vld [vmem:[%s9383_s25 + $0x5b8] sm:$0xff]  ;;  %v490_v56 = vld [vmem:[%s9383_s25 + $0x5c0] sm:$0xff] }
  0x72   : > { %487 = vst [vmem:[%s9388_s26 + $0x5b0] sm:$0xff] %v486_v54  ;;  %v492_v57 = vld [vmem:[%s9383_s25 + $0x5c8] sm:$0xff]  ;;  %489 = vst [vmem:[%s9388_s26 + $0x5b8] sm:$0xff] %v488_v55  ;;  %v494_v58 = vld [vmem:[%s9383_s25 + $0x5d0] sm:$0xff] }
  0x73   : > { %491 = vst [vmem:[%s9388_s26 + $0x5c0] sm:$0xff] %v490_v56  ;;  %493 = vst [vmem:[%s9388_s26 + $0x5c8] sm:$0xff] %v492_v57  ;;  %v496_v59 = vld [vmem:[%s9383_s25 + $0x5d8] sm:$0xff]  ;;  %v498_v60 = vld [vmem:[%s9383_s25 + $0x5e0] sm:$0xff] }
  0x74   : > { %495 = vst [vmem:[%s9388_s26 + $0x5d0] sm:$0xff] %v494_v58  ;;  %497 = vst [vmem:[%s9388_s26 + $0x5d8] sm:$0xff] %v496_v59  ;;  %v500_v61 = vld [vmem:[%s9383_s25 + $0x5e8] sm:$0xff]  ;;  %v502_v62 = vld [vmem:[%s9383_s25 + $0x5f0] sm:$0xff] }
  0x75   : > { %499 = vst [vmem:[%s9388_s26 + $0x5e0] sm:$0xff] %v498_v60  ;;  %v504_v63 = vld [vmem:[%s9383_s25 + $0x5f8] sm:$0xff]  ;;  %501 = vst [vmem:[%s9388_s26 + $0x5e8] sm:$0xff] %v500_v61  ;;  %v506_v0 = vld [vmem:[%s9383_s25 + $0x600] sm:$0xff] }
  0x76   : > { %503 = vst [vmem:[%s9388_s26 + $0x5f0] sm:$0xff] %v502_v62  ;;  %505 = vst [vmem:[%s9388_s26 + $0x5f8] sm:$0xff] %v504_v63  ;;  %v508_v1 = vld [vmem:[%s9383_s25 + $0x608] sm:$0xff]  ;;  %v510_v2 = vld [vmem:[%s9383_s25 + $0x610] sm:$0xff] }
  0x77   : > { %507 = vst [vmem:[%s9388_s26 + $0x600] sm:$0xff] %v506_v0  ;;  %509 = vst [vmem:[%s9388_s26 + $0x608] sm:$0xff] %v508_v1  ;;  %v512_v3 = vld [vmem:[%s9383_s25 + $0x618] sm:$0xff]  ;;  %v514_v4 = vld [vmem:[%s9383_s25 + $0x620] sm:$0xff] }
  0x78   : > { %511 = vst [vmem:[%s9388_s26 + $0x610] sm:$0xff] %v510_v2  ;;  %v516_v5 = vld [vmem:[%s9383_s25 + $0x628] sm:$0xff]  ;;  %513 = vst [vmem:[%s9388_s26 + $0x618] sm:$0xff] %v512_v3  ;;  %v518_v6 = vld [vmem:[%s9383_s25 + $0x630] sm:$0xff] }
  0x79   : > { %515 = vst [vmem:[%s9388_s26 + $0x620] sm:$0xff] %v514_v4  ;;  %517 = vst [vmem:[%s9388_s26 + $0x628] sm:$0xff] %v516_v5  ;;  %v520_v7 = vld [vmem:[%s9383_s25 + $0x638] sm:$0xff]  ;;  %v522_v8 = vld [vmem:[%s9383_s25 + $0x640] sm:$0xff] }
  0x7a   : > { %519 = vst [vmem:[%s9388_s26 + $0x630] sm:$0xff] %v518_v6  ;;  %521 = vst [vmem:[%s9388_s26 + $0x638] sm:$0xff] %v520_v7  ;;  %v524_v9 = vld [vmem:[%s9383_s25 + $0x648] sm:$0xff]  ;;  %v526_v10 = vld [vmem:[%s9383_s25 + $0x650] sm:$0xff] }
  0x7b   : > { %523 = vst [vmem:[%s9388_s26 + $0x640] sm:$0xff] %v522_v8  ;;  %v528_v11 = vld [vmem:[%s9383_s25 + $0x658] sm:$0xff]  ;;  %525 = vst [vmem:[%s9388_s26 + $0x648] sm:$0xff] %v524_v9  ;;  %v530_v12 = vld [vmem:[%s9383_s25 + $0x660] sm:$0xff] }
  0x7c   : > { %527 = vst [vmem:[%s9388_s26 + $0x650] sm:$0xff] %v526_v10  ;;  %529 = vst [vmem:[%s9388_s26 + $0x658] sm:$0xff] %v528_v11  ;;  %v532_v13 = vld [vmem:[%s9383_s25 + $0x668] sm:$0xff]  ;;  %v534_v14 = vld [vmem:[%s9383_s25 + $0x670] sm:$0xff] }
  0x7d   : > { %531 = vst [vmem:[%s9388_s26 + $0x660] sm:$0xff] %v530_v12  ;;  %533 = vst [vmem:[%s9388_s26 + $0x668] sm:$0xff] %v532_v13  ;;  %v536_v15 = vld [vmem:[%s9383_s25 + $0x678] sm:$0xff]  ;;  %v538_v16 = vld [vmem:[%s9383_s25 + $0x680] sm:$0xff] }
  0x7e   : > { %535 = vst [vmem:[%s9388_s26 + $0x670] sm:$0xff] %v534_v14  ;;  %v540_v17 = vld [vmem:[%s9383_s25 + $0x688] sm:$0xff]  ;;  %537 = vst [vmem:[%s9388_s26 + $0x678] sm:$0xff] %v536_v15  ;;  %v542_v18 = vld [vmem:[%s9383_s25 + $0x690] sm:$0xff] }
  0x7f   : > { %539 = vst [vmem:[%s9388_s26 + $0x680] sm:$0xff] %v538_v16  ;;  %541 = vst [vmem:[%s9388_s26 + $0x688] sm:$0xff] %v540_v17  ;;  %v544_v19 = vld [vmem:[%s9383_s25 + $0x698] sm:$0xff]  ;;  %v546_v20 = vld [vmem:[%s9383_s25 + $0x6a0] sm:$0xff] }
  0x80   : > { %543 = vst [vmem:[%s9388_s26 + $0x690] sm:$0xff] %v542_v18  ;;  %545 = vst [vmem:[%s9388_s26 + $0x698] sm:$0xff] %v544_v19  ;;  %v548_v21 = vld [vmem:[%s9383_s25 + $0x6a8] sm:$0xff]  ;;  %v550_v22 = vld [vmem:[%s9383_s25 + $0x6b0] sm:$0xff] }
  0x81   : > { %547 = vst [vmem:[%s9388_s26 + $0x6a0] sm:$0xff] %v546_v20  ;;  %v552_v23 = vld [vmem:[%s9383_s25 + $0x6b8] sm:$0xff]  ;;  %549 = vst [vmem:[%s9388_s26 + $0x6a8] sm:$0xff] %v548_v21  ;;  %v554_v24 = vld [vmem:[%s9383_s25 + $0x6c0] sm:$0xff] }
  0x82   : > { %551 = vst [vmem:[%s9388_s26 + $0x6b0] sm:$0xff] %v550_v22  ;;  %553 = vst [vmem:[%s9388_s26 + $0x6b8] sm:$0xff] %v552_v23  ;;  %v556_v25 = vld [vmem:[%s9383_s25 + $0x6c8] sm:$0xff]  ;;  %v558_v26 = vld [vmem:[%s9383_s25 + $0x6d0] sm:$0xff] }
  0x83   : > { %555 = vst [vmem:[%s9388_s26 + $0x6c0] sm:$0xff] %v554_v24  ;;  %557 = vst [vmem:[%s9388_s26 + $0x6c8] sm:$0xff] %v556_v25  ;;  %v560_v27 = vld [vmem:[%s9383_s25 + $0x6d8] sm:$0xff]  ;;  %v562_v28 = vld [vmem:[%s9383_s25 + $0x6e0] sm:$0xff] }
  0x84   : > { %559 = vst [vmem:[%s9388_s26 + $0x6d0] sm:$0xff] %v558_v26  ;;  %v564_v29 = vld [vmem:[%s9383_s25 + $0x6e8] sm:$0xff]  ;;  %561 = vst [vmem:[%s9388_s26 + $0x6d8] sm:$0xff] %v560_v27  ;;  %v566_v30 = vld [vmem:[%s9383_s25 + $0x6f0] sm:$0xff] }
  0x85   : > { %563 = vst [vmem:[%s9388_s26 + $0x6e0] sm:$0xff] %v562_v28  ;;  %565 = vst [vmem:[%s9388_s26 + $0x6e8] sm:$0xff] %v564_v29  ;;  %v568_v31 = vld [vmem:[%s9383_s25 + $0x6f8] sm:$0xff]  ;;  %v570_v32 = vld [vmem:[%s9383_s25 + $0x700] sm:$0xff] }
  0x86   : > { %567 = vst [vmem:[%s9388_s26 + $0x6f0] sm:$0xff] %v566_v30  ;;  %569 = vst [vmem:[%s9388_s26 + $0x6f8] sm:$0xff] %v568_v31  ;;  %v572_v33 = vld [vmem:[%s9383_s25 + $0x708] sm:$0xff]  ;;  %v574_v34 = vld [vmem:[%s9383_s25 + $0x710] sm:$0xff] }
  0x87   : > { %571 = vst [vmem:[%s9388_s26 + $0x700] sm:$0xff] %v570_v32  ;;  %v576_v35 = vld [vmem:[%s9383_s25 + $0x718] sm:$0xff]  ;;  %573 = vst [vmem:[%s9388_s26 + $0x708] sm:$0xff] %v572_v33  ;;  %v578_v36 = vld [vmem:[%s9383_s25 + $0x720] sm:$0xff] }
  0x88   : > { %575 = vst [vmem:[%s9388_s26 + $0x710] sm:$0xff] %v574_v34  ;;  %577 = vst [vmem:[%s9388_s26 + $0x718] sm:$0xff] %v576_v35  ;;  %v580_v37 = vld [vmem:[%s9383_s25 + $0x728] sm:$0xff]  ;;  %v582_v38 = vld [vmem:[%s9383_s25 + $0x730] sm:$0xff] }
  0x89   : > { %579 = vst [vmem:[%s9388_s26 + $0x720] sm:$0xff] %v578_v36  ;;  %581 = vst [vmem:[%s9388_s26 + $0x728] sm:$0xff] %v580_v37  ;;  %v584_v39 = vld [vmem:[%s9383_s25 + $0x738] sm:$0xff]  ;;  %v586_v40 = vld [vmem:[%s9383_s25 + $0x740] sm:$0xff] }
  0x8a   : > { %583 = vst [vmem:[%s9388_s26 + $0x730] sm:$0xff] %v582_v38  ;;  %v588_v41 = vld [vmem:[%s9383_s25 + $0x748] sm:$0xff]  ;;  %585 = vst [vmem:[%s9388_s26 + $0x738] sm:$0xff] %v584_v39  ;;  %v590_v42 = vld [vmem:[%s9383_s25 + $0x750] sm:$0xff] }
  0x8b   : > { %587 = vst [vmem:[%s9388_s26 + $0x740] sm:$0xff] %v586_v40  ;;  %589 = vst [vmem:[%s9388_s26 + $0x748] sm:$0xff] %v588_v41  ;;  %v592_v43 = vld [vmem:[%s9383_s25 + $0x758] sm:$0xff]  ;;  %v594_v44 = vld [vmem:[%s9383_s25 + $0x760] sm:$0xff] }
  0x8c   : > { %591 = vst [vmem:[%s9388_s26 + $0x750] sm:$0xff] %v590_v42  ;;  %593 = vst [vmem:[%s9388_s26 + $0x758] sm:$0xff] %v592_v43  ;;  %v596_v45 = vld [vmem:[%s9383_s25 + $0x768] sm:$0xff]  ;;  %v598_v46 = vld [vmem:[%s9383_s25 + $0x770] sm:$0xff] }
  0x8d   : > { %595 = vst [vmem:[%s9388_s26 + $0x760] sm:$0xff] %v594_v44  ;;  %v600_v47 = vld [vmem:[%s9383_s25 + $0x778] sm:$0xff]  ;;  %597 = vst [vmem:[%s9388_s26 + $0x768] sm:$0xff] %v596_v45  ;;  %v602_v48 = vld [vmem:[%s9383_s25 + $0x780] sm:$0xff] }
  0x8e   : > { %599 = vst [vmem:[%s9388_s26 + $0x770] sm:$0xff] %v598_v46  ;;  %601 = vst [vmem:[%s9388_s26 + $0x778] sm:$0xff] %v600_v47  ;;  %v604_v49 = vld [vmem:[%s9383_s25 + $0x788] sm:$0xff]  ;;  %v606_v50 = vld [vmem:[%s9383_s25 + $0x790] sm:$0xff] }
  0x8f   : > { %603 = vst [vmem:[%s9388_s26 + $0x780] sm:$0xff] %v602_v48  ;;  %605 = vst [vmem:[%s9388_s26 + $0x788] sm:$0xff] %v604_v49  ;;  %v608_v51 = vld [vmem:[%s9383_s25 + $0x798] sm:$0xff]  ;;  %v610_v52 = vld [vmem:[%s9383_s25 + $0x7a0] sm:$0xff] }
  0x90   : > { %607 = vst [vmem:[%s9388_s26 + $0x790] sm:$0xff] %v606_v50  ;;  %v612_v53 = vld [vmem:[%s9383_s25 + $0x7a8] sm:$0xff]  ;;  %609 = vst [vmem:[%s9388_s26 + $0x798] sm:$0xff] %v608_v51  ;;  %v614_v54 = vld [vmem:[%s9383_s25 + $0x7b0] sm:$0xff] }
  0x91   : > { %611 = vst [vmem:[%s9388_s26 + $0x7a0] sm:$0xff] %v610_v52  ;;  %613 = vst [vmem:[%s9388_s26 + $0x7a8] sm:$0xff] %v612_v53  ;;  %v616_v55 = vld [vmem:[%s9383_s25 + $0x7b8] sm:$0xff]  ;;  %v618_v56 = vld [vmem:[%s9383_s25 + $0x7c0] sm:$0xff] }
  0x92   : > { %615 = vst [vmem:[%s9388_s26 + $0x7b0] sm:$0xff] %v614_v54  ;;  %617 = vst [vmem:[%s9388_s26 + $0x7b8] sm:$0xff] %v616_v55  ;;  %v620_v57 = vld [vmem:[%s9383_s25 + $0x7c8] sm:$0xff]  ;;  %v622_v58 = vld [vmem:[%s9383_s25 + $0x7d0] sm:$0xff] }
  0x93   : > { %619 = vst [vmem:[%s9388_s26 + $0x7c0] sm:$0xff] %v618_v56  ;;  %v624_v59 = vld [vmem:[%s9383_s25 + $0x7d8] sm:$0xff]  ;;  %621 = vst [vmem:[%s9388_s26 + $0x7c8] sm:$0xff] %v620_v57  ;;  %v626_v60 = vld [vmem:[%s9383_s25 + $0x7e0] sm:$0xff] }
  0x94   : > { %623 = vst [vmem:[%s9388_s26 + $0x7d0] sm:$0xff] %v622_v58  ;;  %625 = vst [vmem:[%s9388_s26 + $0x7d8] sm:$0xff] %v624_v59  ;;  %v628_v61 = vld [vmem:[%s9383_s25 + $0x7e8] sm:$0xff]  ;;  %v630_v62 = vld [vmem:[%s9383_s25 + $0x7f0] sm:$0xff] }
  0x95   : > { %627 = vst [vmem:[%s9388_s26 + $0x7e0] sm:$0xff] %v626_v60  ;;  %629 = vst [vmem:[%s9388_s26 + $0x7e8] sm:$0xff] %v628_v61  ;;  %v632_v63 = vld [vmem:[%s9383_s25 + $0x7f8] sm:$0xff]  ;;  %v634_v0 = vld [vmem:[%s9383_s25 + $0x1000] sm:$0xff] }
  0x96   : > { %631 = vst [vmem:[%s9388_s26 + $0x7f0] sm:$0xff] %v630_v62  ;;  %v636_v1 = vld [vmem:[%s9383_s25 + $0x1008] sm:$0xff]  ;;  %633 = vst [vmem:[%s9388_s26 + $0x7f8] sm:$0xff] %v632_v63  ;;  %v638_v2 = vld [vmem:[%s9383_s25 + $0x1010] sm:$0xff] }
  0x97   : > { %635 = vst [vmem:[%s9388_s26 + $0x800] sm:$0xff] %v634_v0  ;;  %637 = vst [vmem:[%s9388_s26 + $0x808] sm:$0xff] %v636_v1  ;;  %v640_v3 = vld [vmem:[%s9383_s25 + $0x1018] sm:$0xff]  ;;  %v642_v4 = vld [vmem:[%s9383_s25 + $0x1020] sm:$0xff] }
  0x98   : > { %639 = vst [vmem:[%s9388_s26 + $0x810] sm:$0xff] %v638_v2  ;;  %641 = vst [vmem:[%s9388_s26 + $0x818] sm:$0xff] %v640_v3  ;;  %v644_v5 = vld [vmem:[%s9383_s25 + $0x1028] sm:$0xff]  ;;  %v646_v6 = vld [vmem:[%s9383_s25 + $0x1030] sm:$0xff] }
  0x99   : > { %643 = vst [vmem:[%s9388_s26 + $0x820] sm:$0xff] %v642_v4  ;;  %v648_v7 = vld [vmem:[%s9383_s25 + $0x1038] sm:$0xff]  ;;  %645 = vst [vmem:[%s9388_s26 + $0x828] sm:$0xff] %v644_v5  ;;  %v650_v8 = vld [vmem:[%s9383_s25 + $0x1040] sm:$0xff] }
  0x9a   : > { %647 = vst [vmem:[%s9388_s26 + $0x830] sm:$0xff] %v646_v6  ;;  %649 = vst [vmem:[%s9388_s26 + $0x838] sm:$0xff] %v648_v7  ;;  %v652_v9 = vld [vmem:[%s9383_s25 + $0x1048] sm:$0xff]  ;;  %v654_v10 = vld [vmem:[%s9383_s25 + $0x1050] sm:$0xff] }
  0x9b   : > { %651 = vst [vmem:[%s9388_s26 + $0x840] sm:$0xff] %v650_v8  ;;  %653 = vst [vmem:[%s9388_s26 + $0x848] sm:$0xff] %v652_v9  ;;  %v656_v11 = vld [vmem:[%s9383_s25 + $0x1058] sm:$0xff]  ;;  %v658_v12 = vld [vmem:[%s9383_s25 + $0x1060] sm:$0xff] }
  0x9c   : > { %655 = vst [vmem:[%s9388_s26 + $0x850] sm:$0xff] %v654_v10  ;;  %v660_v13 = vld [vmem:[%s9383_s25 + $0x1068] sm:$0xff]  ;;  %657 = vst [vmem:[%s9388_s26 + $0x858] sm:$0xff] %v656_v11  ;;  %v662_v14 = vld [vmem:[%s9383_s25 + $0x1070] sm:$0xff] }
  0x9d   : > { %659 = vst [vmem:[%s9388_s26 + $0x860] sm:$0xff] %v658_v12  ;;  %661 = vst [vmem:[%s9388_s26 + $0x868] sm:$0xff] %v660_v13  ;;  %v664_v15 = vld [vmem:[%s9383_s25 + $0x1078] sm:$0xff]  ;;  %v666_v16 = vld [vmem:[%s9383_s25 + $0x1080] sm:$0xff] }
  0x9e   : > { %663 = vst [vmem:[%s9388_s26 + $0x870] sm:$0xff] %v662_v14  ;;  %665 = vst [vmem:[%s9388_s26 + $0x878] sm:$0xff] %v664_v15  ;;  %v668_v17 = vld [vmem:[%s9383_s25 + $0x1088] sm:$0xff]  ;;  %v670_v18 = vld [vmem:[%s9383_s25 + $0x1090] sm:$0xff] }
  0x9f   : > { %667 = vst [vmem:[%s9388_s26 + $0x880] sm:$0xff] %v666_v16  ;;  %v672_v19 = vld [vmem:[%s9383_s25 + $0x1098] sm:$0xff]  ;;  %669 = vst [vmem:[%s9388_s26 + $0x888] sm:$0xff] %v668_v17  ;;  %v674_v20 = vld [vmem:[%s9383_s25 + $0x10a0] sm:$0xff] }
  0xa0   : > { %671 = vst [vmem:[%s9388_s26 + $0x890] sm:$0xff] %v670_v18  ;;  %673 = vst [vmem:[%s9388_s26 + $0x898] sm:$0xff] %v672_v19  ;;  %v676_v21 = vld [vmem:[%s9383_s25 + $0x10a8] sm:$0xff]  ;;  %v678_v22 = vld [vmem:[%s9383_s25 + $0x10b0] sm:$0xff] }
  0xa1   : > { %675 = vst [vmem:[%s9388_s26 + $0x8a0] sm:$0xff] %v674_v20  ;;  %677 = vst [vmem:[%s9388_s26 + $0x8a8] sm:$0xff] %v676_v21  ;;  %v680_v23 = vld [vmem:[%s9383_s25 + $0x10b8] sm:$0xff]  ;;  %v682_v24 = vld [vmem:[%s9383_s25 + $0x10c0] sm:$0xff] }
  0xa2   : > { %679 = vst [vmem:[%s9388_s26 + $0x8b0] sm:$0xff] %v678_v22  ;;  %v684_v25 = vld [vmem:[%s9383_s25 + $0x10c8] sm:$0xff]  ;;  %681 = vst [vmem:[%s9388_s26 + $0x8b8] sm:$0xff] %v680_v23  ;;  %v686_v26 = vld [vmem:[%s9383_s25 + $0x10d0] sm:$0xff] }
  0xa3   : > { %683 = vst [vmem:[%s9388_s26 + $0x8c0] sm:$0xff] %v682_v24  ;;  %685 = vst [vmem:[%s9388_s26 + $0x8c8] sm:$0xff] %v684_v25  ;;  %v688_v27 = vld [vmem:[%s9383_s25 + $0x10d8] sm:$0xff]  ;;  %v690_v28 = vld [vmem:[%s9383_s25 + $0x10e0] sm:$0xff] }
  0xa4   : > { %687 = vst [vmem:[%s9388_s26 + $0x8d0] sm:$0xff] %v686_v26  ;;  %689 = vst [vmem:[%s9388_s26 + $0x8d8] sm:$0xff] %v688_v27  ;;  %v692_v29 = vld [vmem:[%s9383_s25 + $0x10e8] sm:$0xff]  ;;  %v694_v30 = vld [vmem:[%s9383_s25 + $0x10f0] sm:$0xff] }
  0xa5   : > { %691 = vst [vmem:[%s9388_s26 + $0x8e0] sm:$0xff] %v690_v28  ;;  %v696_v31 = vld [vmem:[%s9383_s25 + $0x10f8] sm:$0xff]  ;;  %693 = vst [vmem:[%s9388_s26 + $0x8e8] sm:$0xff] %v692_v29  ;;  %v698_v32 = vld [vmem:[%s9383_s25 + $0x1100] sm:$0xff] }
  0xa6   : > { %695 = vst [vmem:[%s9388_s26 + $0x8f0] sm:$0xff] %v694_v30  ;;  %697 = vst [vmem:[%s9388_s26 + $0x8f8] sm:$0xff] %v696_v31  ;;  %v700_v33 = vld [vmem:[%s9383_s25 + $0x1108] sm:$0xff]  ;;  %v702_v34 = vld [vmem:[%s9383_s25 + $0x1110] sm:$0xff] }
  0xa7   : > { %699 = vst [vmem:[%s9388_s26 + $0x900] sm:$0xff] %v698_v32  ;;  %701 = vst [vmem:[%s9388_s26 + $0x908] sm:$0xff] %v700_v33  ;;  %v704_v35 = vld [vmem:[%s9383_s25 + $0x1118] sm:$0xff]  ;;  %v706_v36 = vld [vmem:[%s9383_s25 + $0x1120] sm:$0xff] }
  0xa8   : > { %703 = vst [vmem:[%s9388_s26 + $0x910] sm:$0xff] %v702_v34  ;;  %v708_v37 = vld [vmem:[%s9383_s25 + $0x1128] sm:$0xff]  ;;  %705 = vst [vmem:[%s9388_s26 + $0x918] sm:$0xff] %v704_v35  ;;  %v710_v38 = vld [vmem:[%s9383_s25 + $0x1130] sm:$0xff] }
  0xa9   : > { %707 = vst [vmem:[%s9388_s26 + $0x920] sm:$0xff] %v706_v36  ;;  %709 = vst [vmem:[%s9388_s26 + $0x928] sm:$0xff] %v708_v37  ;;  %v712_v39 = vld [vmem:[%s9383_s25 + $0x1138] sm:$0xff]  ;;  %v714_v40 = vld [vmem:[%s9383_s25 + $0x1140] sm:$0xff] }
  0xaa   : > { %711 = vst [vmem:[%s9388_s26 + $0x930] sm:$0xff] %v710_v38  ;;  %713 = vst [vmem:[%s9388_s26 + $0x938] sm:$0xff] %v712_v39  ;;  %v716_v41 = vld [vmem:[%s9383_s25 + $0x1148] sm:$0xff]  ;;  %v718_v42 = vld [vmem:[%s9383_s25 + $0x1150] sm:$0xff] }
  0xab   : > { %715 = vst [vmem:[%s9388_s26 + $0x940] sm:$0xff] %v714_v40  ;;  %v720_v43 = vld [vmem:[%s9383_s25 + $0x1158] sm:$0xff]  ;;  %717 = vst [vmem:[%s9388_s26 + $0x948] sm:$0xff] %v716_v41  ;;  %v722_v44 = vld [vmem:[%s9383_s25 + $0x1160] sm:$0xff] }
  0xac   : > { %719 = vst [vmem:[%s9388_s26 + $0x950] sm:$0xff] %v718_v42  ;;  %721 = vst [vmem:[%s9388_s26 + $0x958] sm:$0xff] %v720_v43  ;;  %v724_v45 = vld [vmem:[%s9383_s25 + $0x1168] sm:$0xff]  ;;  %v726_v46 = vld [vmem:[%s9383_s25 + $0x1170] sm:$0xff] }
  0xad   : > { %723 = vst [vmem:[%s9388_s26 + $0x960] sm:$0xff] %v722_v44  ;;  %725 = vst [vmem:[%s9388_s26 + $0x968] sm:$0xff] %v724_v45  ;;  %v728_v47 = vld [vmem:[%s9383_s25 + $0x1178] sm:$0xff]  ;;  %v730_v48 = vld [vmem:[%s9383_s25 + $0x1180] sm:$0xff] }
  0xae   : > { %727 = vst [vmem:[%s9388_s26 + $0x970] sm:$0xff] %v726_v46  ;;  %v732_v49 = vld [vmem:[%s9383_s25 + $0x1188] sm:$0xff]  ;;  %729 = vst [vmem:[%s9388_s26 + $0x978] sm:$0xff] %v728_v47  ;;  %v734_v50 = vld [vmem:[%s9383_s25 + $0x1190] sm:$0xff] }
  0xaf   : > { %731 = vst [vmem:[%s9388_s26 + $0x980] sm:$0xff] %v730_v48  ;;  %733 = vst [vmem:[%s9388_s26 + $0x988] sm:$0xff] %v732_v49  ;;  %v736_v51 = vld [vmem:[%s9383_s25 + $0x1198] sm:$0xff]  ;;  %v738_v52 = vld [vmem:[%s9383_s25 + $0x11a0] sm:$0xff] }
  0xb0   : > { %735 = vst [vmem:[%s9388_s26 + $0x990] sm:$0xff] %v734_v50  ;;  %737 = vst [vmem:[%s9388_s26 + $0x998] sm:$0xff] %v736_v51  ;;  %v740_v53 = vld [vmem:[%s9383_s25 + $0x11a8] sm:$0xff]  ;;  %v742_v54 = vld [vmem:[%s9383_s25 + $0x11b0] sm:$0xff] }
  0xb1   : > { %739 = vst [vmem:[%s9388_s26 + $0x9a0] sm:$0xff] %v738_v52  ;;  %v744_v55 = vld [vmem:[%s9383_s25 + $0x11b8] sm:$0xff]  ;;  %741 = vst [vmem:[%s9388_s26 + $0x9a8] sm:$0xff] %v740_v53  ;;  %v746_v56 = vld [vmem:[%s9383_s25 + $0x11c0] sm:$0xff] }
  0xb2   : > { %743 = vst [vmem:[%s9388_s26 + $0x9b0] sm:$0xff] %v742_v54  ;;  %745 = vst [vmem:[%s9388_s26 + $0x9b8] sm:$0xff] %v744_v55  ;;  %v748_v57 = vld [vmem:[%s9383_s25 + $0x11c8] sm:$0xff]  ;;  %v750_v58 = vld [vmem:[%s9383_s25 + $0x11d0] sm:$0xff] }
  0xb3   : > { %747 = vst [vmem:[%s9388_s26 + $0x9c0] sm:$0xff] %v746_v56  ;;  %749 = vst [vmem:[%s9388_s26 + $0x9c8] sm:$0xff] %v748_v57  ;;  %v752_v59 = vld [vmem:[%s9383_s25 + $0x11d8] sm:$0xff]  ;;  %v754_v60 = vld [vmem:[%s9383_s25 + $0x11e0] sm:$0xff] }
  0xb4   : > { %751 = vst [vmem:[%s9388_s26 + $0x9d0] sm:$0xff] %v750_v58  ;;  %v756_v61 = vld [vmem:[%s9383_s25 + $0x11e8] sm:$0xff]  ;;  %753 = vst [vmem:[%s9388_s26 + $0x9d8] sm:$0xff] %v752_v59  ;;  %v758_v62 = vld [vmem:[%s9383_s25 + $0x11f0] sm:$0xff] }
  0xb5   : > { %755 = vst [vmem:[%s9388_s26 + $0x9e0] sm:$0xff] %v754_v60  ;;  %757 = vst [vmem:[%s9388_s26 + $0x9e8] sm:$0xff] %v756_v61  ;;  %v760_v63 = vld [vmem:[%s9383_s25 + $0x11f8] sm:$0xff]  ;;  %v762_v0 = vld [vmem:[%s9383_s25 + $0x1200] sm:$0xff] }
  0xb6   : > { %759 = vst [vmem:[%s9388_s26 + $0x9f0] sm:$0xff] %v758_v62  ;;  %761 = vst [vmem:[%s9388_s26 + $0x9f8] sm:$0xff] %v760_v63  ;;  %v764_v1 = vld [vmem:[%s9383_s25 + $0x1208] sm:$0xff]  ;;  %v766_v2 = vld [vmem:[%s9383_s25 + $0x1210] sm:$0xff] }
  0xb7   : > { %763 = vst [vmem:[%s9388_s26 + $0xa00] sm:$0xff] %v762_v0  ;;  %v768_v3 = vld [vmem:[%s9383_s25 + $0x1218] sm:$0xff]  ;;  %765 = vst [vmem:[%s9388_s26 + $0xa08] sm:$0xff] %v764_v1  ;;  %v770_v4 = vld [vmem:[%s9383_s25 + $0x1220] sm:$0xff] }
  0xb8   : > { %767 = vst [vmem:[%s9388_s26 + $0xa10] sm:$0xff] %v766_v2  ;;  %769 = vst [vmem:[%s9388_s26 + $0xa18] sm:$0xff] %v768_v3  ;;  %v772_v5 = vld [vmem:[%s9383_s25 + $0x1228] sm:$0xff]  ;;  %v774_v6 = vld [vmem:[%s9383_s25 + $0x1230] sm:$0xff] }
  0xb9   : > { %771 = vst [vmem:[%s9388_s26 + $0xa20] sm:$0xff] %v770_v4  ;;  %773 = vst [vmem:[%s9388_s26 + $0xa28] sm:$0xff] %v772_v5  ;;  %v776_v7 = vld [vmem:[%s9383_s25 + $0x1238] sm:$0xff]  ;;  %v778_v8 = vld [vmem:[%s9383_s25 + $0x1240] sm:$0xff] }
  0xba   : > { %775 = vst [vmem:[%s9388_s26 + $0xa30] sm:$0xff] %v774_v6  ;;  %v780_v9 = vld [vmem:[%s9383_s25 + $0x1248] sm:$0xff]  ;;  %777 = vst [vmem:[%s9388_s26 + $0xa38] sm:$0xff] %v776_v7  ;;  %v782_v10 = vld [vmem:[%s9383_s25 + $0x1250] sm:$0xff] }
  0xbb   : > { %779 = vst [vmem:[%s9388_s26 + $0xa40] sm:$0xff] %v778_v8  ;;  %781 = vst [vmem:[%s9388_s26 + $0xa48] sm:$0xff] %v780_v9  ;;  %v784_v11 = vld [vmem:[%s9383_s25 + $0x1258] sm:$0xff]  ;;  %v786_v12 = vld [vmem:[%s9383_s25 + $0x1260] sm:$0xff] }
  0xbc   : > { %783 = vst [vmem:[%s9388_s26 + $0xa50] sm:$0xff] %v782_v10  ;;  %785 = vst [vmem:[%s9388_s26 + $0xa58] sm:$0xff] %v784_v11  ;;  %v788_v13 = vld [vmem:[%s9383_s25 + $0x1268] sm:$0xff]  ;;  %v790_v14 = vld [vmem:[%s9383_s25 + $0x1270] sm:$0xff] }
  0xbd   : > { %787 = vst [vmem:[%s9388_s26 + $0xa60] sm:$0xff] %v786_v12  ;;  %v792_v15 = vld [vmem:[%s9383_s25 + $0x1278] sm:$0xff]  ;;  %789 = vst [vmem:[%s9388_s26 + $0xa68] sm:$0xff] %v788_v13  ;;  %v794_v16 = vld [vmem:[%s9383_s25 + $0x1280] sm:$0xff] }
  0xbe   : > { %791 = vst [vmem:[%s9388_s26 + $0xa70] sm:$0xff] %v790_v14  ;;  %793 = vst [vmem:[%s9388_s26 + $0xa78] sm:$0xff] %v792_v15  ;;  %v796_v17 = vld [vmem:[%s9383_s25 + $0x1288] sm:$0xff]  ;;  %v798_v18 = vld [vmem:[%s9383_s25 + $0x1290] sm:$0xff] }
  0xbf   : > { %795 = vst [vmem:[%s9388_s26 + $0xa80] sm:$0xff] %v794_v16  ;;  %797 = vst [vmem:[%s9388_s26 + $0xa88] sm:$0xff] %v796_v17  ;;  %v800_v19 = vld [vmem:[%s9383_s25 + $0x1298] sm:$0xff]  ;;  %v802_v20 = vld [vmem:[%s9383_s25 + $0x12a0] sm:$0xff] }
  0xc0   : > { %799 = vst [vmem:[%s9388_s26 + $0xa90] sm:$0xff] %v798_v18  ;;  %v804_v21 = vld [vmem:[%s9383_s25 + $0x12a8] sm:$0xff]  ;;  %801 = vst [vmem:[%s9388_s26 + $0xa98] sm:$0xff] %v800_v19  ;;  %v806_v22 = vld [vmem:[%s9383_s25 + $0x12b0] sm:$0xff] }
  0xc1   : > { %803 = vst [vmem:[%s9388_s26 + $0xaa0] sm:$0xff] %v802_v20  ;;  %805 = vst [vmem:[%s9388_s26 + $0xaa8] sm:$0xff] %v804_v21  ;;  %v808_v23 = vld [vmem:[%s9383_s25 + $0x12b8] sm:$0xff]  ;;  %v810_v24 = vld [vmem:[%s9383_s25 + $0x12c0] sm:$0xff] }
  0xc2   : > { %807 = vst [vmem:[%s9388_s26 + $0xab0] sm:$0xff] %v806_v22  ;;  %809 = vst [vmem:[%s9388_s26 + $0xab8] sm:$0xff] %v808_v23  ;;  %v812_v25 = vld [vmem:[%s9383_s25 + $0x12c8] sm:$0xff]  ;;  %v814_v26 = vld [vmem:[%s9383_s25 + $0x12d0] sm:$0xff] }
  0xc3   : > { %811 = vst [vmem:[%s9388_s26 + $0xac0] sm:$0xff] %v810_v24  ;;  %v816_v27 = vld [vmem:[%s9383_s25 + $0x12d8] sm:$0xff]  ;;  %813 = vst [vmem:[%s9388_s26 + $0xac8] sm:$0xff] %v812_v25  ;;  %v818_v28 = vld [vmem:[%s9383_s25 + $0x12e0] sm:$0xff] }
  0xc4   : > { %815 = vst [vmem:[%s9388_s26 + $0xad0] sm:$0xff] %v814_v26  ;;  %817 = vst [vmem:[%s9388_s26 + $0xad8] sm:$0xff] %v816_v27  ;;  %v820_v29 = vld [vmem:[%s9383_s25 + $0x12e8] sm:$0xff]  ;;  %v822_v30 = vld [vmem:[%s9383_s25 + $0x12f0] sm:$0xff] }
  0xc5   : > { %819 = vst [vmem:[%s9388_s26 + $0xae0] sm:$0xff] %v818_v28  ;;  %821 = vst [vmem:[%s9388_s26 + $0xae8] sm:$0xff] %v820_v29  ;;  %v824_v31 = vld [vmem:[%s9383_s25 + $0x12f8] sm:$0xff]  ;;  %v826_v32 = vld [vmem:[%s9383_s25 + $0x1300] sm:$0xff] }
  0xc6   : > { %823 = vst [vmem:[%s9388_s26 + $0xaf0] sm:$0xff] %v822_v30  ;;  %v828_v33 = vld [vmem:[%s9383_s25 + $0x1308] sm:$0xff]  ;;  %825 = vst [vmem:[%s9388_s26 + $0xaf8] sm:$0xff] %v824_v31  ;;  %v830_v34 = vld [vmem:[%s9383_s25 + $0x1310] sm:$0xff] }
  0xc7   : > { %827 = vst [vmem:[%s9388_s26 + $0xb00] sm:$0xff] %v826_v32  ;;  %829 = vst [vmem:[%s9388_s26 + $0xb08] sm:$0xff] %v828_v33  ;;  %v832_v35 = vld [vmem:[%s9383_s25 + $0x1318] sm:$0xff]  ;;  %v834_v36 = vld [vmem:[%s9383_s25 + $0x1320] sm:$0xff] }
  0xc8   : > { %831 = vst [vmem:[%s9388_s26 + $0xb10] sm:$0xff] %v830_v34  ;;  %833 = vst [vmem:[%s9388_s26 + $0xb18] sm:$0xff] %v832_v35  ;;  %v836_v37 = vld [vmem:[%s9383_s25 + $0x1328] sm:$0xff]  ;;  %v838_v38 = vld [vmem:[%s9383_s25 + $0x1330] sm:$0xff] }
  0xc9   : > { %835 = vst [vmem:[%s9388_s26 + $0xb20] sm:$0xff] %v834_v36  ;;  %v840_v39 = vld [vmem:[%s9383_s25 + $0x1338] sm:$0xff]  ;;  %837 = vst [vmem:[%s9388_s26 + $0xb28] sm:$0xff] %v836_v37  ;;  %v842_v40 = vld [vmem:[%s9383_s25 + $0x1340] sm:$0xff] }
  0xca   : > { %839 = vst [vmem:[%s9388_s26 + $0xb30] sm:$0xff] %v838_v38  ;;  %841 = vst [vmem:[%s9388_s26 + $0xb38] sm:$0xff] %v840_v39  ;;  %v844_v41 = vld [vmem:[%s9383_s25 + $0x1348] sm:$0xff]  ;;  %v846_v42 = vld [vmem:[%s9383_s25 + $0x1350] sm:$0xff] }
  0xcb   : > { %843 = vst [vmem:[%s9388_s26 + $0xb40] sm:$0xff] %v842_v40  ;;  %845 = vst [vmem:[%s9388_s26 + $0xb48] sm:$0xff] %v844_v41  ;;  %v848_v43 = vld [vmem:[%s9383_s25 + $0x1358] sm:$0xff]  ;;  %v850_v44 = vld [vmem:[%s9383_s25 + $0x1360] sm:$0xff] }
  0xcc   : > { %847 = vst [vmem:[%s9388_s26 + $0xb50] sm:$0xff] %v846_v42  ;;  %v852_v45 = vld [vmem:[%s9383_s25 + $0x1368] sm:$0xff]  ;;  %849 = vst [vmem:[%s9388_s26 + $0xb58] sm:$0xff] %v848_v43  ;;  %v854_v46 = vld [vmem:[%s9383_s25 + $0x1370] sm:$0xff] }
  0xcd   : > { %851 = vst [vmem:[%s9388_s26 + $0xb60] sm:$0xff] %v850_v44  ;;  %853 = vst [vmem:[%s9388_s26 + $0xb68] sm:$0xff] %v852_v45  ;;  %v856_v47 = vld [vmem:[%s9383_s25 + $0x1378] sm:$0xff]  ;;  %v858_v48 = vld [vmem:[%s9383_s25 + $0x1380] sm:$0xff] }
  0xce   : > { %855 = vst [vmem:[%s9388_s26 + $0xb70] sm:$0xff] %v854_v46  ;;  %857 = vst [vmem:[%s9388_s26 + $0xb78] sm:$0xff] %v856_v47  ;;  %v860_v49 = vld [vmem:[%s9383_s25 + $0x1388] sm:$0xff]  ;;  %v862_v50 = vld [vmem:[%s9383_s25 + $0x1390] sm:$0xff] }
  0xcf   : > { %859 = vst [vmem:[%s9388_s26 + $0xb80] sm:$0xff] %v858_v48  ;;  %v864_v51 = vld [vmem:[%s9383_s25 + $0x1398] sm:$0xff]  ;;  %861 = vst [vmem:[%s9388_s26 + $0xb88] sm:$0xff] %v860_v49  ;;  %v866_v52 = vld [vmem:[%s9383_s25 + $0x13a0] sm:$0xff] }
  0xd0   : > { %863 = vst [vmem:[%s9388_s26 + $0xb90] sm:$0xff] %v862_v50  ;;  %865 = vst [vmem:[%s9388_s26 + $0xb98] sm:$0xff] %v864_v51  ;;  %v868_v53 = vld [vmem:[%s9383_s25 + $0x13a8] sm:$0xff]  ;;  %v870_v54 = vld [vmem:[%s9383_s25 + $0x13b0] sm:$0xff] }
  0xd1   : > { %867 = vst [vmem:[%s9388_s26 + $0xba0] sm:$0xff] %v866_v52  ;;  %869 = vst [vmem:[%s9388_s26 + $0xba8] sm:$0xff] %v868_v53  ;;  %v872_v55 = vld [vmem:[%s9383_s25 + $0x13b8] sm:$0xff]  ;;  %v874_v56 = vld [vmem:[%s9383_s25 + $0x13c0] sm:$0xff] }
  0xd2   : > { %871 = vst [vmem:[%s9388_s26 + $0xbb0] sm:$0xff] %v870_v54  ;;  %v876_v57 = vld [vmem:[%s9383_s25 + $0x13c8] sm:$0xff]  ;;  %873 = vst [vmem:[%s9388_s26 + $0xbb8] sm:$0xff] %v872_v55  ;;  %v878_v58 = vld [vmem:[%s9383_s25 + $0x13d0] sm:$0xff] }
  0xd3   : > { %875 = vst [vmem:[%s9388_s26 + $0xbc0] sm:$0xff] %v874_v56  ;;  %877 = vst [vmem:[%s9388_s26 + $0xbc8] sm:$0xff] %v876_v57  ;;  %v880_v59 = vld [vmem:[%s9383_s25 + $0x13d8] sm:$0xff]  ;;  %v882_v60 = vld [vmem:[%s9383_s25 + $0x13e0] sm:$0xff] }
  0xd4   : > { %879 = vst [vmem:[%s9388_s26 + $0xbd0] sm:$0xff] %v878_v58  ;;  %881 = vst [vmem:[%s9388_s26 + $0xbd8] sm:$0xff] %v880_v59  ;;  %v884_v61 = vld [vmem:[%s9383_s25 + $0x13e8] sm:$0xff]  ;;  %v886_v62 = vld [vmem:[%s9383_s25 + $0x13f0] sm:$0xff] }
  0xd5   : > { %883 = vst [vmem:[%s9388_s26 + $0xbe0] sm:$0xff] %v882_v60  ;;  %v888_v63 = vld [vmem:[%s9383_s25 + $0x13f8] sm:$0xff]  ;;  %885 = vst [vmem:[%s9388_s26 + $0xbe8] sm:$0xff] %v884_v61  ;;  %v890_v0 = vld [vmem:[%s9383_s25 + $0x1400] sm:$0xff] }
  0xd6   : > { %887 = vst [vmem:[%s9388_s26 + $0xbf0] sm:$0xff] %v886_v62  ;;  %889 = vst [vmem:[%s9388_s26 + $0xbf8] sm:$0xff] %v888_v63  ;;  %v892_v1 = vld [vmem:[%s9383_s25 + $0x1408] sm:$0xff]  ;;  %v894_v2 = vld [vmem:[%s9383_s25 + $0x1410] sm:$0xff] }
  0xd7   : > { %891 = vst [vmem:[%s9388_s26 + $0xc00] sm:$0xff] %v890_v0  ;;  %893 = vst [vmem:[%s9388_s26 + $0xc08] sm:$0xff] %v892_v1  ;;  %v896_v3 = vld [vmem:[%s9383_s25 + $0x1418] sm:$0xff]  ;;  %v898_v4 = vld [vmem:[%s9383_s25 + $0x1420] sm:$0xff] }
  0xd8   : > { %895 = vst [vmem:[%s9388_s26 + $0xc10] sm:$0xff] %v894_v2  ;;  %v900_v5 = vld [vmem:[%s9383_s25 + $0x1428] sm:$0xff]  ;;  %897 = vst [vmem:[%s9388_s26 + $0xc18] sm:$0xff] %v896_v3  ;;  %v902_v6 = vld [vmem:[%s9383_s25 + $0x1430] sm:$0xff] }
  0xd9   : > { %899 = vst [vmem:[%s9388_s26 + $0xc20] sm:$0xff] %v898_v4  ;;  %901 = vst [vmem:[%s9388_s26 + $0xc28] sm:$0xff] %v900_v5  ;;  %v904_v7 = vld [vmem:[%s9383_s25 + $0x1438] sm:$0xff]  ;;  %v906_v8 = vld [vmem:[%s9383_s25 + $0x1440] sm:$0xff] }
  0xda   : > { %903 = vst [vmem:[%s9388_s26 + $0xc30] sm:$0xff] %v902_v6  ;;  %905 = vst [vmem:[%s9388_s26 + $0xc38] sm:$0xff] %v904_v7  ;;  %v908_v9 = vld [vmem:[%s9383_s25 + $0x1448] sm:$0xff]  ;;  %v910_v10 = vld [vmem:[%s9383_s25 + $0x1450] sm:$0xff] }
  0xdb   : > { %907 = vst [vmem:[%s9388_s26 + $0xc40] sm:$0xff] %v906_v8  ;;  %v912_v11 = vld [vmem:[%s9383_s25 + $0x1458] sm:$0xff]  ;;  %909 = vst [vmem:[%s9388_s26 + $0xc48] sm:$0xff] %v908_v9  ;;  %v914_v12 = vld [vmem:[%s9383_s25 + $0x1460] sm:$0xff] }
  0xdc   : > { %911 = vst [vmem:[%s9388_s26 + $0xc50] sm:$0xff] %v910_v10  ;;  %913 = vst [vmem:[%s9388_s26 + $0xc58] sm:$0xff] %v912_v11  ;;  %v916_v13 = vld [vmem:[%s9383_s25 + $0x1468] sm:$0xff]  ;;  %v918_v14 = vld [vmem:[%s9383_s25 + $0x1470] sm:$0xff] }
  0xdd   : > { %915 = vst [vmem:[%s9388_s26 + $0xc60] sm:$0xff] %v914_v12  ;;  %917 = vst [vmem:[%s9388_s26 + $0xc68] sm:$0xff] %v916_v13  ;;  %v920_v15 = vld [vmem:[%s9383_s25 + $0x1478] sm:$0xff]  ;;  %v922_v16 = vld [vmem:[%s9383_s25 + $0x1480] sm:$0xff] }
  0xde   : > { %919 = vst [vmem:[%s9388_s26 + $0xc70] sm:$0xff] %v918_v14  ;;  %v924_v17 = vld [vmem:[%s9383_s25 + $0x1488] sm:$0xff]  ;;  %921 = vst [vmem:[%s9388_s26 + $0xc78] sm:$0xff] %v920_v15  ;;  %v926_v18 = vld [vmem:[%s9383_s25 + $0x1490] sm:$0xff] }
  0xdf   : > { %923 = vst [vmem:[%s9388_s26 + $0xc80] sm:$0xff] %v922_v16  ;;  %925 = vst [vmem:[%s9388_s26 + $0xc88] sm:$0xff] %v924_v17  ;;  %v928_v19 = vld [vmem:[%s9383_s25 + $0x1498] sm:$0xff]  ;;  %v930_v20 = vld [vmem:[%s9383_s25 + $0x14a0] sm:$0xff] }
  0xe0   : > { %927 = vst [vmem:[%s9388_s26 + $0xc90] sm:$0xff] %v926_v18  ;;  %929 = vst [vmem:[%s9388_s26 + $0xc98] sm:$0xff] %v928_v19  ;;  %v932_v21 = vld [vmem:[%s9383_s25 + $0x14a8] sm:$0xff]  ;;  %v934_v22 = vld [vmem:[%s9383_s25 + $0x14b0] sm:$0xff] }
  0xe1   : > { %931 = vst [vmem:[%s9388_s26 + $0xca0] sm:$0xff] %v930_v20  ;;  %v936_v23 = vld [vmem:[%s9383_s25 + $0x14b8] sm:$0xff]  ;;  %933 = vst [vmem:[%s9388_s26 + $0xca8] sm:$0xff] %v932_v21  ;;  %v938_v24 = vld [vmem:[%s9383_s25 + $0x14c0] sm:$0xff] }
  0xe2   : > { %935 = vst [vmem:[%s9388_s26 + $0xcb0] sm:$0xff] %v934_v22  ;;  %937 = vst [vmem:[%s9388_s26 + $0xcb8] sm:$0xff] %v936_v23  ;;  %v940_v25 = vld [vmem:[%s9383_s25 + $0x14c8] sm:$0xff]  ;;  %v942_v26 = vld [vmem:[%s9383_s25 + $0x14d0] sm:$0xff] }
  0xe3   : > { %939 = vst [vmem:[%s9388_s26 + $0xcc0] sm:$0xff] %v938_v24  ;;  %941 = vst [vmem:[%s9388_s26 + $0xcc8] sm:$0xff] %v940_v25  ;;  %v944_v27 = vld [vmem:[%s9383_s25 + $0x14d8] sm:$0xff]  ;;  %v946_v28 = vld [vmem:[%s9383_s25 + $0x14e0] sm:$0xff] }
  0xe4   : > { %943 = vst [vmem:[%s9388_s26 + $0xcd0] sm:$0xff] %v942_v26  ;;  %v948_v29 = vld [vmem:[%s9383_s25 + $0x14e8] sm:$0xff]  ;;  %945 = vst [vmem:[%s9388_s26 + $0xcd8] sm:$0xff] %v944_v27  ;;  %v950_v30 = vld [vmem:[%s9383_s25 + $0x14f0] sm:$0xff] }
  0xe5   : > { %947 = vst [vmem:[%s9388_s26 + $0xce0] sm:$0xff] %v946_v28  ;;  %949 = vst [vmem:[%s9388_s26 + $0xce8] sm:$0xff] %v948_v29  ;;  %v952_v31 = vld [vmem:[%s9383_s25 + $0x14f8] sm:$0xff]  ;;  %v954_v32 = vld [vmem:[%s9383_s25 + $0x1500] sm:$0xff] }
  0xe6   : > { %951 = vst [vmem:[%s9388_s26 + $0xcf0] sm:$0xff] %v950_v30  ;;  %953 = vst [vmem:[%s9388_s26 + $0xcf8] sm:$0xff] %v952_v31  ;;  %v956_v33 = vld [vmem:[%s9383_s25 + $0x1508] sm:$0xff]  ;;  %v958_v34 = vld [vmem:[%s9383_s25 + $0x1510] sm:$0xff] }
  0xe7   : > { %955 = vst [vmem:[%s9388_s26 + $0xd00] sm:$0xff] %v954_v32  ;;  %v960_v35 = vld [vmem:[%s9383_s25 + $0x1518] sm:$0xff]  ;;  %957 = vst [vmem:[%s9388_s26 + $0xd08] sm:$0xff] %v956_v33  ;;  %v962_v36 = vld [vmem:[%s9383_s25 + $0x1520] sm:$0xff] }
  0xe8   : > { %959 = vst [vmem:[%s9388_s26 + $0xd10] sm:$0xff] %v958_v34  ;;  %961 = vst [vmem:[%s9388_s26 + $0xd18] sm:$0xff] %v960_v35  ;;  %v964_v37 = vld [vmem:[%s9383_s25 + $0x1528] sm:$0xff]  ;;  %v966_v38 = vld [vmem:[%s9383_s25 + $0x1530] sm:$0xff] }
  0xe9   : > { %963 = vst [vmem:[%s9388_s26 + $0xd20] sm:$0xff] %v962_v36  ;;  %965 = vst [vmem:[%s9388_s26 + $0xd28] sm:$0xff] %v964_v37  ;;  %v968_v39 = vld [vmem:[%s9383_s25 + $0x1538] sm:$0xff]  ;;  %v970_v40 = vld [vmem:[%s9383_s25 + $0x1540] sm:$0xff] }
  0xea   : > { %967 = vst [vmem:[%s9388_s26 + $0xd30] sm:$0xff] %v966_v38  ;;  %v972_v41 = vld [vmem:[%s9383_s25 + $0x1548] sm:$0xff]  ;;  %969 = vst [vmem:[%s9388_s26 + $0xd38] sm:$0xff] %v968_v39  ;;  %v974_v42 = vld [vmem:[%s9383_s25 + $0x1550] sm:$0xff] }
  0xeb   : > { %971 = vst [vmem:[%s9388_s26 + $0xd40] sm:$0xff] %v970_v40  ;;  %973 = vst [vmem:[%s9388_s26 + $0xd48] sm:$0xff] %v972_v41  ;;  %v976_v43 = vld [vmem:[%s9383_s25 + $0x1558] sm:$0xff]  ;;  %v978_v44 = vld [vmem:[%s9383_s25 + $0x1560] sm:$0xff] }
  0xec   : > { %975 = vst [vmem:[%s9388_s26 + $0xd50] sm:$0xff] %v974_v42  ;;  %977 = vst [vmem:[%s9388_s26 + $0xd58] sm:$0xff] %v976_v43  ;;  %v980_v45 = vld [vmem:[%s9383_s25 + $0x1568] sm:$0xff]  ;;  %v982_v46 = vld [vmem:[%s9383_s25 + $0x1570] sm:$0xff] }
  0xed   : > { %979 = vst [vmem:[%s9388_s26 + $0xd60] sm:$0xff] %v978_v44  ;;  %v984_v47 = vld [vmem:[%s9383_s25 + $0x1578] sm:$0xff]  ;;  %981 = vst [vmem:[%s9388_s26 + $0xd68] sm:$0xff] %v980_v45  ;;  %v986_v48 = vld [vmem:[%s9383_s25 + $0x1580] sm:$0xff] }
  0xee   : > { %983 = vst [vmem:[%s9388_s26 + $0xd70] sm:$0xff] %v982_v46  ;;  %985 = vst [vmem:[%s9388_s26 + $0xd78] sm:$0xff] %v984_v47  ;;  %v988_v49 = vld [vmem:[%s9383_s25 + $0x1588] sm:$0xff]  ;;  %v990_v50 = vld [vmem:[%s9383_s25 + $0x1590] sm:$0xff] }
  0xef   : > { %987 = vst [vmem:[%s9388_s26 + $0xd80] sm:$0xff] %v986_v48  ;;  %989 = vst [vmem:[%s9388_s26 + $0xd88] sm:$0xff] %v988_v49  ;;  %v992_v51 = vld [vmem:[%s9383_s25 + $0x1598] sm:$0xff]  ;;  %v994_v52 = vld [vmem:[%s9383_s25 + $0x15a0] sm:$0xff] }
  0xf0   : > { %991 = vst [vmem:[%s9388_s26 + $0xd90] sm:$0xff] %v990_v50  ;;  %v996_v53 = vld [vmem:[%s9383_s25 + $0x15a8] sm:$0xff]  ;;  %993 = vst [vmem:[%s9388_s26 + $0xd98] sm:$0xff] %v992_v51  ;;  %v998_v54 = vld [vmem:[%s9383_s25 + $0x15b0] sm:$0xff] }
  0xf1   : > { %995 = vst [vmem:[%s9388_s26 + $0xda0] sm:$0xff] %v994_v52  ;;  %997 = vst [vmem:[%s9388_s26 + $0xda8] sm:$0xff] %v996_v53  ;;  %v1000_v55 = vld [vmem:[%s9383_s25 + $0x15b8] sm:$0xff]  ;;  %v1002_v56 = vld [vmem:[%s9383_s25 + $0x15c0] sm:$0xff] }
  0xf2   : > { %999 = vst [vmem:[%s9388_s26 + $0xdb0] sm:$0xff] %v998_v54  ;;  %1001 = vst [vmem:[%s9388_s26 + $0xdb8] sm:$0xff] %v1000_v55  ;;  %v1004_v57 = vld [vmem:[%s9383_s25 + $0x15c8] sm:$0xff]  ;;  %v1006_v58 = vld [vmem:[%s9383_s25 + $0x15d0] sm:$0xff] }
  0xf3   : > { %1003 = vst [vmem:[%s9388_s26 + $0xdc0] sm:$0xff] %v1002_v56  ;;  %v1008_v59 = vld [vmem:[%s9383_s25 + $0x15d8] sm:$0xff]  ;;  %1005 = vst [vmem:[%s9388_s26 + $0xdc8] sm:$0xff] %v1004_v57  ;;  %v1010_v60 = vld [vmem:[%s9383_s25 + $0x15e0] sm:$0xff] }
  0xf4   : > { %1007 = vst [vmem:[%s9388_s26 + $0xdd0] sm:$0xff] %v1006_v58  ;;  %1009 = vst [vmem:[%s9388_s26 + $0xdd8] sm:$0xff] %v1008_v59  ;;  %v1012_v61 = vld [vmem:[%s9383_s25 + $0x15e8] sm:$0xff]  ;;  %v1014_v62 = vld [vmem:[%s9383_s25 + $0x15f0] sm:$0xff] }
  0xf5   : > { %1011 = vst [vmem:[%s9388_s26 + $0xde0] sm:$0xff] %v1010_v60  ;;  %1013 = vst [vmem:[%s9388_s26 + $0xde8] sm:$0xff] %v1012_v61  ;;  %v1016_v63 = vld [vmem:[%s9383_s25 + $0x15f8] sm:$0xff]  ;;  %v1018_v0 = vld [vmem:[%s9383_s25 + $0x1600] sm:$0xff] }
  0xf6   : > { %1015 = vst [vmem:[%s9388_s26 + $0xdf0] sm:$0xff] %v1014_v62  ;;  %v1020_v1 = vld [vmem:[%s9383_s25 + $0x1608] sm:$0xff]  ;;  %1017 = vst [vmem:[%s9388_s26 + $0xdf8] sm:$0xff] %v1016_v63  ;;  %v1022_v2 = vld [vmem:[%s9383_s25 + $0x1610] sm:$0xff] }
  0xf7   : > { %1019 = vst [vmem:[%s9388_s26 + $0xe00] sm:$0xff] %v1018_v0  ;;  %1021 = vst [vmem:[%s9388_s26 + $0xe08] sm:$0xff] %v1020_v1  ;;  %v1024_v3 = vld [vmem:[%s9383_s25 + $0x1618] sm:$0xff]  ;;  %v1026_v4 = vld [vmem:[%s9383_s25 + $0x1620] sm:$0xff] }
  0xf8   : > { %1023 = vst [vmem:[%s9388_s26 + $0xe10] sm:$0xff] %v1022_v2  ;;  %1025 = vst [vmem:[%s9388_s26 + $0xe18] sm:$0xff] %v1024_v3  ;;  %v1028_v5 = vld [vmem:[%s9383_s25 + $0x1628] sm:$0xff]  ;;  %v1030_v6 = vld [vmem:[%s9383_s25 + $0x1630] sm:$0xff] }
  0xf9   : > { %1027 = vst [vmem:[%s9388_s26 + $0xe20] sm:$0xff] %v1026_v4  ;;  %v1032_v7 = vld [vmem:[%s9383_s25 + $0x1638] sm:$0xff]  ;;  %1029 = vst [vmem:[%s9388_s26 + $0xe28] sm:$0xff] %v1028_v5  ;;  %v1034_v8 = vld [vmem:[%s9383_s25 + $0x1640] sm:$0xff] }
  0xfa   : > { %1031 = vst [vmem:[%s9388_s26 + $0xe30] sm:$0xff] %v1030_v6  ;;  %1033 = vst [vmem:[%s9388_s26 + $0xe38] sm:$0xff] %v1032_v7  ;;  %v1036_v9 = vld [vmem:[%s9383_s25 + $0x1648] sm:$0xff]  ;;  %v1038_v10 = vld [vmem:[%s9383_s25 + $0x1650] sm:$0xff] }
  0xfb   : > { %1035 = vst [vmem:[%s9388_s26 + $0xe40] sm:$0xff] %v1034_v8  ;;  %1037 = vst [vmem:[%s9388_s26 + $0xe48] sm:$0xff] %v1036_v9  ;;  %v1040_v11 = vld [vmem:[%s9383_s25 + $0x1658] sm:$0xff]  ;;  %v1042_v12 = vld [vmem:[%s9383_s25 + $0x1660] sm:$0xff] }
  0xfc   : > { %1039 = vst [vmem:[%s9388_s26 + $0xe50] sm:$0xff] %v1038_v10  ;;  %v1044_v13 = vld [vmem:[%s9383_s25 + $0x1668] sm:$0xff]  ;;  %1041 = vst [vmem:[%s9388_s26 + $0xe58] sm:$0xff] %v1040_v11  ;;  %v1046_v14 = vld [vmem:[%s9383_s25 + $0x1670] sm:$0xff] }
  0xfd   : > { %1043 = vst [vmem:[%s9388_s26 + $0xe60] sm:$0xff] %v1042_v12  ;;  %1045 = vst [vmem:[%s9388_s26 + $0xe68] sm:$0xff] %v1044_v13  ;;  %v1048_v15 = vld [vmem:[%s9383_s25 + $0x1678] sm:$0xff]  ;;  %v1050_v16 = vld [vmem:[%s9383_s25 + $0x1680] sm:$0xff] }
  0xfe   : > { %1047 = vst [vmem:[%s9388_s26 + $0xe70] sm:$0xff] %v1046_v14  ;;  %1049 = vst [vmem:[%s9388_s26 + $0xe78] sm:$0xff] %v1048_v15  ;;  %v1052_v17 = vld [vmem:[%s9383_s25 + $0x1688] sm:$0xff]  ;;  %v1054_v18 = vld [vmem:[%s9383_s25 + $0x1690] sm:$0xff] }
  0xff   : > { %1051 = vst [vmem:[%s9388_s26 + $0xe80] sm:$0xff] %v1050_v16  ;;  %v1056_v19 = vld [vmem:[%s9383_s25 + $0x1698] sm:$0xff]  ;;  %1053 = vst [vmem:[%s9388_s26 + $0xe88] sm:$0xff] %v1052_v17  ;;  %v1058_v20 = vld [vmem:[%s9383_s25 + $0x16a0] sm:$0xff] }
 0x100   : > { %1055 = vst [vmem:[%s9388_s26 + $0xe90] sm:$0xff] %v1054_v18  ;;  %1057 = vst [vmem:[%s9388_s26 + $0xe98] sm:$0xff] %v1056_v19  ;;  %v1060_v21 = vld [vmem:[%s9383_s25 + $0x16a8] sm:$0xff]  ;;  %v1062_v22 = vld [vmem:[%s9383_s25 + $0x16b0] sm:$0xff] }
 0x101   : > { %1059 = vst [vmem:[%s9388_s26 + $0xea0] sm:$0xff] %v1058_v20  ;;  %1061 = vst [vmem:[%s9388_s26 + $0xea8] sm:$0xff] %v1060_v21  ;;  %v1064_v23 = vld [vmem:[%s9383_s25 + $0x16b8] sm:$0xff]  ;;  %v1066_v24 = vld [vmem:[%s9383_s25 + $0x16c0] sm:$0xff] }
 0x102   : > { %1063 = vst [vmem:[%s9388_s26 + $0xeb0] sm:$0xff] %v1062_v22  ;;  %v1068_v25 = vld [vmem:[%s9383_s25 + $0x16c8] sm:$0xff]  ;;  %1065 = vst [vmem:[%s9388_s26 + $0xeb8] sm:$0xff] %v1064_v23  ;;  %v1070_v26 = vld [vmem:[%s9383_s25 + $0x16d0] sm:$0xff] }
 0x103   : > { %1067 = vst [vmem:[%s9388_s26 + $0xec0] sm:$0xff] %v1066_v24  ;;  %1069 = vst [vmem:[%s9388_s26 + $0xec8] sm:$0xff] %v1068_v25  ;;  %v1072_v27 = vld [vmem:[%s9383_s25 + $0x16d8] sm:$0xff]  ;;  %v1074_v28 = vld [vmem:[%s9383_s25 + $0x16e0] sm:$0xff] }
 0x104   : > { %1071 = vst [vmem:[%s9388_s26 + $0xed0] sm:$0xff] %v1070_v26  ;;  %1073 = vst [vmem:[%s9388_s26 + $0xed8] sm:$0xff] %v1072_v27  ;;  %v1076_v29 = vld [vmem:[%s9383_s25 + $0x16e8] sm:$0xff]  ;;  %v1078_v30 = vld [vmem:[%s9383_s25 + $0x16f0] sm:$0xff] }
 0x105   : > { %1075 = vst [vmem:[%s9388_s26 + $0xee0] sm:$0xff] %v1074_v28  ;;  %v1080_v31 = vld [vmem:[%s9383_s25 + $0x16f8] sm:$0xff]  ;;  %1077 = vst [vmem:[%s9388_s26 + $0xee8] sm:$0xff] %v1076_v29  ;;  %v1082_v32 = vld [vmem:[%s9383_s25 + $0x1700] sm:$0xff] }
 0x106   : > { %1079 = vst [vmem:[%s9388_s26 + $0xef0] sm:$0xff] %v1078_v30  ;;  %1081 = vst [vmem:[%s9388_s26 + $0xef8] sm:$0xff] %v1080_v31  ;;  %v1084_v33 = vld [vmem:[%s9383_s25 + $0x1708] sm:$0xff]  ;;  %v1086_v34 = vld [vmem:[%s9383_s25 + $0x1710] sm:$0xff] }
 0x107   : > { %1083 = vst [vmem:[%s9388_s26 + $0xf00] sm:$0xff] %v1082_v32  ;;  %1085 = vst [vmem:[%s9388_s26 + $0xf08] sm:$0xff] %v1084_v33  ;;  %v1088_v35 = vld [vmem:[%s9383_s25 + $0x1718] sm:$0xff]  ;;  %v1090_v36 = vld [vmem:[%s9383_s25 + $0x1720] sm:$0xff] }
 0x108   : > { %1087 = vst [vmem:[%s9388_s26 + $0xf10] sm:$0xff] %v1086_v34  ;;  %v1092_v37 = vld [vmem:[%s9383_s25 + $0x1728] sm:$0xff]  ;;  %1089 = vst [vmem:[%s9388_s26 + $0xf18] sm:$0xff] %v1088_v35  ;;  %v1094_v38 = vld [vmem:[%s9383_s25 + $0x1730] sm:$0xff] }
 0x109   : > { %1091 = vst [vmem:[%s9388_s26 + $0xf20] sm:$0xff] %v1090_v36  ;;  %1093 = vst [vmem:[%s9388_s26 + $0xf28] sm:$0xff] %v1092_v37  ;;  %v1096_v39 = vld [vmem:[%s9383_s25 + $0x1738] sm:$0xff]  ;;  %v1098_v40 = vld [vmem:[%s9383_s25 + $0x1740] sm:$0xff] }
 0x10a   : > { %1095 = vst [vmem:[%s9388_s26 + $0xf30] sm:$0xff] %v1094_v38  ;;  %1097 = vst [vmem:[%s9388_s26 + $0xf38] sm:$0xff] %v1096_v39  ;;  %v1100_v41 = vld [vmem:[%s9383_s25 + $0x1748] sm:$0xff]  ;;  %v1102_v42 = vld [vmem:[%s9383_s25 + $0x1750] sm:$0xff] }
 0x10b   : > { %1099 = vst [vmem:[%s9388_s26 + $0xf40] sm:$0xff] %v1098_v40  ;;  %v1104_v43 = vld [vmem:[%s9383_s25 + $0x1758] sm:$0xff]  ;;  %1101 = vst [vmem:[%s9388_s26 + $0xf48] sm:$0xff] %v1100_v41  ;;  %v1106_v44 = vld [vmem:[%s9383_s25 + $0x1760] sm:$0xff] }
 0x10c   : > { %1103 = vst [vmem:[%s9388_s26 + $0xf50] sm:$0xff] %v1102_v42  ;;  %1105 = vst [vmem:[%s9388_s26 + $0xf58] sm:$0xff] %v1104_v43  ;;  %v1108_v45 = vld [vmem:[%s9383_s25 + $0x1768] sm:$0xff]  ;;  %v1110_v46 = vld [vmem:[%s9383_s25 + $0x1770] sm:$0xff] }
 0x10d   : > { %1107 = vst [vmem:[%s9388_s26 + $0xf60] sm:$0xff] %v1106_v44  ;;  %1109 = vst [vmem:[%s9388_s26 + $0xf68] sm:$0xff] %v1108_v45  ;;  %v1112_v47 = vld [vmem:[%s9383_s25 + $0x1778] sm:$0xff]  ;;  %v1114_v48 = vld [vmem:[%s9383_s25 + $0x1780] sm:$0xff] }
 0x10e   : > { %1111 = vst [vmem:[%s9388_s26 + $0xf70] sm:$0xff] %v1110_v46  ;;  %v1116_v49 = vld [vmem:[%s9383_s25 + $0x1788] sm:$0xff]  ;;  %1113 = vst [vmem:[%s9388_s26 + $0xf78] sm:$0xff] %v1112_v47  ;;  %v1118_v50 = vld [vmem:[%s9383_s25 + $0x1790] sm:$0xff] }
 0x10f   : > { %1115 = vst [vmem:[%s9388_s26 + $0xf80] sm:$0xff] %v1114_v48  ;;  %1117 = vst [vmem:[%s9388_s26 + $0xf88] sm:$0xff] %v1116_v49  ;;  %v1120_v51 = vld [vmem:[%s9383_s25 + $0x1798] sm:$0xff]  ;;  %v1122_v52 = vld [vmem:[%s9383_s25 + $0x17a0] sm:$0xff] }
 0x110   : > { %1119 = vst [vmem:[%s9388_s26 + $0xf90] sm:$0xff] %v1118_v50  ;;  %1121 = vst [vmem:[%s9388_s26 + $0xf98] sm:$0xff] %v1120_v51  ;;  %v1124_v53 = vld [vmem:[%s9383_s25 + $0x17a8] sm:$0xff]  ;;  %v1126_v54 = vld [vmem:[%s9383_s25 + $0x17b0] sm:$0xff] }
 0x111   : > { %1123 = vst [vmem:[%s9388_s26 + $0xfa0] sm:$0xff] %v1122_v52  ;;  %v1128_v55 = vld [vmem:[%s9383_s25 + $0x17b8] sm:$0xff]  ;;  %1125 = vst [vmem:[%s9388_s26 + $0xfa8] sm:$0xff] %v1124_v53  ;;  %v1130_v56 = vld [vmem:[%s9383_s25 + $0x17c0] sm:$0xff] }
 0x112   : > { %1127 = vst [vmem:[%s9388_s26 + $0xfb0] sm:$0xff] %v1126_v54  ;;  %1129 = vst [vmem:[%s9388_s26 + $0xfb8] sm:$0xff] %v1128_v55  ;;  %v1132_v57 = vld [vmem:[%s9383_s25 + $0x17c8] sm:$0xff]  ;;  %v1134_v58 = vld [vmem:[%s9383_s25 + $0x17d0] sm:$0xff] }
 0x113   : > { %1131 = vst [vmem:[%s9388_s26 + $0xfc0] sm:$0xff] %v1130_v56  ;;  %1133 = vst [vmem:[%s9388_s26 + $0xfc8] sm:$0xff] %v1132_v57  ;;  %v1136_v59 = vld [vmem:[%s9383_s25 + $0x17d8] sm:$0xff]  ;;  %v1138_v60 = vld [vmem:[%s9383_s25 + $0x17e0] sm:$0xff] }
 0x114   : > { %1135 = vst [vmem:[%s9388_s26 + $0xfd0] sm:$0xff] %v1134_v58  ;;  %v1140_v61 = vld [vmem:[%s9383_s25 + $0x17e8] sm:$0xff]  ;;  %1137 = vst [vmem:[%s9388_s26 + $0xfd8] sm:$0xff] %v1136_v59  ;;  %v1142_v62 = vld [vmem:[%s9383_s25 + $0x17f0] sm:$0xff] }
 0x115   : > { %1139 = vst [vmem:[%s9388_s26 + $0xfe0] sm:$0xff] %v1138_v60  ;;  %1141 = vst [vmem:[%s9388_s26 + $0xfe8] sm:$0xff] %v1140_v61  ;;  %v1144_v63 = vld [vmem:[%s9383_s25 + $0x17f8] sm:$0xff] }
 0x116   : > { %1143 = vst [vmem:[%s9388_s26 + $0xff0] sm:$0xff] %v1142_v62  ;;  %1145 = vst [vmem:[%s9388_s26 + $0xff8] sm:$0xff] %v1144_v63 }
 0x117 PF: > { %p9159_p11 = scmp.ge.s32.totalorder %s9304_s11, 1  ;;  %p1150_p12 = scmp.lt.s32.totalorder %s9304_s11, 3 }
 0x119   : > { %p1151_p13 = pnand %p9159_p11, %p1150_p12 }
 0x11b   : > { %1154 = sbr.rel (%p1151_p13) target bundleno = 1420 (0x58c), region = 43 }
 0x120   : > { %s10414_s27 = sand.u32 1, %s9288_s7   ;;  %vm1692_vm0 = vcmask 1045504   ;;  %s9168_s3 = sshll.u32 %s9296_s9, 12 }
 0x121   : > { %s9160_s28 = sshll.u32 %s10414_s27, 12  ;;  %s9161_s30 = sshll.u32 %s10414_s27, 9 }
 0x122   : > { %s10417_s29 = scalar_lea.vmem [#allocation2], %s9160_s28  ;;  %s12548_s2 = scalar_lea.vmem [#allocation3], %s9161_s30 }
 0x123   : > { %v1180_v0 = vld [vmem:[%s10417_s29] sm:$0x3f]  ;;  %v1181_v1 = vld [vmem:[%s10417_s29 + $0x8] sm:$0x3f]  ;;  %v1182_v2 = vld [vmem:[%s10417_s29 + $0x10] sm:$0x3f]  ;;  %s13435_s13 = scalar_lea.hbm %s13488_s1, %s9168_s3 }
 0x124   : > { %v1183_v3 = vld [vmem:[%s10417_s29 + $0x18] sm:$0x3f]  ;;  %v1184_v4 = vld [vmem:[%s10417_s29 + $0x20] sm:$0x3f]  ;;  %v1185_v5 = vld [vmem:[%s10417_s29 + $0x28] sm:$0x3f] }
 0x125   : > { %v1186_v6 = vld [vmem:[%s10417_s29 + $0x30] sm:$0x3f]  ;;  %v1187_v7 = vld [vmem:[%s10417_s29 + $0x38] sm:$0x3f]  ;;  %v1693_v8 = vsel %vm1692_vm0, %v1180_v0, -inf  ;;  %v1700_v9 = vsel %vm1692_vm0, %v1181_v1, -inf }
 0x126   : > { %v1707_v10 = vsel %vm1692_vm0, %v1182_v2, -inf  ;;  %v1714_v11 = vsel %vm1692_vm0, %v1183_v3, -inf  ;;  %v1694_v12 = vrot.slane %v1693_v8, 4  ;;  %v1701_v13 = vrot.slane %v1700_v9, 4  ;;  %v1188_v44 = vld [vmem:[%s10417_s29 + $0x40] sm:$0x3f] }
 0x127   : > { %v1708_v14 = vrot.slane %v1707_v10, 4  ;;  %v1715_v15 = vrot.slane %v1714_v11, 4  ;;  %v1721_v16 = vsel %vm1692_vm0, %v1184_v4, -inf  ;;  %v1728_v17 = vsel %vm1692_vm0, %v1185_v5, -inf  ;;  %v1189_v49 = vld [vmem:[%s10417_s29 + $0x48] sm:$0x3f] }
 0x128   : > { %v1735_v18 = vsel %vm1692_vm0, %v1186_v6, -inf  ;;  %v1742_v19 = vsel %vm1692_vm0, %v1187_v7, -inf  ;;  %v1695_v20 = vmax.f32 %v1693_v8, %v1694_v12  ;;  %v1702_v21 = vmax.f32 %v1700_v9, %v1701_v13  ;;  %v1190_v50 = vld [vmem:[%s10417_s29 + $0x50] sm:$0x3f]  ;;  %v1191_v51 = vld [vmem:[%s10417_s29 + $0x58] sm:$0x3f] }
 0x129   : > { %v1709_v22 = vmax.f32 %v1707_v10, %v1708_v14  ;;  %v1716_v23 = vmax.f32 %v1714_v11, %v1715_v15  ;;  %v1722_v24 = vrot.slane %v1721_v16, 4  ;;  %v1729_v25 = vrot.slane %v1728_v17, 4  ;;  %v1192_v56 = vld [vmem:[%s10417_s29 + $0x60] sm:$0x3f]  ;;  %v1193_v57 = vld [vmem:[%s10417_s29 + $0x68] sm:$0x3f] }
 0x12a   : > { %v1736_v26 = vrot.slane %v1735_v18, 4  ;;  %v1743_v27 = vrot.slane %v1742_v19, 4  ;;  %v1696_v28 = vrot.slane %v1695_v20, 2  ;;  %v1703_v29 = vrot.slane %v1702_v21, 2  ;;  %v1194_v62 = vld [vmem:[%s10417_s29 + $0x70] sm:$0x3f] }
 0x12b   : > { %v1710_v30 = vrot.slane %v1709_v22, 2  ;;  %v1717_v31 = vrot.slane %v1716_v23, 2  ;;  %v1723_v32 = vmax.f32 %v1721_v16, %v1722_v24  ;;  %v1730_v33 = vmax.f32 %v1728_v17, %v1729_v25  ;;  %v1195_v3 = vld [vmem:[%s10417_s29 + $0x78] sm:$0x3f]  ;;  %s9070_s4 = sshll.u32 %s12548_s2, 4  ;;  %s9054_s9 = scalar_lea.sflag [#allocation4], %s10414_s27  ;;  %s13438_s4 = int_to_ptr.vmem [resolvable:$true] %s9070_s4 }
 0x12c   : > { %v1737_v34 = vmax.f32 %v1735_v18, %v1736_v26  ;;  %v1744_v35 = vmax.f32 %v1742_v19, %v1743_v27  ;;  %v1697_v36 = vmax.f32 %v1695_v20, %v1696_v28  ;;  %v1704_v37 = vmax.f32 %v1702_v21, %v1703_v29  ;;  %s9228_s15 = scalar_lea.vmem %s13438_s4, 8192  ;;  %s9307_s17 = smov [#allocation3]  }
 0x12d   : > { %v1711_v38 = vmax.f32 %v1709_v22, %v1710_v30  ;;  %v1718_v39 = vmax.f32 %v1716_v23, %v1717_v31  ;;  %v1724_v40 = vrot.slane %v1723_v32, 2  ;;  %v1731_v41 = vrot.slane %v1730_v33, 2  ;;  %p9229_p0 = scmp.ne.s32.totalorder %s13438_s4, %s9228_s15  ;;  %s9232_s20 = sshll.u32 %s9307_s17, 4  ;;  %s9233_s20 = int_to_ptr.vmem [resolvable:$false] %s9232_s20 }
 0x12e   : > { %v1738_v42 = vrot.slane %v1737_v34, 2  ;;  %v1745_v43 = vrot.slane %v1744_v35, 2  ;;  %v1698_v45 = vrot.slane %v1697_v36, 1  ;;  %v1705_v46 = vrot.slane %v1704_v37, 1  ;;  %s9234_s21 = scalar_lea.vmem %s9233_s20, 16384  ;;  %p9235_p3 = scmp.lt.s32.totalorder %s13438_s4, %s9233_s20 }
 0x12f   : > { %v1712_v47 = vrot.slane %v1711_v38, 1  ;;  %v1719_v48 = vrot.slane %v1718_v39, 1  ;;  %v1725_v52 = vmax.f32 %v1723_v32, %v1724_v40  ;;  %v1732_v53 = vmax.f32 %v1730_v33, %v1731_v41  ;;  %p9230_p1 = pnand %p9229_p0, %p9360_p5  ;;  %p9236_p4 = scmp.lt.s32.totalorder %s9234_s21, %s9228_s15 }
 0x130   : > { %v1739_v54 = vmax.f32 %v1737_v34, %v1738_v42  ;;  %v1746_v55 = vmax.f32 %v1744_v35, %v1745_v43  ;;  %v10441_v58 = vmax.f32 %v1697_v36, %v1698_v45  ;;  %v10443_v59 = vmax.f32 %v1704_v37, %v1705_v46 }
 0x131   : > { %v10445_v60 = vmax.f32 %v1711_v38, %v1712_v47  ;;  %v10447_v61 = vmax.f32 %v1718_v39, %v1719_v48  ;;  %v1726_v63 = vrot.slane %v1725_v52, 1  ;;  %v1733_v0 = vrot.slane %v1732_v53, 1  ;;  %p9231_p2 = pneg %p9230_p1  ;;  %p9237_p6 = por %p9236_p4, %p9235_p3 }
 0x132   : > { %v1740_v1 = vrot.slane %v1739_v54, 1  ;;  %v1747_v2 = vrot.slane %v1746_v55, 1  ;;  %v1749_v4 = vsel %vm1692_vm0, %v1188_v44, -inf  ;;  %v1756_v5 = vsel %vm1692_vm0, %v1189_v49, -inf  ;;  %v1196_v44 = vld [vmem:[%s10417_s29 + $0x80] sm:$0x3f] }
 0x133   : > { %v1763_v6 = vsel %vm1692_vm0, %v1190_v50, -inf  ;;  %v1770_v7 = vsel %vm1692_vm0, %v1191_v51, -inf  ;;  %v10455_v8 = vmax.f32 %v1725_v52, %v1726_v63  ;;  %v10457_v9 = vmax.f32 %v1732_v53, %v1733_v0  ;;  %v1197_v49 = vld [vmem:[%s10417_s29 + $0x88] sm:$0x3f]  ;;  %v1198_v50 = vld [vmem:[%s10417_s29 + $0x90] sm:$0x3f]  ;;  %p9238_p7 = pnand %p9237_p6, %p9231_p2 }
 0x134   : > { %v10459_v10 = vmax.f32 %v1739_v54, %v1740_v1  ;;  %v10461_v11 = vmax.f32 %v1746_v55, %v1747_v2  ;;  %v1750_v12 = vrot.slane %v1749_v4, 4  ;;  %v1757_v13 = vrot.slane %v1756_v5, 4  ;;  %v1199_v51 = vld [vmem:[%s10417_s29 + $0x98] sm:$0x3f]  ;;  %v1202_v2 = vld [vmem:[%s10417_s29 + $0xb0] sm:$0x3f] }
 0x135   : > { %v1764_v14 = vrot.slane %v1763_v6, 4  ;;  %v1771_v15 = vrot.slane %v1770_v7, 4  ;;  %v1777_v16 = vsel %vm1692_vm0, %v1192_v56, -inf  ;;  %v1784_v17 = vsel %vm1692_vm0, %v1193_v57, -inf  ;;  %v1200_v56 = vld [vmem:[%s10417_s29 + $0xa0] sm:$0x3f] }
 0x136   : > { %v1791_v18 = vsel %vm1692_vm0, %v1194_v62, -inf  ;;  %v1798_v19 = vsel %vm1692_vm0, %v1195_v3, -inf  ;;  %v1751_v20 = vmax.f32 %v1749_v4, %v1750_v12  ;;  %v1758_v21 = vmax.f32 %v1756_v5, %v1757_v13  ;;  %v1201_v57 = vld [vmem:[%s10417_s29 + $0xa8] sm:$0x3f] }
 0x137   : > { %v1765_v22 = vmax.f32 %v1763_v6, %v1764_v14  ;;  %v1772_v23 = vmax.f32 %v1770_v7, %v1771_v15  ;;  %v1778_v24 = vrot.slane %v1777_v16, 4  ;;  %v1785_v25 = vrot.slane %v1784_v17, 4  ;;  %v1203_v7 = vld [vmem:[%s10417_s29 + $0xb8] sm:$0x3f] }
 0x138   : > { %v1792_v26 = vrot.slane %v1791_v18, 4  ;;  %v1799_v27 = vrot.slane %v1798_v19, 4  ;;  %v1752_v28 = vrot.slane %v1751_v20, 2  ;;  %v1759_v29 = vrot.slane %v1758_v21, 2 }
 0x139   : > { %v1766_v30 = vrot.slane %v1765_v22, 2  ;;  %v1773_v31 = vrot.slane %v1772_v23, 2  ;;  %v1779_v32 = vmax.f32 %v1777_v16, %v1778_v24  ;;  %v1786_v33 = vmax.f32 %v1784_v17, %v1785_v25 }
 0x13a   : > { %v1793_v34 = vmax.f32 %v1791_v18, %v1792_v26  ;;  %v1800_v35 = vmax.f32 %v1798_v19, %v1799_v27  ;;  %v1753_v36 = vmax.f32 %v1751_v20, %v1752_v28  ;;  %v1760_v37 = vmax.f32 %v1758_v21, %v1759_v29 }
 0x13b   : > { %v1767_v38 = vmax.f32 %v1765_v22, %v1766_v30  ;;  %v1774_v39 = vmax.f32 %v1772_v23, %v1773_v31  ;;  %v1780_v40 = vrot.slane %v1779_v32, 2  ;;  %v1787_v41 = vrot.slane %v1786_v33, 2 }
 0x13c   : > { %v1794_v42 = vrot.slane %v1793_v34, 2  ;;  %v1801_v43 = vrot.slane %v1800_v35, 2  ;;  %v1754_v45 = vrot.slane %v1753_v36, 1  ;;  %v1761_v46 = vrot.slane %v1760_v37, 1 }
 0x13d   : > { %v1768_v47 = vrot.slane %v1767_v38, 1  ;;  %v1775_v48 = vrot.slane %v1774_v39, 1  ;;  %v1781_v52 = vmax.f32 %v1779_v32, %v1780_v40  ;;  %v1788_v53 = vmax.f32 %v1786_v33, %v1787_v41 }
 0x13e   : > { %v1795_v54 = vmax.f32 %v1793_v34, %v1794_v42  ;;  %v1802_v55 = vmax.f32 %v1800_v35, %v1801_v43  ;;  %v10473_v62 = vmax.f32 %v1753_v36, %v1754_v45  ;;  %v10475_v63 = vmax.f32 %v1760_v37, %v1761_v46 }
 0x13f   : > { %v10477_v0 = vmax.f32 %v1767_v38, %v1768_v47  ;;  %v10479_v1 = vmax.f32 %v1774_v39, %v1775_v48  ;;  %v1782_v3 = vrot.slane %v1781_v52, 1  ;;  %v1789_v4 = vrot.slane %v1788_v53, 1 }
 0x140   : > { %v1796_v5 = vrot.slane %v1795_v54, 1  ;;  %v1803_v6 = vrot.slane %v1802_v55, 1  ;;  %v1805_v12 = vsel %vm1692_vm0, %v1196_v44, -inf  ;;  %v1812_v13 = vsel %vm1692_vm0, %v1197_v49, -inf }
 0x141   : > { %v1819_v14 = vsel %vm1692_vm0, %v1198_v50, -inf  ;;  %v1826_v15 = vsel %vm1692_vm0, %v1199_v51, -inf  ;;  %v10487_v16 = vmax.f32 %v1781_v52, %v1782_v3  ;;  %v10489_v17 = vmax.f32 %v1788_v53, %v1789_v4  ;;  %v1204_v52 = vld [vmem:[%s10417_s29 + $0xc0] sm:$0x3f]  ;;  %v1207_v3 = vld [vmem:[%s10417_s29 + $0xd8] sm:$0x3f] }
 0x142   : > { %v10491_v18 = vmax.f32 %v1795_v54, %v1796_v5  ;;  %v10493_v19 = vmax.f32 %v1802_v55, %v1803_v6  ;;  %v1806_v20 = vrot.slane %v1805_v12, 4  ;;  %v1813_v21 = vrot.slane %v1812_v13, 4 }
 0x143   : > { %v1820_v22 = vrot.slane %v1819_v14, 4  ;;  %v1827_v23 = vrot.slane %v1826_v15, 4  ;;  %v1833_v24 = vsel %vm1692_vm0, %v1200_v56, -inf  ;;  %v1840_v25 = vsel %vm1692_vm0, %v1201_v57, -inf  ;;  %v1205_v57 = vld [vmem:[%s10417_s29 + $0xc8] sm:$0x3f] }
 0x144   : > { %v1847_v26 = vsel %vm1692_vm0, %v1202_v2, -inf  ;;  %v1854_v27 = vsel %vm1692_vm0, %v1203_v7, -inf  ;;  %v1807_v28 = vmax.f32 %v1805_v12, %v1806_v20  ;;  %v1814_v29 = vmax.f32 %v1812_v13, %v1813_v21  ;;  %v1206_v2 = vld [vmem:[%s10417_s29 + $0xd0] sm:$0x3f]  ;;  %v1208_v12 = vld [vmem:[%s10417_s29 + $0xe0] sm:$0x3f] }
 0x145   : > { %v1821_v30 = vmax.f32 %v1819_v14, %v1820_v22  ;;  %v1828_v31 = vmax.f32 %v1826_v15, %v1827_v23  ;;  %v1834_v32 = vrot.slane %v1833_v24, 4  ;;  %v1841_v33 = vrot.slane %v1840_v25, 4  ;;  %v1209_v13 = vld [vmem:[%s10417_s29 + $0xe8] sm:$0x3f]  ;;  %v1210_v22 = vld [vmem:[%s10417_s29 + $0xf0] sm:$0x3f] }
 0x146   : > { %v1848_v34 = vrot.slane %v1847_v26, 4  ;;  %v1855_v35 = vrot.slane %v1854_v27, 4  ;;  %v1808_v36 = vrot.slane %v1807_v28, 2  ;;  %v1815_v37 = vrot.slane %v1814_v29, 2 }
 0x147   : > { %v1822_v38 = vrot.slane %v1821_v30, 2  ;;  %v1829_v39 = vrot.slane %v1828_v31, 2  ;;  %v1835_v40 = vmax.f32 %v1833_v24, %v1834_v32  ;;  %v1842_v41 = vmax.f32 %v1840_v25, %v1841_v33 }
 0x148   : > { %v1849_v42 = vmax.f32 %v1847_v26, %v1848_v34  ;;  %v1856_v43 = vmax.f32 %v1854_v27, %v1855_v35  ;;  %v1809_v44 = vmax.f32 %v1807_v28, %v1808_v36  ;;  %v1816_v45 = vmax.f32 %v1814_v29, %v1815_v37  ;;  %v1211_v27 = vld [vmem:[%s10417_s29 + $0xf8] sm:$0x3f] }
 0x149   : > { %v1823_v46 = vmax.f32 %v1821_v30, %v1822_v38  ;;  %v1830_v47 = vmax.f32 %v1828_v31, %v1829_v39  ;;  %v1836_v48 = vrot.slane %v1835_v40, 2  ;;  %v1843_v49 = vrot.slane %v1842_v41, 2 }
 0x14a   : > { %v1850_v50 = vrot.slane %v1849_v42, 2  ;;  %v1857_v51 = vrot.slane %v1856_v43, 2  ;;  %v1810_v53 = vrot.slane %v1809_v44, 1  ;;  %v1817_v54 = vrot.slane %v1816_v45, 1 }
 0x14b   : > { %v1824_v55 = vrot.slane %v1823_v46, 1  ;;  %v1831_v56 = vrot.slane %v1830_v47, 1  ;;  %v1837_v4 = vmax.f32 %v1835_v40, %v1836_v48  ;;  %v1844_v5 = vmax.f32 %v1842_v41, %v1843_v49 }
 0x14c   : > { %v1851_v6 = vmax.f32 %v1849_v42, %v1850_v50  ;;  %v1858_v7 = vmax.f32 %v1856_v43, %v1857_v51  ;;  %v10505_v14 = vmax.f32 %v1809_v44, %v1810_v53  ;;  %v10507_v15 = vmax.f32 %v1816_v45, %v1817_v54 }
 0x14d   : > { %v10509_v20 = vmax.f32 %v1823_v46, %v1824_v55  ;;  %v10511_v21 = vmax.f32 %v1830_v47, %v1831_v56  ;;  %v1838_v23 = vrot.slane %v1837_v4, 1  ;;  %v1845_v24 = vrot.slane %v1844_v5, 1 }
 0x14e   : > { %v1852_v25 = vrot.slane %v1851_v6, 1  ;;  %v1859_v26 = vrot.slane %v1858_v7, 1  ;;  %v1861_v28 = vsel %vm1692_vm0, %v1204_v52, -inf  ;;  %v1868_v29 = vsel %vm1692_vm0, %v1205_v57, -inf }
 0x14f   : > { %v1875_v30 = vsel %vm1692_vm0, %v1206_v2, -inf  ;;  %v1882_v31 = vsel %vm1692_vm0, %v1207_v3, -inf  ;;  %v10519_v32 = vmax.f32 %v1837_v4, %v1838_v23  ;;  %v10521_v33 = vmax.f32 %v1844_v5, %v1845_v24  ;;  %v1212_v24 = vld [vmem:[%s10417_s29 + $0x100] sm:$0x3f] }
 0x150   : > { %v10523_v34 = vmax.f32 %v1851_v6, %v1852_v25  ;;  %v10525_v35 = vmax.f32 %v1858_v7, %v1859_v26  ;;  %v1862_v36 = vrot.slane %v1861_v28, 4  ;;  %v1869_v37 = vrot.slane %v1868_v29, 4 }
 0x151   : > { %v1876_v38 = vrot.slane %v1875_v30, 4  ;;  %v1883_v39 = vrot.slane %v1882_v31, 4  ;;  %v1889_v40 = vsel %vm1692_vm0, %v1208_v12, -inf  ;;  %v1896_v41 = vsel %vm1692_vm0, %v1209_v13, -inf }
 0x152   : > { %v1903_v42 = vsel %vm1692_vm0, %v1210_v22, -inf  ;;  %v1910_v43 = vsel %vm1692_vm0, %v1211_v27, -inf  ;;  %v1863_v44 = vmax.f32 %v1861_v28, %v1862_v36  ;;  %v1870_v45 = vmax.f32 %v1868_v29, %v1869_v37  ;;  %v1213_v29 = vld [vmem:[%s10417_s29 + $0x108] sm:$0x3f] }
 0x153   : > { %v1877_v46 = vmax.f32 %v1875_v30, %v1876_v38  ;;  %v1884_v47 = vmax.f32 %v1882_v31, %v1883_v39  ;;  %v1890_v48 = vrot.slane %v1889_v40, 4  ;;  %v1897_v49 = vrot.slane %v1896_v41, 4  ;;  %v1214_v30 = vld [vmem:[%s10417_s29 + $0x110] sm:$0x3f]  ;;  %v1215_v31 = vld [vmem:[%s10417_s29 + $0x118] sm:$0x3f] }
 0x154   : > { %v1904_v50 = vrot.slane %v1903_v42, 4  ;;  %v1911_v51 = vrot.slane %v1910_v43, 4  ;;  %v1864_v52 = vrot.slane %v1863_v44, 2  ;;  %v1871_v53 = vrot.slane %v1870_v45, 2 }
 0x155   : > { %v1878_v54 = vrot.slane %v1877_v46, 2  ;;  %v1885_v55 = vrot.slane %v1884_v47, 2  ;;  %v1891_v56 = vmax.f32 %v1889_v40, %v1890_v48  ;;  %v1898_v57 = vmax.f32 %v1896_v41, %v1897_v49  ;;  %v1216_v40 = vld [vmem:[%s10417_s29 + $0x120] sm:$0x3f]  ;;  %v1217_v41 = vld [vmem:[%s10417_s29 + $0x128] sm:$0x3f] }
 0x156   : > { %v1905_v2 = vmax.f32 %v1903_v42, %v1904_v50  ;;  %v1912_v3 = vmax.f32 %v1910_v43, %v1911_v51  ;;  %v1865_v4 = vmax.f32 %v1863_v44, %v1864_v52  ;;  %v1872_v5 = vmax.f32 %v1870_v45, %v1871_v53  ;;  %v1219_v51 = vld [vmem:[%s10417_s29 + $0x138] sm:$0x3f] }
 0x157   : > { %v1879_v6 = vmax.f32 %v1877_v46, %v1878_v54  ;;  %v1886_v7 = vmax.f32 %v1884_v47, %v1885_v55  ;;  %v1892_v12 = vrot.slane %v1891_v56, 2  ;;  %v1899_v13 = vrot.slane %v1898_v57, 2  ;;  %v1218_v46 = vld [vmem:[%s10417_s29 + $0x130] sm:$0x3f] }
 0x158   : > { %v1906_v22 = vrot.slane %v1905_v2, 2  ;;  %v1913_v23 = vrot.slane %v1912_v3, 2  ;;  %v1866_v25 = vrot.slane %v1865_v4, 1  ;;  %v1873_v26 = vrot.slane %v1872_v5, 1 }
 0x159   : > { %v1880_v27 = vrot.slane %v1879_v6, 1  ;;  %v1887_v28 = vrot.slane %v1886_v7, 1  ;;  %v1893_v36 = vmax.f32 %v1891_v56, %v1892_v12  ;;  %v1900_v37 = vmax.f32 %v1898_v57, %v1899_v13 }
 0x15a   : > { %v1907_v38 = vmax.f32 %v1905_v2, %v1906_v22  ;;  %v1914_v39 = vmax.f32 %v1912_v3, %v1913_v23  ;;  %v10537_v42 = vmax.f32 %v1865_v4, %v1866_v25  ;;  %v10539_v43 = vmax.f32 %v1872_v5, %v1873_v26 }
 0x15b   : > { %v10541_v44 = vmax.f32 %v1879_v6, %v1880_v27  ;;  %v10543_v45 = vmax.f32 %v1886_v7, %v1887_v28  ;;  %v1894_v47 = vrot.slane %v1893_v36, 1  ;;  %v1901_v48 = vrot.slane %v1900_v37, 1 }
 0x15c   : > { %v1908_v49 = vrot.slane %v1907_v38, 1  ;;  %v1915_v50 = vrot.slane %v1914_v39, 1  ;;  %v1917_v52 = vsel %vm1692_vm0, %v1212_v24, -inf  ;;  %v1924_v53 = vsel %vm1692_vm0, %v1213_v29, -inf }
 0x15d   : > { %v1931_v54 = vsel %vm1692_vm0, %v1214_v30, -inf  ;;  %v1938_v55 = vsel %vm1692_vm0, %v1215_v31, -inf  ;;  %v10551_v56 = vmax.f32 %v1893_v36, %v1894_v47  ;;  %v10553_v57 = vmax.f32 %v1900_v37, %v1901_v48 }
 0x15e   : > { %v10555_v2 = vmax.f32 %v1907_v38, %v1908_v49  ;;  %v10557_v3 = vmax.f32 %v1914_v39, %v1915_v50  ;;  %v1918_v4 = vrot.slane %v1917_v52, 4  ;;  %v1925_v5 = vrot.slane %v1924_v53, 4 }
 0x15f   : > { %13491 = vst [vmem:[#allocation6_spill] sm:$0xff] %v10551_v56  ;;  %13492 = vst [vmem:[#allocation7_spill] sm:$0xff] %v10553_v57  ;;  %v1932_v6 = vrot.slane %v1931_v54, 4  ;;  %v1939_v7 = vrot.slane %v1938_v55, 4  ;;  %v1945_v12 = vsel %vm1692_vm0, %v1216_v40, -inf  ;;  %v1952_v13 = vsel %vm1692_vm0, %v1217_v41, -inf }
 0x160   : > { %13493 = vst [vmem:[#allocation8_spill] sm:$0xff] %v10555_v2  ;;  %13494 = vst [vmem:[#allocation9_spill] sm:$0xff] %v10557_v3  ;;  %v1959_v22 = vsel %vm1692_vm0, %v1218_v46, -inf  ;;  %v1966_v23 = vsel %vm1692_vm0, %v1219_v51, -inf  ;;  %v1919_v24 = vmax.f32 %v1917_v52, %v1918_v4  ;;  %v1926_v25 = vmax.f32 %v1924_v53, %v1925_v5  ;;  %v1220_v4 = vld [vmem:[%s10417_s29 + $0x140] sm:$0x3f] }
 0x161   : > { %v1933_v26 = vmax.f32 %v1931_v54, %v1932_v6  ;;  %v1940_v27 = vmax.f32 %v1938_v55, %v1939_v7  ;;  %v1946_v28 = vrot.slane %v1945_v12, 4  ;;  %v1953_v29 = vrot.slane %v1952_v13, 4  ;;  %v1227_v57 = vld [vmem:[%s10417_s29 + $0x178] sm:$0x3f] }
 0x162   : > { %v1960_v30 = vrot.slane %v1959_v22, 4  ;;  %v1967_v31 = vrot.slane %v1966_v23, 4  ;;  %v1920_v36 = vrot.slane %v1919_v24, 2  ;;  %v1927_v37 = vrot.slane %v1926_v25, 2 }
 0x163   : > { %v1934_v38 = vrot.slane %v1933_v26, 2  ;;  %v1941_v39 = vrot.slane %v1940_v27, 2  ;;  %v1947_v40 = vmax.f32 %v1945_v12, %v1946_v28  ;;  %v1954_v47 = vmax.f32 %v1952_v13, %v1953_v29  ;;  %v1221_v13 = vld [vmem:[%s10417_s29 + $0x148] sm:$0x3f]  ;;  %v1224_v28 = vld [vmem:[%s10417_s29 + $0x160] sm:$0x3f] }
 0x164   : > { %v1961_v41 = vmax.f32 %v1959_v22, %v1960_v30  ;;  %v1968_v46 = vmax.f32 %v1966_v23, %v1967_v31  ;;  %v1921_v48 = vmax.f32 %v1919_v24, %v1920_v36  ;;  %v1928_v49 = vmax.f32 %v1926_v25, %v1927_v37  ;;  %v1222_v22 = vld [vmem:[%s10417_s29 + $0x150] sm:$0x3f]  ;;  %v1223_v23 = vld [vmem:[%s10417_s29 + $0x158] sm:$0x3f]  ;;  %v1225_v29 = vld [vmem:[%s10417_s29 + $0x168] sm:$0x3f] }
 0x165   : > { %v1935_v50 = vmax.f32 %v1933_v26, %v1934_v38  ;;  %v1942_v51 = vmax.f32 %v1940_v27, %v1941_v39  ;;  %v1948_v52 = vrot.slane %v1947_v40, 2  ;;  %v1955_v53 = vrot.slane %v1954_v47, 2  ;;  %v1226_v38 = vld [vmem:[%s10417_s29 + $0x170] sm:$0x3f] }
 0x166   : > { %v1962_v54 = vrot.slane %v1961_v41, 2  ;;  %v1969_v55 = vrot.slane %v1968_v46, 2  ;;  %v1922_v5 = vrot.slane %v1921_v48, 1  ;;  %v1929_v6 = vrot.slane %v1928_v49, 1 }
 0x167   : > { %v1936_v7 = vrot.slane %v1935_v50, 1  ;;  %v1943_v12 = vrot.slane %v1942_v51, 1  ;;  %v1949_v24 = vmax.f32 %v1947_v40, %v1948_v52  ;;  %v1956_v25 = vmax.f32 %v1954_v47, %v1955_v53 }
 0x168   : > { %v1963_v26 = vmax.f32 %v1961_v41, %v1962_v54  ;;  %v1970_v27 = vmax.f32 %v1968_v46, %v1969_v55  ;;  %v10569_v30 = vmax.f32 %v1921_v48, %v1922_v5  ;;  %v10571_v31 = vmax.f32 %v1928_v49, %v1929_v6 }
 0x169   : > { %v10573_v36 = vmax.f32 %v1935_v50, %v1936_v7  ;;  %v10575_v37 = vmax.f32 %v1942_v51, %v1943_v12  ;;  %v1950_v39 = vrot.slane %v1949_v24, 1  ;;  %v1957_v2 = vrot.slane %v1956_v25, 1 }
 0x16a   : > { %13495 = vst [vmem:[#allocation10_spill] sm:$0xff] %v10569_v30  ;;  %13496 = vst [vmem:[#allocation11_spill] sm:$0xff] %v10571_v31  ;;  %v1964_v3 = vrot.slane %v1963_v26, 1  ;;  %v1971_v56 = vrot.slane %v1970_v27, 1  ;;  %v1973_v40 = vsel %vm1692_vm0, %v1220_v4, -inf  ;;  %v1980_v47 = vsel %vm1692_vm0, %v1221_v13, -inf }
 0x16b   : > { %13497 = vst [vmem:[#allocation12_spill] sm:$0xff] %v10573_v36  ;;  %13498 = vst [vmem:[#allocation13_spill] sm:$0xff] %v10575_v37  ;;  %v1987_v41 = vsel %vm1692_vm0, %v1222_v22, -inf  ;;  %v1994_v46 = vsel %vm1692_vm0, %v1223_v23, -inf  ;;  %v10583_v48 = vmax.f32 %v1949_v24, %v1950_v39  ;;  %v10585_v49 = vmax.f32 %v1956_v25, %v1957_v2  ;;  %v1235_v31 = vld [vmem:[%s10417_s29 + $0x1b8] sm:$0x3f] }
 0x16c   : > { %v10587_v50 = vmax.f32 %v1963_v26, %v1964_v3  ;;  %v10589_v51 = vmax.f32 %v1970_v27, %v1971_v56  ;;  %v1974_v52 = vrot.slane %v1973_v40, 4  ;;  %v1981_v53 = vrot.slane %v1980_v47, 4 }
 0x16d   : > { %13499 = vst [vmem:[#allocation14_spill] sm:$0xff] %v10583_v48  ;;  %13500 = vst [vmem:[#allocation15_spill] sm:$0xff] %v10585_v49  ;;  %v1988_v54 = vrot.slane %v1987_v41, 4  ;;  %v1995_v55 = vrot.slane %v1994_v46, 4  ;;  %v2001_v4 = vsel %vm1692_vm0, %v1224_v28, -inf  ;;  %v2008_v5 = vsel %vm1692_vm0, %v1225_v29, -inf }
 0x16e   : > { %13501 = vst [vmem:[#allocation16_spill] sm:$0xff] %v10587_v50  ;;  %13502 = vst [vmem:[#allocation17_spill] sm:$0xff] %v10589_v51  ;;  %v2015_v6 = vsel %vm1692_vm0, %v1226_v38, -inf  ;;  %v2022_v7 = vsel %vm1692_vm0, %v1227_v57, -inf  ;;  %v1975_v12 = vmax.f32 %v1973_v40, %v1974_v52  ;;  %v1982_v13 = vmax.f32 %v1980_v47, %v1981_v53 }
 0x16f   : > { %v1989_v2 = vmax.f32 %v1987_v41, %v1988_v54  ;;  %v1996_v22 = vmax.f32 %v1994_v46, %v1995_v55  ;;  %v2002_v3 = vrot.slane %v2001_v4, 4  ;;  %v2009_v23 = vrot.slane %v2008_v5, 4  ;;  %v1228_v55 = vld [vmem:[%s10417_s29 + $0x180] sm:$0x3f] }
 0x170   : > { %v2016_v56 = vrot.slane %v2015_v6, 4  ;;  %v2023_v24 = vrot.slane %v2022_v7, 4  ;;  %v1976_v25 = vrot.slane %v1975_v12, 2  ;;  %v1983_v26 = vrot.slane %v1982_v13, 2 }
 0x171   : > { %v1990_v27 = vrot.slane %v1989_v2, 2  ;;  %v1997_v39 = vrot.slane %v1996_v22, 2  ;;  %v2003_v28 = vmax.f32 %v2001_v4, %v2002_v3  ;;  %v2010_v50 = vmax.f32 %v2008_v5, %v2009_v23  ;;  %v1230_v3 = vld [vmem:[%s10417_s29 + $0x190] sm:$0x3f]  ;;  %v1232_v23 = vld [vmem:[%s10417_s29 + $0x1a0] sm:$0x3f] }
 0x172   : > { %v2017_v29 = vmax.f32 %v2015_v6, %v2016_v56  ;;  %v2024_v38 = vmax.f32 %v2022_v7, %v2023_v24  ;;  %v1977_v57 = vmax.f32 %v1975_v12, %v1976_v25  ;;  %v1984_v40 = vmax.f32 %v1982_v13, %v1983_v26  ;;  %v1229_v6 = vld [vmem:[%s10417_s29 + $0x188] sm:$0x3f]  ;;  %v1231_v7 = vld [vmem:[%s10417_s29 + $0x198] sm:$0x3f] }
 0x173   : > { %v1991_v47 = vmax.f32 %v1989_v2, %v1990_v27  ;;  %v1998_v41 = vmax.f32 %v1996_v22, %v1997_v39  ;;  %v2004_v46 = vrot.slane %v2003_v28, 2  ;;  %v2011_v52 = vrot.slane %v2010_v50, 2  ;;  %v1233_v56 = vld [vmem:[%s10417_s29 + $0x1a8] sm:$0x3f]  ;;  %v1234_v39 = vld [vmem:[%s10417_s29 + $0x1b0] sm:$0x3f] }
 0x174   : > { %v2018_v53 = vrot.slane %v2017_v29, 2  ;;  %v2025_v54 = vrot.slane %v2024_v38, 2  ;;  %v1978_v51 = vrot.slane %v1977_v57, 1  ;;  %v1985_v48 = vrot.slane %v1984_v40, 1 }
 0x175   : > { %v1992_v4 = vrot.slane %v1991_v47, 1  ;;  %v1999_v5 = vrot.slane %v1998_v41, 1  ;;  %v2005_v12 = vmax.f32 %v2003_v28, %v2004_v46  ;;  %v2012_v13 = vmax.f32 %v2010_v50, %v2011_v52 }
 0x176   : > { %v2019_v2 = vmax.f32 %v2017_v29, %v2018_v53  ;;  %v2026_v22 = vmax.f32 %v2024_v38, %v2025_v54  ;;  %v10601_v24 = vmax.f32 %v1977_v57, %v1978_v51  ;;  %v10603_v25 = vmax.f32 %v1984_v40, %v1985_v48 }
 0x177   : > { %v10605_v26 = vmax.f32 %v1991_v47, %v1992_v4  ;;  %v10607_v27 = vmax.f32 %v1998_v41, %v1999_v5  ;;  %v2006_v49 = vrot.slane %v2005_v12, 1  ;;  %v2013_v36 = vrot.slane %v2012_v13, 1 }
 0x178   : > { %13503 = vst [vmem:[#allocation18_spill] sm:$0xff] %v10601_v24  ;;  %13504 = vst [vmem:[#allocation19_spill] sm:$0xff] %v10603_v25  ;;  %v2020_v37 = vrot.slane %v2019_v2, 1  ;;  %v2027_v30 = vrot.slane %v2026_v22, 1  ;;  %v2029_v50 = vsel %vm1692_vm0, %v1228_v55, -inf  ;;  %v2036_v28 = vsel %vm1692_vm0, %v1229_v6, -inf }
 0x179   : > { %13505 = vst [vmem:[#allocation20_spill] sm:$0xff] %v10605_v26  ;;  %13506 = vst [vmem:[#allocation21_spill] sm:$0xff] %v10607_v27  ;;  %v2043_v29 = vsel %vm1692_vm0, %v1230_v3, -inf  ;;  %v2050_v51 = vsel %vm1692_vm0, %v1231_v7, -inf  ;;  %v10615_v48 = vmax.f32 %v2005_v12, %v2006_v49  ;;  %v10617_v38 = vmax.f32 %v2012_v13, %v2013_v36  ;;  %v1243_v25 = vld [vmem:[%s10417_s29 + $0x1f8] sm:$0x3f] }
 0x17a   : > { %v10619_v57 = vmax.f32 %v2019_v2, %v2020_v37  ;;  %v10621_v40 = vmax.f32 %v2026_v22, %v2027_v30  ;;  %v2030_v47 = vrot.slane %v2029_v50, 4  ;;  %v2037_v41 = vrot.slane %v2036_v28, 4 }
 0x17b   : > { %13507 = vst [vmem:[#allocation22_spill] sm:$0xff] %v10615_v48  ;;  %13508 = vst [vmem:[#allocation23_spill] sm:$0xff] %v10617_v38  ;;  %v2044_v46 = vrot.slane %v2043_v29, 4  ;;  %v2051_v52 = vrot.slane %v2050_v51, 4  ;;  %v2057_v53 = vsel %vm1692_vm0, %v1232_v23, -inf  ;;  %v2064_v54 = vsel %vm1692_vm0, %v1233_v56, -inf }
 0x17c   : > { %13509 = vst [vmem:[#allocation24_spill] sm:$0xff] %v10619_v57  ;;  %13510 = vst [vmem:[#allocation25_spill] sm:$0xff] %v10621_v40  ;;  %v2071_v55 = vsel %vm1692_vm0, %v1234_v39, -inf  ;;  %v2078_v4 = vsel %vm1692_vm0, %v1235_v31, -inf  ;;  %v2031_v49 = vmax.f32 %v2029_v50, %v2030_v47  ;;  %v2038_v5 = vmax.f32 %v2036_v28, %v2037_v41 }
 0x17d   : > { %v2045_v36 = vmax.f32 %v2043_v29, %v2044_v46  ;;  %v2052_v6 = vmax.f32 %v2050_v51, %v2051_v52  ;;  %v2058_v37 = vrot.slane %v2057_v53, 4  ;;  %v2065_v3 = vrot.slane %v2064_v54, 4  ;;  %v1236_v52 = vld [vmem:[%s10417_s29 + $0x1c0] sm:$0x3f] }
 0x17e   : > { %v2072_v30 = vrot.slane %v2071_v55, 4  ;;  %v2079_v7 = vrot.slane %v2078_v4, 4  ;;  %v2032_v12 = vrot.slane %v2031_v49, 2  ;;  %v2039_v13 = vrot.slane %v2038_v5, 2 }
 0x17f   : > { %v2046_v2 = vrot.slane %v2045_v36, 2  ;;  %v2053_v22 = vrot.slane %v2052_v6, 2  ;;  %v2059_v23 = vmax.f32 %v2057_v53, %v2058_v37  ;;  %v2066_v57 = vmax.f32 %v2064_v54, %v2065_v3  ;;  %v1238_v37 = vld [vmem:[%s10417_s29 + $0x1d0] sm:$0x3f]  ;;  %v1240_v3 = vld [vmem:[%s10417_s29 + $0x1e0] sm:$0x3f] }
 0x180   : > { %v2073_v56 = vmax.f32 %v2071_v55, %v2072_v30  ;;  %v2080_v39 = vmax.f32 %v2078_v4, %v2079_v7  ;;  %v2033_v31 = vmax.f32 %v2031_v49, %v2032_v12  ;;  %v2040_v50 = vmax.f32 %v2038_v5, %v2039_v13  ;;  %v1237_v55 = vld [vmem:[%s10417_s29 + $0x1c8] sm:$0x3f]  ;;  %v1239_v4 = vld [vmem:[%s10417_s29 + $0x1d8] sm:$0x3f] }
 0x181   : > { %v2047_v28 = vmax.f32 %v2045_v36, %v2046_v2  ;;  %v2054_v29 = vmax.f32 %v2052_v6, %v2053_v22  ;;  %v2060_v51 = vrot.slane %v2059_v23, 2  ;;  %v2067_v47 = vrot.slane %v2066_v57, 2  ;;  %v1241_v30 = vld [vmem:[%s10417_s29 + $0x1e8] sm:$0x3f]  ;;  %v1242_v22 = vld [vmem:[%s10417_s29 + $0x1f0] sm:$0x3f] }
 0x182   : > { %v2074_v41 = vrot.slane %v2073_v56, 2  ;;  %v2081_v46 = vrot.slane %v2080_v39, 2  ;;  %v2034_v40 = vrot.slane %v2033_v31, 1  ;;  %v2041_v48 = vrot.slane %v2040_v50, 1 }
 0x183   : > { %v2048_v53 = vrot.slane %v2047_v28, 1  ;;  %v2055_v54 = vrot.slane %v2054_v29, 1  ;;  %v2061_v49 = vmax.f32 %v2059_v23, %v2060_v51  ;;  %v2068_v5 = vmax.f32 %v2066_v57, %v2067_v47 }
 0x184   : > { %v2075_v36 = vmax.f32 %v2073_v56, %v2074_v41  ;;  %v2082_v6 = vmax.f32 %v2080_v39, %v2081_v46  ;;  %v10633_v7 = vmax.f32 %v2033_v31, %v2034_v40  ;;  %v10635_v12 = vmax.f32 %v2040_v50, %v2041_v48 }
 0x185   : > { %v10637_v13 = vmax.f32 %v2047_v28, %v2048_v53  ;;  %v10639_v2 = vmax.f32 %v2054_v29, %v2055_v54  ;;  %v2062_v38 = vrot.slane %v2061_v49, 1  ;;  %v2069_v26 = vrot.slane %v2068_v5, 1 }
 0x186   : > { %13511 = vst [vmem:[#allocation26_spill] sm:$0xff] %v10633_v7  ;;  %13512 = vst [vmem:[#allocation27_spill] sm:$0xff] %v10635_v12  ;;  %v2076_v27 = vrot.slane %v2075_v36, 1  ;;  %v2083_v24 = vrot.slane %v2082_v6, 1  ;;  %v2085_v57 = vsel %vm1692_vm0, %v1236_v52, -inf  ;;  %v2092_v23 = vsel %vm1692_vm0, %v1237_v55, -inf }
 0x187   : > { %13513 = vst [vmem:[#allocation28_spill] sm:$0xff] %v10637_v13  ;;  %13514 = vst [vmem:[#allocation29_spill] sm:$0xff] %v10639_v2  ;;  %v2099_v56 = vsel %vm1692_vm0, %v1238_v37, -inf  ;;  %v2106_v40 = vsel %vm1692_vm0, %v1239_v4, -inf  ;;  %v10647_v48 = vmax.f32 %v2061_v49, %v2062_v38  ;;  %v10649_v39 = vmax.f32 %v2068_v5, %v2069_v26  ;;  %v1251_v12 = vld [vmem:[%s10417_s29 + $0x238] sm:$0x3f] }
 0x188   : > { %v10651_v31 = vmax.f32 %v2075_v36, %v2076_v27  ;;  %v10653_v50 = vmax.f32 %v2082_v6, %v2083_v24  ;;  %v2086_v28 = vrot.slane %v2085_v57, 4  ;;  %v2093_v29 = vrot.slane %v2092_v23, 4 }
 0x189   : > { %13515 = vst [vmem:[#allocation30_spill] sm:$0xff] %v10647_v48  ;;  %13516 = vst [vmem:[#allocation31_spill] sm:$0xff] %v10649_v39  ;;  %v2100_v51 = vrot.slane %v2099_v56, 4  ;;  %v2107_v47 = vrot.slane %v2106_v40, 4  ;;  %v2113_v41 = vsel %vm1692_vm0, %v1240_v3, -inf  ;;  %v2120_v46 = vsel %vm1692_vm0, %v1241_v30, -inf }
 0x18a   : > { %13517 = vst [vmem:[#allocation32_spill] sm:$0xff] %v10651_v31  ;;  %13518 = vst [vmem:[#allocation33_spill] sm:$0xff] %v10653_v50  ;;  %v2127_v52 = vsel %vm1692_vm0, %v1242_v22, -inf  ;;  %v2134_v53 = vsel %vm1692_vm0, %v1243_v25, -inf  ;;  %v2087_v38 = vmax.f32 %v2085_v57, %v2086_v28  ;;  %v2094_v54 = vmax.f32 %v2092_v23, %v2093_v29 }
 0x18b   : > { %v2101_v26 = vmax.f32 %v2099_v56, %v2100_v51  ;;  %v2108_v55 = vmax.f32 %v2106_v40, %v2107_v47  ;;  %v2114_v27 = vrot.slane %v2113_v41, 4  ;;  %v2121_v37 = vrot.slane %v2120_v46, 4  ;;  %v1244_v47 = vld [vmem:[%s10417_s29 + $0x200] sm:$0x3f] }
 0x18c   : > { %v2128_v24 = vrot.slane %v2127_v52, 4  ;;  %v2135_v4 = vrot.slane %v2134_v53, 4  ;;  %v2088_v49 = vrot.slane %v2087_v38, 2  ;;  %v2095_v5 = vrot.slane %v2094_v54, 2 }
 0x18d   : > { %v2102_v36 = vrot.slane %v2101_v26, 2  ;;  %v2109_v6 = vrot.slane %v2108_v55, 2  ;;  %v2115_v3 = vmax.f32 %v2113_v41, %v2114_v27  ;;  %v2122_v31 = vmax.f32 %v2120_v46, %v2121_v37  ;;  %v1246_v27 = vld [vmem:[%s10417_s29 + $0x210] sm:$0x3f]  ;;  %v1248_v37 = vld [vmem:[%s10417_s29 + $0x220] sm:$0x3f] }
 0x18e   : > { %v2129_v30 = vmax.f32 %v2127_v52, %v2128_v24  ;;  %v2136_v22 = vmax.f32 %v2134_v53, %v2135_v4  ;;  %v2089_v25 = vmax.f32 %v2087_v38, %v2088_v49  ;;  %v2096_v57 = vmax.f32 %v2094_v54, %v2095_v5  ;;  %v1245_v52 = vld [vmem:[%s10417_s29 + $0x208] sm:$0x3f]  ;;  %v1247_v53 = vld [vmem:[%s10417_s29 + $0x218] sm:$0x3f] }
 0x18f   : > { %v2103_v23 = vmax.f32 %v2101_v26, %v2102_v36  ;;  %v2110_v56 = vmax.f32 %v2108_v55, %v2109_v6  ;;  %v2116_v40 = vrot.slane %v2115_v3, 2  ;;  %v2123_v28 = vrot.slane %v2122_v31, 2  ;;  %v1249_v24 = vld [vmem:[%s10417_s29 + $0x228] sm:$0x3f]  ;;  %v1250_v6 = vld [vmem:[%s10417_s29 + $0x230] sm:$0x3f] }
 0x190   : > { %v2130_v29 = vrot.slane %v2129_v30, 2  ;;  %v2137_v51 = vrot.slane %v2136_v22, 2  ;;  %v2090_v50 = vrot.slane %v2089_v25, 1  ;;  %v2097_v48 = vrot.slane %v2096_v57, 1 }
 0x191   : > { %v2104_v41 = vrot.slane %v2103_v23, 1  ;;  %v2111_v46 = vrot.slane %v2110_v56, 1  ;;  %v2117_v38 = vmax.f32 %v2115_v3, %v2116_v40  ;;  %v2124_v54 = vmax.f32 %v2122_v31, %v2123_v28 }
 0x192   : > { %v2131_v26 = vmax.f32 %v2129_v30, %v2130_v29  ;;  %v2138_v55 = vmax.f32 %v2136_v22, %v2137_v51  ;;  %v10665_v4 = vmax.f32 %v2089_v25, %v2090_v50  ;;  %v10667_v49 = vmax.f32 %v2096_v57, %v2097_v48 }
 0x193   : > { %v10669_v5 = vmax.f32 %v2103_v23, %v2104_v41  ;;  %v10671_v36 = vmax.f32 %v2110_v56, %v2111_v46  ;;  %v2118_v39 = vrot.slane %v2117_v38, 1  ;;  %v2125_v13 = vrot.slane %v2124_v54, 1 }
 0x194   : > { %13519 = vst [vmem:[#allocation34_spill] sm:$0xff] %v10665_v4  ;;  %13520 = vst [vmem:[#allocation35_spill] sm:$0xff] %v10667_v49  ;;  %v2132_v2 = vrot.slane %v2131_v26, 1  ;;  %v2139_v7 = vrot.slane %v2138_v55, 1  ;;  %v2141_v31 = vsel %vm1692_vm0, %v1244_v47, -inf  ;;  %v2148_v3 = vsel %vm1692_vm0, %v1245_v52, -inf }
 0x195   : > { %13521 = vst [vmem:[#allocation36_spill] sm:$0xff] %v10669_v5  ;;  %13522 = vst [vmem:[#allocation37_spill] sm:$0xff] %v10671_v36  ;;  %v2155_v30 = vsel %vm1692_vm0, %v1246_v27, -inf  ;;  %v2162_v50 = vsel %vm1692_vm0, %v1247_v53, -inf  ;;  %v10679_v48 = vmax.f32 %v2117_v38, %v2118_v39  ;;  %v10681_v22 = vmax.f32 %v2124_v54, %v2125_v13  ;;  %v1259_v49 = vld [vmem:[%s10417_s29 + $0x278] sm:$0x3f] }
 0x196   : > { %v10683_v25 = vmax.f32 %v2131_v26, %v2132_v2  ;;  %v10685_v57 = vmax.f32 %v2138_v55, %v2139_v7  ;;  %v2142_v23 = vrot.slane %v2141_v31, 4  ;;  %v2149_v56 = vrot.slane %v2148_v3, 4 }
 0x197   : > { %13523 = vst [vmem:[#allocation38_spill] sm:$0xff] %v10679_v48  ;;  %13524 = vst [vmem:[#allocation39_spill] sm:$0xff] %v10681_v22  ;;  %v2156_v40 = vrot.slane %v2155_v30, 4  ;;  %v2163_v28 = vrot.slane %v2162_v50, 4  ;;  %v2169_v29 = vsel %vm1692_vm0, %v1248_v37, -inf  ;;  %v2176_v51 = vsel %vm1692_vm0, %v1249_v24, -inf }
 0x198   : > { %13525 = vst [vmem:[#allocation40_spill] sm:$0xff] %v10683_v25  ;;  %13526 = vst [vmem:[#allocation41_spill] sm:$0xff] %v10685_v57  ;;  %v2183_v47 = vsel %vm1692_vm0, %v1250_v6, -inf  ;;  %v2190_v41 = vsel %vm1692_vm0, %v1251_v12, -inf  ;;  %v2143_v39 = vmax.f32 %v2141_v31, %v2142_v23  ;;  %v2150_v46 = vmax.f32 %v2148_v3, %v2149_v56 }
 0x199   : > { %v2157_v13 = vmax.f32 %v2155_v30, %v2156_v40  ;;  %v2164_v52 = vmax.f32 %v2162_v50, %v2163_v28  ;;  %v2170_v2 = vrot.slane %v2169_v29, 4  ;;  %v2177_v27 = vrot.slane %v2176_v51, 4  ;;  %v1252_v28 = vld [vmem:[%s10417_s29 + $0x240] sm:$0x3f] }
 0x19a   : > { %v2184_v7 = vrot.slane %v2183_v47, 4  ;;  %v2191_v53 = vrot.slane %v2190_v41, 4  ;;  %v2144_v38 = vrot.slane %v2143_v39, 2  ;;  %v2151_v54 = vrot.slane %v2150_v46, 2 }
 0x19b   : > { %v2158_v26 = vrot.slane %v2157_v13, 2  ;;  %v2165_v55 = vrot.slane %v2164_v52, 2  ;;  %v2171_v37 = vmax.f32 %v2169_v29, %v2170_v2  ;;  %v2178_v25 = vmax.f32 %v2176_v51, %v2177_v27  ;;  %v1254_v2 = vld [vmem:[%s10417_s29 + $0x250] sm:$0x3f]  ;;  %v1256_v27 = vld [vmem:[%s10417_s29 + $0x260] sm:$0x3f] }
 0x19c   : > { %v2185_v24 = vmax.f32 %v2183_v47, %v2184_v7  ;;  %v2192_v6 = vmax.f32 %v2190_v41, %v2191_v53  ;;  %v2145_v12 = vmax.f32 %v2143_v39, %v2144_v38  ;;  %v2152_v31 = vmax.f32 %v2150_v46, %v2151_v54  ;;  %v1253_v47 = vld [vmem:[%s10417_s29 + $0x248] sm:$0x3f]  ;;  %v1255_v41 = vld [vmem:[%s10417_s29 + $0x258] sm:$0x3f] }
 0x19d   : > { %v2159_v3 = vmax.f32 %v2157_v13, %v2158_v26  ;;  %v2166_v30 = vmax.f32 %v2164_v52, %v2165_v55  ;;  %v2172_v50 = vrot.slane %v2171_v37, 2  ;;  %v2179_v23 = vrot.slane %v2178_v25, 2  ;;  %v1257_v7 = vld [vmem:[%s10417_s29 + $0x268] sm:$0x3f]  ;;  %v1258_v55 = vld [vmem:[%s10417_s29 + $0x270] sm:$0x3f] }
 0x19e   : > { %v2186_v56 = vrot.slane %v2185_v24, 2  ;;  %v2193_v40 = vrot.slane %v2192_v6, 2  ;;  %v2146_v57 = vrot.slane %v2145_v12, 1  ;;  %v2153_v48 = vrot.slane %v2152_v31, 1 }
 0x19f   : > { %v2160_v29 = vrot.slane %v2159_v3, 1  ;;  %v2167_v51 = vrot.slane %v2166_v30, 1  ;;  %v2173_v39 = vmax.f32 %v2171_v37, %v2172_v50  ;;  %v2180_v46 = vmax.f32 %v2178_v25, %v2179_v23 }
 0x1a0   : > { %v2187_v13 = vmax.f32 %v2185_v24, %v2186_v56  ;;  %v2194_v52 = vmax.f32 %v2192_v6, %v2193_v40  ;;  %v10697_v53 = vmax.f32 %v2145_v12, %v2146_v57  ;;  %v10699_v38 = vmax.f32 %v2152_v31, %v2153_v48 }
 0x1a1   : > { %v10701_v54 = vmax.f32 %v2159_v3, %v2160_v29  ;;  %v10703_v26 = vmax.f32 %v2166_v30, %v2167_v51  ;;  %v2174_v22 = vrot.slane %v2173_v39, 1  ;;  %v2181_v5 = vrot.slane %v2180_v46, 1 }
 0x1a2   : > { %13527 = vst [vmem:[#allocation42_spill] sm:$0xff] %v10697_v53  ;;  %13528 = vst [vmem:[#allocation43_spill] sm:$0xff] %v10699_v38  ;;  %v2188_v36 = vrot.slane %v2187_v13, 1  ;;  %v2195_v4 = vrot.slane %v2194_v52, 1  ;;  %v2197_v25 = vsel %vm1692_vm0, %v1252_v28, -inf  ;;  %v2204_v37 = vsel %vm1692_vm0, %v1253_v47, -inf }
 0x1a3   : > { %13529 = vst [vmem:[#allocation44_spill] sm:$0xff] %v10701_v54  ;;  %13530 = vst [vmem:[#allocation45_spill] sm:$0xff] %v10703_v26  ;;  %v2211_v24 = vsel %vm1692_vm0, %v1254_v2, -inf  ;;  %v2218_v57 = vsel %vm1692_vm0, %v1255_v41, -inf  ;;  %v10711_v48 = vmax.f32 %v2173_v39, %v2174_v22  ;;  %v10713_v6 = vmax.f32 %v2180_v46, %v2181_v5  ;;  %v1267_v38 = vld [vmem:[%s10417_s29 + $0x2b8] sm:$0x3f] }
 0x1a4   : > { %v10715_v12 = vmax.f32 %v2187_v13, %v2188_v36  ;;  %v10717_v31 = vmax.f32 %v2194_v52, %v2195_v4  ;;  %v2198_v3 = vrot.slane %v2197_v25, 4  ;;  %v2205_v30 = vrot.slane %v2204_v37, 4 }
 0x1a5   : > { %13531 = vst [vmem:[#allocation46_spill] sm:$0xff] %v10711_v48  ;;  %13532 = vst [vmem:[#allocation47_spill] sm:$0xff] %v10713_v6  ;;  %v2212_v50 = vrot.slane %v2211_v24, 4  ;;  %v2219_v23 = vrot.slane %v2218_v57, 4  ;;  %v2225_v56 = vsel %vm1692_vm0, %v1256_v27, -inf  ;;  %v2232_v40 = vsel %vm1692_vm0, %v1257_v7, -inf }
 0x1a6   : > { %13533 = vst [vmem:[#allocation48_spill] sm:$0xff] %v10715_v12  ;;  %13534 = vst [vmem:[#allocation49_spill] sm:$0xff] %v10717_v31  ;;  %v2239_v28 = vsel %vm1692_vm0, %v1258_v55, -inf  ;;  %v2246_v29 = vsel %vm1692_vm0, %v1259_v49, -inf  ;;  %v2199_v22 = vmax.f32 %v2197_v25, %v2198_v3  ;;  %v2206_v51 = vmax.f32 %v2204_v37, %v2205_v30 }
 0x1a7   : > { %v2213_v5 = vmax.f32 %v2211_v24, %v2212_v50  ;;  %v2220_v47 = vmax.f32 %v2218_v57, %v2219_v23  ;;  %v2226_v36 = vrot.slane %v2225_v56, 4  ;;  %v2233_v2 = vrot.slane %v2232_v40, 4  ;;  %v1260_v23 = vld [vmem:[%s10417_s29 + $0x280] sm:$0x3f] }
 0x1a8   : > { %v2240_v4 = vrot.slane %v2239_v28, 4  ;;  %v2247_v41 = vrot.slane %v2246_v29, 4  ;;  %v2200_v39 = vrot.slane %v2199_v22, 2  ;;  %v2207_v46 = vrot.slane %v2206_v51, 2 }
 0x1a9   : > { %v2214_v13 = vrot.slane %v2213_v5, 2  ;;  %v2221_v52 = vrot.slane %v2220_v47, 2  ;;  %v2227_v27 = vmax.f32 %v2225_v56, %v2226_v36  ;;  %v2234_v12 = vmax.f32 %v2232_v40, %v2233_v2  ;;  %v1262_v36 = vld [vmem:[%s10417_s29 + $0x290] sm:$0x3f]  ;;  %v1264_v2 = vld [vmem:[%s10417_s29 + $0x2a0] sm:$0x3f] }
 0x1aa   : > { %v2241_v7 = vmax.f32 %v2239_v28, %v2240_v4  ;;  %v2248_v55 = vmax.f32 %v2246_v29, %v2247_v41  ;;  %v2201_v49 = vmax.f32 %v2199_v22, %v2200_v39  ;;  %v2208_v25 = vmax.f32 %v2206_v51, %v2207_v46  ;;  %v1261_v28 = vld [vmem:[%s10417_s29 + $0x288] sm:$0x3f]  ;;  %v1263_v29 = vld [vmem:[%s10417_s29 + $0x298] sm:$0x3f] }
 0x1ab   : > { %v2215_v37 = vmax.f32 %v2213_v5, %v2214_v13  ;;  %v2222_v24 = vmax.f32 %v2220_v47, %v2221_v52  ;;  %v2228_v57 = vrot.slane %v2227_v27, 2  ;;  %v2235_v3 = vrot.slane %v2234_v12, 2  ;;  %v1265_v4 = vld [vmem:[%s10417_s29 + $0x2a8] sm:$0x3f]  ;;  %v1266_v52 = vld [vmem:[%s10417_s29 + $0x2b0] sm:$0x3f] }
 0x1ac   : > { %v2242_v30 = vrot.slane %v2241_v7, 2  ;;  %v2249_v50 = vrot.slane %v2248_v55, 2  ;;  %v2202_v31 = vrot.slane %v2201_v49, 1  ;;  %v2209_v48 = vrot.slane %v2208_v25, 1 }
 0x1ad   : > { %v2216_v56 = vrot.slane %v2215_v37, 1  ;;  %v2223_v40 = vrot.slane %v2222_v24, 1  ;;  %v2229_v22 = vmax.f32 %v2227_v27, %v2228_v57  ;;  %v2236_v51 = vmax.f32 %v2234_v12, %v2235_v3 }
 0x1ae   : > { %v2243_v5 = vmax.f32 %v2241_v7, %v2242_v30  ;;  %v2250_v47 = vmax.f32 %v2248_v55, %v2249_v50  ;;  %v10729_v41 = vmax.f32 %v2201_v49, %v2202_v31  ;;  %v10731_v39 = vmax.f32 %v2208_v25, %v2209_v48 }
 0x1af   : > { %v10733_v46 = vmax.f32 %v2215_v37, %v2216_v56  ;;  %v10735_v13 = vmax.f32 %v2222_v24, %v2223_v40  ;;  %v2230_v6 = vrot.slane %v2229_v22, 1  ;;  %v2237_v54 = vrot.slane %v2236_v51, 1 }
 0x1b0   : > { %13535 = vst [vmem:[#allocation50_spill] sm:$0xff] %v10729_v41  ;;  %13536 = vst [vmem:[#allocation51_spill] sm:$0xff] %v10731_v39  ;;  %v2244_v26 = vrot.slane %v2243_v5, 1  ;;  %v2251_v53 = vrot.slane %v2250_v47, 1  ;;  %v2253_v12 = vsel %vm1692_vm0, %v1260_v23, -inf  ;;  %v2260_v27 = vsel %vm1692_vm0, %v1261_v28, -inf }
 0x1b1   : > { %13537 = vst [vmem:[#allocation52_spill] sm:$0xff] %v10733_v46  ;;  %13538 = vst [vmem:[#allocation53_spill] sm:$0xff] %v10735_v13  ;;  %v2267_v7 = vsel %vm1692_vm0, %v1262_v36, -inf  ;;  %v2274_v31 = vsel %vm1692_vm0, %v1263_v29, -inf  ;;  %v10743_v48 = vmax.f32 %v2229_v22, %v2230_v6  ;;  %v10745_v55 = vmax.f32 %v2236_v51, %v2237_v54  ;;  %v1275_v39 = vld [vmem:[%s10417_s29 + $0x2f8] sm:$0x3f] }
 0x1b2   : > { %v10747_v49 = vmax.f32 %v2243_v5, %v2244_v26  ;;  %v10749_v25 = vmax.f32 %v2250_v47, %v2251_v53  ;;  %v2254_v37 = vrot.slane %v2253_v12, 4  ;;  %v2261_v24 = vrot.slane %v2260_v27, 4 }
 0x1b3   : > { %13539 = vst [vmem:[#allocation54_spill] sm:$0xff] %v10743_v48  ;;  %13540 = vst [vmem:[#allocation55_spill] sm:$0xff] %v10745_v55  ;;  %v2268_v57 = vrot.slane %v2267_v7, 4  ;;  %v2275_v3 = vrot.slane %v2274_v31, 4  ;;  %v2281_v30 = vsel %vm1692_vm0, %v1264_v2, -inf  ;;  %v2288_v50 = vsel %vm1692_vm0, %v1265_v4, -inf }
 0x1b4   : > { %13541 = vst [vmem:[#allocation56_spill] sm:$0xff] %v10747_v49  ;;  %13542 = vst [vmem:[#allocation57_spill] sm:$0xff] %v10749_v25  ;;  %v2295_v23 = vsel %vm1692_vm0, %v1266_v52, -inf  ;;  %v2302_v56 = vsel %vm1692_vm0, %v1267_v38, -inf  ;;  %v2255_v6 = vmax.f32 %v2253_v12, %v2254_v37  ;;  %v2262_v40 = vmax.f32 %v2260_v27, %v2261_v24 }
 0x1b5   : > { %v2269_v54 = vmax.f32 %v2267_v7, %v2268_v57  ;;  %v2276_v28 = vmax.f32 %v2274_v31, %v2275_v3  ;;  %v2282_v26 = vrot.slane %v2281_v30, 4  ;;  %v2289_v36 = vrot.slane %v2288_v50, 4  ;;  %v1268_v3 = vld [vmem:[%s10417_s29 + $0x2c0] sm:$0x3f] }
 0x1b6   : > { %v2296_v53 = vrot.slane %v2295_v23, 4  ;;  %v2303_v29 = vrot.slane %v2302_v56, 4  ;;  %v2256_v22 = vrot.slane %v2255_v6, 2  ;;  %v2263_v51 = vrot.slane %v2262_v40, 2 }
 0x1b7   : > { %v2270_v5 = vrot.slane %v2269_v54, 2  ;;  %v2277_v47 = vrot.slane %v2276_v28, 2  ;;  %v2283_v2 = vmax.f32 %v2281_v30, %v2282_v26  ;;  %v2290_v49 = vmax.f32 %v2288_v50, %v2289_v36  ;;  %v1270_v26 = vld [vmem:[%s10417_s29 + $0x2d0] sm:$0x3f]  ;;  %v1272_v36 = vld [vmem:[%s10417_s29 + $0x2e0] sm:$0x3f] }
 0x1b8   : > { %v2297_v4 = vmax.f32 %v2295_v23, %v2296_v53  ;;  %v2304_v52 = vmax.f32 %v2302_v56, %v2303_v29  ;;  %v2257_v38 = vmax.f32 %v2255_v6, %v2256_v22  ;;  %v2264_v12 = vmax.f32 %v2262_v40, %v2263_v51  ;;  %v1269_v23 = vld [vmem:[%s10417_s29 + $0x2c8] sm:$0x3f]  ;;  %v1271_v56 = vld [vmem:[%s10417_s29 + $0x2d8] sm:$0x3f] }
 0x1b9   : > { %v2271_v27 = vmax.f32 %v2269_v54, %v2270_v5  ;;  %v2278_v7 = vmax.f32 %v2276_v28, %v2277_v47  ;;  %v2284_v31 = vrot.slane %v2283_v2, 2  ;;  %v2291_v37 = vrot.slane %v2290_v49, 2  ;;  %v1273_v53 = vld [vmem:[%s10417_s29 + $0x2e8] sm:$0x3f]  ;;  %v1274_v47 = vld [vmem:[%s10417_s29 + $0x2f0] sm:$0x3f] }
 0x1ba   : > { %v2298_v24 = vrot.slane %v2297_v4, 2  ;;  %v2305_v57 = vrot.slane %v2304_v52, 2  ;;  %v2258_v25 = vrot.slane %v2257_v38, 1  ;;  %v2265_v48 = vrot.slane %v2264_v12, 1 }
 0x1bb   : > { %v2272_v30 = vrot.slane %v2271_v27, 1  ;;  %v2279_v50 = vrot.slane %v2278_v7, 1  ;;  %v2285_v6 = vmax.f32 %v2283_v2, %v2284_v31  ;;  %v2292_v40 = vmax.f32 %v2290_v49, %v2291_v37 }
 0x1bc   : > { %v2299_v54 = vmax.f32 %v2297_v4, %v2298_v24  ;;  %v2306_v28 = vmax.f32 %v2304_v52, %v2305_v57  ;;  %v10761_v29 = vmax.f32 %v2257_v38, %v2258_v25  ;;  %v10763_v22 = vmax.f32 %v2264_v12, %v2265_v48 }
 0x1bd   : > { %v10765_v51 = vmax.f32 %v2271_v27, %v2272_v30  ;;  %v10767_v5 = vmax.f32 %v2278_v7, %v2279_v50  ;;  %v2286_v55 = vrot.slane %v2285_v6, 1  ;;  %v2293_v46 = vrot.slane %v2292_v40, 1 }
 0x1be   : > { %13543 = vst [vmem:[#allocation58_spill] sm:$0xff] %v10761_v29  ;;  %13544 = vst [vmem:[#allocation59_spill] sm:$0xff] %v10763_v22  ;;  %v2300_v13 = vrot.slane %v2299_v54, 1  ;;  %v2307_v41 = vrot.slane %v2306_v28, 1  ;;  %v2309_v49 = vsel %vm1692_vm0, %v1268_v3, -inf  ;;  %v2316_v2 = vsel %vm1692_vm0, %v1269_v23, -inf }
 0x1bf   : > { %13545 = vst [vmem:[#allocation60_spill] sm:$0xff] %v10765_v51  ;;  %13546 = vst [vmem:[#allocation61_spill] sm:$0xff] %v10767_v5  ;;  %v2323_v4 = vsel %vm1692_vm0, %v1270_v26, -inf  ;;  %v2330_v25 = vsel %vm1692_vm0, %v1271_v56, -inf  ;;  %v10775_v48 = vmax.f32 %v2285_v6, %v2286_v55  ;;  %v10777_v52 = vmax.f32 %v2292_v40, %v2293_v46  ;;  %v1283_v22 = vld [vmem:[%s10417_s29 + $0x338] sm:$0x3f] }
 0x1c0   : > { %v10779_v38 = vmax.f32 %v2299_v54, %v2300_v13  ;;  %v10781_v12 = vmax.f32 %v2306_v28, %v2307_v41  ;;  %v2310_v27 = vrot.slane %v2309_v49, 4  ;;  %v2317_v7 = vrot.slane %v2316_v2, 4 }
 0x1c1   : > { %13547 = vst [vmem:[#allocation62_spill] sm:$0xff] %v10775_v48  ;;  %13548 = vst [vmem:[#allocation63_spill] sm:$0xff] %v10777_v52  ;;  %v2324_v31 = vrot.slane %v2323_v4, 4  ;;  %v2331_v37 = vrot.slane %v2330_v25, 4  ;;  %v2337_v24 = vsel %vm1692_vm0, %v1272_v36, -inf  ;;  %v2344_v57 = vsel %vm1692_vm0, %v1273_v53, -inf }
 0x1c2   : > { %13549 = vst [vmem:[#allocation64_spill] sm:$0xff] %v10779_v38  ;;  %13550 = vst [vmem:[#allocation65_spill] sm:$0xff] %v10781_v12  ;;  %v2351_v3 = vsel %vm1692_vm0, %v1274_v47, -inf  ;;  %v2358_v30 = vsel %vm1692_vm0, %v1275_v39, -inf  ;;  %v2311_v55 = vmax.f32 %v2309_v49, %v2310_v27  ;;  %v2318_v50 = vmax.f32 %v2316_v2, %v2317_v7 }
 0x1c3   : > { %v2325_v46 = vmax.f32 %v2323_v4, %v2324_v31  ;;  %v2332_v23 = vmax.f32 %v2330_v25, %v2331_v37  ;;  %v2338_v13 = vrot.slane %v2337_v24, 4  ;;  %v2345_v26 = vrot.slane %v2344_v57, 4  ;;  %v1276_v37 = vld [vmem:[%s10417_s29 + $0x300] sm:$0x3f] }
 0x1c4   : > { %v2352_v41 = vrot.slane %v2351_v3, 4  ;;  %v2359_v56 = vrot.slane %v2358_v30, 4  ;;  %v2312_v6 = vrot.slane %v2311_v55, 2  ;;  %v2319_v40 = vrot.slane %v2318_v50, 2 }
 0x1c5   : > { %v2326_v54 = vrot.slane %v2325_v46, 2  ;;  %v2333_v28 = vrot.slane %v2332_v23, 2  ;;  %v2339_v36 = vmax.f32 %v2337_v24, %v2338_v13  ;;  %v2346_v38 = vmax.f32 %v2344_v57, %v2345_v26  ;;  %v1278_v13 = vld [vmem:[%s10417_s29 + $0x310] sm:$0x3f]  ;;  %v1280_v26 = vld [vmem:[%s10417_s29 + $0x320] sm:$0x3f] }
 0x1c6   : > { %v2353_v53 = vmax.f32 %v2351_v3, %v2352_v41  ;;  %v2360_v47 = vmax.f32 %v2358_v30, %v2359_v56  ;;  %v2313_v39 = vmax.f32 %v2311_v55, %v2312_v6  ;;  %v2320_v49 = vmax.f32 %v2318_v50, %v2319_v40  ;;  %v1277_v3 = vld [vmem:[%s10417_s29 + $0x308] sm:$0x3f]  ;;  %v1279_v30 = vld [vmem:[%s10417_s29 + $0x318] sm:$0x3f] }
 0x1c7   : > { %v2327_v2 = vmax.f32 %v2325_v46, %v2326_v54  ;;  %v2334_v4 = vmax.f32 %v2332_v23, %v2333_v28  ;;  %v2340_v25 = vrot.slane %v2339_v36, 2  ;;  %v2347_v27 = vrot.slane %v2346_v38, 2  ;;  %v1281_v41 = vld [vmem:[%s10417_s29 + $0x328] sm:$0x3f]  ;;  %v1282_v28 = vld [vmem:[%s10417_s29 + $0x330] sm:$0x3f] }
 0x1c8   : > { %v2354_v7 = vrot.slane %v2353_v53, 2  ;;  %v2361_v31 = vrot.slane %v2360_v47, 2  ;;  %v2314_v12 = vrot.slane %v2313_v39, 1  ;;  %v2321_v48 = vrot.slane %v2320_v49, 1 }
 0x1c9   : > { %v2328_v24 = vrot.slane %v2327_v2, 1  ;;  %v2335_v57 = vrot.slane %v2334_v4, 1  ;;  %v2341_v55 = vmax.f32 %v2339_v36, %v2340_v25  ;;  %v2348_v50 = vmax.f32 %v2346_v38, %v2347_v27 }
 0x1ca   : > { %v2355_v46 = vmax.f32 %v2353_v53, %v2354_v7  ;;  %v2362_v23 = vmax.f32 %v2360_v47, %v2361_v31  ;;  %v10793_v56 = vmax.f32 %v2313_v39, %v2314_v12  ;;  %v10795_v6 = vmax.f32 %v2320_v49, %v2321_v48 }
 0x1cb   : > { %v10797_v40 = vmax.f32 %v2327_v2, %v2328_v24  ;;  %v10799_v54 = vmax.f32 %v2334_v4, %v2335_v57  ;;  %v2342_v52 = vrot.slane %v2341_v55, 1  ;;  %v2349_v51 = vrot.slane %v2348_v50, 1 }
 0x1cc   : > { %13551 = vst [vmem:[#allocation66_spill] sm:$0xff] %v10793_v56  ;;  %13552 = vst [vmem:[#allocation67_spill] sm:$0xff] %v10795_v6  ;;  %v2356_v5 = vrot.slane %v2355_v46, 1  ;;  %v2363_v29 = vrot.slane %v2362_v23, 1  ;;  %v2365_v38 = vsel %vm1692_vm0, %v1276_v37, -inf  ;;  %v2372_v36 = vsel %vm1692_vm0, %v1277_v3, -inf }
 0x1cd   : > { %13553 = vst [vmem:[#allocation68_spill] sm:$0xff] %v10797_v40  ;;  %13554 = vst [vmem:[#allocation69_spill] sm:$0xff] %v10799_v54  ;;  %v2379_v53 = vsel %vm1692_vm0, %v1278_v13, -inf  ;;  %v2386_v12 = vsel %vm1692_vm0, %v1279_v30, -inf  ;;  %v10807_v48 = vmax.f32 %v2341_v55, %v2342_v52  ;;  %v10809_v47 = vmax.f32 %v2348_v50, %v2349_v51  ;;  %v1291_v6 = vld [vmem:[%s10417_s29 + $0x378] sm:$0x3f] }
 0x1ce   : > { %v10811_v39 = vmax.f32 %v2355_v46, %v2356_v5  ;;  %v10813_v49 = vmax.f32 %v2362_v23, %v2363_v29  ;;  %v2366_v2 = vrot.slane %v2365_v38, 4  ;;  %v2373_v4 = vrot.slane %v2372_v36, 4 }
 0x1cf   : > { %13555 = vst [vmem:[#allocation70_spill] sm:$0xff] %v10807_v48  ;;  %13556 = vst [vmem:[#allocation71_spill] sm:$0xff] %v10809_v47  ;;  %v2380_v25 = vrot.slane %v2379_v53, 4  ;;  %v2387_v27 = vrot.slane %v2386_v12, 4  ;;  %v2393_v7 = vsel %vm1692_vm0, %v1280_v26, -inf  ;;  %v2400_v31 = vsel %vm1692_vm0, %v1281_v41, -inf }
 0x1d0   : > { %13557 = vst [vmem:[#allocation72_spill] sm:$0xff] %v10811_v39  ;;  %13558 = vst [vmem:[#allocation73_spill] sm:$0xff] %v10813_v49  ;;  %v2407_v37 = vsel %vm1692_vm0, %v1282_v28, -inf  ;;  %v2414_v24 = vsel %vm1692_vm0, %v1283_v22, -inf  ;;  %v2367_v52 = vmax.f32 %v2365_v38, %v2366_v2  ;;  %v2374_v57 = vmax.f32 %v2372_v36, %v2373_v4 }
 0x1d1   : > { %v2381_v51 = vmax.f32 %v2379_v53, %v2380_v25  ;;  %v2388_v3 = vmax.f32 %v2386_v12, %v2387_v27  ;;  %v2394_v5 = vrot.slane %v2393_v7, 4  ;;  %v2401_v13 = vrot.slane %v2400_v31, 4  ;;  %v1284_v27 = vld [vmem:[%s10417_s29 + $0x340] sm:$0x3f] }
 0x1d2   : > { %v2408_v29 = vrot.slane %v2407_v37, 4  ;;  %v2415_v30 = vrot.slane %v2414_v24, 4  ;;  %v2368_v55 = vrot.slane %v2367_v52, 2  ;;  %v2375_v50 = vrot.slane %v2374_v57, 2 }
 0x1d3   : > { %v2382_v46 = vrot.slane %v2381_v51, 2  ;;  %v2389_v23 = vrot.slane %v2388_v3, 2  ;;  %v2395_v26 = vmax.f32 %v2393_v7, %v2394_v5  ;;  %v2402_v39 = vmax.f32 %v2400_v31, %v2401_v13  ;;  %v1286_v5 = vld [vmem:[%s10417_s29 + $0x350] sm:$0x3f]  ;;  %v1288_v13 = vld [vmem:[%s10417_s29 + $0x360] sm:$0x3f] }
 0x1d4   : > { %v2409_v41 = vmax.f32 %v2407_v37, %v2408_v29  ;;  %v2416_v28 = vmax.f32 %v2414_v24, %v2415_v30  ;;  %v2369_v22 = vmax.f32 %v2367_v52, %v2368_v55  ;;  %v2376_v38 = vmax.f32 %v2374_v57, %v2375_v50  ;;  %v1285_v37 = vld [vmem:[%s10417_s29 + $0x348] sm:$0x3f]  ;;  %v1287_v24 = vld [vmem:[%s10417_s29 + $0x358] sm:$0x3f] }
 0x1d5   : > { %v2383_v36 = vmax.f32 %v2381_v51, %v2382_v46  ;;  %v2390_v53 = vmax.f32 %v2388_v3, %v2389_v23  ;;  %v2396_v12 = vrot.slane %v2395_v26, 2  ;;  %v2403_v2 = vrot.slane %v2402_v39, 2  ;;  %v1289_v29 = vld [vmem:[%s10417_s29 + $0x368] sm:$0x3f]  ;;  %v1290_v23 = vld [vmem:[%s10417_s29 + $0x370] sm:$0x3f] }
 0x1d6   : > { %v2410_v4 = vrot.slane %v2409_v41, 2  ;;  %v2417_v25 = vrot.slane %v2416_v28, 2  ;;  %v2370_v49 = vrot.slane %v2369_v22, 1  ;;  %v2377_v48 = vrot.slane %v2376_v38, 1 }
 0x1d7   : > { %v2384_v7 = vrot.slane %v2383_v36, 1  ;;  %v2391_v31 = vrot.slane %v2390_v53, 1  ;;  %v2397_v52 = vmax.f32 %v2395_v26, %v2396_v12  ;;  %v2404_v57 = vmax.f32 %v2402_v39, %v2403_v2 }
 0x1d8   : > { %v2411_v51 = vmax.f32 %v2409_v41, %v2410_v4  ;;  %v2418_v3 = vmax.f32 %v2416_v28, %v2417_v25  ;;  %v10825_v30 = vmax.f32 %v2369_v22, %v2370_v49  ;;  %v10827_v55 = vmax.f32 %v2376_v38, %v2377_v48 }
 0x1d9   : > { %v10829_v50 = vmax.f32 %v2383_v36, %v2384_v7  ;;  %v10831_v46 = vmax.f32 %v2390_v53, %v2391_v31  ;;  %v2398_v47 = vrot.slane %v2397_v52, 1  ;;  %v2405_v40 = vrot.slane %v2404_v57, 1 }
 0x1da   : > { %13559 = vst [vmem:[#allocation74_spill] sm:$0xff] %v10825_v30  ;;  %13560 = vst [vmem:[#allocation75_spill] sm:$0xff] %v10827_v55  ;;  %v2412_v54 = vrot.slane %v2411_v51, 1  ;;  %v2419_v56 = vrot.slane %v2418_v3, 1  ;;  %v2421_v39 = vsel %vm1692_vm0, %v1284_v27, -inf  ;;  %v2428_v26 = vsel %vm1692_vm0, %v1285_v37, -inf }
 0x1db   : > { %13561 = vst [vmem:[#allocation76_spill] sm:$0xff] %v10829_v50  ;;  %13562 = vst [vmem:[#allocation77_spill] sm:$0xff] %v10831_v46  ;;  %v2435_v41 = vsel %vm1692_vm0, %v1286_v5, -inf  ;;  %v2442_v49 = vsel %vm1692_vm0, %v1287_v24, -inf  ;;  %v10839_v48 = vmax.f32 %v2397_v52, %v2398_v47  ;;  %v10841_v28 = vmax.f32 %v2404_v57, %v2405_v40  ;;  %v1299_v55 = vld [vmem:[%s10417_s29 + $0x3b8] sm:$0x3f] }
 0x1dc   : > { %v10843_v22 = vmax.f32 %v2411_v51, %v2412_v54  ;;  %v10845_v38 = vmax.f32 %v2418_v3, %v2419_v56  ;;  %v2422_v36 = vrot.slane %v2421_v39, 4  ;;  %v2429_v53 = vrot.slane %v2428_v26, 4 }
 0x1dd   : > { %13563 = vst [vmem:[#allocation78_spill] sm:$0xff] %v10839_v48  ;;  %13564 = vst [vmem:[#allocation79_spill] sm:$0xff] %v10841_v28  ;;  %v2436_v12 = vrot.slane %v2435_v41, 4  ;;  %v2443_v2 = vrot.slane %v2442_v49, 4  ;;  %v2449_v4 = vsel %vm1692_vm0, %v1288_v13, -inf  ;;  %v2456_v25 = vsel %vm1692_vm0, %v1289_v29, -inf }
 0x1de   : > { %13565 = vst [vmem:[#allocation80_spill] sm:$0xff] %v10843_v22  ;;  %13566 = vst [vmem:[#allocation81_spill] sm:$0xff] %v10845_v38  ;;  %v2463_v27 = vsel %vm1692_vm0, %v1290_v23, -inf  ;;  %v2470_v7 = vsel %vm1692_vm0, %v1291_v6, -inf  ;;  %v2423_v47 = vmax.f32 %v2421_v39, %v2422_v36  ;;  %v2430_v31 = vmax.f32 %v2428_v26, %v2429_v53 }
 0x1df   : > { %v2437_v40 = vmax.f32 %v2435_v41, %v2436_v12  ;;  %v2444_v37 = vmax.f32 %v2442_v49, %v2443_v2  ;;  %v2450_v54 = vrot.slane %v2449_v4, 4  ;;  %v2457_v5 = vrot.slane %v2456_v25, 4  ;;  %v1292_v2 = vld [vmem:[%s10417_s29 + $0x380] sm:$0x3f] }
 0x1e0   : > { %v2464_v56 = vrot.slane %v2463_v27, 4  ;;  %v2471_v24 = vrot.slane %v2470_v7, 4  ;;  %v2424_v52 = vrot.slane %v2423_v47, 2  ;;  %v2431_v57 = vrot.slane %v2430_v31, 2 }
 0x1e1   : > { %v2438_v51 = vrot.slane %v2437_v40, 2  ;;  %v2445_v3 = vrot.slane %v2444_v37, 2  ;;  %v2451_v13 = vmax.f32 %v2449_v4, %v2450_v54  ;;  %v2458_v22 = vmax.f32 %v2456_v25, %v2457_v5  ;;  %v1294_v54 = vld [vmem:[%s10417_s29 + $0x390] sm:$0x3f]  ;;  %v1296_v5 = vld [vmem:[%s10417_s29 + $0x3a0] sm:$0x3f] }
 0x1e2   : > { %v2465_v29 = vmax.f32 %v2463_v27, %v2464_v56  ;;  %v2472_v23 = vmax.f32 %v2470_v7, %v2471_v24  ;;  %v2425_v6 = vmax.f32 %v2423_v47, %v2424_v52  ;;  %v2432_v39 = vmax.f32 %v2430_v31, %v2431_v57  ;;  %v1293_v27 = vld [vmem:[%s10417_s29 + $0x388] sm:$0x3f]  ;;  %v1295_v7 = vld [vmem:[%s10417_s29 + $0x398] sm:$0x3f] }
 0x1e3   : > { %v2439_v26 = vmax.f32 %v2437_v40, %v2438_v51  ;;  %v2446_v41 = vmax.f32 %v2444_v37, %v2445_v3  ;;  %v2452_v49 = vrot.slane %v2451_v13, 2  ;;  %v2459_v36 = vrot.slane %v2458_v22, 2  ;;  %v1297_v56 = vld [vmem:[%s10417_s29 + $0x3a8] sm:$0x3f]  ;;  %v1298_v3 = vld [vmem:[%s10417_s29 + $0x3b0] sm:$0x3f] }
 0x1e4   : > { %v2466_v53 = vrot.slane %v2465_v29, 2  ;;  %v2473_v12 = vrot.slane %v2472_v23, 2  ;;  %v2426_v38 = vrot.slane %v2425_v6, 1  ;;  %v2433_v48 = vrot.slane %v2432_v39, 1 }
 0x1e5   : > { %v2440_v4 = vrot.slane %v2439_v26, 1  ;;  %v2447_v25 = vrot.slane %v2446_v41, 1  ;;  %v2453_v47 = vmax.f32 %v2451_v13, %v2452_v49  ;;  %v2460_v31 = vmax.f32 %v2458_v22, %v2459_v36 }
 0x1e6   : > { %v2467_v40 = vmax.f32 %v2465_v29, %v2466_v53  ;;  %v2474_v37 = vmax.f32 %v2472_v23, %v2473_v12  ;;  %v10857_v24 = vmax.f32 %v2425_v6, %v2426_v38  ;;  %v10859_v52 = vmax.f32 %v2432_v39, %v2433_v48 }
 0x1e7   : > { %v10861_v57 = vmax.f32 %v2439_v26, %v2440_v4  ;;  %v10863_v51 = vmax.f32 %v2446_v41, %v2447_v25  ;;  %v2454_v28 = vrot.slane %v2453_v47, 1  ;;  %v2461_v50 = vrot.slane %v2460_v31, 1 }
 0x1e8   : > { %13567 = vst [vmem:[#allocation82_spill] sm:$0xff] %v10857_v24  ;;  %13568 = vst [vmem:[#allocation83_spill] sm:$0xff] %v10859_v52  ;;  %v2468_v46 = vrot.slane %v2467_v40, 1  ;;  %v2475_v30 = vrot.slane %v2474_v37, 1  ;;  %v2477_v22 = vsel %vm1692_vm0, %v1292_v2, -inf  ;;  %v2484_v13 = vsel %vm1692_vm0, %v1293_v27, -inf }
 0x1e9   : > { %13569 = vst [vmem:[#allocation84_spill] sm:$0xff] %v10861_v57  ;;  %13570 = vst [vmem:[#allocation85_spill] sm:$0xff] %v10863_v51  ;;  %v2491_v29 = vsel %vm1692_vm0, %v1294_v54, -inf  ;;  %v2498_v38 = vsel %vm1692_vm0, %v1295_v7, -inf  ;;  %v10871_v48 = vmax.f32 %v2453_v47, %v2454_v28  ;;  %v10873_v23 = vmax.f32 %v2460_v31, %v2461_v50  ;;  %v1307_v52 = vld [vmem:[%s10417_s29 + $0x3f8] sm:$0x3f] }
 0x1ea   : > { %v10875_v6 = vmax.f32 %v2467_v40, %v2468_v46  ;;  %v10877_v39 = vmax.f32 %v2474_v37, %v2475_v30  ;;  %v2478_v26 = vrot.slane %v2477_v22, 4  ;;  %v2485_v41 = vrot.slane %v2484_v13, 4 }
 0x1eb   : > { %13571 = vst [vmem:[#allocation86_spill] sm:$0xff] %v10871_v48  ;;  %13572 = vst [vmem:[#allocation87_spill] sm:$0xff] %v10873_v23  ;;  %v2492_v49 = vrot.slane %v2491_v29, 4  ;;  %v2499_v36 = vrot.slane %v2498_v38, 4  ;;  %v2505_v53 = vsel %vm1692_vm0, %v1296_v5, -inf  ;;  %v2512_v12 = vsel %vm1692_vm0, %v1297_v56, -inf }
 0x1ec   : > { %13573 = vst [vmem:[#allocation88_spill] sm:$0xff] %v10875_v6  ;;  %13574 = vst [vmem:[#allocation89_spill] sm:$0xff] %v10877_v39  ;;  %v2519_v2 = vsel %vm1692_vm0, %v1298_v3, -inf  ;;  %v2526_v4 = vsel %vm1692_vm0, %v1299_v55, -inf  ;;  %v2479_v28 = vmax.f32 %v2477_v22, %v2478_v26  ;;  %v2486_v25 = vmax.f32 %v2484_v13, %v2485_v41 }
 0x1ed   : > { %v2493_v50 = vmax.f32 %v2491_v29, %v2492_v49  ;;  %v2500_v27 = vmax.f32 %v2498_v38, %v2499_v36  ;;  %v2506_v46 = vrot.slane %v2505_v53, 4  ;;  %v2513_v54 = vrot.slane %v2512_v12, 4  ;;  %v1300_v36 = vld [vmem:[%s10417_s29 + $0x3c0] sm:$0x3f] }
 0x1ee   : > { %v2520_v30 = vrot.slane %v2519_v2, 4  ;;  %v2527_v7 = vrot.slane %v2526_v4, 4  ;;  %v2480_v47 = vrot.slane %v2479_v28, 2  ;;  %v2487_v31 = vrot.slane %v2486_v25, 2 }
 0x1ef   : > { %v2494_v40 = vrot.slane %v2493_v50, 2  ;;  %v2501_v37 = vrot.slane %v2500_v27, 2  ;;  %v2507_v5 = vmax.f32 %v2505_v53, %v2506_v46  ;;  %v2514_v6 = vmax.f32 %v2512_v12, %v2513_v54  ;;  %v1302_v46 = vld [vmem:[%s10417_s29 + $0x3d0] sm:$0x3f]  ;;  %v1304_v54 = vld [vmem:[%s10417_s29 + $0x3e0] sm:$0x3f] }
 0x1f0   : > { %v2521_v56 = vmax.f32 %v2519_v2, %v2520_v30  ;;  %v2528_v3 = vmax.f32 %v2526_v4, %v2527_v7  ;;  %v2481_v55 = vmax.f32 %v2479_v28, %v2480_v47  ;;  %v2488_v22 = vmax.f32 %v2486_v25, %v2487_v31  ;;  %v1301_v2 = vld [vmem:[%s10417_s29 + $0x3c8] sm:$0x3f]  ;;  %v1303_v4 = vld [vmem:[%s10417_s29 + $0x3d8] sm:$0x3f] }
 0x1f1   : > { %v2495_v13 = vmax.f32 %v2493_v50, %v2494_v40  ;;  %v2502_v29 = vmax.f32 %v2500_v27, %v2501_v37  ;;  %v2508_v38 = vrot.slane %v2507_v5, 2  ;;  %v2515_v26 = vrot.slane %v2514_v6, 2  ;;  %v1305_v30 = vld [vmem:[%s10417_s29 + $0x3e8] sm:$0x3f]  ;;  %v1306_v37 = vld [vmem:[%s10417_s29 + $0x3f0] sm:$0x3f] }
 0x1f2   : > { %v2522_v41 = vrot.slane %v2521_v56, 2  ;;  %v2529_v49 = vrot.slane %v2528_v3, 2  ;;  %v2482_v39 = vrot.slane %v2481_v55, 1  ;;  %v2489_v48 = vrot.slane %v2488_v22, 1 }
 0x1f3   : > { %v2496_v53 = vrot.slane %v2495_v13, 1  ;;  %v2503_v12 = vrot.slane %v2502_v29, 1  ;;  %v2509_v28 = vmax.f32 %v2507_v5, %v2508_v38  ;;  %v2516_v25 = vmax.f32 %v2514_v6, %v2515_v26 }
 0x1f4   : > { %v2523_v50 = vmax.f32 %v2521_v56, %v2522_v41  ;;  %v2530_v27 = vmax.f32 %v2528_v3, %v2529_v49  ;;  %v10889_v7 = vmax.f32 %v2481_v55, %v2482_v39  ;;  %v10891_v47 = vmax.f32 %v2488_v22, %v2489_v48 }
 0x1f5   : > { %v10893_v31 = vmax.f32 %v2495_v13, %v2496_v53  ;;  %v10895_v40 = vmax.f32 %v2502_v29, %v2503_v12  ;;  %v2510_v23 = vrot.slane %v2509_v28, 1  ;;  %v2517_v57 = vrot.slane %v2516_v25, 1 }
 0x1f6   : > { %13575 = vst [vmem:[#allocation90_spill] sm:$0xff] %v10889_v7  ;;  %13576 = vst [vmem:[#allocation91_spill] sm:$0xff] %v10891_v47  ;;  %v2524_v51 = vrot.slane %v2523_v50, 1  ;;  %v2531_v24 = vrot.slane %v2530_v27, 1  ;;  %v2533_v6 = vsel %vm1692_vm0, %v1300_v36, -inf  ;;  %v2540_v5 = vsel %vm1692_vm0, %v1301_v2, -inf }
 0x1f7   : > { %13577 = vst [vmem:[#allocation92_spill] sm:$0xff] %v10893_v31  ;;  %13578 = vst [vmem:[#allocation93_spill] sm:$0xff] %v10895_v40  ;;  %v2547_v56 = vsel %vm1692_vm0, %v1302_v46, -inf  ;;  %v2554_v39 = vsel %vm1692_vm0, %v1303_v4, -inf  ;;  %v10903_v48 = vmax.f32 %v2509_v28, %v2510_v23  ;;  %v10905_v3 = vmax.f32 %v2516_v25, %v2517_v57  ;;  %v1315_v47 = vld [vmem:[%s10417_s29 + $0x438] sm:$0x3f] }
 0x1f8   : > { %v10907_v55 = vmax.f32 %v2523_v50, %v2524_v51  ;;  %v10909_v22 = vmax.f32 %v2530_v27, %v2531_v24  ;;  %v2534_v13 = vrot.slane %v2533_v6, 4  ;;  %v2541_v29 = vrot.slane %v2540_v5, 4 }
 0x1f9   : > { %13579 = vst [vmem:[#allocation94_spill] sm:$0xff] %v10903_v48  ;;  %13580 = vst [vmem:[#allocation95_spill] sm:$0xff] %v10905_v3  ;;  %v2548_v38 = vrot.slane %v2547_v56, 4  ;;  %v2555_v26 = vrot.slane %v2554_v39, 4  ;;  %v2561_v41 = vsel %vm1692_vm0, %v1304_v54, -inf  ;;  %v2568_v49 = vsel %vm1692_vm0, %v1305_v30, -inf }
 0x1fa   : > { %13581 = vst [vmem:[#allocation96_spill] sm:$0xff] %v10907_v55  ;;  %13582 = vst [vmem:[#allocation97_spill] sm:$0xff] %v10909_v22  ;;  %v2575_v36 = vsel %vm1692_vm0, %v1306_v37, -inf  ;;  %v2582_v53 = vsel %vm1692_vm0, %v1307_v52, -inf  ;;  %v2535_v23 = vmax.f32 %v2533_v6, %v2534_v13  ;;  %v2542_v12 = vmax.f32 %v2540_v5, %v2541_v29 }
 0x1fb   : > { %v2549_v57 = vmax.f32 %v2547_v56, %v2548_v38  ;;  %v2556_v2 = vmax.f32 %v2554_v39, %v2555_v26  ;;  %v2562_v51 = vrot.slane %v2561_v41, 4  ;;  %v2569_v46 = vrot.slane %v2568_v49, 4  ;;  %v1308_v26 = vld [vmem:[%s10417_s29 + $0x400] sm:$0x3f] }
 0x1fc   : > { %v2576_v24 = vrot.slane %v2575_v36, 4  ;;  %v2583_v4 = vrot.slane %v2582_v53, 4  ;;  %v2536_v28 = vrot.slane %v2535_v23, 2  ;;  %v2543_v25 = vrot.slane %v2542_v12, 2 }
 0x1fd   : > { %v2550_v50 = vrot.slane %v2549_v57, 2  ;;  %v2557_v27 = vrot.slane %v2556_v2, 2  ;;  %v2563_v54 = vmax.f32 %v2561_v41, %v2562_v51  ;;  %v2570_v55 = vmax.f32 %v2568_v49, %v2569_v46  ;;  %v1310_v51 = vld [vmem:[%s10417_s29 + $0x410] sm:$0x3f]  ;;  %v1312_v46 = vld [vmem:[%s10417_s29 + $0x420] sm:$0x3f] }
 0x1fe   : > { %v2577_v30 = vmax.f32 %v2575_v36, %v2576_v24  ;;  %v2584_v37 = vmax.f32 %v2582_v53, %v2583_v4  ;;  %v2537_v52 = vmax.f32 %v2535_v23, %v2536_v28  ;;  %v2544_v6 = vmax.f32 %v2542_v12, %v2543_v25  ;;  %v1309_v36 = vld [vmem:[%s10417_s29 + $0x408] sm:$0x3f]  ;;  %v1311_v53 = vld [vmem:[%s10417_s29 + $0x418] sm:$0x3f] }
 0x1ff   : > { %v2551_v5 = vmax.f32 %v2549_v57, %v2550_v50  ;;  %v2558_v56 = vmax.f32 %v2556_v2, %v2557_v27  ;;  %v2564_v39 = vrot.slane %v2563_v54, 2  ;;  %v2571_v13 = vrot.slane %v2570_v55, 2  ;;  %v1313_v24 = vld [vmem:[%s10417_s29 + $0x428] sm:$0x3f]  ;;  %v1314_v27 = vld [vmem:[%s10417_s29 + $0x430] sm:$0x3f] }
 0x200   : > { %v2578_v29 = vrot.slane %v2577_v30, 2  ;;  %v2585_v38 = vrot.slane %v2584_v37, 2  ;;  %v2538_v22 = vrot.slane %v2537_v52, 1  ;;  %v2545_v48 = vrot.slane %v2544_v6, 1 }
 0x201   : > { %v2552_v41 = vrot.slane %v2551_v5, 1  ;;  %v2559_v49 = vrot.slane %v2558_v56, 1  ;;  %v2565_v23 = vmax.f32 %v2563_v54, %v2564_v39  ;;  %v2572_v12 = vmax.f32 %v2570_v55, %v2571_v13 }
 0x202   : > { %v2579_v57 = vmax.f32 %v2577_v30, %v2578_v29  ;;  %v2586_v2 = vmax.f32 %v2584_v37, %v2585_v38  ;;  %v10921_v4 = vmax.f32 %v2537_v52, %v2538_v22  ;;  %v10923_v28 = vmax.f32 %v2544_v6, %v2545_v48 }
 0x203   : > { %v10925_v25 = vmax.f32 %v2551_v5, %v2552_v41  ;;  %v10927_v50 = vmax.f32 %v2558_v56, %v2559_v49  ;;  %v2566_v3 = vrot.slane %v2565_v23, 1  ;;  %v2573_v31 = vrot.slane %v2572_v12, 1 }
 0x204   : > { %13583 = vst [vmem:[#allocation98_spill] sm:$0xff] %v10921_v4  ;;  %13584 = vst [vmem:[#allocation99_spill] sm:$0xff] %v10923_v28  ;;  %v2580_v40 = vrot.slane %v2579_v57, 1  ;;  %v2587_v7 = vrot.slane %v2586_v2, 1  ;;  %v2589_v55 = vsel %vm1692_vm0, %v1308_v26, -inf  ;;  %v2596_v54 = vsel %vm1692_vm0, %v1309_v36, -inf }
 0x205   : > { %13585 = vst [vmem:[#allocation100_spill] sm:$0xff] %v10925_v25  ;;  %13586 = vst [vmem:[#allocation101_spill] sm:$0xff] %v10927_v50  ;;  %v2603_v30 = vsel %vm1692_vm0, %v1310_v51, -inf  ;;  %v2610_v22 = vsel %vm1692_vm0, %v1311_v53, -inf  ;;  %v10935_v48 = vmax.f32 %v2565_v23, %v2566_v3  ;;  %v10937_v37 = vmax.f32 %v2572_v12, %v2573_v31  ;;  %v1323_v28 = vld [vmem:[%s10417_s29 + $0x478] sm:$0x3f] }
 0x206   : > { %v10939_v52 = vmax.f32 %v2579_v57, %v2580_v40  ;;  %v10941_v6 = vmax.f32 %v2586_v2, %v2587_v7  ;;  %v2590_v5 = vrot.slane %v2589_v55, 4  ;;  %v2597_v56 = vrot.slane %v2596_v54, 4 }
 0x207   : > { %13587 = vst [vmem:[#allocation102_spill] sm:$0xff] %v10935_v48  ;;  %13588 = vst [vmem:[#allocation103_spill] sm:$0xff] %v10937_v37  ;;  %v2604_v39 = vrot.slane %v2603_v30, 4  ;;  %v2611_v13 = vrot.slane %v2610_v22, 4  ;;  %v2617_v29 = vsel %vm1692_vm0, %v1312_v46, -inf  ;;  %v2624_v38 = vsel %vm1692_vm0, %v1313_v24, -inf }
 0x208   : > { %13589 = vst [vmem:[#allocation104_spill] sm:$0xff] %v10939_v52  ;;  %13590 = vst [vmem:[#allocation105_spill] sm:$0xff] %v10941_v6  ;;  %v2631_v26 = vsel %vm1692_vm0, %v1314_v27, -inf  ;;  %v2638_v41 = vsel %vm1692_vm0, %v1315_v47, -inf  ;;  %v2591_v3 = vmax.f32 %v2589_v55, %v2590_v5  ;;  %v2598_v49 = vmax.f32 %v2596_v54, %v2597_v56 }
 0x209   : > { %v2605_v31 = vmax.f32 %v2603_v30, %v2604_v39  ;;  %v2612_v36 = vmax.f32 %v2610_v22, %v2611_v13  ;;  %v2618_v40 = vrot.slane %v2617_v29, 4  ;;  %v2625_v51 = vrot.slane %v2624_v38, 4  ;;  %v1316_v13 = vld [vmem:[%s10417_s29 + $0x440] sm:$0x3f] }
 0x20a   : > { %v2632_v7 = vrot.slane %v2631_v26, 4  ;;  %v2639_v53 = vrot.slane %v2638_v41, 4  ;;  %v2592_v23 = vrot.slane %v2591_v3, 2  ;;  %v2599_v12 = vrot.slane %v2598_v49, 2 }
 0x20b   : > { %v2606_v57 = vrot.slane %v2605_v31, 2  ;;  %v2613_v2 = vrot.slane %v2612_v36, 2  ;;  %v2619_v46 = vmax.f32 %v2617_v29, %v2618_v40  ;;  %v2626_v52 = vmax.f32 %v2624_v38, %v2625_v51  ;;  %v1318_v40 = vld [vmem:[%s10417_s29 + $0x450] sm:$0x3f]  ;;  %v1320_v51 = vld [vmem:[%s10417_s29 + $0x460] sm:$0x3f] }
 0x20c   : > { %v2633_v24 = vmax.f32 %v2631_v26, %v2632_v7  ;;  %v2640_v27 = vmax.f32 %v2638_v41, %v2639_v53  ;;  %v2593_v47 = vmax.f32 %v2591_v3, %v2592_v23  ;;  %v2600_v55 = vmax.f32 %v2598_v49, %v2599_v12  ;;  %v1317_v26 = vld [vmem:[%s10417_s29 + $0x448] sm:$0x3f]  ;;  %v1319_v41 = vld [vmem:[%s10417_s29 + $0x458] sm:$0x3f] }
 0x20d   : > { %v2607_v54 = vmax.f32 %v2605_v31, %v2606_v57  ;;  %v2614_v30 = vmax.f32 %v2612_v36, %v2613_v2  ;;  %v2620_v22 = vrot.slane %v2619_v46, 2  ;;  %v2627_v5 = vrot.slane %v2626_v52, 2  ;;  %v1321_v7 = vld [vmem:[%s10417_s29 + $0x468] sm:$0x3f]  ;;  %v1322_v2 = vld [vmem:[%s10417_s29 + $0x470] sm:$0x3f] }
 0x20e   : > { %v2634_v56 = vrot.slane %v2633_v24, 2  ;;  %v2641_v39 = vrot.slane %v2640_v27, 2  ;;  %v2594_v6 = vrot.slane %v2593_v47, 1  ;;  %v2601_v48 = vrot.slane %v2600_v55, 1 }
 0x20f   : > { %v2608_v29 = vrot.slane %v2607_v54, 1  ;;  %v2615_v38 = vrot.slane %v2614_v30, 1  ;;  %v2621_v3 = vmax.f32 %v2619_v46, %v2620_v22  ;;  %v2628_v49 = vmax.f32 %v2626_v52, %v2627_v5 }
 0x210   : > { %v2635_v31 = vmax.f32 %v2633_v24, %v2634_v56  ;;  %v2642_v36 = vmax.f32 %v2640_v27, %v2641_v39  ;;  %v10953_v53 = vmax.f32 %v2593_v47, %v2594_v6  ;;  %v10955_v23 = vmax.f32 %v2600_v55, %v2601_v48 }
 0x211   : > { %v10957_v12 = vmax.f32 %v2607_v54, %v2608_v29  ;;  %v10959_v57 = vmax.f32 %v2614_v30, %v2615_v38  ;;  %v2622_v37 = vrot.slane %v2621_v3, 1  ;;  %v2629_v25 = vrot.slane %v2628_v49, 1 }
 0x212   : > { %13591 = vst [vmem:[#allocation106_spill] sm:$0xff] %v10953_v53  ;;  %13592 = vst [vmem:[#allocation107_spill] sm:$0xff] %v10955_v23  ;;  %v2636_v50 = vrot.slane %v2635_v31, 1  ;;  %v2643_v4 = vrot.slane %v2642_v36, 1  ;;  %v2645_v52 = vsel %vm1692_vm0, %v1316_v13, -inf  ;;  %v2652_v46 = vsel %vm1692_vm0, %v1317_v26, -inf }
 0x213   : > { %13593 = vst [vmem:[#allocation108_spill] sm:$0xff] %v10957_v12  ;;  %13594 = vst [vmem:[#allocation109_spill] sm:$0xff] %v10959_v57  ;;  %v2659_v24 = vsel %vm1692_vm0, %v1318_v40, -inf  ;;  %v2666_v6 = vsel %vm1692_vm0, %v1319_v41, -inf  ;;  %v10967_v48 = vmax.f32 %v2621_v3, %v2622_v37  ;;  %v10969_v27 = vmax.f32 %v2628_v49, %v2629_v25  ;;  %v1331_v23 = vld [vmem:[%s10417_s29 + $0x4b8] sm:$0x3f] }
 0x214   : > { %v10971_v47 = vmax.f32 %v2635_v31, %v2636_v50  ;;  %v10973_v55 = vmax.f32 %v2642_v36, %v2643_v4  ;;  %v2646_v54 = vrot.slane %v2645_v52, 4  ;;  %v2653_v30 = vrot.slane %v2652_v46, 4 }
 0x215   : > { %13595 = vst [vmem:[#allocation110_spill] sm:$0xff] %v10967_v48  ;;  %13596 = vst [vmem:[#allocation111_spill] sm:$0xff] %v10969_v27  ;;  %v2660_v22 = vrot.slane %v2659_v24, 4  ;;  %v2667_v5 = vrot.slane %v2666_v6, 4  ;;  %v2673_v56 = vsel %vm1692_vm0, %v1320_v51, -inf  ;;  %v2680_v39 = vsel %vm1692_vm0, %v1321_v7, -inf }
 0x216   : > { %13597 = vst [vmem:[#allocation112_spill] sm:$0xff] %v10971_v47  ;;  %13598 = vst [vmem:[#allocation113_spill] sm:$0xff] %v10973_v55  ;;  %v2687_v13 = vsel %vm1692_vm0, %v1322_v2, -inf  ;;  %v2694_v29 = vsel %vm1692_vm0, %v1323_v28, -inf  ;;  %v2647_v37 = vmax.f32 %v2645_v52, %v2646_v54  ;;  %v2654_v38 = vmax.f32 %v2652_v46, %v2653_v30 }
 0x217   : > { %v2661_v25 = vmax.f32 %v2659_v24, %v2660_v22  ;;  %v2668_v26 = vmax.f32 %v2666_v6, %v2667_v5  ;;  %v2674_v50 = vrot.slane %v2673_v56, 4  ;;  %v2681_v40 = vrot.slane %v2680_v39, 4  ;;  %v1324_v5 = vld [vmem:[%s10417_s29 + $0x480] sm:$0x3f] }
 0x218   : > { %v2688_v4 = vrot.slane %v2687_v13, 4  ;;  %v2695_v41 = vrot.slane %v2694_v29, 4  ;;  %v2648_v3 = vrot.slane %v2647_v37, 2  ;;  %v2655_v49 = vrot.slane %v2654_v38, 2 }
 0x219   : > { %v2662_v31 = vrot.slane %v2661_v25, 2  ;;  %v2669_v36 = vrot.slane %v2668_v26, 2  ;;  %v2675_v51 = vmax.f32 %v2673_v56, %v2674_v50  ;;  %v2682_v47 = vmax.f32 %v2680_v39, %v2681_v40  ;;  %v1326_v50 = vld [vmem:[%s10417_s29 + $0x490] sm:$0x3f]  ;;  %v1328_v40 = vld [vmem:[%s10417_s29 + $0x4a0] sm:$0x3f] }
 0x21a   : > { %v2689_v7 = vmax.f32 %v2687_v13, %v2688_v4  ;;  %v2696_v2 = vmax.f32 %v2694_v29, %v2695_v41  ;;  %v2649_v28 = vmax.f32 %v2647_v37, %v2648_v3  ;;  %v2656_v52 = vmax.f32 %v2654_v38, %v2655_v49  ;;  %v1325_v13 = vld [vmem:[%s10417_s29 + $0x488] sm:$0x3f]  ;;  %v1327_v29 = vld [vmem:[%s10417_s29 + $0x498] sm:$0x3f] }
 0x21b   : > { %v2663_v46 = vmax.f32 %v2661_v25, %v2662_v31  ;;  %v2670_v24 = vmax.f32 %v2668_v26, %v2669_v36  ;;  %v2676_v6 = vrot.slane %v2675_v51, 2  ;;  %v2683_v54 = vrot.slane %v2682_v47, 2  ;;  %v1329_v4 = vld [vmem:[%s10417_s29 + $0x4a8] sm:$0x3f]  ;;  %v1330_v36 = vld [vmem:[%s10417_s29 + $0x4b0] sm:$0x3f] }
 0x21c   : > { %v2690_v30 = vrot.slane %v2689_v7, 2  ;;  %v2697_v22 = vrot.slane %v2696_v2, 2  ;;  %v2650_v55 = vrot.slane %v2649_v28, 1  ;;  %v2657_v48 = vrot.slane %v2656_v52, 1 }
 0x21d   : > { %v2664_v56 = vrot.slane %v2663_v46, 1  ;;  %v2671_v39 = vrot.slane %v2670_v24, 1  ;;  %v2677_v37 = vmax.f32 %v2675_v51, %v2676_v6  ;;  %v2684_v38 = vmax.f32 %v2682_v47, %v2683_v54 }
 0x21e   : > { %v2691_v25 = vmax.f32 %v2689_v7, %v2690_v30  ;;  %v2698_v26 = vmax.f32 %v2696_v2, %v2697_v22  ;;  %v10985_v41 = vmax.f32 %v2649_v28, %v2650_v55  ;;  %v10987_v3 = vmax.f32 %v2656_v52, %v2657_v48 }
 0x21f   : > { %v10989_v49 = vmax.f32 %v2663_v46, %v2664_v56  ;;  %v10991_v31 = vmax.f32 %v2670_v24, %v2671_v39  ;;  %v2678_v27 = vrot.slane %v2677_v37, 1  ;;  %v2685_v12 = vrot.slane %v2684_v38, 1 }
 0x220   : > { %13599 = vst [vmem:[#allocation114_spill] sm:$0xff] %v10985_v41  ;;  %13600 = vst [vmem:[#allocation115_spill] sm:$0xff] %v10987_v3  ;;  %v2692_v57 = vrot.slane %v2691_v25, 1  ;;  %v2699_v53 = vrot.slane %v2698_v26, 1  ;;  %v2701_v47 = vsel %vm1692_vm0, %v1324_v5, -inf  ;;  %v2708_v51 = vsel %vm1692_vm0, %v1325_v13, -inf }
 0x221   : > { %13601 = vst [vmem:[#allocation116_spill] sm:$0xff] %v10989_v49  ;;  %13602 = vst [vmem:[#allocation117_spill] sm:$0xff] %v10991_v31  ;;  %v2715_v7 = vsel %vm1692_vm0, %v1326_v50, -inf  ;;  %v2722_v55 = vsel %vm1692_vm0, %v1327_v29, -inf  ;;  %v10999_v48 = vmax.f32 %v2677_v37, %v2678_v27  ;;  %v11001_v2 = vmax.f32 %v2684_v38, %v2685_v12  ;;  %v1339_v3 = vld [vmem:[%s10417_s29 + $0x4f8] sm:$0x3f] }
 0x222   : > { %v11003_v28 = vmax.f32 %v2691_v25, %v2692_v57  ;;  %v11005_v52 = vmax.f32 %v2698_v26, %v2699_v53  ;;  %v2702_v46 = vrot.slane %v2701_v47, 4  ;;  %v2709_v24 = vrot.slane %v2708_v51, 4 }
 0x223   : > { %13603 = vst [vmem:[#allocation118_spill] sm:$0xff] %v10999_v48  ;;  %13604 = vst [vmem:[#allocation119_spill] sm:$0xff] %v11001_v2  ;;  %v2716_v6 = vrot.slane %v2715_v7, 4  ;;  %v2723_v54 = vrot.slane %v2722_v55, 4  ;;  %v2729_v30 = vsel %vm1692_vm0, %v1328_v40, -inf  ;;  %v2736_v22 = vsel %vm1692_vm0, %v1329_v4, -inf }
 0x224   : > { %13605 = vst [vmem:[#allocation120_spill] sm:$0xff] %v11003_v28  ;;  %13606 = vst [vmem:[#allocation121_spill] sm:$0xff] %v11005_v52  ;;  %v2743_v5 = vsel %vm1692_vm0, %v1330_v36, -inf  ;;  %v2750_v56 = vsel %vm1692_vm0, %v1331_v23, -inf  ;;  %v2703_v27 = vmax.f32 %v2701_v47, %v2702_v46  ;;  %v2710_v39 = vmax.f32 %v2708_v51, %v2709_v24 }
 0x225   : > { %v2717_v12 = vmax.f32 %v2715_v7, %v2716_v6  ;;  %v2724_v13 = vmax.f32 %v2722_v55, %v2723_v54  ;;  %v2730_v57 = vrot.slane %v2729_v30, 4  ;;  %v2737_v50 = vrot.slane %v2736_v22, 4  ;;  %v1332_v54 = vld [vmem:[%s10417_s29 + $0x4c0] sm:$0x3f] }
 0x226   : > { %v2744_v53 = vrot.slane %v2743_v5, 4  ;;  %v2751_v29 = vrot.slane %v2750_v56, 4  ;;  %v2704_v37 = vrot.slane %v2703_v27, 2  ;;  %v2711_v38 = vrot.slane %v2710_v39, 2 }
 0x227   : > { %v2718_v25 = vrot.slane %v2717_v12, 2  ;;  %v2725_v26 = vrot.slane %v2724_v13, 2  ;;  %v2731_v40 = vmax.f32 %v2729_v30, %v2730_v57  ;;  %v2738_v28 = vmax.f32 %v2736_v22, %v2737_v50  ;;  %v1334_v57 = vld [vmem:[%s10417_s29 + $0x4d0] sm:$0x3f]  ;;  %v1336_v50 = vld [vmem:[%s10417_s29 + $0x4e0] sm:$0x3f] }
 0x228   : > { %v2745_v4 = vmax.f32 %v2743_v5, %v2744_v53  ;;  %v2752_v36 = vmax.f32 %v2750_v56, %v2751_v29  ;;  %v2705_v23 = vmax.f32 %v2703_v27, %v2704_v37  ;;  %v2712_v47 = vmax.f32 %v2710_v39, %v2711_v38  ;;  %v1333_v5 = vld [vmem:[%s10417_s29 + $0x4c8] sm:$0x3f]  ;;  %v1335_v56 = vld [vmem:[%s10417_s29 + $0x4d8] sm:$0x3f] }
 0x229   : > { %v2719_v51 = vmax.f32 %v2717_v12, %v2718_v25  ;;  %v2726_v7 = vmax.f32 %v2724_v13, %v2725_v26  ;;  %v2732_v55 = vrot.slane %v2731_v40, 2  ;;  %v2739_v46 = vrot.slane %v2738_v28, 2  ;;  %v1337_v53 = vld [vmem:[%s10417_s29 + $0x4e8] sm:$0x3f]  ;;  %v1338_v26 = vld [vmem:[%s10417_s29 + $0x4f0] sm:$0x3f] }
 0x22a   : > { %v2746_v24 = vrot.slane %v2745_v4, 2  ;;  %v2753_v6 = vrot.slane %v2752_v36, 2  ;;  %v2706_v52 = vrot.slane %v2705_v23, 1  ;;  %v2713_v48 = vrot.slane %v2712_v47, 1 }
 0x22b   : > { %v2720_v30 = vrot.slane %v2719_v51, 1  ;;  %v2727_v22 = vrot.slane %v2726_v7, 1  ;;  %v2733_v27 = vmax.f32 %v2731_v40, %v2732_v55  ;;  %v2740_v39 = vmax.f32 %v2738_v28, %v2739_v46 }
 0x22c   : > { %v2747_v12 = vmax.f32 %v2745_v4, %v2746_v24  ;;  %v2754_v13 = vmax.f32 %v2752_v36, %v2753_v6  ;;  %v11017_v29 = vmax.f32 %v2705_v23, %v2706_v52  ;;  %v11019_v37 = vmax.f32 %v2712_v47, %v2713_v48 }
 0x22d   : > { %v11021_v38 = vmax.f32 %v2719_v51, %v2720_v30  ;;  %v11023_v25 = vmax.f32 %v2726_v7, %v2727_v22  ;;  %v2734_v2 = vrot.slane %v2733_v27, 1  ;;  %v2741_v49 = vrot.slane %v2740_v39, 1 }
 0x22e   : > { %13607 = vst [vmem:[#allocation122_spill] sm:$0xff] %v11017_v29  ;;  %13608 = vst [vmem:[#allocation123_spill] sm:$0xff] %v11019_v37  ;;  %v2748_v31 = vrot.slane %v2747_v12, 1  ;;  %v2755_v41 = vrot.slane %v2754_v13, 1  ;;  %v2757_v28 = vsel %vm1692_vm0, %v1332_v54, -inf  ;;  %v2764_v40 = vsel %vm1692_vm0, %v1333_v5, -inf }
 0x22f   : > { %13609 = vst [vmem:[#allocation124_spill] sm:$0xff] %v11021_v38  ;;  %13610 = vst [vmem:[#allocation125_spill] sm:$0xff] %v11023_v25  ;;  %v2771_v4 = vsel %vm1692_vm0, %v1334_v57, -inf  ;;  %v2778_v52 = vsel %vm1692_vm0, %v1335_v56, -inf  ;;  %v11031_v48 = vmax.f32 %v2733_v27, %v2734_v2  ;;  %v11033_v36 = vmax.f32 %v2740_v39, %v2741_v49  ;;  %v1347_v37 = vld [vmem:[%s10417_s29 + $0x538] sm:$0x3f] }
 0x230   : > { %v11035_v23 = vmax.f32 %v2747_v12, %v2748_v31  ;;  %v11037_v47 = vmax.f32 %v2754_v13, %v2755_v41  ;;  %v2758_v51 = vrot.slane %v2757_v28, 4  ;;  %v2765_v7 = vrot.slane %v2764_v40, 4 }
 0x231   : > { %13611 = vst [vmem:[#allocation126_spill] sm:$0xff] %v11031_v48  ;;  %13612 = vst [vmem:[#allocation127_spill] sm:$0xff] %v11033_v36  ;;  %v2772_v55 = vrot.slane %v2771_v4, 4  ;;  %v2779_v46 = vrot.slane %v2778_v52, 4  ;;  %v2785_v24 = vsel %vm1692_vm0, %v1336_v50, -inf  ;;  %v2792_v6 = vsel %vm1692_vm0, %v1337_v53, -inf }
 0x232   : > { %13613 = vst [vmem:[#allocation128_spill] sm:$0xff] %v11035_v23  ;;  %13614 = vst [vmem:[#allocation129_spill] sm:$0xff] %v11037_v47  ;;  %v2799_v54 = vsel %vm1692_vm0, %v1338_v26, -inf  ;;  %v2806_v30 = vsel %vm1692_vm0, %v1339_v3, -inf  ;;  %v2759_v2 = vmax.f32 %v2757_v28, %v2758_v51  ;;  %v2766_v22 = vmax.f32 %v2764_v40, %v2765_v7 }
 0x233   : > { %v2773_v49 = vmax.f32 %v2771_v4, %v2772_v55  ;;  %v2780_v5 = vmax.f32 %v2778_v52, %v2779_v46  ;;  %v2786_v31 = vrot.slane %v2785_v24, 4  ;;  %v2793_v57 = vrot.slane %v2792_v6, 4  ;;  %v1340_v46 = vld [vmem:[%s10417_s29 + $0x500] sm:$0x3f] }
 0x234   : > { %v2800_v41 = vrot.slane %v2799_v54, 4  ;;  %v2807_v56 = vrot.slane %v2806_v30, 4  ;;  %v2760_v27 = vrot.slane %v2759_v2, 2  ;;  %v2767_v39 = vrot.slane %v2766_v22, 2 }
 0x235   : > { %v2774_v12 = vrot.slane %v2773_v49, 2  ;;  %v2781_v13 = vrot.slane %v2780_v5, 2  ;;  %v2787_v50 = vmax.f32 %v2785_v24, %v2786_v31  ;;  %v2794_v23 = vmax.f32 %v2792_v6, %v2793_v57  ;;  %v1342_v31 = vld [vmem:[%s10417_s29 + $0x510] sm:$0x3f]  ;;  %v1344_v57 = vld [vmem:[%s10417_s29 + $0x520] sm:$0x3f] }
 0x236   : > { %v2801_v53 = vmax.f32 %v2799_v54, %v2800_v41  ;;  %v2808_v26 = vmax.f32 %v2806_v30, %v2807_v56  ;;  %v2761_v3 = vmax.f32 %v2759_v2, %v2760_v27  ;;  %v2768_v28 = vmax.f32 %v2766_v22, %v2767_v39  ;;  %v1341_v54 = vld [vmem:[%s10417_s29 + $0x508] sm:$0x3f]  ;;  %v1343_v30 = vld [vmem:[%s10417_s29 + $0x518] sm:$0x3f] }
 0x237   : > { %v2775_v40 = vmax.f32 %v2773_v49, %v2774_v12  ;;  %v2782_v4 = vmax.f32 %v2780_v5, %v2781_v13  ;;  %v2788_v52 = vrot.slane %v2787_v50, 2  ;;  %v2795_v51 = vrot.slane %v2794_v23, 2  ;;  %v1345_v41 = vld [vmem:[%s10417_s29 + $0x528] sm:$0x3f]  ;;  %v1346_v13 = vld [vmem:[%s10417_s29 + $0x530] sm:$0x3f] }
 0x238   : > { %v2802_v7 = vrot.slane %v2801_v53, 2  ;;  %v2809_v55 = vrot.slane %v2808_v26, 2  ;;  %v2762_v47 = vrot.slane %v2761_v3, 1  ;;  %v2769_v48 = vrot.slane %v2768_v28, 1 }
 0x239   : > { %v2776_v24 = vrot.slane %v2775_v40, 1  ;;  %v2783_v6 = vrot.slane %v2782_v4, 1  ;;  %v2789_v2 = vmax.f32 %v2787_v50, %v2788_v52  ;;  %v2796_v22 = vmax.f32 %v2794_v23, %v2795_v51 }
 0x23a   : > { %v2803_v49 = vmax.f32 %v2801_v53, %v2802_v7  ;;  %v2810_v5 = vmax.f32 %v2808_v26, %v2809_v55  ;;  %v11049_v56 = vmax.f32 %v2761_v3, %v2762_v47  ;;  %v11051_v27 = vmax.f32 %v2768_v28, %v2769_v48 }
 0x23b   : > { %v11053_v39 = vmax.f32 %v2775_v40, %v2776_v24  ;;  %v11055_v12 = vmax.f32 %v2782_v4, %v2783_v6  ;;  %v2790_v36 = vrot.slane %v2789_v2, 1  ;;  %v2797_v38 = vrot.slane %v2796_v22, 1 }
 0x23c   : > { %13615 = vst [vmem:[#allocation130_spill] sm:$0xff] %v11049_v56  ;;  %13616 = vst [vmem:[#allocation131_spill] sm:$0xff] %v11051_v27  ;;  %v2804_v25 = vrot.slane %v2803_v49, 1  ;;  %v2811_v29 = vrot.slane %v2810_v5, 1  ;;  %v2813_v23 = vsel %vm1692_vm0, %v1340_v46, -inf  ;;  %v2820_v50 = vsel %vm1692_vm0, %v1341_v54, -inf }
 0x23d   : > { %13617 = vst [vmem:[#allocation132_spill] sm:$0xff] %v11053_v39  ;;  %13618 = vst [vmem:[#allocation133_spill] sm:$0xff] %v11055_v12  ;;  %v2827_v53 = vsel %vm1692_vm0, %v1342_v31, -inf  ;;  %v2834_v47 = vsel %vm1692_vm0, %v1343_v30, -inf  ;;  %v11063_v48 = vmax.f32 %v2789_v2, %v2790_v36  ;;  %v11065_v26 = vmax.f32 %v2796_v22, %v2797_v38  ;;  %v1355_v27 = vld [vmem:[%s10417_s29 + $0x578] sm:$0x3f] }
 0x23e   : > { %v11067_v3 = vmax.f32 %v2803_v49, %v2804_v25  ;;  %v11069_v28 = vmax.f32 %v2810_v5, %v2811_v29  ;;  %v2814_v40 = vrot.slane %v2813_v23, 4  ;;  %v2821_v4 = vrot.slane %v2820_v50, 4 }
 0x23f   : > { %13619 = vst [vmem:[#allocation134_spill] sm:$0xff] %v11063_v48  ;;  %13620 = vst [vmem:[#allocation135_spill] sm:$0xff] %v11065_v26  ;;  %v2828_v52 = vrot.slane %v2827_v53, 4  ;;  %v2835_v51 = vrot.slane %v2834_v47, 4  ;;  %v2841_v7 = vsel %vm1692_vm0, %v1344_v57, -inf  ;;  %v2848_v55 = vsel %vm1692_vm0, %v1345_v41, -inf }
 0x240   : > { %13621 = vst [vmem:[#allocation136_spill] sm:$0xff] %v11067_v3  ;;  %13622 = vst [vmem:[#allocation137_spill] sm:$0xff] %v11069_v28  ;;  %v2855_v46 = vsel %vm1692_vm0, %v1346_v13, -inf  ;;  %v2862_v24 = vsel %vm1692_vm0, %v1347_v37, -inf  ;;  %v2815_v36 = vmax.f32 %v2813_v23, %v2814_v40  ;;  %v2822_v6 = vmax.f32 %v2820_v50, %v2821_v4 }
 0x241   : > { %v2829_v38 = vmax.f32 %v2827_v53, %v2828_v52  ;;  %v2836_v54 = vmax.f32 %v2834_v47, %v2835_v51  ;;  %v2842_v25 = vrot.slane %v2841_v7, 4  ;;  %v2849_v31 = vrot.slane %v2848_v55, 4  ;;  %v1348_v51 = vld [vmem:[%s10417_s29 + $0x540] sm:$0x3f] }
 0x242   : > { %v2856_v29 = vrot.slane %v2855_v46, 4  ;;  %v2863_v30 = vrot.slane %v2862_v24, 4  ;;  %v2816_v2 = vrot.slane %v2815_v36, 2  ;;  %v2823_v22 = vrot.slane %v2822_v6, 2 }
 0x243   : > { %v2830_v49 = vrot.slane %v2829_v38, 2  ;;  %v2837_v5 = vrot.slane %v2836_v54, 2  ;;  %v2843_v57 = vmax.f32 %v2841_v7, %v2842_v25  ;;  %v2850_v3 = vmax.f32 %v2848_v55, %v2849_v31  ;;  %v1350_v25 = vld [vmem:[%s10417_s29 + $0x550] sm:$0x3f]  ;;  %v1352_v31 = vld [vmem:[%s10417_s29 + $0x560] sm:$0x3f] }
 0x244   : > { %v2857_v41 = vmax.f32 %v2855_v46, %v2856_v29  ;;  %v2864_v13 = vmax.f32 %v2862_v24, %v2863_v30  ;;  %v2817_v37 = vmax.f32 %v2815_v36, %v2816_v2  ;;  %v2824_v23 = vmax.f32 %v2822_v6, %v2823_v22  ;;  %v1349_v46 = vld [vmem:[%s10417_s29 + $0x548] sm:$0x3f]  ;;  %v1351_v24 = vld [vmem:[%s10417_s29 + $0x558] sm:$0x3f] }
 0x245   : > { %v2831_v50 = vmax.f32 %v2829_v38, %v2830_v49  ;;  %v2838_v53 = vmax.f32 %v2836_v54, %v2837_v5  ;;  %v2844_v47 = vrot.slane %v2843_v57, 2  ;;  %v2851_v40 = vrot.slane %v2850_v3, 2  ;;  %v1353_v29 = vld [vmem:[%s10417_s29 + $0x568] sm:$0x3f]  ;;  %v1354_v5 = vld [vmem:[%s10417_s29 + $0x570] sm:$0x3f] }
 0x246   : > { %v2858_v4 = vrot.slane %v2857_v41, 2  ;;  %v2865_v52 = vrot.slane %v2864_v13, 2  ;;  %v2818_v28 = vrot.slane %v2817_v37, 1  ;;  %v2825_v48 = vrot.slane %v2824_v23, 1 }
 0x247   : > { %v2832_v7 = vrot.slane %v2831_v50, 1  ;;  %v2839_v55 = vrot.slane %v2838_v53, 1  ;;  %v2845_v36 = vmax.f32 %v2843_v57, %v2844_v47  ;;  %v2852_v6 = vmax.f32 %v2850_v3, %v2851_v40 }
 0x248   : > { %v2859_v38 = vmax.f32 %v2857_v41, %v2858_v4  ;;  %v2866_v54 = vmax.f32 %v2864_v13, %v2865_v52  ;;  %v11081_v30 = vmax.f32 %v2817_v37, %v2818_v28  ;;  %v11083_v2 = vmax.f32 %v2824_v23, %v2825_v48 }
 0x249   : > { %v11085_v22 = vmax.f32 %v2831_v50, %v2832_v7  ;;  %v11087_v49 = vmax.f32 %v2838_v53, %v2839_v55  ;;  %v2846_v26 = vrot.slane %v2845_v36, 1  ;;  %v2853_v39 = vrot.slane %v2852_v6, 1 }
 0x24a   : > { %13623 = vst [vmem:[#allocation138_spill] sm:$0xff] %v11081_v30  ;;  %13624 = vst [vmem:[#allocation139_spill] sm:$0xff] %v11083_v2  ;;  %v2860_v12 = vrot.slane %v2859_v38, 1  ;;  %v2867_v56 = vrot.slane %v2866_v54, 1  ;;  %v2869_v3 = vsel %vm1692_vm0, %v1348_v51, -inf  ;;  %v2876_v57 = vsel %vm1692_vm0, %v1349_v46, -inf }
 0x24b   : > { %13625 = vst [vmem:[#allocation140_spill] sm:$0xff] %v11085_v22  ;;  %13626 = vst [vmem:[#allocation141_spill] sm:$0xff] %v11087_v49  ;;  %v2883_v41 = vsel %vm1692_vm0, %v1350_v25, -inf  ;;  %v2890_v28 = vsel %vm1692_vm0, %v1351_v24, -inf  ;;  %v11095_v48 = vmax.f32 %v2845_v36, %v2846_v26  ;;  %v11097_v13 = vmax.f32 %v2852_v6, %v2853_v39  ;;  %v1363_v2 = vld [vmem:[%s10417_s29 + $0x5b8] sm:$0x3f] }
 0x24c   : > { %v11099_v37 = vmax.f32 %v2859_v38, %v2860_v12  ;;  %v11101_v23 = vmax.f32 %v2866_v54, %v2867_v56  ;;  %v2870_v50 = vrot.slane %v2869_v3, 4  ;;  %v2877_v53 = vrot.slane %v2876_v57, 4 }
 0x24d   : > { %13627 = vst [vmem:[#allocation142_spill] sm:$0xff] %v11095_v48  ;;  %13628 = vst [vmem:[#allocation143_spill] sm:$0xff] %v11097_v13  ;;  %v2884_v47 = vrot.slane %v2883_v41, 4  ;;  %v2891_v40 = vrot.slane %v2890_v28, 4  ;;  %v2897_v4 = vsel %vm1692_vm0, %v1352_v31, -inf  ;;  %v2904_v52 = vsel %vm1692_vm0, %v1353_v29, -inf }
 0x24e   : > { %13629 = vst [vmem:[#allocation144_spill] sm:$0xff] %v11099_v37  ;;  %13630 = vst [vmem:[#allocation145_spill] sm:$0xff] %v11101_v23  ;;  %v2911_v51 = vsel %vm1692_vm0, %v1354_v5, -inf  ;;  %v2918_v7 = vsel %vm1692_vm0, %v1355_v27, -inf  ;;  %v2871_v26 = vmax.f32 %v2869_v3, %v2870_v50  ;;  %v2878_v55 = vmax.f32 %v2876_v57, %v2877_v53 }
 0x24f   : > { %v2885_v39 = vmax.f32 %v2883_v41, %v2884_v47  ;;  %v2892_v46 = vmax.f32 %v2890_v28, %v2891_v40  ;;  %v2898_v12 = vrot.slane %v2897_v4, 4  ;;  %v2905_v25 = vrot.slane %v2904_v52, 4  ;;  %v1356_v40 = vld [vmem:[%s10417_s29 + $0x580] sm:$0x3f] }
 0x250   : > { %v2912_v56 = vrot.slane %v2911_v51, 4  ;;  %v2919_v24 = vrot.slane %v2918_v7, 4  ;;  %v2872_v36 = vrot.slane %v2871_v26, 2  ;;  %v2879_v6 = vrot.slane %v2878_v55, 2 }
 0x251   : > { %v2886_v38 = vrot.slane %v2885_v39, 2  ;;  %v2893_v54 = vrot.slane %v2892_v46, 2  ;;  %v2899_v31 = vmax.f32 %v2897_v4, %v2898_v12  ;;  %v2906_v37 = vmax.f32 %v2904_v52, %v2905_v25  ;;  %v1358_v12 = vld [vmem:[%s10417_s29 + $0x590] sm:$0x3f]  ;;  %v1360_v25 = vld [vmem:[%s10417_s29 + $0x5a0] sm:$0x3f] }
 0x252   : > { %v2913_v29 = vmax.f32 %v2911_v51, %v2912_v56  ;;  %v2920_v5 = vmax.f32 %v2918_v7, %v2919_v24  ;;  %v2873_v27 = vmax.f32 %v2871_v26, %v2872_v36  ;;  %v2880_v3 = vmax.f32 %v2878_v55, %v2879_v6  ;;  %v1357_v51 = vld [vmem:[%s10417_s29 + $0x588] sm:$0x3f]  ;;  %v1359_v7 = vld [vmem:[%s10417_s29 + $0x598] sm:$0x3f] }
 0x253   : > { %v2887_v57 = vmax.f32 %v2885_v39, %v2886_v38  ;;  %v2894_v41 = vmax.f32 %v2892_v46, %v2893_v54  ;;  %v2900_v28 = vrot.slane %v2899_v31, 2  ;;  %v2907_v50 = vrot.slane %v2906_v37, 2  ;;  %v1361_v56 = vld [vmem:[%s10417_s29 + $0x5a8] sm:$0x3f]  ;;  %v1362_v54 = vld [vmem:[%s10417_s29 + $0x5b0] sm:$0x3f] }
 0x254   : > { %v2914_v53 = vrot.slane %v2913_v29, 2  ;;  %v2921_v47 = vrot.slane %v2920_v5, 2  ;;  %v2874_v23 = vrot.slane %v2873_v27, 1  ;;  %v2881_v48 = vrot.slane %v2880_v3, 1 }
 0x255   : > { %v2888_v4 = vrot.slane %v2887_v57, 1  ;;  %v2895_v52 = vrot.slane %v2894_v41, 1  ;;  %v2901_v26 = vmax.f32 %v2899_v31, %v2900_v28  ;;  %v2908_v55 = vmax.f32 %v2906_v37, %v2907_v50 }
 0x256   : > { %v2915_v39 = vmax.f32 %v2913_v29, %v2914_v53  ;;  %v2922_v46 = vmax.f32 %v2920_v5, %v2921_v47  ;;  %v11113_v24 = vmax.f32 %v2873_v27, %v2874_v23  ;;  %v11115_v36 = vmax.f32 %v2880_v3, %v2881_v48 }
 0x257   : > { %v11117_v6 = vmax.f32 %v2887_v57, %v2888_v4  ;;  %v11119_v38 = vmax.f32 %v2894_v41, %v2895_v52  ;;  %v2902_v13 = vrot.slane %v2901_v26, 1  ;;  %v2909_v22 = vrot.slane %v2908_v55, 1 }
 0x258   : > { %13631 = vst [vmem:[#allocation146_spill] sm:$0xff] %v11113_v24  ;;  %13632 = vst [vmem:[#allocation147_spill] sm:$0xff] %v11115_v36  ;;  %v2916_v49 = vrot.slane %v2915_v39, 1  ;;  %v2923_v30 = vrot.slane %v2922_v46, 1  ;;  %v2925_v37 = vsel %vm1692_vm0, %v1356_v40, -inf  ;;  %v2932_v31 = vsel %vm1692_vm0, %v1357_v51, -inf }
 0x259   : > { %13633 = vst [vmem:[#allocation148_spill] sm:$0xff] %v11117_v6  ;;  %13634 = vst [vmem:[#allocation149_spill] sm:$0xff] %v11119_v38  ;;  %v2939_v29 = vsel %vm1692_vm0, %v1358_v12, -inf  ;;  %v2946_v23 = vsel %vm1692_vm0, %v1359_v7, -inf  ;;  %v11127_v48 = vmax.f32 %v2901_v26, %v2902_v13  ;;  %v11129_v5 = vmax.f32 %v2908_v55, %v2909_v22  ;;  %v1371_v36 = vld [vmem:[%s10417_s29 + $0x5f8] sm:$0x3f] }
 0x25a   : > { %v11131_v27 = vmax.f32 %v2915_v39, %v2916_v49  ;;  %v11133_v3 = vmax.f32 %v2922_v46, %v2923_v30  ;;  %v2926_v57 = vrot.slane %v2925_v37, 4  ;;  %v2933_v41 = vrot.slane %v2932_v31, 4 }
 0x25b   : > { %13635 = vst [vmem:[#allocation150_spill] sm:$0xff] %v11127_v48  ;;  %13636 = vst [vmem:[#allocation151_spill] sm:$0xff] %v11129_v5  ;;  %v2940_v28 = vrot.slane %v2939_v29, 4  ;;  %v2947_v50 = vrot.slane %v2946_v23, 4  ;;  %v2953_v53 = vsel %vm1692_vm0, %v1360_v25, -inf  ;;  %v2960_v47 = vsel %vm1692_vm0, %v1361_v56, -inf }
 0x25c   : > { %13637 = vst [vmem:[#allocation152_spill] sm:$0xff] %v11131_v27  ;;  %13638 = vst [vmem:[#allocation153_spill] sm:$0xff] %v11133_v3  ;;  %v2967_v40 = vsel %vm1692_vm0, %v1362_v54, -inf  ;;  %v2974_v4 = vsel %vm1692_vm0, %v1363_v2, -inf  ;;  %v2927_v13 = vmax.f32 %v2925_v37, %v2926_v57  ;;  %v2934_v52 = vmax.f32 %v2932_v31, %v2933_v41 }
 0x25d   : > { %v2941_v22 = vmax.f32 %v2939_v29, %v2940_v28  ;;  %v2948_v51 = vmax.f32 %v2946_v23, %v2947_v50  ;;  %v2954_v49 = vrot.slane %v2953_v53, 4  ;;  %v2961_v12 = vrot.slane %v2960_v47, 4  ;;  %v1364_v50 = vld [vmem:[%s10417_s29 + $0x5c0] sm:$0x3f] }
 0x25e   : > { %v2968_v30 = vrot.slane %v2967_v40, 4  ;;  %v2975_v7 = vrot.slane %v2974_v4, 4  ;;  %v2928_v26 = vrot.slane %v2927_v13, 2  ;;  %v2935_v55 = vrot.slane %v2934_v52, 2 }
 0x25f   : > { %v2942_v39 = vrot.slane %v2941_v22, 2  ;;  %v2949_v46 = vrot.slane %v2948_v51, 2  ;;  %v2955_v25 = vmax.f32 %v2953_v53, %v2954_v49  ;;  %v2962_v27 = vmax.f32 %v2960_v47, %v2961_v12  ;;  %v1366_v49 = vld [vmem:[%s10417_s29 + $0x5d0] sm:$0x3f]  ;;  %v1368_v12 = vld [vmem:[%s10417_s29 + $0x5e0] sm:$0x3f] }
 0x260   : > { %v2969_v56 = vmax.f32 %v2967_v40, %v2968_v30  ;;  %v2976_v54 = vmax.f32 %v2974_v4, %v2975_v7  ;;  %v2929_v2 = vmax.f32 %v2927_v13, %v2928_v26  ;;  %v2936_v37 = vmax.f32 %v2934_v52, %v2935_v55  ;;  %v1365_v40 = vld [vmem:[%s10417_s29 + $0x5c8] sm:$0x3f]  ;;  %v1367_v4 = vld [vmem:[%s10417_s29 + $0x5d8] sm:$0x3f] }
 0x261   : > { %v2943_v31 = vmax.f32 %v2941_v22, %v2942_v39  ;;  %v2950_v29 = vmax.f32 %v2948_v51, %v2949_v46  ;;  %v2956_v23 = vrot.slane %v2955_v25, 2  ;;  %v2963_v57 = vrot.slane %v2962_v27, 2  ;;  %v1369_v30 = vld [vmem:[%s10417_s29 + $0x5e8] sm:$0x3f]  ;;  %v1370_v46 = vld [vmem:[%s10417_s29 + $0x5f0] sm:$0x3f] }
 0x262   : > { %v2970_v41 = vrot.slane %v2969_v56, 2  ;;  %v2977_v28 = vrot.slane %v2976_v54, 2  ;;  %v2930_v3 = vrot.slane %v2929_v2, 1  ;;  %v2937_v48 = vrot.slane %v2936_v37, 1 }
 0x263   : > { %v2944_v53 = vrot.slane %v2943_v31, 1  ;;  %v2951_v47 = vrot.slane %v2950_v29, 1  ;;  %v2957_v13 = vmax.f32 %v2955_v25, %v2956_v23  ;;  %v2964_v52 = vmax.f32 %v2962_v27, %v2963_v57 }
 0x264   : > { %v2971_v22 = vmax.f32 %v2969_v56, %v2970_v41  ;;  %v2978_v51 = vmax.f32 %v2976_v54, %v2977_v28  ;;  %v11145_v7 = vmax.f32 %v2929_v2, %v2930_v3  ;;  %v11147_v26 = vmax.f32 %v2936_v37, %v2937_v48 }
 0x265   : > { %v11149_v55 = vmax.f32 %v2943_v31, %v2944_v53  ;;  %v11151_v39 = vmax.f32 %v2950_v29, %v2951_v47  ;;  %v2958_v5 = vrot.slane %v2957_v13, 1  ;;  %v2965_v6 = vrot.slane %v2964_v52, 1 }
 0x266   : > { %13639 = vst [vmem:[#allocation154_spill] sm:$0xff] %v11145_v7  ;;  %13640 = vst [vmem:[#allocation155_spill] sm:$0xff] %v11147_v26  ;;  %v2972_v38 = vrot.slane %v2971_v22, 1  ;;  %v2979_v24 = vrot.slane %v2978_v51, 1  ;;  %v2981_v27 = vsel %vm1692_vm0, %v1364_v50, -inf  ;;  %v2988_v25 = vsel %vm1692_vm0, %v1365_v40, -inf }
 0x267   : > { %13641 = vst [vmem:[#allocation156_spill] sm:$0xff] %v11149_v55  ;;  %13642 = vst [vmem:[#allocation157_spill] sm:$0xff] %v11151_v39  ;;  %v2995_v56 = vsel %vm1692_vm0, %v1366_v49, -inf  ;;  %v3002_v3 = vsel %vm1692_vm0, %v1367_v4, -inf  ;;  %v11159_v48 = vmax.f32 %v2957_v13, %v2958_v5  ;;  %v11161_v54 = vmax.f32 %v2964_v52, %v2965_v6  ;;  %v1379_v26 = vld [vmem:[%s10417_s29 + $0x638] sm:$0x3f] }
 0x268   : > { %v11163_v2 = vmax.f32 %v2971_v22, %v2972_v38  ;;  %v11165_v37 = vmax.f32 %v2978_v51, %v2979_v24  ;;  %v2982_v31 = vrot.slane %v2981_v27, 4  ;;  %v2989_v29 = vrot.slane %v2988_v25, 4 }
 0x269   : > { %13643 = vst [vmem:[#allocation158_spill] sm:$0xff] %v11159_v48  ;;  %13644 = vst [vmem:[#allocation159_spill] sm:$0xff] %v11161_v54  ;;  %v2996_v23 = vrot.slane %v2995_v56, 4  ;;  %v3003_v57 = vrot.slane %v3002_v3, 4  ;;  %v3009_v41 = vsel %vm1692_vm0, %v1368_v12, -inf  ;;  %v3016_v28 = vsel %vm1692_vm0, %v1369_v30, -inf }
 0x26a   : > { %13645 = vst [vmem:[#allocation160_spill] sm:$0xff] %v11163_v2  ;;  %13646 = vst [vmem:[#allocation161_spill] sm:$0xff] %v11165_v37  ;;  %v3023_v50 = vsel %vm1692_vm0, %v1370_v46, -inf  ;;  %v3030_v53 = vsel %vm1692_vm0, %v1371_v36, -inf  ;;  %v2983_v5 = vmax.f32 %v2981_v27, %v2982_v31  ;;  %v2990_v47 = vmax.f32 %v2988_v25, %v2989_v29 }
 0x26b   : > { %v2997_v6 = vmax.f32 %v2995_v56, %v2996_v23  ;;  %v3004_v40 = vmax.f32 %v3002_v3, %v3003_v57  ;;  %v3010_v38 = vrot.slane %v3009_v41, 4  ;;  %v3017_v49 = vrot.slane %v3016_v28, 4  ;;  %v1372_v57 = vld [vmem:[%s10417_s29 + $0x600] sm:$0x3f] }
 0x26c   : > { %v3024_v24 = vrot.slane %v3023_v50, 4  ;;  %v3031_v4 = vrot.slane %v3030_v53, 4  ;;  %v2984_v13 = vrot.slane %v2983_v5, 2  ;;  %v2991_v52 = vrot.slane %v2990_v47, 2 }
 0x26d   : > { %v2998_v22 = vrot.slane %v2997_v6, 2  ;;  %v3005_v51 = vrot.slane %v3004_v40, 2  ;;  %v3011_v12 = vmax.f32 %v3009_v41, %v3010_v38  ;;  %v3018_v2 = vmax.f32 %v3016_v28, %v3017_v49  ;;  %v1374_v38 = vld [vmem:[%s10417_s29 + $0x610] sm:$0x3f]  ;;  %v1376_v49 = vld [vmem:[%s10417_s29 + $0x620] sm:$0x3f] }
 0x26e   : > { %v3025_v30 = vmax.f32 %v3023_v50, %v3024_v24  ;;  %v3032_v46 = vmax.f32 %v3030_v53, %v3031_v4  ;;  %v2985_v36 = vmax.f32 %v2983_v5, %v2984_v13  ;;  %v2992_v27 = vmax.f32 %v2990_v47, %v2991_v52  ;;  %v1373_v50 = vld [vmem:[%s10417_s29 + $0x608] sm:$0x3f]  ;;  %v1375_v53 = vld [vmem:[%s10417_s29 + $0x618] sm:$0x3f] }
 0x26f   : > { %v2999_v25 = vmax.f32 %v2997_v6, %v2998_v22  ;;  %v3006_v56 = vmax.f32 %v3004_v40, %v3005_v51  ;;  %v3012_v3 = vrot.slane %v3011_v12, 2  ;;  %v3019_v31 = vrot.slane %v3018_v2, 2  ;;  %v1377_v24 = vld [vmem:[%s10417_s29 + $0x628] sm:$0x3f]  ;;  %v1378_v51 = vld [vmem:[%s10417_s29 + $0x630] sm:$0x3f] }
 0x270   : > { %v3026_v29 = vrot.slane %v3025_v30, 2  ;;  %v3033_v23 = vrot.slane %v3032_v46, 2  ;;  %v2986_v37 = vrot.slane %v2985_v36, 1  ;;  %v2993_v48 = vrot.slane %v2992_v27, 1 }
 0x271   : > { %v3000_v41 = vrot.slane %v2999_v25, 1  ;;  %v3007_v28 = vrot.slane %v3006_v56, 1  ;;  %v3013_v5 = vmax.f32 %v3011_v12, %v3012_v3  ;;  %v3020_v47 = vmax.f32 %v3018_v2, %v3019_v31 }
 0x272   : > { %v3027_v6 = vmax.f32 %v3025_v30, %v3026_v29  ;;  %v3034_v40 = vmax.f32 %v3032_v46, %v3033_v23  ;;  %v11177_v4 = vmax.f32 %v2985_v36, %v2986_v37  ;;  %v11179_v13 = vmax.f32 %v2992_v27, %v2993_v48 }
 0x273   : > { %v11181_v52 = vmax.f32 %v2999_v25, %v3000_v41  ;;  %v11183_v22 = vmax.f32 %v3006_v56, %v3007_v28  ;;  %v3014_v54 = vrot.slane %v3013_v5, 1  ;;  %v3021_v55 = vrot.slane %v3020_v47, 1 }
 0x274   : > { %13647 = vst [vmem:[#allocation162_spill] sm:$0xff] %v11177_v4  ;;  %13648 = vst [vmem:[#allocation163_spill] sm:$0xff] %v11179_v13  ;;  %v3028_v39 = vrot.slane %v3027_v6, 1  ;;  %v3035_v7 = vrot.slane %v3034_v40, 1  ;;  %v3037_v2 = vsel %vm1692_vm0, %v1372_v57, -inf  ;;  %v3044_v12 = vsel %vm1692_vm0, %v1373_v50, -inf }
 0x275   : > { %13649 = vst [vmem:[#allocation164_spill] sm:$0xff] %v11181_v52  ;;  %13650 = vst [vmem:[#allocation165_spill] sm:$0xff] %v11183_v22  ;;  %v3051_v30 = vsel %vm1692_vm0, %v1374_v38, -inf  ;;  %v3058_v37 = vsel %vm1692_vm0, %v1375_v53, -inf  ;;  %v11191_v48 = vmax.f32 %v3013_v5, %v3014_v54  ;;  %v11193_v46 = vmax.f32 %v3020_v47, %v3021_v55  ;;  %v1387_v13 = vld [vmem:[%s10417_s29 + $0x678] sm:$0x3f] }
 0x276   : > { %v11195_v36 = vmax.f32 %v3027_v6, %v3028_v39  ;;  %v11197_v27 = vmax.f32 %v3034_v40, %v3035_v7  ;;  %v3038_v25 = vrot.slane %v3037_v2, 4  ;;  %v3045_v56 = vrot.slane %v3044_v12, 4 }
 0x277   : > { %13651 = vst [vmem:[#allocation166_spill] sm:$0xff] %v11191_v48  ;;  %13652 = vst [vmem:[#allocation167_spill] sm:$0xff] %v11193_v46  ;;  %v3052_v3 = vrot.slane %v3051_v30, 4  ;;  %v3059_v31 = vrot.slane %v3058_v37, 4  ;;  %v3065_v29 = vsel %vm1692_vm0, %v1376_v49, -inf  ;;  %v3072_v23 = vsel %vm1692_vm0, %v1377_v24, -inf }
 0x278   : > { %13653 = vst [vmem:[#allocation168_spill] sm:$0xff] %v11195_v36  ;;  %13654 = vst [vmem:[#allocation169_spill] sm:$0xff] %v11197_v27  ;;  %v3079_v57 = vsel %vm1692_vm0, %v1378_v51, -inf  ;;  %v3086_v41 = vsel %vm1692_vm0, %v1379_v26, -inf  ;;  %v3039_v54 = vmax.f32 %v3037_v2, %v3038_v25  ;;  %v3046_v28 = vmax.f32 %v3044_v12, %v3045_v56 }
 0x279   : > { %v3053_v55 = vmax.f32 %v3051_v30, %v3052_v3  ;;  %v3060_v50 = vmax.f32 %v3058_v37, %v3059_v31  ;;  %v3066_v39 = vrot.slane %v3065_v29, 4  ;;  %v3073_v38 = vrot.slane %v3072_v23, 4  ;;  %v1380_v31 = vld [vmem:[%s10417_s29 + $0x640] sm:$0x3f] }
 0x27a   : > { %v3080_v7 = vrot.slane %v3079_v57, 4  ;;  %v3087_v53 = vrot.slane %v3086_v41, 4  ;;  %v3040_v5 = vrot.slane %v3039_v54, 2  ;;  %v3047_v47 = vrot.slane %v3046_v28, 2 }
 0x27b   : > { %v3054_v6 = vrot.slane %v3053_v55, 2  ;;  %v3061_v40 = vrot.slane %v3060_v50, 2  ;;  %v3067_v49 = vmax.f32 %v3065_v29, %v3066_v39  ;;  %v3074_v36 = vmax.f32 %v3072_v23, %v3073_v38  ;;  %v1382_v39 = vld [vmem:[%s10417_s29 + $0x650] sm:$0x3f]  ;;  %v1384_v38 = vld [vmem:[%s10417_s29 + $0x660] sm:$0x3f] }
 0x27c   : > { %v3081_v24 = vmax.f32 %v3079_v57, %v3080_v7  ;;  %v3088_v51 = vmax.f32 %v3086_v41, %v3087_v53  ;;  %v3041_v26 = vmax.f32 %v3039_v54, %v3040_v5  ;;  %v3048_v2 = vmax.f32 %v3046_v28, %v3047_v47  ;;  %v1381_v57 = vld [vmem:[%s10417_s29 + $0x648] sm:$0x3f]  ;;  %v1383_v41 = vld [vmem:[%s10417_s29 + $0x658] sm:$0x3f] }
 0x27d   : > { %v3055_v12 = vmax.f32 %v3053_v55, %v3054_v6  ;;  %v3062_v30 = vmax.f32 %v3060_v50, %v3061_v40  ;;  %v3068_v37 = vrot.slane %v3067_v49, 2  ;;  %v3075_v25 = vrot.slane %v3074_v36, 2  ;;  %v1385_v7 = vld [vmem:[%s10417_s29 + $0x668] sm:$0x3f]  ;;  %v1386_v40 = vld [vmem:[%s10417_s29 + $0x670] sm:$0x3f] }
 0x27e   : > { %v3082_v56 = vrot.slane %v3081_v24, 2  ;;  %v3089_v3 = vrot.slane %v3088_v51, 2  ;;  %v3042_v27 = vrot.slane %v3041_v26, 1  ;;  %v3049_v48 = vrot.slane %v3048_v2, 1 }
 0x27f   : > { %v3056_v29 = vrot.slane %v3055_v12, 1  ;;  %v3063_v23 = vrot.slane %v3062_v30, 1  ;;  %v3069_v54 = vmax.f32 %v3067_v49, %v3068_v37  ;;  %v3076_v28 = vmax.f32 %v3074_v36, %v3075_v25 }
 0x280   : > { %v3083_v55 = vmax.f32 %v3081_v24, %v3082_v56  ;;  %v3090_v50 = vmax.f32 %v3088_v51, %v3089_v3  ;;  %v11209_v53 = vmax.f32 %v3041_v26, %v3042_v27  ;;  %v11211_v5 = vmax.f32 %v3048_v2, %v3049_v48 }
 0x281   : > { %v11213_v47 = vmax.f32 %v3055_v12, %v3056_v29  ;;  %v11215_v6 = vmax.f32 %v3062_v30, %v3063_v23  ;;  %v3070_v46 = vrot.slane %v3069_v54, 1  ;;  %v3077_v52 = vrot.slane %v3076_v28, 1 }
 0x282   : > { %13655 = vst [vmem:[#allocation170_spill] sm:$0xff] %v11209_v53  ;;  %13656 = vst [vmem:[#allocation171_spill] sm:$0xff] %v11211_v5  ;;  %v3084_v22 = vrot.slane %v3083_v55, 1  ;;  %v3091_v4 = vrot.slane %v3090_v50, 1  ;;  %v3093_v36 = vsel %vm1692_vm0, %v1380_v31, -inf  ;;  %v3100_v49 = vsel %vm1692_vm0, %v1381_v57, -inf }
 0x283   : > { %13657 = vst [vmem:[#allocation172_spill] sm:$0xff] %v11213_v47  ;;  %13658 = vst [vmem:[#allocation173_spill] sm:$0xff] %v11215_v6  ;;  %v3107_v24 = vsel %vm1692_vm0, %v1382_v39, -inf  ;;  %v3114_v27 = vsel %vm1692_vm0, %v1383_v41, -inf  ;;  %v11223_v48 = vmax.f32 %v3069_v54, %v3070_v46  ;;  %v11225_v51 = vmax.f32 %v3076_v28, %v3077_v52  ;;  %v1395_v5 = vld [vmem:[%s10417_s29 + $0x6b8] sm:$0x3f] }
 0x284   : > { %v11227_v26 = vmax.f32 %v3083_v55, %v3084_v22  ;;  %v11229_v2 = vmax.f32 %v3090_v50, %v3091_v4  ;;  %v3094_v12 = vrot.slane %v3093_v36, 4  ;;  %v3101_v30 = vrot.slane %v3100_v49, 4 }
 0x285   : > { %13659 = vst [vmem:[#allocation174_spill] sm:$0xff] %v11223_v48  ;;  %13660 = vst [vmem:[#allocation175_spill] sm:$0xff] %v11225_v51  ;;  %v3108_v37 = vrot.slane %v3107_v24, 4  ;;  %v3115_v25 = vrot.slane %v3114_v27, 4  ;;  %v3121_v56 = vsel %vm1692_vm0, %v1384_v38, -inf  ;;  %v3128_v3 = vsel %vm1692_vm0, %v1385_v7, -inf }
 0x286   : > { %13661 = vst [vmem:[#allocation176_spill] sm:$0xff] %v11227_v26  ;;  %13662 = vst [vmem:[#allocation177_spill] sm:$0xff] %v11229_v2  ;;  %v3135_v31 = vsel %vm1692_vm0, %v1386_v40, -inf  ;;  %v3142_v29 = vsel %vm1692_vm0, %v1387_v13, -inf  ;;  %v3095_v46 = vmax.f32 %v3093_v36, %v3094_v12  ;;  %v3102_v23 = vmax.f32 %v3100_v49, %v3101_v30 }
 0x287   : > { %v3109_v52 = vmax.f32 %v3107_v24, %v3108_v37  ;;  %v3116_v57 = vmax.f32 %v3114_v27, %v3115_v25  ;;  %v3122_v22 = vrot.slane %v3121_v56, 4  ;;  %v3129_v39 = vrot.slane %v3128_v3, 4  ;;  %v1388_v25 = vld [vmem:[%s10417_s29 + $0x680] sm:$0x3f] }
 0x288   : > { %v3136_v4 = vrot.slane %v3135_v31, 4  ;;  %v3143_v41 = vrot.slane %v3142_v29, 4  ;;  %v3096_v54 = vrot.slane %v3095_v46, 2  ;;  %v3103_v28 = vrot.slane %v3102_v23, 2 }
 0x289   : > { %v3110_v55 = vrot.slane %v3109_v52, 2  ;;  %v3117_v50 = vrot.slane %v3116_v57, 2  ;;  %v3123_v38 = vmax.f32 %v3121_v56, %v3122_v22  ;;  %v3130_v26 = vmax.f32 %v3128_v3, %v3129_v39  ;;  %v1390_v22 = vld [vmem:[%s10417_s29 + $0x690] sm:$0x3f]  ;;  %v1392_v39 = vld [vmem:[%s10417_s29 + $0x6a0] sm:$0x3f] }
 0x28a   : > { %v3137_v7 = vmax.f32 %v3135_v31, %v3136_v4  ;;  %v3144_v40 = vmax.f32 %v3142_v29, %v3143_v41  ;;  %v3097_v13 = vmax.f32 %v3095_v46, %v3096_v54  ;;  %v3104_v36 = vmax.f32 %v3102_v23, %v3103_v28  ;;  %v1389_v31 = vld [vmem:[%s10417_s29 + $0x688] sm:$0x3f]  ;;  %v1391_v29 = vld [vmem:[%s10417_s29 + $0x698] sm:$0x3f] }
 0x28b   : > { %v3111_v49 = vmax.f32 %v3109_v52, %v3110_v55  ;;  %v3118_v24 = vmax.f32 %v3116_v57, %v3117_v50  ;;  %v3124_v27 = vrot.slane %v3123_v38, 2  ;;  %v3131_v12 = vrot.slane %v3130_v26, 2  ;;  %v1393_v4 = vld [vmem:[%s10417_s29 + $0x6a8] sm:$0x3f]  ;;  %v1394_v50 = vld [vmem:[%s10417_s29 + $0x6b0] sm:$0x3f] }
 0x28c   : > { %v3138_v30 = vrot.slane %v3137_v7, 2  ;;  %v3145_v37 = vrot.slane %v3144_v40, 2  ;;  %v3098_v2 = vrot.slane %v3097_v13, 1  ;;  %v3105_v48 = vrot.slane %v3104_v36, 1 }
 0x28d   : > { %v3112_v56 = vrot.slane %v3111_v49, 1  ;;  %v3119_v3 = vrot.slane %v3118_v24, 1  ;;  %v3125_v46 = vmax.f32 %v3123_v38, %v3124_v27  ;;  %v3132_v23 = vmax.f32 %v3130_v26, %v3131_v12 }
 0x28e   : > { %v3139_v52 = vmax.f32 %v3137_v7, %v3138_v30  ;;  %v3146_v57 = vmax.f32 %v3144_v40, %v3145_v37  ;;  %v11241_v41 = vmax.f32 %v3097_v13, %v3098_v2  ;;  %v11243_v54 = vmax.f32 %v3104_v36, %v3105_v48 }
 0x28f   : > { %v11245_v28 = vmax.f32 %v3111_v49, %v3112_v56  ;;  %v11247_v55 = vmax.f32 %v3118_v24, %v3119_v3  ;;  %v3126_v51 = vrot.slane %v3125_v46, 1  ;;  %v3133_v47 = vrot.slane %v3132_v23, 1 }
 0x290   : > { %13663 = vst [vmem:[#allocation178_spill] sm:$0xff] %v11241_v41  ;;  %13664 = vst [vmem:[#allocation179_spill] sm:$0xff] %v11243_v54  ;;  %v3140_v6 = vrot.slane %v3139_v52, 1  ;;  %v3147_v53 = vrot.slane %v3146_v57, 1  ;;  %v3149_v26 = vsel %vm1692_vm0, %v1388_v25, -inf  ;;  %v3156_v38 = vsel %vm1692_vm0, %v1389_v31, -inf }
 0x291   : > { %13665 = vst [vmem:[#allocation180_spill] sm:$0xff] %v11245_v28  ;;  %13666 = vst [vmem:[#allocation181_spill] sm:$0xff] %v11247_v55  ;;  %v3163_v7 = vsel %vm1692_vm0, %v1390_v22, -inf  ;;  %v3170_v2 = vsel %vm1692_vm0, %v1391_v29, -inf  ;;  %v11255_v48 = vmax.f32 %v3125_v46, %v3126_v51  ;;  %v11257_v40 = vmax.f32 %v3132_v23, %v3133_v47  ;;  %v1403_v54 = vld [vmem:[%s10417_s29 + $0x6f8] sm:$0x3f] }
 0x292   : > { %v11259_v13 = vmax.f32 %v3139_v52, %v3140_v6  ;;  %v11261_v36 = vmax.f32 %v3146_v57, %v3147_v53  ;;  %v3150_v49 = vrot.slane %v3149_v26, 4  ;;  %v3157_v24 = vrot.slane %v3156_v38, 4 }
 0x293   : > { %13667 = vst [vmem:[#allocation182_spill] sm:$0xff] %v11255_v48  ;;  %13668 = vst [vmem:[#allocation183_spill] sm:$0xff] %v11257_v40  ;;  %v3164_v27 = vrot.slane %v3163_v7, 4  ;;  %v3171_v12 = vrot.slane %v3170_v2, 4  ;;  %v3177_v30 = vsel %vm1692_vm0, %v1392_v39, -inf  ;;  %v3184_v37 = vsel %vm1692_vm0, %v1393_v4, -inf }
 0x294   : > { %13669 = vst [vmem:[#allocation184_spill] sm:$0xff] %v11259_v13  ;;  %13670 = vst [vmem:[#allocation185_spill] sm:$0xff] %v11261_v36  ;;  %v3191_v25 = vsel %vm1692_vm0, %v1394_v50, -inf  ;;  %v3198_v56 = vsel %vm1692_vm0, %v1395_v5, -inf  ;;  %v3151_v51 = vmax.f32 %v3149_v26, %v3150_v49  ;;  %v3158_v3 = vmax.f32 %v3156_v38, %v3157_v24 }
 0x295   : > { %v3165_v47 = vmax.f32 %v3163_v7, %v3164_v27  ;;  %v3172_v31 = vmax.f32 %v3170_v2, %v3171_v12  ;;  %v3178_v6 = vrot.slane %v3177_v30, 4  ;;  %v3185_v22 = vrot.slane %v3184_v37, 4  ;;  %v1396_v12 = vld [vmem:[%s10417_s29 + $0x6c0] sm:$0x3f] }
 0x296   : > { %v3192_v53 = vrot.slane %v3191_v25, 4  ;;  %v3199_v29 = vrot.slane %v3198_v56, 4  ;;  %v3152_v46 = vrot.slane %v3151_v51, 2  ;;  %v3159_v23 = vrot.slane %v3158_v3, 2 }
 0x297   : > { %v3166_v52 = vrot.slane %v3165_v47, 2  ;;  %v3173_v57 = vrot.slane %v3172_v31, 2  ;;  %v3179_v39 = vmax.f32 %v3177_v30, %v3178_v6  ;;  %v3186_v13 = vmax.f32 %v3184_v37, %v3185_v22  ;;  %v1398_v6 = vld [vmem:[%s10417_s29 + $0x6d0] sm:$0x3f]  ;;  %v1400_v22 = vld [vmem:[%s10417_s29 + $0x6e0] sm:$0x3f] }
 0x298   : > { %v3193_v4 = vmax.f32 %v3191_v25, %v3192_v53  ;;  %v3200_v50 = vmax.f32 %v3198_v56, %v3199_v29  ;;  %v3153_v5 = vmax.f32 %v3151_v51, %v3152_v46  ;;  %v3160_v26 = vmax.f32 %v3158_v3, %v3159_v23  ;;  %v1397_v25 = vld [vmem:[%s10417_s29 + $0x6c8] sm:$0x3f]  ;;  %v1399_v56 = vld [vmem:[%s10417_s29 + $0x6d8] sm:$0x3f] }
 0x299   : > { %v3167_v38 = vmax.f32 %v3165_v47, %v3166_v52  ;;  %v3174_v7 = vmax.f32 %v3172_v31, %v3173_v57  ;;  %v3180_v2 = vrot.slane %v3179_v39, 2  ;;  %v3187_v49 = vrot.slane %v3186_v13, 2  ;;  %v1401_v53 = vld [vmem:[%s10417_s29 + $0x6e8] sm:$0x3f]  ;;  %v1402_v57 = vld [vmem:[%s10417_s29 + $0x6f0] sm:$0x3f] }
 0x29a   : > { %v3194_v24 = vrot.slane %v3193_v4, 2  ;;  %v3201_v27 = vrot.slane %v3200_v50, 2  ;;  %v3154_v36 = vrot.slane %v3153_v5, 1  ;;  %v3161_v48 = vrot.slane %v3160_v26, 1 }
 0x29b   : > { %v3168_v30 = vrot.slane %v3167_v38, 1  ;;  %v3175_v37 = vrot.slane %v3174_v7, 1  ;;  %v3181_v51 = vmax.f32 %v3179_v39, %v3180_v2  ;;  %v3188_v3 = vmax.f32 %v3186_v13, %v3187_v49 }
 0x29c   : > { %v3195_v47 = vmax.f32 %v3193_v4, %v3194_v24  ;;  %v3202_v31 = vmax.f32 %v3200_v50, %v3201_v27  ;;  %v11273_v29 = vmax.f32 %v3153_v5, %v3154_v36  ;;  %v11275_v46 = vmax.f32 %v3160_v26, %v3161_v48 }
 0x29d   : > { %v11277_v23 = vmax.f32 %v3167_v38, %v3168_v30  ;;  %v11279_v52 = vmax.f32 %v3174_v7, %v3175_v37  ;;  %v3182_v40 = vrot.slane %v3181_v51, 1  ;;  %v3189_v28 = vrot.slane %v3188_v3, 1 }
 0x29e   : > { %13671 = vst [vmem:[#allocation186_spill] sm:$0xff] %v11273_v29  ;;  %13672 = vst [vmem:[#allocation187_spill] sm:$0xff] %v11275_v46  ;;  %v3196_v55 = vrot.slane %v3195_v47, 1  ;;  %v3203_v41 = vrot.slane %v3202_v31, 1  ;;  %v3205_v13 = vsel %vm1692_vm0, %v1396_v12, -inf  ;;  %v3212_v39 = vsel %vm1692_vm0, %v1397_v25, -inf }
 0x29f   : > { %13673 = vst [vmem:[#allocation188_spill] sm:$0xff] %v11277_v23  ;;  %13674 = vst [vmem:[#allocation189_spill] sm:$0xff] %v11279_v52  ;;  %v3219_v4 = vsel %vm1692_vm0, %v1398_v6, -inf  ;;  %v3226_v36 = vsel %vm1692_vm0, %v1399_v56, -inf  ;;  %v11287_v48 = vmax.f32 %v3181_v51, %v3182_v40  ;;  %v11289_v50 = vmax.f32 %v3188_v3, %v3189_v28  ;;  %v1411_v46 = vld [vmem:[%s10417_s29 + $0x738] sm:$0x3f] }
 0x2a0   : > { %v11291_v5 = vmax.f32 %v3195_v47, %v3196_v55  ;;  %v11293_v26 = vmax.f32 %v3202_v31, %v3203_v41  ;;  %v3206_v38 = vrot.slane %v3205_v13, 4  ;;  %v3213_v7 = vrot.slane %v3212_v39, 4 }
 0x2a1   : > { %13675 = vst [vmem:[#allocation190_spill] sm:$0xff] %v11287_v48  ;;  %13676 = vst [vmem:[#allocation191_spill] sm:$0xff] %v11289_v50  ;;  %v3220_v2 = vrot.slane %v3219_v4, 4  ;;  %v3227_v49 = vrot.slane %v3226_v36, 4  ;;  %v3233_v24 = vsel %vm1692_vm0, %v1400_v22, -inf  ;;  %v3240_v27 = vsel %vm1692_vm0, %v1401_v53, -inf }
 0x2a2   : > { %13677 = vst [vmem:[#allocation192_spill] sm:$0xff] %v11291_v5  ;;  %13678 = vst [vmem:[#allocation193_spill] sm:$0xff] %v11293_v26  ;;  %v3247_v12 = vsel %vm1692_vm0, %v1402_v57, -inf  ;;  %v3254_v30 = vsel %vm1692_vm0, %v1403_v54, -inf  ;;  %v3207_v40 = vmax.f32 %v3205_v13, %v3206_v38  ;;  %v3214_v37 = vmax.f32 %v3212_v39, %v3213_v7 }
 0x2a3   : > { %v3221_v28 = vmax.f32 %v3219_v4, %v3220_v2  ;;  %v3228_v25 = vmax.f32 %v3226_v36, %v3227_v49  ;;  %v3234_v55 = vrot.slane %v3233_v24, 4  ;;  %v3241_v6 = vrot.slane %v3240_v27, 4  ;;  %v1404_v49 = vld [vmem:[%s10417_s29 + $0x700] sm:$0x3f] }
 0x2a4   : > { %v3248_v41 = vrot.slane %v3247_v12, 4  ;;  %v3255_v56 = vrot.slane %v3254_v30, 4  ;;  %v3208_v51 = vrot.slane %v3207_v40, 2  ;;  %v3215_v3 = vrot.slane %v3214_v37, 2 }
 0x2a5   : > { %v3222_v47 = vrot.slane %v3221_v28, 2  ;;  %v3229_v31 = vrot.slane %v3228_v25, 2  ;;  %v3235_v22 = vmax.f32 %v3233_v24, %v3234_v55  ;;  %v3242_v5 = vmax.f32 %v3240_v27, %v3241_v6  ;;  %v1406_v55 = vld [vmem:[%s10417_s29 + $0x710] sm:$0x3f]  ;;  %v1408_v6 = vld [vmem:[%s10417_s29 + $0x720] sm:$0x3f] }
 0x2a6   : > { %v3249_v53 = vmax.f32 %v3247_v12, %v3248_v41  ;;  %v3256_v57 = vmax.f32 %v3254_v30, %v3255_v56  ;;  %v3209_v54 = vmax.f32 %v3207_v40, %v3208_v51  ;;  %v3216_v13 = vmax.f32 %v3214_v37, %v3215_v3  ;;  %v1405_v12 = vld [vmem:[%s10417_s29 + $0x708] sm:$0x3f]  ;;  %v1407_v30 = vld [vmem:[%s10417_s29 + $0x718] sm:$0x3f] }
 0x2a7   : > { %v3223_v39 = vmax.f32 %v3221_v28, %v3222_v47  ;;  %v3230_v4 = vmax.f32 %v3228_v25, %v3229_v31  ;;  %v3236_v36 = vrot.slane %v3235_v22, 2  ;;  %v3243_v38 = vrot.slane %v3242_v5, 2  ;;  %v1409_v41 = vld [vmem:[%s10417_s29 + $0x728] sm:$0x3f]  ;;  %v1410_v31 = vld [vmem:[%s10417_s29 + $0x730] sm:$0x3f] }
 0x2a8   : > { %v3250_v7 = vrot.slane %v3249_v53, 2  ;;  %v3257_v2 = vrot.slane %v3256_v57, 2  ;;  %v3210_v26 = vrot.slane %v3209_v54, 1  ;;  %v3217_v48 = vrot.slane %v3216_v13, 1 }
 0x2a9   : > { %v3224_v24 = vrot.slane %v3223_v39, 1  ;;  %v3231_v27 = vrot.slane %v3230_v4, 1  ;;  %v3237_v40 = vmax.f32 %v3235_v22, %v3236_v36  ;;  %v3244_v37 = vmax.f32 %v3242_v5, %v3243_v38 }
 0x2aa   : > { %v3251_v28 = vmax.f32 %v3249_v53, %v3250_v7  ;;  %v3258_v25 = vmax.f32 %v3256_v57, %v3257_v2  ;;  %v11305_v56 = vmax.f32 %v3209_v54, %v3210_v26  ;;  %v11307_v51 = vmax.f32 %v3216_v13, %v3217_v48 }
 0x2ab   : > { %v11309_v3 = vmax.f32 %v3223_v39, %v3224_v24  ;;  %v11311_v47 = vmax.f32 %v3230_v4, %v3231_v27  ;;  %v3238_v50 = vrot.slane %v3237_v40, 1  ;;  %v3245_v23 = vrot.slane %v3244_v37, 1 }
 0x2ac   : > { %13679 = vst [vmem:[#allocation194_spill] sm:$0xff] %v11305_v56  ;;  %13680 = vst [vmem:[#allocation195_spill] sm:$0xff] %v11307_v51  ;;  %v3252_v52 = vrot.slane %v3251_v28, 1  ;;  %v3259_v29 = vrot.slane %v3258_v25, 1  ;;  %v3261_v5 = vsel %vm1692_vm0, %v1404_v49, -inf  ;;  %v3268_v22 = vsel %vm1692_vm0, %v1405_v12, -inf }
 0x2ad   : > { %13681 = vst [vmem:[#allocation196_spill] sm:$0xff] %v11309_v3  ;;  %13682 = vst [vmem:[#allocation197_spill] sm:$0xff] %v11311_v47  ;;  %v3275_v53 = vsel %vm1692_vm0, %v1406_v55, -inf  ;;  %v3282_v26 = vsel %vm1692_vm0, %v1407_v30, -inf  ;;  %v11319_v48 = vmax.f32 %v3237_v40, %v3238_v50  ;;  %v11321_v57 = vmax.f32 %v3244_v37, %v3245_v23  ;;  %v1419_v51 = vld [vmem:[%s10417_s29 + $0x778] sm:$0x3f] }
 0x2ae   : > { %v11323_v54 = vmax.f32 %v3251_v28, %v3252_v52  ;;  %v11325_v13 = vmax.f32 %v3258_v25, %v3259_v29  ;;  %v3262_v39 = vrot.slane %v3261_v5, 4  ;;  %v3269_v4 = vrot.slane %v3268_v22, 4 }
 0x2af   : > { %13683 = vst [vmem:[#allocation198_spill] sm:$0xff] %v11319_v48  ;;  %13684 = vst [vmem:[#allocation199_spill] sm:$0xff] %v11321_v57  ;;  %v3276_v36 = vrot.slane %v3275_v53, 4  ;;  %v3283_v38 = vrot.slane %v3282_v26, 4  ;;  %v3289_v7 = vsel %vm1692_vm0, %v1408_v6, -inf  ;;  %v3296_v2 = vsel %vm1692_vm0, %v1409_v41, -inf }
 0x2b0   : > { %13685 = vst [vmem:[#allocation200_spill] sm:$0xff] %v11323_v54  ;;  %13686 = vst [vmem:[#allocation201_spill] sm:$0xff] %v11325_v13  ;;  %v3303_v49 = vsel %vm1692_vm0, %v1410_v31, -inf  ;;  %v3310_v24 = vsel %vm1692_vm0, %v1411_v46, -inf  ;;  %v3263_v50 = vmax.f32 %v3261_v5, %v3262_v39  ;;  %v3270_v27 = vmax.f32 %v3268_v22, %v3269_v4 }
 0x2b1   : > { %v3277_v23 = vmax.f32 %v3275_v53, %v3276_v36  ;;  %v3284_v12 = vmax.f32 %v3282_v26, %v3283_v38  ;;  %v3290_v52 = vrot.slane %v3289_v7, 4  ;;  %v3297_v55 = vrot.slane %v3296_v2, 4  ;;  %v1412_v38 = vld [vmem:[%s10417_s29 + $0x740] sm:$0x3f] }
 0x2b2   : > { %v3304_v29 = vrot.slane %v3303_v49, 4  ;;  %v3311_v30 = vrot.slane %v3310_v24, 4  ;;  %v3264_v40 = vrot.slane %v3263_v50, 2  ;;  %v3271_v37 = vrot.slane %v3270_v27, 2 }
 0x2b3   : > { %v3278_v28 = vrot.slane %v3277_v23, 2  ;;  %v3285_v25 = vrot.slane %v3284_v12, 2  ;;  %v3291_v6 = vmax.f32 %v3289_v7, %v3290_v52  ;;  %v3298_v54 = vmax.f32 %v3296_v2, %v3297_v55  ;;  %v1414_v52 = vld [vmem:[%s10417_s29 + $0x750] sm:$0x3f]  ;;  %v1416_v55 = vld [vmem:[%s10417_s29 + $0x760] sm:$0x3f] }
 0x2b4   : > { %v3305_v41 = vmax.f32 %v3303_v49, %v3304_v29  ;;  %v3312_v31 = vmax.f32 %v3310_v24, %v3311_v30  ;;  %v3265_v46 = vmax.f32 %v3263_v50, %v3264_v40  ;;  %v3272_v5 = vmax.f32 %v3270_v27, %v3271_v37  ;;  %v1413_v49 = vld [vmem:[%s10417_s29 + $0x748] sm:$0x3f]  ;;  %v1415_v24 = vld [vmem:[%s10417_s29 + $0x758] sm:$0x3f] }
 0x2b5   : > { %v3279_v22 = vmax.f32 %v3277_v23, %v3278_v28  ;;  %v3286_v53 = vmax.f32 %v3284_v12, %v3285_v25  ;;  %v3292_v26 = vrot.slane %v3291_v6, 2  ;;  %v3299_v39 = vrot.slane %v3298_v54, 2  ;;  %v1417_v29 = vld [vmem:[%s10417_s29 + $0x768] sm:$0x3f]  ;;  %v1418_v25 = vld [vmem:[%s10417_s29 + $0x770] sm:$0x3f] }
 0x2b6   : > { %v3306_v4 = vrot.slane %v3305_v41, 2  ;;  %v3313_v36 = vrot.slane %v3312_v31, 2  ;;  %v3266_v13 = vrot.slane %v3265_v46, 1  ;;  %v3273_v48 = vrot.slane %v3272_v5, 1 }
 0x2b7   : > { %v3280_v7 = vrot.slane %v3279_v22, 1  ;;  %v3287_v2 = vrot.slane %v3286_v53, 1  ;;  %v3293_v50 = vmax.f32 %v3291_v6, %v3292_v26  ;;  %v3300_v27 = vmax.f32 %v3298_v54, %v3299_v39 }
 0x2b8   : > { %v3307_v23 = vmax.f32 %v3305_v41, %v3306_v4  ;;  %v3314_v12 = vmax.f32 %v3312_v31, %v3313_v36  ;;  %v11337_v30 = vmax.f32 %v3265_v46, %v3266_v13  ;;  %v11339_v40 = vmax.f32 %v3272_v5, %v3273_v48 }
 0x2b9   : > { %v11341_v37 = vmax.f32 %v3279_v22, %v3280_v7  ;;  %v11343_v28 = vmax.f32 %v3286_v53, %v3287_v2  ;;  %v3294_v57 = vrot.slane %v3293_v50, 1  ;;  %v3301_v3 = vrot.slane %v3300_v27, 1 }
 0x2ba   : > { %13687 = vst [vmem:[#allocation202_spill] sm:$0xff] %v11337_v30  ;;  %13688 = vst [vmem:[#allocation203_spill] sm:$0xff] %v11339_v40  ;;  %v3308_v47 = vrot.slane %v3307_v23, 1  ;;  %v3315_v56 = vrot.slane %v3314_v12, 1  ;;  %v3317_v54 = vsel %vm1692_vm0, %v1412_v38, -inf  ;;  %v3324_v6 = vsel %vm1692_vm0, %v1413_v49, -inf }
 0x2bb   : > { %13689 = vst [vmem:[#allocation204_spill] sm:$0xff] %v11341_v37  ;;  %13690 = vst [vmem:[#allocation205_spill] sm:$0xff] %v11343_v28  ;;  %v3331_v41 = vsel %vm1692_vm0, %v1414_v52, -inf  ;;  %v3338_v13 = vsel %vm1692_vm0, %v1415_v24, -inf  ;;  %v11351_v48 = vmax.f32 %v3293_v50, %v3294_v57  ;;  %v11353_v31 = vmax.f32 %v3300_v27, %v3301_v3  ;;  %v1427_v40 = vld [vmem:[%s10417_s29 + $0x7b8] sm:$0x3f] }
 0x2bc   : > { %v11355_v46 = vmax.f32 %v3307_v23, %v3308_v47  ;;  %v11357_v5 = vmax.f32 %v3314_v12, %v3315_v56  ;;  %v3318_v22 = vrot.slane %v3317_v54, 4  ;;  %v3325_v53 = vrot.slane %v3324_v6, 4 }
 0x2bd   : > { %13691 = vst [vmem:[#allocation206_spill] sm:$0xff] %v11351_v48  ;;  %13692 = vst [vmem:[#allocation207_spill] sm:$0xff] %v11353_v31  ;;  %v3332_v26 = vrot.slane %v3331_v41, 4  ;;  %v3339_v39 = vrot.slane %v3338_v13, 4  ;;  %v3345_v4 = vsel %vm1692_vm0, %v1416_v55, -inf  ;;  %v3352_v36 = vsel %vm1692_vm0, %v1417_v29, -inf }
 0x2be   : > { %13693 = vst [vmem:[#allocation208_spill] sm:$0xff] %v11355_v46  ;;  %13694 = vst [vmem:[#allocation209_spill] sm:$0xff] %v11357_v5  ;;  %v3359_v38 = vsel %vm1692_vm0, %v1418_v25, -inf  ;;  %v3366_v7 = vsel %vm1692_vm0, %v1419_v51, -inf  ;;  %v3319_v57 = vmax.f32 %v3317_v54, %v3318_v22  ;;  %v3326_v2 = vmax.f32 %v3324_v6, %v3325_v53 }
 0x2bf   : > { %v3333_v3 = vmax.f32 %v3331_v41, %v3332_v26  ;;  %v3340_v49 = vmax.f32 %v3338_v13, %v3339_v39  ;;  %v3346_v47 = vrot.slane %v3345_v4, 4  ;;  %v3353_v52 = vrot.slane %v3352_v36, 4  ;;  %v1420_v39 = vld [vmem:[%s10417_s29 + $0x780] sm:$0x3f] }
 0x2c0   : > { %v3360_v56 = vrot.slane %v3359_v38, 4  ;;  %v3367_v24 = vrot.slane %v3366_v7, 4  ;;  %v3320_v50 = vrot.slane %v3319_v57, 2  ;;  %v3327_v27 = vrot.slane %v3326_v2, 2 }
 0x2c1   : > { %v3334_v23 = vrot.slane %v3333_v3, 2  ;;  %v3341_v12 = vrot.slane %v3340_v49, 2  ;;  %v3347_v55 = vmax.f32 %v3345_v4, %v3346_v47  ;;  %v3354_v46 = vmax.f32 %v3352_v36, %v3353_v52  ;;  %v1422_v47 = vld [vmem:[%s10417_s29 + $0x790] sm:$0x3f]  ;;  %v1424_v52 = vld [vmem:[%s10417_s29 + $0x7a0] sm:$0x3f] }
 0x2c2   : > { %v3361_v29 = vmax.f32 %v3359_v38, %v3360_v56  ;;  %v3368_v25 = vmax.f32 %v3366_v7, %v3367_v24  ;;  %v3321_v51 = vmax.f32 %v3319_v57, %v3320_v50  ;;  %v3328_v54 = vmax.f32 %v3326_v2, %v3327_v27  ;;  %v1421_v38 = vld [vmem:[%s10417_s29 + $0x788] sm:$0x3f]  ;;  %v1423_v7 = vld [vmem:[%s10417_s29 + $0x798] sm:$0x3f] }
 0x2c3   : > { %v3335_v6 = vmax.f32 %v3333_v3, %v3334_v23  ;;  %v3342_v41 = vmax.f32 %v3340_v49, %v3341_v12  ;;  %v3348_v13 = vrot.slane %v3347_v55, 2  ;;  %v3355_v22 = vrot.slane %v3354_v46, 2  ;;  %v1425_v56 = vld [vmem:[%s10417_s29 + $0x7a8] sm:$0x3f]  ;;  %v1426_v12 = vld [vmem:[%s10417_s29 + $0x7b0] sm:$0x3f] }
 0x2c4   : > { %v3362_v53 = vrot.slane %v3361_v29, 2  ;;  %v3369_v26 = vrot.slane %v3368_v25, 2  ;;  %v3322_v5 = vrot.slane %v3321_v51, 1  ;;  %v3329_v48 = vrot.slane %v3328_v54, 1 }
 0x2c5   : > { %v3336_v4 = vrot.slane %v3335_v6, 1  ;;  %v3343_v36 = vrot.slane %v3342_v41, 1  ;;  %v3349_v57 = vmax.f32 %v3347_v55, %v3348_v13  ;;  %v3356_v2 = vmax.f32 %v3354_v46, %v3355_v22 }
 0x2c6   : > { %v3363_v3 = vmax.f32 %v3361_v29, %v3362_v53  ;;  %v3370_v49 = vmax.f32 %v3368_v25, %v3369_v26  ;;  %v11369_v24 = vmax.f32 %v3321_v51, %v3322_v5  ;;  %v11371_v50 = vmax.f32 %v3328_v54, %v3329_v48 }
 0x2c7   : > { %v11373_v27 = vmax.f32 %v3335_v6, %v3336_v4  ;;  %v11375_v23 = vmax.f32 %v3342_v41, %v3343_v36  ;;  %v3350_v31 = vrot.slane %v3349_v57, 1  ;;  %v3357_v37 = vrot.slane %v3356_v2, 1 }
 0x2c8   : > { %13695 = vst [vmem:[#allocation210_spill] sm:$0xff] %v11369_v24  ;;  %13696 = vst [vmem:[#allocation211_spill] sm:$0xff] %v11371_v50  ;;  %v3364_v28 = vrot.slane %v3363_v3, 1  ;;  %v3371_v30 = vrot.slane %v3370_v49, 1  ;;  %v3373_v46 = vsel %vm1692_vm0, %v1420_v39, -inf  ;;  %v3380_v55 = vsel %vm1692_vm0, %v1421_v38, -inf }
 0x2c9   : > { %13697 = vst [vmem:[#allocation212_spill] sm:$0xff] %v11373_v27  ;;  %13698 = vst [vmem:[#allocation213_spill] sm:$0xff] %v11375_v23  ;;  %v3387_v29 = vsel %vm1692_vm0, %v1422_v47, -inf  ;;  %v3394_v5 = vsel %vm1692_vm0, %v1423_v7, -inf  ;;  %v11383_v48 = vmax.f32 %v3349_v57, %v3350_v31  ;;  %v11385_v25 = vmax.f32 %v3356_v2, %v3357_v37  ;;  %v1435_v50 = vld [vmem:[%s10417_s29 + $0x7f8] sm:$0x3f] }
 0x2ca   : > { %v11387_v51 = vmax.f32 %v3363_v3, %v3364_v28  ;;  %v11389_v54 = vmax.f32 %v3370_v49, %v3371_v30  ;;  %v3374_v6 = vrot.slane %v3373_v46, 4  ;;  %v3381_v41 = vrot.slane %v3380_v55, 4 }
 0x2cb   : > { %13699 = vst [vmem:[#allocation214_spill] sm:$0xff] %v11383_v48  ;;  %13700 = vst [vmem:[#allocation215_spill] sm:$0xff] %v11385_v25  ;;  %v3388_v13 = vrot.slane %v3387_v29, 4  ;;  %v3395_v22 = vrot.slane %v3394_v5, 4  ;;  %v3401_v53 = vsel %vm1692_vm0, %v1424_v52, -inf  ;;  %v3408_v26 = vsel %vm1692_vm0, %v1425_v56, -inf }
 0x2cc   : > { %13701 = vst [vmem:[#allocation216_spill] sm:$0xff] %v11387_v51  ;;  %13702 = vst [vmem:[#allocation217_spill] sm:$0xff] %v11389_v54  ;;  %v3415_v39 = vsel %vm1692_vm0, %v1426_v12, -inf  ;;  %v3422_v4 = vsel %vm1692_vm0, %v1427_v40, -inf  ;;  %v3375_v31 = vmax.f32 %v3373_v46, %v3374_v6  ;;  %v3382_v36 = vmax.f32 %v3380_v55, %v3381_v41 }
 0x2cd   : > { %v3389_v37 = vmax.f32 %v3387_v29, %v3388_v13  ;;  %v3396_v38 = vmax.f32 %v3394_v5, %v3395_v22  ;;  %v3402_v28 = vrot.slane %v3401_v53, 4  ;;  %v3409_v47 = vrot.slane %v3408_v26, 4  ;;  %v1428_v22 = vld [vmem:[%s10417_s29 + $0x7c0] sm:$0x3f] }
 0x2ce   : > { %v3416_v30 = vrot.slane %v3415_v39, 4  ;;  %v3423_v7 = vrot.slane %v3422_v4, 4  ;;  %v3376_v57 = vrot.slane %v3375_v31, 2  ;;  %v3383_v2 = vrot.slane %v3382_v36, 2 }
 0x2cf   : > { %v3390_v3 = vrot.slane %v3389_v37, 2  ;;  %v3397_v49 = vrot.slane %v3396_v38, 2  ;;  %v3403_v52 = vmax.f32 %v3401_v53, %v3402_v28  ;;  %v3410_v51 = vmax.f32 %v3408_v26, %v3409_v47  ;;  %v1430_v28 = vld [vmem:[%s10417_s29 + $0x7d0] sm:$0x3f]  ;;  %v1432_v47 = vld [vmem:[%s10417_s29 + $0x7e0] sm:$0x3f] }
 0x2d0   : > { %v3417_v56 = vmax.f32 %v3415_v39, %v3416_v30  ;;  %v3424_v12 = vmax.f32 %v3422_v4, %v3423_v7  ;;  %v3377_v40 = vmax.f32 %v3375_v31, %v3376_v57  ;;  %v3384_v46 = vmax.f32 %v3382_v36, %v3383_v2  ;;  %v1429_v39 = vld [vmem:[%s10417_s29 + $0x7c8] sm:$0x3f]  ;;  %v1431_v4 = vld [vmem:[%s10417_s29 + $0x7d8] sm:$0x3f] }
 0x2d1   : > { %v3391_v55 = vmax.f32 %v3389_v37, %v3390_v3  ;;  %v3398_v29 = vmax.f32 %v3396_v38, %v3397_v49  ;;  %v3404_v5 = vrot.slane %v3403_v52, 2  ;;  %v3411_v6 = vrot.slane %v3410_v51, 2  ;;  %v1433_v30 = vld [vmem:[%s10417_s29 + $0x7e8] sm:$0x3f]  ;;  %v1434_v49 = vld [vmem:[%s10417_s29 + $0x7f0] sm:$0x3f] }
 0x2d2   : > { %v3418_v41 = vrot.slane %v3417_v56, 2  ;;  %v3425_v13 = vrot.slane %v3424_v12, 2  ;;  %v3378_v54 = vrot.slane %v3377_v40, 1  ;;  %v3385_v48 = vrot.slane %v3384_v46, 1 }
 0x2d3   : > { %v3392_v53 = vrot.slane %v3391_v55, 1  ;;  %v3399_v26 = vrot.slane %v3398_v29, 1  ;;  %v3405_v31 = vmax.f32 %v3403_v52, %v3404_v5  ;;  %v3412_v36 = vmax.f32 %v3410_v51, %v3411_v6 }
 0x2d4   : > { %v3419_v37 = vmax.f32 %v3417_v56, %v3418_v41  ;;  %v3426_v38 = vmax.f32 %v3424_v12, %v3425_v13  ;;  %v11401_v7 = vmax.f32 %v3377_v40, %v3378_v54  ;;  %v11403_v57 = vmax.f32 %v3384_v46, %v3385_v48 }
 0x2d5   : > { %v11405_v2 = vmax.f32 %v3391_v55, %v3392_v53  ;;  %v11407_v3 = vmax.f32 %v3398_v29, %v3399_v26  ;;  %v3406_v25 = vrot.slane %v3405_v31, 1  ;;  %v3413_v27 = vrot.slane %v3412_v36, 1 }
 0x2d6   : > { %13703 = vst [vmem:[#allocation218_spill] sm:$0xff] %v11401_v7  ;;  %13704 = vst [vmem:[#allocation219_spill] sm:$0xff] %v11403_v57  ;;  %v3420_v23 = vrot.slane %v3419_v37, 1  ;;  %v3427_v24 = vrot.slane %v3426_v38, 1  ;;  %v3429_v51 = vsel %vm1692_vm0, %v1428_v22, -inf  ;;  %v3436_v52 = vsel %vm1692_vm0, %v1429_v39, -inf }
 0x2d7   : > { %13705 = vst [vmem:[#allocation220_spill] sm:$0xff] %v11405_v2  ;;  %13706 = vst [vmem:[#allocation221_spill] sm:$0xff] %v11407_v3  ;;  %v3443_v56 = vsel %vm1692_vm0, %v1430_v28, -inf  ;;  %v3450_v54 = vsel %vm1692_vm0, %v1431_v4, -inf  ;;  %v11415_v48 = vmax.f32 %v3405_v31, %v3406_v25  ;;  %v11417_v12 = vmax.f32 %v3412_v36, %v3413_v27  ;;  %v1443_v57 = vld [vmem:[%s10417_s29 + $0x838] sm:$0x3f] }
 0x2d8   : > { %v11419_v40 = vmax.f32 %v3419_v37, %v3420_v23  ;;  %v11421_v46 = vmax.f32 %v3426_v38, %v3427_v24  ;;  %v3430_v55 = vrot.slane %v3429_v51, 4  ;;  %v3437_v29 = vrot.slane %v3436_v52, 4 }
 0x2d9   : > { %13707 = vst [vmem:[#allocation222_spill] sm:$0xff] %v11415_v48  ;;  %13708 = vst [vmem:[#allocation223_spill] sm:$0xff] %v11417_v12  ;;  %v3444_v5 = vrot.slane %v3443_v56, 4  ;;  %v3451_v6 = vrot.slane %v3450_v54, 4  ;;  %v3457_v41 = vsel %vm1692_vm0, %v1432_v47, -inf  ;;  %v3464_v13 = vsel %vm1692_vm0, %v1433_v30, -inf }
 0x2da   : > { %13709 = vst [vmem:[#allocation224_spill] sm:$0xff] %v11419_v40  ;;  %13710 = vst [vmem:[#allocation225_spill] sm:$0xff] %v11421_v46  ;;  %v3471_v22 = vsel %vm1692_vm0, %v1434_v49, -inf  ;;  %v3478_v53 = vsel %vm1692_vm0, %v1435_v50, -inf  ;;  %v3431_v25 = vmax.f32 %v3429_v51, %v3430_v55  ;;  %v3438_v26 = vmax.f32 %v3436_v52, %v3437_v29 }
 0x2db   : > { %v3445_v27 = vmax.f32 %v3443_v56, %v3444_v5  ;;  %v3452_v39 = vmax.f32 %v3450_v54, %v3451_v6  ;;  %v3458_v23 = vrot.slane %v3457_v41, 4  ;;  %v3465_v28 = vrot.slane %v3464_v13, 4  ;;  %v1436_v6 = vld [vmem:[%s10417_s29 + $0x800] sm:$0x3f] }
 0x2dc   : > { %v3472_v24 = vrot.slane %v3471_v22, 4  ;;  %v3479_v4 = vrot.slane %v3478_v53, 4  ;;  %v3432_v31 = vrot.slane %v3431_v25, 2  ;;  %v3439_v36 = vrot.slane %v3438_v26, 2 }
 0x2dd   : > { %v3446_v37 = vrot.slane %v3445_v27, 2  ;;  %v3453_v38 = vrot.slane %v3452_v39, 2  ;;  %v3459_v47 = vmax.f32 %v3457_v41, %v3458_v23  ;;  %v3466_v40 = vmax.f32 %v3464_v13, %v3465_v28  ;;  %v1438_v23 = vld [vmem:[%s10417_s29 + $0x810] sm:$0x3f]  ;;  %v1440_v28 = vld [vmem:[%s10417_s29 + $0x820] sm:$0x3f] }
 0x2de   : > { %v3473_v30 = vmax.f32 %v3471_v22, %v3472_v24  ;;  %v3480_v49 = vmax.f32 %v3478_v53, %v3479_v4  ;;  %v3433_v50 = vmax.f32 %v3431_v25, %v3432_v31  ;;  %v3440_v51 = vmax.f32 %v3438_v26, %v3439_v36  ;;  %v1437_v22 = vld [vmem:[%s10417_s29 + $0x808] sm:$0x3f]  ;;  %v1439_v53 = vld [vmem:[%s10417_s29 + $0x818] sm:$0x3f] }
 0x2df   : > { %v3447_v52 = vmax.f32 %v3445_v27, %v3446_v37  ;;  %v3454_v56 = vmax.f32 %v3452_v39, %v3453_v38  ;;  %v3460_v54 = vrot.slane %v3459_v47, 2  ;;  %v3467_v55 = vrot.slane %v3466_v40, 2  ;;  %v1441_v24 = vld [vmem:[%s10417_s29 + $0x828] sm:$0x3f]  ;;  %v1442_v38 = vld [vmem:[%s10417_s29 + $0x830] sm:$0x3f] }
 0x2e0   : > { %v3474_v29 = vrot.slane %v3473_v30, 2  ;;  %v3481_v5 = vrot.slane %v3480_v49, 2  ;;  %v3434_v46 = vrot.slane %v3433_v50, 1  ;;  %v3441_v48 = vrot.slane %v3440_v51, 1 }
 0x2e1   : > { %v3448_v41 = vrot.slane %v3447_v52, 1  ;;  %v3455_v13 = vrot.slane %v3454_v56, 1  ;;  %v3461_v25 = vmax.f32 %v3459_v47, %v3460_v54  ;;  %v3468_v26 = vmax.f32 %v3466_v40, %v3467_v55 }
 0x2e2   : > { %v3475_v27 = vmax.f32 %v3473_v30, %v3474_v29  ;;  %v3482_v39 = vmax.f32 %v3480_v49, %v3481_v5  ;;  %v11433_v4 = vmax.f32 %v3433_v50, %v3434_v46  ;;  %v11435_v31 = vmax.f32 %v3440_v51, %v3441_v48 }
 0x2e3   : > { %v11437_v36 = vmax.f32 %v3447_v52, %v3448_v41  ;;  %v11439_v37 = vmax.f32 %v3454_v56, %v3455_v13  ;;  %v3462_v12 = vrot.slane %v3461_v25, 1  ;;  %v3469_v2 = vrot.slane %v3468_v26, 1 }
 0x2e4   : > { %13711 = vst [vmem:[#allocation226_spill] sm:$0xff] %v11433_v4  ;;  %13712 = vst [vmem:[#allocation227_spill] sm:$0xff] %v11435_v31  ;;  %v3476_v3 = vrot.slane %v3475_v27, 1  ;;  %v3483_v7 = vrot.slane %v3482_v39, 1  ;;  %v3485_v40 = vsel %vm1692_vm0, %v1436_v6, -inf  ;;  %v3492_v47 = vsel %vm1692_vm0, %v1437_v22, -inf }
 0x2e5   : > { %13713 = vst [vmem:[#allocation228_spill] sm:$0xff] %v11437_v36  ;;  %13714 = vst [vmem:[#allocation229_spill] sm:$0xff] %v11439_v37  ;;  %v3499_v30 = vsel %vm1692_vm0, %v1438_v23, -inf  ;;  %v3506_v46 = vsel %vm1692_vm0, %v1439_v53, -inf  ;;  %v11447_v48 = vmax.f32 %v3461_v25, %v3462_v12  ;;  %v11449_v49 = vmax.f32 %v3468_v26, %v3469_v2  ;;  %v1451_v31 = vld [vmem:[%s10417_s29 + $0x878] sm:$0x3f] }
 0x2e6   : > { %v11451_v50 = vmax.f32 %v3475_v27, %v3476_v3  ;;  %v11453_v51 = vmax.f32 %v3482_v39, %v3483_v7  ;;  %v3486_v52 = vrot.slane %v3485_v40, 4  ;;  %v3493_v56 = vrot.slane %v3492_v47, 4 }
 0x2e7   : > { %13715 = vst [vmem:[#allocation230_spill] sm:$0xff] %v11447_v48  ;;  %13716 = vst [vmem:[#allocation231_spill] sm:$0xff] %v11449_v49  ;;  %v3500_v54 = vrot.slane %v3499_v30, 4  ;;  %v3507_v55 = vrot.slane %v3506_v46, 4  ;;  %v3513_v29 = vsel %vm1692_vm0, %v1440_v28, -inf  ;;  %v3520_v5 = vsel %vm1692_vm0, %v1441_v24, -inf }
 0x2e8   : > { %13717 = vst [vmem:[#allocation232_spill] sm:$0xff] %v11451_v50  ;;  %13718 = vst [vmem:[#allocation233_spill] sm:$0xff] %v11453_v51  ;;  %v3527_v6 = vsel %vm1692_vm0, %v1442_v38, -inf  ;;  %v3534_v41 = vsel %vm1692_vm0, %v1443_v57, -inf  ;;  %v3487_v12 = vmax.f32 %v3485_v40, %v3486_v52  ;;  %v3494_v13 = vmax.f32 %v3492_v47, %v3493_v56 }
 0x2e9   : > { %v3501_v2 = vmax.f32 %v3499_v30, %v3500_v54  ;;  %v3508_v22 = vmax.f32 %v3506_v46, %v3507_v55  ;;  %v3514_v3 = vrot.slane %v3513_v29, 4  ;;  %v3521_v23 = vrot.slane %v3520_v5, 4  ;;  %v1444_v55 = vld [vmem:[%s10417_s29 + $0x840] sm:$0x3f] }
 0x2ea   : > { %v3528_v7 = vrot.slane %v3527_v6, 4  ;;  %v3535_v53 = vrot.slane %v3534_v41, 4  ;;  %v3488_v25 = vrot.slane %v3487_v12, 2  ;;  %v3495_v26 = vrot.slane %v3494_v13, 2 }
 0x2eb   : > { %v3502_v27 = vrot.slane %v3501_v2, 2  ;;  %v3509_v39 = vrot.slane %v3508_v22, 2  ;;  %v3515_v28 = vmax.f32 %v3513_v29, %v3514_v3  ;;  %v3522_v50 = vmax.f32 %v3520_v5, %v3521_v23  ;;  %v1446_v3 = vld [vmem:[%s10417_s29 + $0x850] sm:$0x3f]  ;;  %v1448_v23 = vld [vmem:[%s10417_s29 + $0x860] sm:$0x3f] }
 0x2ec   : > { %v3529_v24 = vmax.f32 %v3527_v6, %v3528_v7  ;;  %v3536_v38 = vmax.f32 %v3534_v41, %v3535_v53  ;;  %v3489_v57 = vmax.f32 %v3487_v12, %v3488_v25  ;;  %v3496_v40 = vmax.f32 %v3494_v13, %v3495_v26  ;;  %v1445_v6 = vld [vmem:[%s10417_s29 + $0x848] sm:$0x3f]  ;;  %v1447_v41 = vld [vmem:[%s10417_s29 + $0x858] sm:$0x3f] }
 0x2ed   : > { %v3503_v47 = vmax.f32 %v3501_v2, %v3502_v27  ;;  %v3510_v30 = vmax.f32 %v3508_v22, %v3509_v39  ;;  %v3516_v46 = vrot.slane %v3515_v28, 2  ;;  %v3523_v52 = vrot.slane %v3522_v50, 2  ;;  %v1449_v7 = vld [vmem:[%s10417_s29 + $0x868] sm:$0x3f]  ;;  %v1450_v39 = vld [vmem:[%s10417_s29 + $0x870] sm:$0x3f] }
 0x2ee   : > { %v3530_v56 = vrot.slane %v3529_v24, 2  ;;  %v3537_v54 = vrot.slane %v3536_v38, 2  ;;  %v3490_v51 = vrot.slane %v3489_v57, 1  ;;  %v3497_v48 = vrot.slane %v3496_v40, 1 }
 0x2ef   : > { %v3504_v29 = vrot.slane %v3503_v47, 1  ;;  %v3511_v5 = vrot.slane %v3510_v30, 1  ;;  %v3517_v12 = vmax.f32 %v3515_v28, %v3516_v46  ;;  %v3524_v13 = vmax.f32 %v3522_v50, %v3523_v52 }
 0x2f0   : > { %v3531_v2 = vmax.f32 %v3529_v24, %v3530_v56  ;;  %v3538_v22 = vmax.f32 %v3536_v38, %v3537_v54  ;;  %v11465_v53 = vmax.f32 %v3489_v57, %v3490_v51  ;;  %v11467_v25 = vmax.f32 %v3496_v40, %v3497_v48 }
 0x2f1   : > { %v11469_v26 = vmax.f32 %v3503_v47, %v3504_v29  ;;  %v11471_v27 = vmax.f32 %v3510_v30, %v3511_v5  ;;  %v3518_v49 = vrot.slane %v3517_v12, 1  ;;  %v3525_v36 = vrot.slane %v3524_v13, 1 }
 0x2f2   : > { %13719 = vst [vmem:[#allocation234_spill] sm:$0xff] %v11465_v53  ;;  %13720 = vst [vmem:[#allocation235_spill] sm:$0xff] %v11467_v25  ;;  %v3532_v37 = vrot.slane %v3531_v2, 1  ;;  %v3539_v4 = vrot.slane %v3538_v22, 1  ;;  %v3541_v50 = vsel %vm1692_vm0, %v1444_v55, -inf  ;;  %v3548_v28 = vsel %vm1692_vm0, %v1445_v6, -inf }
 0x2f3   : > { %13721 = vst [vmem:[#allocation236_spill] sm:$0xff] %v11469_v26  ;;  %13722 = vst [vmem:[#allocation237_spill] sm:$0xff] %v11471_v27  ;;  %v3555_v24 = vsel %vm1692_vm0, %v1446_v3, -inf  ;;  %v3562_v51 = vsel %vm1692_vm0, %v1447_v41, -inf  ;;  %v11479_v48 = vmax.f32 %v3517_v12, %v3518_v49  ;;  %v11481_v38 = vmax.f32 %v3524_v13, %v3525_v36  ;;  %v1459_v25 = vld [vmem:[%s10417_s29 + $0x8b8] sm:$0x3f] }
 0x2f4   : > { %v11483_v57 = vmax.f32 %v3531_v2, %v3532_v37  ;;  %v11485_v40 = vmax.f32 %v3538_v22, %v3539_v4  ;;  %v3542_v47 = vrot.slane %v3541_v50, 4  ;;  %v3549_v30 = vrot.slane %v3548_v28, 4 }
 0x2f5   : > { %13723 = vst [vmem:[#allocation238_spill] sm:$0xff] %v11479_v48  ;;  %13724 = vst [vmem:[#allocation239_spill] sm:$0xff] %v11481_v38  ;;  %v3556_v46 = vrot.slane %v3555_v24, 4  ;;  %v3563_v52 = vrot.slane %v3562_v51, 4  ;;  %v3569_v56 = vsel %vm1692_vm0, %v1448_v23, -inf  ;;  %v3576_v54 = vsel %vm1692_vm0, %v1449_v7, -inf }
 0x2f6   : > { %13725 = vst [vmem:[#allocation240_spill] sm:$0xff] %v11483_v57  ;;  %13726 = vst [vmem:[#allocation241_spill] sm:$0xff] %v11485_v40  ;;  %v3583_v55 = vsel %vm1692_vm0, %v1450_v39, -inf  ;;  %v3590_v29 = vsel %vm1692_vm0, %v1451_v31, -inf  ;;  %v3543_v49 = vmax.f32 %v3541_v50, %v3542_v47  ;;  %v3550_v5 = vmax.f32 %v3548_v28, %v3549_v30 }
 0x2f7   : > { %v3557_v36 = vmax.f32 %v3555_v24, %v3556_v46  ;;  %v3564_v6 = vmax.f32 %v3562_v51, %v3563_v52  ;;  %v3570_v37 = vrot.slane %v3569_v56, 4  ;;  %v3577_v3 = vrot.slane %v3576_v54, 4  ;;  %v1452_v52 = vld [vmem:[%s10417_s29 + $0x880] sm:$0x3f] }
 0x2f8   : > { %v3584_v4 = vrot.slane %v3583_v55, 4  ;;  %v3591_v41 = vrot.slane %v3590_v29, 4  ;;  %v3544_v12 = vrot.slane %v3543_v49, 2  ;;  %v3551_v13 = vrot.slane %v3550_v5, 2 }
 0x2f9   : > { %v3558_v2 = vrot.slane %v3557_v36, 2  ;;  %v3565_v22 = vrot.slane %v3564_v6, 2  ;;  %v3571_v23 = vmax.f32 %v3569_v56, %v3570_v37  ;;  %v3578_v57 = vmax.f32 %v3576_v54, %v3577_v3  ;;  %v1454_v37 = vld [vmem:[%s10417_s29 + $0x890] sm:$0x3f]  ;;  %v1456_v3 = vld [vmem:[%s10417_s29 + $0x8a0] sm:$0x3f] }
 0x2fa   : > { %v3585_v7 = vmax.f32 %v3583_v55, %v3584_v4  ;;  %v3592_v39 = vmax.f32 %v3590_v29, %v3591_v41  ;;  %v3545_v31 = vmax.f32 %v3543_v49, %v3544_v12  ;;  %v3552_v50 = vmax.f32 %v3550_v5, %v3551_v13  ;;  %v1453_v55 = vld [vmem:[%s10417_s29 + $0x888] sm:$0x3f]  ;;  %v1455_v29 = vld [vmem:[%s10417_s29 + $0x898] sm:$0x3f] }
 0x2fb   : > { %v3559_v28 = vmax.f32 %v3557_v36, %v3558_v2  ;;  %v3566_v24 = vmax.f32 %v3564_v6, %v3565_v22  ;;  %v3572_v51 = vrot.slane %v3571_v23, 2  ;;  %v3579_v47 = vrot.slane %v3578_v57, 2  ;;  %v1457_v4 = vld [vmem:[%s10417_s29 + $0x8a8] sm:$0x3f]  ;;  %v1458_v22 = vld [vmem:[%s10417_s29 + $0x8b0] sm:$0x3f] }
 0x2fc   : > { %v3586_v30 = vrot.slane %v3585_v7, 2  ;;  %v3593_v46 = vrot.slane %v3592_v39, 2  ;;  %v3546_v40 = vrot.slane %v3545_v31, 1  ;;  %v3553_v48 = vrot.slane %v3552_v50, 1 }
 0x2fd   : > { %v3560_v56 = vrot.slane %v3559_v28, 1  ;;  %v3567_v54 = vrot.slane %v3566_v24, 1  ;;  %v3573_v49 = vmax.f32 %v3571_v23, %v3572_v51  ;;  %v3580_v5 = vmax.f32 %v3578_v57, %v3579_v47 }
 0x2fe   : > { %v3587_v36 = vmax.f32 %v3585_v7, %v3586_v30  ;;  %v3594_v6 = vmax.f32 %v3592_v39, %v3593_v46  ;;  %v11497_v41 = vmax.f32 %v3545_v31, %v3546_v40  ;;  %v11499_v12 = vmax.f32 %v3552_v50, %v3553_v48 }
 0x2ff   : > { %v11501_v13 = vmax.f32 %v3559_v28, %v3560_v56  ;;  %v11503_v2 = vmax.f32 %v3566_v24, %v3567_v54  ;;  %v3574_v38 = vrot.slane %v3573_v49, 1  ;;  %v3581_v26 = vrot.slane %v3580_v5, 1 }
 0x300   : > { %13727 = vst [vmem:[#allocation242_spill] sm:$0xff] %v11497_v41  ;;  %13728 = vst [vmem:[#allocation243_spill] sm:$0xff] %v11499_v12  ;;  %v3588_v27 = vrot.slane %v3587_v36, 1  ;;  %v3595_v53 = vrot.slane %v3594_v6, 1  ;;  %v3597_v57 = vsel %vm1692_vm0, %v1452_v52, -inf  ;;  %v3604_v23 = vsel %vm1692_vm0, %v1453_v55, -inf }
 0x301   : > { %13729 = vst [vmem:[#allocation244_spill] sm:$0xff] %v11501_v13  ;;  %13730 = vst [vmem:[#allocation245_spill] sm:$0xff] %v11503_v2  ;;  %v3611_v7 = vsel %vm1692_vm0, %v1454_v37, -inf  ;;  %v3618_v40 = vsel %vm1692_vm0, %v1455_v29, -inf  ;;  %v11511_v48 = vmax.f32 %v3573_v49, %v3574_v38  ;;  %v11513_v39 = vmax.f32 %v3580_v5, %v3581_v26  ;;  %v1467_v12 = vld [vmem:[%s10417_s29 + $0x8f8] sm:$0x3f] }
 0x302   : > { %v11515_v31 = vmax.f32 %v3587_v36, %v3588_v27  ;;  %v11517_v50 = vmax.f32 %v3594_v6, %v3595_v53  ;;  %v3598_v28 = vrot.slane %v3597_v57, 4  ;;  %v3605_v24 = vrot.slane %v3604_v23, 4 }
 0x303   : > { %13731 = vst [vmem:[#allocation246_spill] sm:$0xff] %v11511_v48  ;;  %13732 = vst [vmem:[#allocation247_spill] sm:$0xff] %v11513_v39  ;;  %v3612_v51 = vrot.slane %v3611_v7, 4  ;;  %v3619_v47 = vrot.slane %v3618_v40, 4  ;;  %v3625_v30 = vsel %vm1692_vm0, %v1456_v3, -inf  ;;  %v3632_v46 = vsel %vm1692_vm0, %v1457_v4, -inf }
 0x304   : > { %13733 = vst [vmem:[#allocation248_spill] sm:$0xff] %v11515_v31  ;;  %13734 = vst [vmem:[#allocation249_spill] sm:$0xff] %v11517_v50  ;;  %v3639_v52 = vsel %vm1692_vm0, %v1458_v22, -inf  ;;  %v3646_v56 = vsel %vm1692_vm0, %v1459_v25, -inf  ;;  %v3599_v38 = vmax.f32 %v3597_v57, %v3598_v28  ;;  %v3606_v54 = vmax.f32 %v3604_v23, %v3605_v24 }
 0x305   : > { %v3613_v26 = vmax.f32 %v3611_v7, %v3612_v51  ;;  %v3620_v55 = vmax.f32 %v3618_v40, %v3619_v47  ;;  %v3626_v27 = vrot.slane %v3625_v30, 4  ;;  %v3633_v37 = vrot.slane %v3632_v46, 4  ;;  %v1460_v47 = vld [vmem:[%s10417_s29 + $0x8c0] sm:$0x3f] }
 0x306   : > { %v3640_v53 = vrot.slane %v3639_v52, 4  ;;  %v3647_v29 = vrot.slane %v3646_v56, 4  ;;  %v3600_v49 = vrot.slane %v3599_v38, 2  ;;  %v3607_v5 = vrot.slane %v3606_v54, 2 }
 0x307   : > { %v3614_v36 = vrot.slane %v3613_v26, 2  ;;  %v3621_v6 = vrot.slane %v3620_v55, 2  ;;  %v3627_v3 = vmax.f32 %v3625_v30, %v3626_v27  ;;  %v3634_v31 = vmax.f32 %v3632_v46, %v3633_v37  ;;  %v1462_v27 = vld [vmem:[%s10417_s29 + $0x8d0] sm:$0x3f]  ;;  %v1464_v37 = vld [vmem:[%s10417_s29 + $0x8e0] sm:$0x3f] }
 0x308   : > { %v3641_v4 = vmax.f32 %v3639_v52, %v3640_v53  ;;  %v3648_v22 = vmax.f32 %v3646_v56, %v3647_v29  ;;  %v3601_v25 = vmax.f32 %v3599_v38, %v3600_v49  ;;  %v3608_v57 = vmax.f32 %v3606_v54, %v3607_v5  ;;  %v1461_v52 = vld [vmem:[%s10417_s29 + $0x8c8] sm:$0x3f]  ;;  %v1463_v56 = vld [vmem:[%s10417_s29 + $0x8d8] sm:$0x3f] }
 0x309   : > { %v3615_v23 = vmax.f32 %v3613_v26, %v3614_v36  ;;  %v3622_v7 = vmax.f32 %v3620_v55, %v3621_v6  ;;  %v3628_v40 = vrot.slane %v3627_v3, 2  ;;  %v3635_v28 = vrot.slane %v3634_v31, 2  ;;  %v1465_v53 = vld [vmem:[%s10417_s29 + $0x8e8] sm:$0x3f]  ;;  %v1466_v6 = vld [vmem:[%s10417_s29 + $0x8f0] sm:$0x3f] }
 0x30a   : > { %v3642_v24 = vrot.slane %v3641_v4, 2  ;;  %v3649_v51 = vrot.slane %v3648_v22, 2  ;;  %v3602_v50 = vrot.slane %v3601_v25, 1  ;;  %v3609_v48 = vrot.slane %v3608_v57, 1 }
 0x30b   : > { %v3616_v30 = vrot.slane %v3615_v23, 1  ;;  %v3623_v46 = vrot.slane %v3622_v7, 1  ;;  %v3629_v38 = vmax.f32 %v3627_v3, %v3628_v40  ;;  %v3636_v54 = vmax.f32 %v3634_v31, %v3635_v28 }
 0x30c   : > { %v3643_v26 = vmax.f32 %v3641_v4, %v3642_v24  ;;  %v3650_v55 = vmax.f32 %v3648_v22, %v3649_v51  ;;  %v11529_v29 = vmax.f32 %v3601_v25, %v3602_v50  ;;  %v11531_v49 = vmax.f32 %v3608_v57, %v3609_v48 }
 0x30d   : > { %v11533_v5 = vmax.f32 %v3615_v23, %v3616_v30  ;;  %v11535_v36 = vmax.f32 %v3622_v7, %v3623_v46  ;;  %v3630_v39 = vrot.slane %v3629_v38, 1  ;;  %v3637_v13 = vrot.slane %v3636_v54, 1 }
 0x30e   : > { %13735 = vst [vmem:[#allocation250_spill] sm:$0xff] %v11529_v29  ;;  %13736 = vst [vmem:[#allocation251_spill] sm:$0xff] %v11531_v49  ;;  %v3644_v2 = vrot.slane %v3643_v26, 1  ;;  %v3651_v41 = vrot.slane %v3650_v55, 1  ;;  %v3653_v31 = vsel %vm1692_vm0, %v1460_v47, -inf  ;;  %v3660_v3 = vsel %vm1692_vm0, %v1461_v52, -inf }
 0x30f   : > { %13737 = vst [vmem:[#allocation252_spill] sm:$0xff] %v11533_v5  ;;  %13738 = vst [vmem:[#allocation253_spill] sm:$0xff] %v11535_v36  ;;  %v3667_v4 = vsel %vm1692_vm0, %v1462_v27, -inf  ;;  %v3674_v50 = vsel %vm1692_vm0, %v1463_v56, -inf  ;;  %v11543_v48 = vmax.f32 %v3629_v38, %v3630_v39  ;;  %v11545_v22 = vmax.f32 %v3636_v54, %v3637_v13  ;;  %v1475_v49 = vld [vmem:[%s10417_s29 + $0x938] sm:$0x3f] }
 0x310   : > { %v11547_v25 = vmax.f32 %v3643_v26, %v3644_v2  ;;  %v11549_v57 = vmax.f32 %v3650_v55, %v3651_v41  ;;  %v3654_v23 = vrot.slane %v3653_v31, 4  ;;  %v3661_v7 = vrot.slane %v3660_v3, 4 }
 0x311   : > { %13739 = vst [vmem:[#allocation254_spill] sm:$0xff] %v11543_v48  ;;  %13740 = vst [vmem:[#allocation255_spill] sm:$0xff] %v11545_v22  ;;  %v3668_v40 = vrot.slane %v3667_v4, 4  ;;  %v3675_v28 = vrot.slane %v3674_v50, 4  ;;  %v3681_v24 = vsel %vm1692_vm0, %v1464_v37, -inf  ;;  %v3688_v51 = vsel %vm1692_vm0, %v1465_v53, -inf }
 0x312   : > { %13741 = vst [vmem:[#allocation256_spill] sm:$0xff] %v11547_v25  ;;  %13742 = vst [vmem:[#allocation257_spill] sm:$0xff] %v11549_v57  ;;  %v3695_v47 = vsel %vm1692_vm0, %v1466_v6, -inf  ;;  %v3702_v30 = vsel %vm1692_vm0, %v1467_v12, -inf  ;;  %v3655_v39 = vmax.f32 %v3653_v31, %v3654_v23  ;;  %v3662_v46 = vmax.f32 %v3660_v3, %v3661_v7 }
 0x313   : > { %v3669_v13 = vmax.f32 %v3667_v4, %v3668_v40  ;;  %v3676_v52 = vmax.f32 %v3674_v50, %v3675_v28  ;;  %v3682_v2 = vrot.slane %v3681_v24, 4  ;;  %v3689_v27 = vrot.slane %v3688_v51, 4  ;;  %v1468_v28 = vld [vmem:[%s10417_s29 + $0x900] sm:$0x3f] }
 0x314   : > { %v3696_v41 = vrot.slane %v3695_v47, 4  ;;  %v3703_v56 = vrot.slane %v3702_v30, 4  ;;  %v3656_v38 = vrot.slane %v3655_v39, 2  ;;  %v3663_v54 = vrot.slane %v3662_v46, 2 }
 0x315   : > { %v3670_v26 = vrot.slane %v3669_v13, 2  ;;  %v3677_v55 = vrot.slane %v3676_v52, 2  ;;  %v3683_v37 = vmax.f32 %v3681_v24, %v3682_v2  ;;  %v3690_v25 = vmax.f32 %v3688_v51, %v3689_v27  ;;  %v1470_v2 = vld [vmem:[%s10417_s29 + $0x910] sm:$0x3f]  ;;  %v1472_v27 = vld [vmem:[%s10417_s29 + $0x920] sm:$0x3f] }
 0x316   : > { %v3697_v53 = vmax.f32 %v3695_v47, %v3696_v41  ;;  %v3704_v6 = vmax.f32 %v3702_v30, %v3703_v56  ;;  %v3657_v12 = vmax.f32 %v3655_v39, %v3656_v38  ;;  %v3664_v31 = vmax.f32 %v3662_v46, %v3663_v54  ;;  %v1469_v47 = vld [vmem:[%s10417_s29 + $0x908] sm:$0x3f]  ;;  %v1471_v30 = vld [vmem:[%s10417_s29 + $0x918] sm:$0x3f] }
 0x317   : > { %v3671_v3 = vmax.f32 %v3669_v13, %v3670_v26  ;;  %v3678_v4 = vmax.f32 %v3676_v52, %v3677_v55  ;;  %v3684_v50 = vrot.slane %v3683_v37, 2  ;;  %v3691_v23 = vrot.slane %v3690_v25, 2  ;;  %v1473_v41 = vld [vmem:[%s10417_s29 + $0x928] sm:$0x3f]  ;;  %v1474_v55 = vld [vmem:[%s10417_s29 + $0x930] sm:$0x3f] }
 0x318   : > { %v3698_v7 = vrot.slane %v3697_v53, 2  ;;  %v3705_v40 = vrot.slane %v3704_v6, 2  ;;  %v3658_v57 = vrot.slane %v3657_v12, 1  ;;  %v3665_v48 = vrot.slane %v3664_v31, 1 }
 0x319   : > { %v3672_v24 = vrot.slane %v3671_v3, 1  ;;  %v3679_v51 = vrot.slane %v3678_v4, 1  ;;  %v3685_v39 = vmax.f32 %v3683_v37, %v3684_v50  ;;  %v3692_v46 = vmax.f32 %v3690_v25, %v3691_v23 }
 0x31a   : > { %v3699_v13 = vmax.f32 %v3697_v53, %v3698_v7  ;;  %v3706_v52 = vmax.f32 %v3704_v6, %v3705_v40  ;;  %v11561_v56 = vmax.f32 %v3657_v12, %v3658_v57  ;;  %v11563_v38 = vmax.f32 %v3664_v31, %v3665_v48 }
 0x31b   : > { %v11565_v54 = vmax.f32 %v3671_v3, %v3672_v24  ;;  %v11567_v26 = vmax.f32 %v3678_v4, %v3679_v51  ;;  %v3686_v22 = vrot.slane %v3685_v39, 1  ;;  %v3693_v5 = vrot.slane %v3692_v46, 1 }
 0x31c   : > { %13743 = vst [vmem:[#allocation258_spill] sm:$0xff] %v11561_v56  ;;  %13744 = vst [vmem:[#allocation259_spill] sm:$0xff] %v11563_v38  ;;  %v3700_v36 = vrot.slane %v3699_v13, 1  ;;  %v3707_v29 = vrot.slane %v3706_v52, 1  ;;  %v3709_v25 = vsel %vm1692_vm0, %v1468_v28, -inf  ;;  %v3716_v37 = vsel %vm1692_vm0, %v1469_v47, -inf }
 0x31d   : > { %13745 = vst [vmem:[#allocation260_spill] sm:$0xff] %v11565_v54  ;;  %13746 = vst [vmem:[#allocation261_spill] sm:$0xff] %v11567_v26  ;;  %v3723_v53 = vsel %vm1692_vm0, %v1470_v2, -inf  ;;  %v3730_v57 = vsel %vm1692_vm0, %v1471_v30, -inf  ;;  %v11575_v48 = vmax.f32 %v3685_v39, %v3686_v22  ;;  %v11577_v6 = vmax.f32 %v3692_v46, %v3693_v5  ;;  %v1483_v38 = vld [vmem:[%s10417_s29 + $0x978] sm:$0x3f] }
 0x31e   : > { %v11579_v12 = vmax.f32 %v3699_v13, %v3700_v36  ;;  %v11581_v31 = vmax.f32 %v3706_v52, %v3707_v29  ;;  %v3710_v3 = vrot.slane %v3709_v25, 4  ;;  %v3717_v4 = vrot.slane %v3716_v37, 4 }
 0x31f   : > { %13747 = vst [vmem:[#allocation262_spill] sm:$0xff] %v11575_v48  ;;  %13748 = vst [vmem:[#allocation263_spill] sm:$0xff] %v11577_v6  ;;  %v3724_v50 = vrot.slane %v3723_v53, 4  ;;  %v3731_v23 = vrot.slane %v3730_v57, 4  ;;  %v3737_v7 = vsel %vm1692_vm0, %v1472_v27, -inf  ;;  %v3744_v40 = vsel %vm1692_vm0, %v1473_v41, -inf }
 0x320   : > { %13749 = vst [vmem:[#allocation264_spill] sm:$0xff] %v11579_v12  ;;  %13750 = vst [vmem:[#allocation265_spill] sm:$0xff] %v11581_v31  ;;  %v3751_v28 = vsel %vm1692_vm0, %v1474_v55, -inf  ;;  %v3758_v24 = vsel %vm1692_vm0, %v1475_v49, -inf  ;;  %v3711_v22 = vmax.f32 %v3709_v25, %v3710_v3  ;;  %v3718_v51 = vmax.f32 %v3716_v37, %v3717_v4 }
 0x321   : > { %v3725_v5 = vmax.f32 %v3723_v53, %v3724_v50  ;;  %v3732_v47 = vmax.f32 %v3730_v57, %v3731_v23  ;;  %v3738_v36 = vrot.slane %v3737_v7, 4  ;;  %v3745_v2 = vrot.slane %v3744_v40, 4  ;;  %v1476_v23 = vld [vmem:[%s10417_s29 + $0x940] sm:$0x3f] }
 0x322   : > { %v3752_v29 = vrot.slane %v3751_v28, 4  ;;  %v3759_v30 = vrot.slane %v3758_v24, 4  ;;  %v3712_v39 = vrot.slane %v3711_v22, 2  ;;  %v3719_v46 = vrot.slane %v3718_v51, 2 }
 0x323   : > { %v3726_v13 = vrot.slane %v3725_v5, 2  ;;  %v3733_v52 = vrot.slane %v3732_v47, 2  ;;  %v3739_v27 = vmax.f32 %v3737_v7, %v3738_v36  ;;  %v3746_v12 = vmax.f32 %v3744_v40, %v3745_v2  ;;  %v1478_v36 = vld [vmem:[%s10417_s29 + $0x950] sm:$0x3f]  ;;  %v1480_v2 = vld [vmem:[%s10417_s29 + $0x960] sm:$0x3f] }
 0x324   : > { %v3753_v41 = vmax.f32 %v3751_v28, %v3752_v29  ;;  %v3760_v55 = vmax.f32 %v3758_v24, %v3759_v30  ;;  %v3713_v49 = vmax.f32 %v3711_v22, %v3712_v39  ;;  %v3720_v25 = vmax.f32 %v3718_v51, %v3719_v46  ;;  %v1477_v28 = vld [vmem:[%s10417_s29 + $0x948] sm:$0x3f]  ;;  %v1479_v24 = vld [vmem:[%s10417_s29 + $0x958] sm:$0x3f] }
 0x325   : > { %v3727_v37 = vmax.f32 %v3725_v5, %v3726_v13  ;;  %v3734_v53 = vmax.f32 %v3732_v47, %v3733_v52  ;;  %v3740_v57 = vrot.slane %v3739_v27, 2  ;;  %v3747_v3 = vrot.slane %v3746_v12, 2  ;;  %v1481_v29 = vld [vmem:[%s10417_s29 + $0x968] sm:$0x3f]  ;;  %v1482_v52 = vld [vmem:[%s10417_s29 + $0x970] sm:$0x3f] }
 0x326   : > { %v3754_v4 = vrot.slane %v3753_v41, 2  ;;  %v3761_v50 = vrot.slane %v3760_v55, 2  ;;  %v3714_v31 = vrot.slane %v3713_v49, 1  ;;  %v3721_v48 = vrot.slane %v3720_v25, 1 }
 0x327   : > { %v3728_v7 = vrot.slane %v3727_v37, 1  ;;  %v3735_v40 = vrot.slane %v3734_v53, 1  ;;  %v3741_v22 = vmax.f32 %v3739_v27, %v3740_v57  ;;  %v3748_v51 = vmax.f32 %v3746_v12, %v3747_v3 }
 0x328   : > { %v3755_v5 = vmax.f32 %v3753_v41, %v3754_v4  ;;  %v3762_v47 = vmax.f32 %v3760_v55, %v3761_v50  ;;  %v11593_v30 = vmax.f32 %v3713_v49, %v3714_v31  ;;  %v11595_v39 = vmax.f32 %v3720_v25, %v3721_v48 }
 0x329   : > { %v11597_v46 = vmax.f32 %v3727_v37, %v3728_v7  ;;  %v11599_v13 = vmax.f32 %v3734_v53, %v3735_v40  ;;  %v3742_v6 = vrot.slane %v3741_v22, 1  ;;  %v3749_v54 = vrot.slane %v3748_v51, 1 }
 0x32a   : > { %13751 = vst [vmem:[#allocation266_spill] sm:$0xff] %v11593_v30  ;;  %13752 = vst [vmem:[#allocation267_spill] sm:$0xff] %v11595_v39  ;;  %v3756_v26 = vrot.slane %v3755_v5, 1  ;;  %v3763_v56 = vrot.slane %v3762_v47, 1  ;;  %v3765_v12 = vsel %vm1692_vm0, %v1476_v23, -inf  ;;  %v3772_v27 = vsel %vm1692_vm0, %v1477_v28, -inf }
 0x32b   : > { %13753 = vst [vmem:[#allocation268_spill] sm:$0xff] %v11597_v46  ;;  %13754 = vst [vmem:[#allocation269_spill] sm:$0xff] %v11599_v13  ;;  %v3779_v41 = vsel %vm1692_vm0, %v1478_v36, -inf  ;;  %v3786_v31 = vsel %vm1692_vm0, %v1479_v24, -inf  ;;  %v11607_v48 = vmax.f32 %v3741_v22, %v3742_v6  ;;  %v11609_v55 = vmax.f32 %v3748_v51, %v3749_v54  ;;  %v1491_v39 = vld [vmem:[%s10417_s29 + $0x9b8] sm:$0x3f] }
 0x32c   : > { %v11611_v49 = vmax.f32 %v3755_v5, %v3756_v26  ;;  %v11613_v25 = vmax.f32 %v3762_v47, %v3763_v56  ;;  %v3766_v37 = vrot.slane %v3765_v12, 4  ;;  %v3773_v53 = vrot.slane %v3772_v27, 4 }
 0x32d   : > { %13755 = vst [vmem:[#allocation270_spill] sm:$0xff] %v11607_v48  ;;  %13756 = vst [vmem:[#allocation271_spill] sm:$0xff] %v11609_v55  ;;  %v3780_v57 = vrot.slane %v3779_v41, 4  ;;  %v3787_v3 = vrot.slane %v3786_v31, 4  ;;  %v3793_v4 = vsel %vm1692_vm0, %v1480_v2, -inf  ;;  %v3800_v50 = vsel %vm1692_vm0, %v1481_v29, -inf }
 0x32e   : > { %13757 = vst [vmem:[#allocation272_spill] sm:$0xff] %v11611_v49  ;;  %13758 = vst [vmem:[#allocation273_spill] sm:$0xff] %v11613_v25  ;;  %v3807_v23 = vsel %vm1692_vm0, %v1482_v52, -inf  ;;  %v3814_v7 = vsel %vm1692_vm0, %v1483_v38, -inf  ;;  %v3767_v6 = vmax.f32 %v3765_v12, %v3766_v37  ;;  %v3774_v40 = vmax.f32 %v3772_v27, %v3773_v53 }
 0x32f   : > { %v3781_v54 = vmax.f32 %v3779_v41, %v3780_v57  ;;  %v3788_v28 = vmax.f32 %v3786_v31, %v3787_v3  ;;  %v3794_v26 = vrot.slane %v3793_v4, 4  ;;  %v3801_v36 = vrot.slane %v3800_v50, 4  ;;  %v1484_v3 = vld [vmem:[%s10417_s29 + $0x980] sm:$0x3f] }
 0x330   : > { %v3808_v56 = vrot.slane %v3807_v23, 4  ;;  %v3815_v24 = vrot.slane %v3814_v7, 4  ;;  %v3768_v22 = vrot.slane %v3767_v6, 2  ;;  %v3775_v51 = vrot.slane %v3774_v40, 2 }
 0x331   : > { %v3782_v5 = vrot.slane %v3781_v54, 2  ;;  %v3789_v47 = vrot.slane %v3788_v28, 2  ;;  %v3795_v2 = vmax.f32 %v3793_v4, %v3794_v26  ;;  %v3802_v49 = vmax.f32 %v3800_v50, %v3801_v36  ;;  %v1486_v26 = vld [vmem:[%s10417_s29 + $0x990] sm:$0x3f]  ;;  %v1488_v36 = vld [vmem:[%s10417_s29 + $0x9a0] sm:$0x3f] }
 0x332   : > { %v3809_v29 = vmax.f32 %v3807_v23, %v3808_v56  ;;  %v3816_v52 = vmax.f32 %v3814_v7, %v3815_v24  ;;  %v3769_v38 = vmax.f32 %v3767_v6, %v3768_v22  ;;  %v3776_v12 = vmax.f32 %v3774_v40, %v3775_v51  ;;  %v1485_v23 = vld [vmem:[%s10417_s29 + $0x988] sm:$0x3f]  ;;  %v1487_v7 = vld [vmem:[%s10417_s29 + $0x998] sm:$0x3f] }
 0x333   : > { %v3783_v27 = vmax.f32 %v3781_v54, %v3782_v5  ;;  %v3790_v41 = vmax.f32 %v3788_v28, %v3789_v47  ;;  %v3796_v31 = vrot.slane %v3795_v2, 2  ;;  %v3803_v37 = vrot.slane %v3802_v49, 2  ;;  %v1489_v56 = vld [vmem:[%s10417_s29 + $0x9a8] sm:$0x3f]  ;;  %v1490_v47 = vld [vmem:[%s10417_s29 + $0x9b0] sm:$0x3f] }
 0x334   : > { %v3810_v53 = vrot.slane %v3809_v29, 2  ;;  %v3817_v57 = vrot.slane %v3816_v52, 2  ;;  %v3770_v25 = vrot.slane %v3769_v38, 1  ;;  %v3777_v48 = vrot.slane %v3776_v12, 1 }
 0x335   : > { %v3784_v4 = vrot.slane %v3783_v27, 1  ;;  %v3791_v50 = vrot.slane %v3790_v41, 1  ;;  %v3797_v6 = vmax.f32 %v3795_v2, %v3796_v31  ;;  %v3804_v40 = vmax.f32 %v3802_v49, %v3803_v37 }
 0x336   : > { %v3811_v54 = vmax.f32 %v3809_v29, %v3810_v53  ;;  %v3818_v28 = vmax.f32 %v3816_v52, %v3817_v57  ;;  %v11625_v24 = vmax.f32 %v3769_v38, %v3770_v25  ;;  %v11627_v22 = vmax.f32 %v3776_v12, %v3777_v48 }
 0x337   : > { %v11629_v51 = vmax.f32 %v3783_v27, %v3784_v4  ;;  %v11631_v5 = vmax.f32 %v3790_v41, %v3791_v50  ;;  %v3798_v55 = vrot.slane %v3797_v6, 1  ;;  %v3805_v46 = vrot.slane %v3804_v40, 1 }
 0x338   : > { %13759 = vst [vmem:[#allocation274_spill] sm:$0xff] %v11625_v24  ;;  %13760 = vst [vmem:[#allocation275_spill] sm:$0xff] %v11627_v22  ;;  %v3812_v13 = vrot.slane %v3811_v54, 1  ;;  %v3819_v30 = vrot.slane %v3818_v28, 1  ;;  %v3821_v49 = vsel %vm1692_vm0, %v1484_v3, -inf  ;;  %v3828_v2 = vsel %vm1692_vm0, %v1485_v23, -inf }
 0x339   : > { %13761 = vst [vmem:[#allocation276_spill] sm:$0xff] %v11629_v51  ;;  %13762 = vst [vmem:[#allocation277_spill] sm:$0xff] %v11631_v5  ;;  %v3835_v29 = vsel %vm1692_vm0, %v1486_v26, -inf  ;;  %v3842_v25 = vsel %vm1692_vm0, %v1487_v7, -inf  ;;  %v11639_v48 = vmax.f32 %v3797_v6, %v3798_v55  ;;  %v11641_v52 = vmax.f32 %v3804_v40, %v3805_v46  ;;  %v1499_v22 = vld [vmem:[%s10417_s29 + $0x9f8] sm:$0x3f] }
 0x33a   : > { %v11643_v38 = vmax.f32 %v3811_v54, %v3812_v13  ;;  %v11645_v12 = vmax.f32 %v3818_v28, %v3819_v30  ;;  %v3822_v27 = vrot.slane %v3821_v49, 4  ;;  %v3829_v41 = vrot.slane %v3828_v2, 4 }
 0x33b   : > { %13763 = vst [vmem:[#allocation278_spill] sm:$0xff] %v11639_v48  ;;  %13764 = vst [vmem:[#allocation279_spill] sm:$0xff] %v11641_v52  ;;  %v3836_v31 = vrot.slane %v3835_v29, 4  ;;  %v3843_v37 = vrot.slane %v3842_v25, 4  ;;  %v3849_v53 = vsel %vm1692_vm0, %v1488_v36, -inf  ;;  %v3856_v57 = vsel %vm1692_vm0, %v1489_v56, -inf }
 0x33c   : > { %13765 = vst [vmem:[#allocation280_spill] sm:$0xff] %v11643_v38  ;;  %13766 = vst [vmem:[#allocation281_spill] sm:$0xff] %v11645_v12  ;;  %v3863_v3 = vsel %vm1692_vm0, %v1490_v47, -inf  ;;  %v3870_v4 = vsel %vm1692_vm0, %v1491_v39, -inf  ;;  %v3823_v55 = vmax.f32 %v3821_v49, %v3822_v27  ;;  %v3830_v50 = vmax.f32 %v3828_v2, %v3829_v41 }
 0x33d   : > { %v3837_v46 = vmax.f32 %v3835_v29, %v3836_v31  ;;  %v3844_v23 = vmax.f32 %v3842_v25, %v3843_v37  ;;  %v3850_v13 = vrot.slane %v3849_v53, 4  ;;  %v3857_v26 = vrot.slane %v3856_v57, 4  ;;  %v1492_v37 = vld [vmem:[%s10417_s29 + $0x9c0] sm:$0x3f] }
 0x33e   : > { %v3864_v30 = vrot.slane %v3863_v3, 4  ;;  %v3871_v7 = vrot.slane %v3870_v4, 4  ;;  %v3824_v6 = vrot.slane %v3823_v55, 2  ;;  %v3831_v40 = vrot.slane %v3830_v50, 2 }
 0x33f   : > { %v3838_v54 = vrot.slane %v3837_v46, 2  ;;  %v3845_v28 = vrot.slane %v3844_v23, 2  ;;  %v3851_v36 = vmax.f32 %v3849_v53, %v3850_v13  ;;  %v3858_v38 = vmax.f32 %v3856_v57, %v3857_v26  ;;  %v1494_v13 = vld [vmem:[%s10417_s29 + $0x9d0] sm:$0x3f]  ;;  %v1496_v26 = vld [vmem:[%s10417_s29 + $0x9e0] sm:$0x3f] }
 0x340   : > { %v3865_v56 = vmax.f32 %v3863_v3, %v3864_v30  ;;  %v3872_v47 = vmax.f32 %v3870_v4, %v3871_v7  ;;  %v3825_v39 = vmax.f32 %v3823_v55, %v3824_v6  ;;  %v3832_v49 = vmax.f32 %v3830_v50, %v3831_v40  ;;  %v1493_v3 = vld [vmem:[%s10417_s29 + $0x9c8] sm:$0x3f]  ;;  %v1495_v4 = vld [vmem:[%s10417_s29 + $0x9d8] sm:$0x3f] }
 0x341   : > { %v3839_v2 = vmax.f32 %v3837_v46, %v3838_v54  ;;  %v3846_v29 = vmax.f32 %v3844_v23, %v3845_v28  ;;  %v3852_v25 = vrot.slane %v3851_v36, 2  ;;  %v3859_v27 = vrot.slane %v3858_v38, 2  ;;  %v1497_v30 = vld [vmem:[%s10417_s29 + $0x9e8] sm:$0x3f]  ;;  %v1498_v28 = vld [vmem:[%s10417_s29 + $0x9f0] sm:$0x3f] }
 0x342   : > { %v3866_v41 = vrot.slane %v3865_v56, 2  ;;  %v3873_v31 = vrot.slane %v3872_v47, 2  ;;  %v3826_v12 = vrot.slane %v3825_v39, 1  ;;  %v3833_v48 = vrot.slane %v3832_v49, 1 }
 0x343   : > { %v3840_v53 = vrot.slane %v3839_v2, 1  ;;  %v3847_v57 = vrot.slane %v3846_v29, 1  ;;  %v3853_v55 = vmax.f32 %v3851_v36, %v3852_v25  ;;  %v3860_v50 = vmax.f32 %v3858_v38, %v3859_v27 }
 0x344   : > { %v3867_v46 = vmax.f32 %v3865_v56, %v3866_v41  ;;  %v3874_v23 = vmax.f32 %v3872_v47, %v3873_v31  ;;  %v11657_v7 = vmax.f32 %v3825_v39, %v3826_v12  ;;  %v11659_v6 = vmax.f32 %v3832_v49, %v3833_v48 }
 0x345   : > { %v11661_v40 = vmax.f32 %v3839_v2, %v3840_v53  ;;  %v11663_v54 = vmax.f32 %v3846_v29, %v3847_v57  ;;  %v3854_v52 = vrot.slane %v3853_v55, 1  ;;  %v3861_v51 = vrot.slane %v3860_v50, 1 }
 0x346   : > { %13767 = vst [vmem:[#allocation282_spill] sm:$0xff] %v11657_v7  ;;  %13768 = vst [vmem:[#allocation283_spill] sm:$0xff] %v11659_v6  ;;  %v3868_v5 = vrot.slane %v3867_v46, 1  ;;  %v3875_v24 = vrot.slane %v3874_v23, 1  ;;  %v3877_v38 = vsel %vm1692_vm0, %v1492_v37, -inf  ;;  %v3884_v36 = vsel %vm1692_vm0, %v1493_v3, -inf }
 0x347   : > { %13769 = vst [vmem:[#allocation284_spill] sm:$0xff] %v11661_v40  ;;  %13770 = vst [vmem:[#allocation285_spill] sm:$0xff] %v11663_v54  ;;  %v3891_v56 = vsel %vm1692_vm0, %v1494_v13, -inf  ;;  %v3898_v12 = vsel %vm1692_vm0, %v1495_v4, -inf  ;;  %v11671_v48 = vmax.f32 %v3853_v55, %v3854_v52  ;;  %v11673_v47 = vmax.f32 %v3860_v50, %v3861_v51  ;;  %v1507_v6 = vld [vmem:[%s10417_s29 + $0xa38] sm:$0x3f] }
 0x348   : > { %v11675_v39 = vmax.f32 %v3867_v46, %v3868_v5  ;;  %v11677_v49 = vmax.f32 %v3874_v23, %v3875_v24  ;;  %v3878_v2 = vrot.slane %v3877_v38, 4  ;;  %v3885_v29 = vrot.slane %v3884_v36, 4 }
 0x349   : > { %13771 = vst [vmem:[#allocation286_spill] sm:$0xff] %v11671_v48  ;;  %13772 = vst [vmem:[#allocation287_spill] sm:$0xff] %v11673_v47  ;;  %v3892_v25 = vrot.slane %v3891_v56, 4  ;;  %v3899_v27 = vrot.slane %v3898_v12, 4  ;;  %v3905_v41 = vsel %vm1692_vm0, %v1496_v26, -inf  ;;  %v3912_v31 = vsel %vm1692_vm0, %v1497_v30, -inf }
 0x34a   : > { %13773 = vst [vmem:[#allocation288_spill] sm:$0xff] %v11675_v39  ;;  %13774 = vst [vmem:[#allocation289_spill] sm:$0xff] %v11677_v49  ;;  %v3919_v37 = vsel %vm1692_vm0, %v1498_v28, -inf  ;;  %v3926_v53 = vsel %vm1692_vm0, %v1499_v22, -inf  ;;  %v3879_v52 = vmax.f32 %v3877_v38, %v3878_v2  ;;  %v3886_v57 = vmax.f32 %v3884_v36, %v3885_v29 }
 0x34b   : > { %v3893_v51 = vmax.f32 %v3891_v56, %v3892_v25  ;;  %v3900_v3 = vmax.f32 %v3898_v12, %v3899_v27  ;;  %v3906_v5 = vrot.slane %v3905_v41, 4  ;;  %v3913_v13 = vrot.slane %v3912_v31, 4  ;;  %v1500_v27 = vld [vmem:[%s10417_s29 + $0xa00] sm:$0x3f] }
 0x34c   : > { %v3920_v24 = vrot.slane %v3919_v37, 4  ;;  %v3927_v4 = vrot.slane %v3926_v53, 4  ;;  %v3880_v55 = vrot.slane %v3879_v52, 2  ;;  %v3887_v50 = vrot.slane %v3886_v57, 2 }
 0x34d   : > { %v3894_v46 = vrot.slane %v3893_v51, 2  ;;  %v3901_v23 = vrot.slane %v3900_v3, 2  ;;  %v3907_v26 = vmax.f32 %v3905_v41, %v3906_v5  ;;  %v3914_v39 = vmax.f32 %v3912_v31, %v3913_v13  ;;  %v1502_v5 = vld [vmem:[%s10417_s29 + $0xa10] sm:$0x3f]  ;;  %v1504_v13 = vld [vmem:[%s10417_s29 + $0xa20] sm:$0x3f] }
 0x34e   : > { %v3921_v30 = vmax.f32 %v3919_v37, %v3920_v24  ;;  %v3928_v28 = vmax.f32 %v3926_v53, %v3927_v4  ;;  %v3881_v22 = vmax.f32 %v3879_v52, %v3880_v55  ;;  %v3888_v38 = vmax.f32 %v3886_v57, %v3887_v50  ;;  %v1501_v37 = vld [vmem:[%s10417_s29 + $0xa08] sm:$0x3f]  ;;  %v1503_v53 = vld [vmem:[%s10417_s29 + $0xa18] sm:$0x3f] }
 0x34f   : > { %v3895_v36 = vmax.f32 %v3893_v51, %v3894_v46  ;;  %v3902_v56 = vmax.f32 %v3900_v3, %v3901_v23  ;;  %v3908_v12 = vrot.slane %v3907_v26, 2  ;;  %v3915_v2 = vrot.slane %v3914_v39, 2  ;;  %v1505_v24 = vld [vmem:[%s10417_s29 + $0xa28] sm:$0x3f]  ;;  %v1506_v23 = vld [vmem:[%s10417_s29 + $0xa30] sm:$0x3f] }
 0x350   : > { %v3922_v29 = vrot.slane %v3921_v30, 2  ;;  %v3929_v25 = vrot.slane %v3928_v28, 2  ;;  %v3882_v49 = vrot.slane %v3881_v22, 1  ;;  %v3889_v48 = vrot.slane %v3888_v38, 1 }
 0x351   : > { %v3896_v41 = vrot.slane %v3895_v36, 1  ;;  %v3903_v31 = vrot.slane %v3902_v56, 1  ;;  %v3909_v52 = vmax.f32 %v3907_v26, %v3908_v12  ;;  %v3916_v57 = vmax.f32 %v3914_v39, %v3915_v2 }
 0x352   : > { %v3923_v51 = vmax.f32 %v3921_v30, %v3922_v29  ;;  %v3930_v3 = vmax.f32 %v3928_v28, %v3929_v25  ;;  %v11689_v4 = vmax.f32 %v3881_v22, %v3882_v49  ;;  %v11691_v55 = vmax.f32 %v3888_v38, %v3889_v48 }
 0x353   : > { %v11693_v50 = vmax.f32 %v3895_v36, %v3896_v41  ;;  %v11695_v46 = vmax.f32 %v3902_v56, %v3903_v31  ;;  %v3910_v47 = vrot.slane %v3909_v52, 1  ;;  %v3917_v40 = vrot.slane %v3916_v57, 1 }
 0x354   : > { %13775 = vst [vmem:[#allocation290_spill] sm:$0xff] %v11689_v4  ;;  %13776 = vst [vmem:[#allocation291_spill] sm:$0xff] %v11691_v55  ;;  %v3924_v54 = vrot.slane %v3923_v51, 1  ;;  %v3931_v7 = vrot.slane %v3930_v3, 1  ;;  %v3933_v39 = vsel %vm1692_vm0, %v1500_v27, -inf  ;;  %v3940_v26 = vsel %vm1692_vm0, %v1501_v37, -inf }
 0x355   : > { %13777 = vst [vmem:[#allocation292_spill] sm:$0xff] %v11693_v50  ;;  %13778 = vst [vmem:[#allocation293_spill] sm:$0xff] %v11695_v46  ;;  %v3947_v30 = vsel %vm1692_vm0, %v1502_v5, -inf  ;;  %v3954_v49 = vsel %vm1692_vm0, %v1503_v53, -inf  ;;  %v11703_v48 = vmax.f32 %v3909_v52, %v3910_v47  ;;  %v11705_v28 = vmax.f32 %v3916_v57, %v3917_v40  ;;  %v1515_v55 = vld [vmem:[%s10417_s29 + $0xa78] sm:$0x3f] }
 0x356   : > { %v11707_v22 = vmax.f32 %v3923_v51, %v3924_v54  ;;  %v11709_v38 = vmax.f32 %v3930_v3, %v3931_v7  ;;  %v3934_v36 = vrot.slane %v3933_v39, 4  ;;  %v3941_v56 = vrot.slane %v3940_v26, 4 }
 0x357   : > { %13779 = vst [vmem:[#allocation294_spill] sm:$0xff] %v11703_v48  ;;  %13780 = vst [vmem:[#allocation295_spill] sm:$0xff] %v11705_v28  ;;  %v3948_v12 = vrot.slane %v3947_v30, 4  ;;  %v3955_v2 = vrot.slane %v3954_v49, 4  ;;  %v3961_v29 = vsel %vm1692_vm0, %v1504_v13, -inf  ;;  %v3968_v25 = vsel %vm1692_vm0, %v1505_v24, -inf }
 0x358   : > { %13781 = vst [vmem:[#allocation296_spill] sm:$0xff] %v11707_v22  ;;  %13782 = vst [vmem:[#allocation297_spill] sm:$0xff] %v11709_v38  ;;  %v3975_v27 = vsel %vm1692_vm0, %v1506_v23, -inf  ;;  %v3982_v41 = vsel %vm1692_vm0, %v1507_v6, -inf  ;;  %v3935_v47 = vmax.f32 %v3933_v39, %v3934_v36  ;;  %v3942_v31 = vmax.f32 %v3940_v26, %v3941_v56 }
 0x359   : > { %v3949_v40 = vmax.f32 %v3947_v30, %v3948_v12  ;;  %v3956_v37 = vmax.f32 %v3954_v49, %v3955_v2  ;;  %v3962_v54 = vrot.slane %v3961_v29, 4  ;;  %v3969_v5 = vrot.slane %v3968_v25, 4  ;;  %v1508_v2 = vld [vmem:[%s10417_s29 + $0xa40] sm:$0x3f] }
 0x35a   : > { %v3976_v7 = vrot.slane %v3975_v27, 4  ;;  %v3983_v53 = vrot.slane %v3982_v41, 4  ;;  %v3936_v52 = vrot.slane %v3935_v47, 2  ;;  %v3943_v57 = vrot.slane %v3942_v31, 2 }
 0x35b   : > { %v3950_v51 = vrot.slane %v3949_v40, 2  ;;  %v3957_v3 = vrot.slane %v3956_v37, 2  ;;  %v3963_v13 = vmax.f32 %v3961_v29, %v3962_v54  ;;  %v3970_v22 = vmax.f32 %v3968_v25, %v3969_v5  ;;  %v1510_v54 = vld [vmem:[%s10417_s29 + $0xa50] sm:$0x3f]  ;;  %v1512_v5 = vld [vmem:[%s10417_s29 + $0xa60] sm:$0x3f] }
 0x35c   : > { %v3977_v24 = vmax.f32 %v3975_v27, %v3976_v7  ;;  %v3984_v23 = vmax.f32 %v3982_v41, %v3983_v53  ;;  %v3937_v6 = vmax.f32 %v3935_v47, %v3936_v52  ;;  %v3944_v39 = vmax.f32 %v3942_v31, %v3943_v57  ;;  %v1509_v27 = vld [vmem:[%s10417_s29 + $0xa48] sm:$0x3f]  ;;  %v1511_v41 = vld [vmem:[%s10417_s29 + $0xa58] sm:$0x3f] }
 0x35d   : > { %v3951_v26 = vmax.f32 %v3949_v40, %v3950_v51  ;;  %v3958_v30 = vmax.f32 %v3956_v37, %v3957_v3  ;;  %v3964_v49 = vrot.slane %v3963_v13, 2  ;;  %v3971_v36 = vrot.slane %v3970_v22, 2  ;;  %v1513_v7 = vld [vmem:[%s10417_s29 + $0xa68] sm:$0x3f]  ;;  %v1514_v3 = vld [vmem:[%s10417_s29 + $0xa70] sm:$0x3f] }
 0x35e   : > { %v3978_v56 = vrot.slane %v3977_v24, 2  ;;  %v3985_v12 = vrot.slane %v3984_v23, 2  ;;  %v3938_v38 = vrot.slane %v3937_v6, 1  ;;  %v3945_v48 = vrot.slane %v3944_v39, 1 }
 0x35f   : > { %v3952_v29 = vrot.slane %v3951_v26, 1  ;;  %v3959_v25 = vrot.slane %v3958_v30, 1  ;;  %v3965_v47 = vmax.f32 %v3963_v13, %v3964_v49  ;;  %v3972_v31 = vmax.f32 %v3970_v22, %v3971_v36 }
 0x360   : > { %v3979_v40 = vmax.f32 %v3977_v24, %v3978_v56  ;;  %v3986_v37 = vmax.f32 %v3984_v23, %v3985_v12  ;;  %v11721_v53 = vmax.f32 %v3937_v6, %v3938_v38  ;;  %v11723_v52 = vmax.f32 %v3944_v39, %v3945_v48 }
 0x361   : > { %v11725_v57 = vmax.f32 %v3951_v26, %v3952_v29  ;;  %v11727_v51 = vmax.f32 %v3958_v30, %v3959_v25  ;;  %v3966_v28 = vrot.slane %v3965_v47, 1  ;;  %v3973_v50 = vrot.slane %v3972_v31, 1 }
 0x362   : > { %13783 = vst [vmem:[#allocation298_spill] sm:$0xff] %v11721_v53  ;;  %13784 = vst [vmem:[#allocation299_spill] sm:$0xff] %v11723_v52  ;;  %v3980_v46 = vrot.slane %v3979_v40, 1  ;;  %v3987_v4 = vrot.slane %v3986_v37, 1  ;;  %v3989_v22 = vsel %vm1692_vm0, %v1508_v2, -inf  ;;  %v3996_v13 = vsel %vm1692_vm0, %v1509_v27, -inf }
 0x363   : > { %13785 = vst [vmem:[#allocation300_spill] sm:$0xff] %v11725_v57  ;;  %13786 = vst [vmem:[#allocation301_spill] sm:$0xff] %v11727_v51  ;;  %v4003_v24 = vsel %vm1692_vm0, %v1510_v54, -inf  ;;  %v4010_v38 = vsel %vm1692_vm0, %v1511_v41, -inf  ;;  %v11735_v48 = vmax.f32 %v3965_v47, %v3966_v28  ;;  %v11737_v23 = vmax.f32 %v3972_v31, %v3973_v50  ;;  %v1523_v52 = vld [vmem:[%s10417_s29 + $0xab8] sm:$0x3f] }
 0x364   : > { %v11739_v6 = vmax.f32 %v3979_v40, %v3980_v46  ;;  %v11741_v39 = vmax.f32 %v3986_v37, %v3987_v4  ;;  %v3990_v26 = vrot.slane %v3989_v22, 4  ;;  %v3997_v30 = vrot.slane %v3996_v13, 4 }
 0x365   : > { %13787 = vst [vmem:[#allocation302_spill] sm:$0xff] %v11735_v48  ;;  %13788 = vst [vmem:[#allocation303_spill] sm:$0xff] %v11737_v23  ;;  %v4004_v49 = vrot.slane %v4003_v24, 4  ;;  %v4011_v36 = vrot.slane %v4010_v38, 4  ;;  %v4017_v56 = vsel %vm1692_vm0, %v1512_v5, -inf  ;;  %v4024_v12 = vsel %vm1692_vm0, %v1513_v7, -inf }
 0x366   : > { %13789 = vst [vmem:[#allocation304_spill] sm:$0xff] %v11739_v6  ;;  %13790 = vst [vmem:[#allocation305_spill] sm:$0xff] %v11741_v39  ;;  %v4031_v2 = vsel %vm1692_vm0, %v1514_v3, -inf  ;;  %v4038_v29 = vsel %vm1692_vm0, %v1515_v55, -inf  ;;  %v3991_v28 = vmax.f32 %v3989_v22, %v3990_v26  ;;  %v3998_v25 = vmax.f32 %v3996_v13, %v3997_v30 }
 0x367   : > { %v4005_v50 = vmax.f32 %v4003_v24, %v4004_v49  ;;  %v4012_v27 = vmax.f32 %v4010_v38, %v4011_v36  ;;  %v4018_v46 = vrot.slane %v4017_v56, 4  ;;  %v4025_v54 = vrot.slane %v4024_v12, 4  ;;  %v1516_v36 = vld [vmem:[%s10417_s29 + $0xa80] sm:$0x3f] }
 0x368   : > { %v4032_v4 = vrot.slane %v4031_v2, 4  ;;  %v4039_v41 = vrot.slane %v4038_v29, 4  ;;  %v3992_v47 = vrot.slane %v3991_v28, 2  ;;  %v3999_v31 = vrot.slane %v3998_v25, 2 }
 0x369   : > { %v4006_v40 = vrot.slane %v4005_v50, 2  ;;  %v4013_v37 = vrot.slane %v4012_v27, 2  ;;  %v4019_v5 = vmax.f32 %v4017_v56, %v4018_v46  ;;  %v4026_v6 = vmax.f32 %v4024_v12, %v4025_v54  ;;  %v1518_v46 = vld [vmem:[%s10417_s29 + $0xa90] sm:$0x3f]  ;;  %v1520_v54 = vld [vmem:[%s10417_s29 + $0xaa0] sm:$0x3f] }
 0x36a   : > { %v4033_v7 = vmax.f32 %v4031_v2, %v4032_v4  ;;  %v4040_v3 = vmax.f32 %v4038_v29, %v4039_v41  ;;  %v3993_v55 = vmax.f32 %v3991_v28, %v3992_v47  ;;  %v4000_v22 = vmax.f32 %v3998_v25, %v3999_v31  ;;  %v1517_v2 = vld [vmem:[%s10417_s29 + $0xa88] sm:$0x3f]  ;;  %v1519_v29 = vld [vmem:[%s10417_s29 + $0xa98] sm:$0x3f] }
 0x36b   : > { %v4007_v13 = vmax.f32 %v4005_v50, %v4006_v40  ;;  %v4014_v24 = vmax.f32 %v4012_v27, %v4013_v37  ;;  %v4020_v38 = vrot.slane %v4019_v5, 2  ;;  %v4027_v26 = vrot.slane %v4026_v6, 2  ;;  %v1521_v4 = vld [vmem:[%s10417_s29 + $0xaa8] sm:$0x3f]  ;;  %v1522_v37 = vld [vmem:[%s10417_s29 + $0xab0] sm:$0x3f] }
 0x36c   : > { %v4034_v30 = vrot.slane %v4033_v7, 2  ;;  %v4041_v49 = vrot.slane %v4040_v3, 2  ;;  %v3994_v39 = vrot.slane %v3993_v55, 1  ;;  %v4001_v48 = vrot.slane %v4000_v22, 1 }
 0x36d   : > { %v4008_v56 = vrot.slane %v4007_v13, 1  ;;  %v4015_v12 = vrot.slane %v4014_v24, 1  ;;  %v4021_v28 = vmax.f32 %v4019_v5, %v4020_v38  ;;  %v4028_v25 = vmax.f32 %v4026_v6, %v4027_v26 }
 0x36e   : > { %v4035_v50 = vmax.f32 %v4033_v7, %v4034_v30  ;;  %v4042_v27 = vmax.f32 %v4040_v3, %v4041_v49  ;;  %v11753_v41 = vmax.f32 %v3993_v55, %v3994_v39  ;;  %v11755_v47 = vmax.f32 %v4000_v22, %v4001_v48 }
 0x36f   : > { %v11757_v31 = vmax.f32 %v4007_v13, %v4008_v56  ;;  %v11759_v40 = vmax.f32 %v4014_v24, %v4015_v12  ;;  %v4022_v23 = vrot.slane %v4021_v28, 1  ;;  %v4029_v57 = vrot.slane %v4028_v25, 1 }
 0x370   : > { %13791 = vst [vmem:[#allocation306_spill] sm:$0xff] %v11753_v41  ;;  %13792 = vst [vmem:[#allocation307_spill] sm:$0xff] %v11755_v47  ;;  %v4036_v51 = vrot.slane %v4035_v50, 1  ;;  %v4043_v53 = vrot.slane %v4042_v27, 1  ;;  %v4045_v6 = vsel %vm1692_vm0, %v1516_v36, -inf  ;;  %v4052_v5 = vsel %vm1692_vm0, %v1517_v2, -inf }
 0x371   : > { %13793 = vst [vmem:[#allocation308_spill] sm:$0xff] %v11757_v31  ;;  %13794 = vst [vmem:[#allocation309_spill] sm:$0xff] %v11759_v40  ;;  %v4059_v7 = vsel %vm1692_vm0, %v1518_v46, -inf  ;;  %v4066_v39 = vsel %vm1692_vm0, %v1519_v29, -inf  ;;  %v11767_v48 = vmax.f32 %v4021_v28, %v4022_v23  ;;  %v11769_v3 = vmax.f32 %v4028_v25, %v4029_v57  ;;  %v1531_v47 = vld [vmem:[%s10417_s29 + $0xaf8] sm:$0x3f] }
 0x372   : > { %v11771_v55 = vmax.f32 %v4035_v50, %v4036_v51  ;;  %v11773_v22 = vmax.f32 %v4042_v27, %v4043_v53  ;;  %v4046_v13 = vrot.slane %v4045_v6, 4  ;;  %v4053_v24 = vrot.slane %v4052_v5, 4 }
 0x373   : > { %13795 = vst [vmem:[#allocation310_spill] sm:$0xff] %v11767_v48  ;;  %13796 = vst [vmem:[#allocation311_spill] sm:$0xff] %v11769_v3  ;;  %v4060_v38 = vrot.slane %v4059_v7, 4  ;;  %v4067_v26 = vrot.slane %v4066_v39, 4  ;;  %v4073_v30 = vsel %vm1692_vm0, %v1520_v54, -inf  ;;  %v4080_v49 = vsel %vm1692_vm0, %v1521_v4, -inf }
 0x374   : > { %13797 = vst [vmem:[#allocation312_spill] sm:$0xff] %v11771_v55  ;;  %13798 = vst [vmem:[#allocation313_spill] sm:$0xff] %v11773_v22  ;;  %v4087_v36 = vsel %vm1692_vm0, %v1522_v37, -inf  ;;  %v4094_v56 = vsel %vm1692_vm0, %v1523_v52, -inf  ;;  %v4047_v23 = vmax.f32 %v4045_v6, %v4046_v13  ;;  %v4054_v12 = vmax.f32 %v4052_v5, %v4053_v24 }
 0x375   : > { %v4061_v57 = vmax.f32 %v4059_v7, %v4060_v38  ;;  %v4068_v2 = vmax.f32 %v4066_v39, %v4067_v26  ;;  %v4074_v51 = vrot.slane %v4073_v30, 4  ;;  %v4081_v46 = vrot.slane %v4080_v49, 4  ;;  %v1524_v26 = vld [vmem:[%s10417_s29 + $0xac0] sm:$0x3f] }
 0x376   : > { %v4088_v53 = vrot.slane %v4087_v36, 4  ;;  %v4095_v29 = vrot.slane %v4094_v56, 4  ;;  %v4048_v28 = vrot.slane %v4047_v23, 2  ;;  %v4055_v25 = vrot.slane %v4054_v12, 2 }
 0x377   : > { %v4062_v50 = vrot.slane %v4061_v57, 2  ;;  %v4069_v27 = vrot.slane %v4068_v2, 2  ;;  %v4075_v54 = vmax.f32 %v4073_v30, %v4074_v51  ;;  %v4082_v55 = vmax.f32 %v4080_v49, %v4081_v46  ;;  %v1526_v51 = vld [vmem:[%s10417_s29 + $0xad0] sm:$0x3f]  ;;  %v1528_v46 = vld [vmem:[%s10417_s29 + $0xae0] sm:$0x3f] }
 0x378   : > { %v4089_v4 = vmax.f32 %v4087_v36, %v4088_v53  ;;  %v4096_v37 = vmax.f32 %v4094_v56, %v4095_v29  ;;  %v4049_v52 = vmax.f32 %v4047_v23, %v4048_v28  ;;  %v4056_v6 = vmax.f32 %v4054_v12, %v4055_v25  ;;  %v1525_v36 = vld [vmem:[%s10417_s29 + $0xac8] sm:$0x3f]  ;;  %v1527_v56 = vld [vmem:[%s10417_s29 + $0xad8] sm:$0x3f] }
 0x379   : > { %v4063_v5 = vmax.f32 %v4061_v57, %v4062_v50  ;;  %v4070_v7 = vmax.f32 %v4068_v2, %v4069_v27  ;;  %v4076_v39 = vrot.slane %v4075_v54, 2  ;;  %v4083_v13 = vrot.slane %v4082_v55, 2  ;;  %v1529_v53 = vld [vmem:[%s10417_s29 + $0xae8] sm:$0x3f]  ;;  %v1530_v27 = vld [vmem:[%s10417_s29 + $0xaf0] sm:$0x3f] }
 0x37a   : > { %v4090_v24 = vrot.slane %v4089_v4, 2  ;;  %v4097_v38 = vrot.slane %v4096_v37, 2  ;;  %v4050_v22 = vrot.slane %v4049_v52, 1  ;;  %v4057_v48 = vrot.slane %v4056_v6, 1 }
 0x37b   : > { %v4064_v30 = vrot.slane %v4063_v5, 1  ;;  %v4071_v49 = vrot.slane %v4070_v7, 1  ;;  %v4077_v23 = vmax.f32 %v4075_v54, %v4076_v39  ;;  %v4084_v12 = vmax.f32 %v4082_v55, %v4083_v13 }
 0x37c   : > { %v4091_v57 = vmax.f32 %v4089_v4, %v4090_v24  ;;  %v4098_v2 = vmax.f32 %v4096_v37, %v4097_v38  ;;  %v11785_v29 = vmax.f32 %v4049_v52, %v4050_v22  ;;  %v11787_v28 = vmax.f32 %v4056_v6, %v4057_v48 }
 0x37d   : > { %v11789_v25 = vmax.f32 %v4063_v5, %v4064_v30  ;;  %v11791_v50 = vmax.f32 %v4070_v7, %v4071_v49  ;;  %v4078_v3 = vrot.slane %v4077_v23, 1  ;;  %v4085_v31 = vrot.slane %v4084_v12, 1 }
 0x37e   : > { %13799 = vst [vmem:[#allocation314_spill] sm:$0xff] %v11785_v29  ;;  %13800 = vst [vmem:[#allocation315_spill] sm:$0xff] %v11787_v28  ;;  %v4092_v40 = vrot.slane %v4091_v57, 1  ;;  %v4099_v41 = vrot.slane %v4098_v2, 1  ;;  %v4101_v55 = vsel %vm1692_vm0, %v1524_v26, -inf  ;;  %v4108_v54 = vsel %vm1692_vm0, %v1525_v36, -inf }
 0x37f   : > { %13801 = vst [vmem:[#allocation316_spill] sm:$0xff] %v11789_v25  ;;  %13802 = vst [vmem:[#allocation317_spill] sm:$0xff] %v11791_v50  ;;  %v4115_v4 = vsel %vm1692_vm0, %v1526_v51, -inf  ;;  %v4122_v22 = vsel %vm1692_vm0, %v1527_v56, -inf  ;;  %v11799_v48 = vmax.f32 %v4077_v23, %v4078_v3  ;;  %v11801_v37 = vmax.f32 %v4084_v12, %v4085_v31  ;;  %v1539_v28 = vld [vmem:[%s10417_s29 + $0xb38] sm:$0x3f] }
 0x380   : > { %v11803_v52 = vmax.f32 %v4091_v57, %v4092_v40  ;;  %v11805_v6 = vmax.f32 %v4098_v2, %v4099_v41  ;;  %v4102_v5 = vrot.slane %v4101_v55, 4  ;;  %v4109_v7 = vrot.slane %v4108_v54, 4 }
 0x381   : > { %13803 = vst [vmem:[#allocation318_spill] sm:$0xff] %v11799_v48  ;;  %13804 = vst [vmem:[#allocation319_spill] sm:$0xff] %v11801_v37  ;;  %v4116_v39 = vrot.slane %v4115_v4, 4  ;;  %v4123_v13 = vrot.slane %v4122_v22, 4  ;;  %v4129_v24 = vsel %vm1692_vm0, %v1528_v46, -inf  ;;  %v4136_v38 = vsel %vm1692_vm0, %v1529_v53, -inf }
 0x382   : > { %13805 = vst [vmem:[#allocation320_spill] sm:$0xff] %v11803_v52  ;;  %13806 = vst [vmem:[#allocation321_spill] sm:$0xff] %v11805_v6  ;;  %v4143_v26 = vsel %vm1692_vm0, %v1530_v27, -inf  ;;  %v4150_v30 = vsel %vm1692_vm0, %v1531_v47, -inf  ;;  %v4103_v3 = vmax.f32 %v4101_v55, %v4102_v5  ;;  %v4110_v49 = vmax.f32 %v4108_v54, %v4109_v7 }
 0x383   : > { %v4117_v31 = vmax.f32 %v4115_v4, %v4116_v39  ;;  %v4124_v36 = vmax.f32 %v4122_v22, %v4123_v13  ;;  %v4130_v40 = vrot.slane %v4129_v24, 4  ;;  %v4137_v51 = vrot.slane %v4136_v38, 4  ;;  %v1532_v13 = vld [vmem:[%s10417_s29 + $0xb00] sm:$0x3f] }
 0x384   : > { %v4144_v41 = vrot.slane %v4143_v26, 4  ;;  %v4151_v56 = vrot.slane %v4150_v30, 4  ;;  %v4104_v23 = vrot.slane %v4103_v3, 2  ;;  %v4111_v12 = vrot.slane %v4110_v49, 2 }
 0x385   : > { %v4118_v57 = vrot.slane %v4117_v31, 2  ;;  %v4125_v2 = vrot.slane %v4124_v36, 2  ;;  %v4131_v46 = vmax.f32 %v4129_v24, %v4130_v40  ;;  %v4138_v52 = vmax.f32 %v4136_v38, %v4137_v51  ;;  %v1534_v40 = vld [vmem:[%s10417_s29 + $0xb10] sm:$0x3f]  ;;  %v1536_v51 = vld [vmem:[%s10417_s29 + $0xb20] sm:$0x3f] }
 0x386   : > { %v4145_v53 = vmax.f32 %v4143_v26, %v4144_v41  ;;  %v4152_v27 = vmax.f32 %v4150_v30, %v4151_v56  ;;  %v4105_v47 = vmax.f32 %v4103_v3, %v4104_v23  ;;  %v4112_v55 = vmax.f32 %v4110_v49, %v4111_v12  ;;  %v1533_v26 = vld [vmem:[%s10417_s29 + $0xb08] sm:$0x3f]  ;;  %v1535_v30 = vld [vmem:[%s10417_s29 + $0xb18] sm:$0x3f] }
 0x387   : > { %v4119_v54 = vmax.f32 %v4117_v31, %v4118_v57  ;;  %v4126_v4 = vmax.f32 %v4124_v36, %v4125_v2  ;;  %v4132_v22 = vrot.slane %v4131_v46, 2  ;;  %v4139_v5 = vrot.slane %v4138_v52, 2  ;;  %v1537_v41 = vld [vmem:[%s10417_s29 + $0xb28] sm:$0x3f]  ;;  %v1538_v2 = vld [vmem:[%s10417_s29 + $0xb30] sm:$0x3f] }
 0x388   : > { %v4146_v7 = vrot.slane %v4145_v53, 2  ;;  %v4153_v39 = vrot.slane %v4152_v27, 2  ;;  %v4106_v6 = vrot.slane %v4105_v47, 1  ;;  %v4113_v48 = vrot.slane %v4112_v55, 1 }
 0x389   : > { %v4120_v24 = vrot.slane %v4119_v54, 1  ;;  %v4127_v38 = vrot.slane %v4126_v4, 1  ;;  %v4133_v3 = vmax.f32 %v4131_v46, %v4132_v22  ;;  %v4140_v49 = vmax.f32 %v4138_v52, %v4139_v5 }
 0x38a   : > { %v4147_v31 = vmax.f32 %v4145_v53, %v4146_v7  ;;  %v4154_v36 = vmax.f32 %v4152_v27, %v4153_v39  ;;  %v11817_v56 = vmax.f32 %v4105_v47, %v4106_v6  ;;  %v11819_v23 = vmax.f32 %v4112_v55, %v4113_v48 }
 0x38b   : > { %v11821_v12 = vmax.f32 %v4119_v54, %v4120_v24  ;;  %v11823_v57 = vmax.f32 %v4126_v4, %v4127_v38  ;;  %v4134_v37 = vrot.slane %v4133_v3, 1  ;;  %v4141_v25 = vrot.slane %v4140_v49, 1 }
 0x38c   : > { %13807 = vst [vmem:[#allocation322_spill] sm:$0xff] %v11817_v56  ;;  %13808 = vst [vmem:[#allocation323_spill] sm:$0xff] %v11819_v23  ;;  %v4148_v50 = vrot.slane %v4147_v31, 1  ;;  %v4155_v29 = vrot.slane %v4154_v36, 1  ;;  %v4157_v52 = vsel %vm1692_vm0, %v1532_v13, -inf  ;;  %v4164_v46 = vsel %vm1692_vm0, %v1533_v26, -inf }
 0x38d   : > { %13809 = vst [vmem:[#allocation324_spill] sm:$0xff] %v11821_v12  ;;  %13810 = vst [vmem:[#allocation325_spill] sm:$0xff] %v11823_v57  ;;  %v4171_v53 = vsel %vm1692_vm0, %v1534_v40, -inf  ;;  %v4178_v6 = vsel %vm1692_vm0, %v1535_v30, -inf  ;;  %v11831_v48 = vmax.f32 %v4133_v3, %v4134_v37  ;;  %v11833_v27 = vmax.f32 %v4140_v49, %v4141_v25  ;;  %v1547_v23 = vld [vmem:[%s10417_s29 + $0xb78] sm:$0x3f] }
 0x38e   : > { %v11835_v47 = vmax.f32 %v4147_v31, %v4148_v50  ;;  %v11837_v55 = vmax.f32 %v4154_v36, %v4155_v29  ;;  %v4158_v54 = vrot.slane %v4157_v52, 4  ;;  %v4165_v4 = vrot.slane %v4164_v46, 4 }
 0x38f   : > { %13811 = vst [vmem:[#allocation326_spill] sm:$0xff] %v11831_v48  ;;  %13812 = vst [vmem:[#allocation327_spill] sm:$0xff] %v11833_v27  ;;  %v4172_v22 = vrot.slane %v4171_v53, 4  ;;  %v4179_v5 = vrot.slane %v4178_v6, 4  ;;  %v4185_v7 = vsel %vm1692_vm0, %v1536_v51, -inf  ;;  %v4192_v39 = vsel %vm1692_vm0, %v1537_v41, -inf }
 0x390   : > { %13813 = vst [vmem:[#allocation328_spill] sm:$0xff] %v11835_v47  ;;  %13814 = vst [vmem:[#allocation329_spill] sm:$0xff] %v11837_v55  ;;  %v4199_v13 = vsel %vm1692_vm0, %v1538_v2, -inf  ;;  %v4206_v24 = vsel %vm1692_vm0, %v1539_v28, -inf  ;;  %v4159_v37 = vmax.f32 %v4157_v52, %v4158_v54  ;;  %v4166_v38 = vmax.f32 %v4164_v46, %v4165_v4 }
 0x391   : > { %v4173_v25 = vmax.f32 %v4171_v53, %v4172_v22  ;;  %v4180_v26 = vmax.f32 %v4178_v6, %v4179_v5  ;;  %v4186_v50 = vrot.slane %v4185_v7, 4  ;;  %v4193_v40 = vrot.slane %v4192_v39, 4  ;;  %v1540_v5 = vld [vmem:[%s10417_s29 + $0xb40] sm:$0x3f] }
 0x392   : > { %v4200_v29 = vrot.slane %v4199_v13, 4  ;;  %v4207_v30 = vrot.slane %v4206_v24, 4  ;;  %v4160_v3 = vrot.slane %v4159_v37, 2  ;;  %v4167_v49 = vrot.slane %v4166_v38, 2 }
 0x393   : > { %v4174_v31 = vrot.slane %v4173_v25, 2  ;;  %v4181_v36 = vrot.slane %v4180_v26, 2  ;;  %v4187_v51 = vmax.f32 %v4185_v7, %v4186_v50  ;;  %v4194_v47 = vmax.f32 %v4192_v39, %v4193_v40  ;;  %v1542_v50 = vld [vmem:[%s10417_s29 + $0xb50] sm:$0x3f]  ;;  %v1544_v40 = vld [vmem:[%s10417_s29 + $0xb60] sm:$0x3f] }
 0x394   : > { %v4201_v41 = vmax.f32 %v4199_v13, %v4200_v29  ;;  %v4208_v2 = vmax.f32 %v4206_v24, %v4207_v30  ;;  %v4161_v28 = vmax.f32 %v4159_v37, %v4160_v3  ;;  %v4168_v52 = vmax.f32 %v4166_v38, %v4167_v49  ;;  %v1541_v13 = vld [vmem:[%s10417_s29 + $0xb48] sm:$0x3f]  ;;  %v1543_v24 = vld [vmem:[%s10417_s29 + $0xb58] sm:$0x3f] }
 0x395   : > { %v4175_v46 = vmax.f32 %v4173_v25, %v4174_v31  ;;  %v4182_v53 = vmax.f32 %v4180_v26, %v4181_v36  ;;  %v4188_v6 = vrot.slane %v4187_v51, 2  ;;  %v4195_v54 = vrot.slane %v4194_v47, 2  ;;  %v1545_v29 = vld [vmem:[%s10417_s29 + $0xb68] sm:$0x3f]  ;;  %v1546_v36 = vld [vmem:[%s10417_s29 + $0xb70] sm:$0x3f] }
 0x396   : > { %v4202_v4 = vrot.slane %v4201_v41, 2  ;;  %v4209_v22 = vrot.slane %v4208_v2, 2  ;;  %v4162_v55 = vrot.slane %v4161_v28, 1  ;;  %v4169_v48 = vrot.slane %v4168_v52, 1 }
 0x397   : > { %v4176_v7 = vrot.slane %v4175_v46, 1  ;;  %v4183_v39 = vrot.slane %v4182_v53, 1  ;;  %v4189_v37 = vmax.f32 %v4187_v51, %v4188_v6  ;;  %v4196_v38 = vmax.f32 %v4194_v47, %v4195_v54 }
 0x398   : > { %v4203_v25 = vmax.f32 %v4201_v41, %v4202_v4  ;;  %v4210_v26 = vmax.f32 %v4208_v2, %v4209_v22  ;;  %v11849_v30 = vmax.f32 %v4161_v28, %v4162_v55  ;;  %v11851_v3 = vmax.f32 %v4168_v52, %v4169_v48 }
 0x399   : > { %v11853_v49 = vmax.f32 %v4175_v46, %v4176_v7  ;;  %v11855_v31 = vmax.f32 %v4182_v53, %v4183_v39  ;;  %v4190_v27 = vrot.slane %v4189_v37, 1  ;;  %v4197_v12 = vrot.slane %v4196_v38, 1 }
 0x39a   : > { %13815 = vst [vmem:[#allocation330_spill] sm:$0xff] %v11849_v30  ;;  %13816 = vst [vmem:[#allocation331_spill] sm:$0xff] %v11851_v3  ;;  %v4204_v57 = vrot.slane %v4203_v25, 1  ;;  %v4211_v56 = vrot.slane %v4210_v26, 1  ;;  %v4213_v47 = vsel %vm1692_vm0, %v1540_v5, -inf  ;;  %v4220_v51 = vsel %vm1692_vm0, %v1541_v13, -inf }
 0x39b   : > { %13817 = vst [vmem:[#allocation332_spill] sm:$0xff] %v11853_v49  ;;  %13818 = vst [vmem:[#allocation333_spill] sm:$0xff] %v11855_v31  ;;  %v4227_v41 = vsel %vm1692_vm0, %v1542_v50, -inf  ;;  %v4234_v55 = vsel %vm1692_vm0, %v1543_v24, -inf  ;;  %v11863_v48 = vmax.f32 %v4189_v37, %v4190_v27  ;;  %v11865_v2 = vmax.f32 %v4196_v38, %v4197_v12  ;;  %v1555_v3 = vld [vmem:[%s10417_s29 + $0xbb8] sm:$0x3f] }
 0x39c   : > { %v11867_v28 = vmax.f32 %v4203_v25, %v4204_v57  ;;  %v11869_v52 = vmax.f32 %v4210_v26, %v4211_v56  ;;  %v4214_v46 = vrot.slane %v4213_v47, 4  ;;  %v4221_v53 = vrot.slane %v4220_v51, 4 }
 0x39d   : > { %13819 = vst [vmem:[#allocation334_spill] sm:$0xff] %v11863_v48  ;;  %13820 = vst [vmem:[#allocation335_spill] sm:$0xff] %v11865_v2  ;;  %v4228_v6 = vrot.slane %v4227_v41, 4  ;;  %v4235_v54 = vrot.slane %v4234_v55, 4  ;;  %v4241_v4 = vsel %vm1692_vm0, %v1544_v40, -inf  ;;  %v4248_v22 = vsel %vm1692_vm0, %v1545_v29, -inf }
 0x39e   : > { %13821 = vst [vmem:[#allocation336_spill] sm:$0xff] %v11867_v28  ;;  %13822 = vst [vmem:[#allocation337_spill] sm:$0xff] %v11869_v52  ;;  %v4255_v5 = vsel %vm1692_vm0, %v1546_v36, -inf  ;;  %v4262_v7 = vsel %vm1692_vm0, %v1547_v23, -inf  ;;  %v4215_v27 = vmax.f32 %v4213_v47, %v4214_v46  ;;  %v4222_v39 = vmax.f32 %v4220_v51, %v4221_v53 }
 0x39f   : > { %v4229_v12 = vmax.f32 %v4227_v41, %v4228_v6  ;;  %v4236_v13 = vmax.f32 %v4234_v55, %v4235_v54  ;;  %v4242_v57 = vrot.slane %v4241_v4, 4  ;;  %v4249_v50 = vrot.slane %v4248_v22, 4  ;;  %v1548_v54 = vld [vmem:[%s10417_s29 + $0xb80] sm:$0x3f] }
 0x3a0   : > { %v4256_v56 = vrot.slane %v4255_v5, 4  ;;  %v4263_v24 = vrot.slane %v4262_v7, 4  ;;  %v4216_v37 = vrot.slane %v4215_v27, 2  ;;  %v4223_v38 = vrot.slane %v4222_v39, 2 }
 0x3a1   : > { %v4230_v25 = vrot.slane %v4229_v12, 2  ;;  %v4237_v26 = vrot.slane %v4236_v13, 2  ;;  %v4243_v40 = vmax.f32 %v4241_v4, %v4242_v57  ;;  %v4250_v28 = vmax.f32 %v4248_v22, %v4249_v50  ;;  %v1550_v57 = vld [vmem:[%s10417_s29 + $0xb90] sm:$0x3f]  ;;  %v1552_v50 = vld [vmem:[%s10417_s29 + $0xba0] sm:$0x3f] }
 0x3a2   : > { %v4257_v29 = vmax.f32 %v4255_v5, %v4256_v56  ;;  %v4264_v36 = vmax.f32 %v4262_v7, %v4263_v24  ;;  %v4217_v23 = vmax.f32 %v4215_v27, %v4216_v37  ;;  %v4224_v47 = vmax.f32 %v4222_v39, %v4223_v38  ;;  %v1549_v5 = vld [vmem:[%s10417_s29 + $0xb88] sm:$0x3f]  ;;  %v1551_v7 = vld [vmem:[%s10417_s29 + $0xb98] sm:$0x3f] }
 0x3a3   : > { %v4231_v51 = vmax.f32 %v4229_v12, %v4230_v25  ;;  %v4238_v41 = vmax.f32 %v4236_v13, %v4237_v26  ;;  %v4244_v55 = vrot.slane %v4243_v40, 2  ;;  %v4251_v46 = vrot.slane %v4250_v28, 2  ;;  %v1553_v56 = vld [vmem:[%s10417_s29 + $0xba8] sm:$0x3f]  ;;  %v1554_v26 = vld [vmem:[%s10417_s29 + $0xbb0] sm:$0x3f] }
 0x3a4   : > { %v4258_v53 = vrot.slane %v4257_v29, 2  ;;  %v4265_v6 = vrot.slane %v4264_v36, 2  ;;  %v4218_v52 = vrot.slane %v4217_v23, 1  ;;  %v4225_v48 = vrot.slane %v4224_v47, 1 }
 0x3a5   : > { %v4232_v4 = vrot.slane %v4231_v51, 1  ;;  %v4239_v22 = vrot.slane %v4238_v41, 1  ;;  %v4245_v27 = vmax.f32 %v4243_v40, %v4244_v55  ;;  %v4252_v39 = vmax.f32 %v4250_v28, %v4251_v46 }
 0x3a6   : > { %v4259_v12 = vmax.f32 %v4257_v29, %v4258_v53  ;;  %v4266_v13 = vmax.f32 %v4264_v36, %v4265_v6  ;;  %v11881_v24 = vmax.f32 %v4217_v23, %v4218_v52  ;;  %v11883_v37 = vmax.f32 %v4224_v47, %v4225_v48 }
 0x3a7   : > { %v11885_v38 = vmax.f32 %v4231_v51, %v4232_v4  ;;  %v11887_v25 = vmax.f32 %v4238_v41, %v4239_v22  ;;  %v4246_v2 = vrot.slane %v4245_v27, 1  ;;  %v4253_v49 = vrot.slane %v4252_v39, 1 }
 0x3a8   : > { %13823 = vst [vmem:[#allocation338_spill] sm:$0xff] %v11881_v24  ;;  %13824 = vst [vmem:[#allocation339_spill] sm:$0xff] %v11883_v37  ;;  %v4260_v31 = vrot.slane %v4259_v12, 1  ;;  %v4267_v30 = vrot.slane %v4266_v13, 1  ;;  %v4269_v28 = vsel %vm1692_vm0, %v1548_v54, -inf  ;;  %v4276_v40 = vsel %vm1692_vm0, %v1549_v5, -inf }
 0x3a9   : > { %13825 = vst [vmem:[#allocation340_spill] sm:$0xff] %v11885_v38  ;;  %13826 = vst [vmem:[#allocation341_spill] sm:$0xff] %v11887_v25  ;;  %v4283_v29 = vsel %vm1692_vm0, %v1550_v57, -inf  ;;  %v4290_v52 = vsel %vm1692_vm0, %v1551_v7, -inf  ;;  %v11895_v48 = vmax.f32 %v4245_v27, %v4246_v2  ;;  %v11897_v36 = vmax.f32 %v4252_v39, %v4253_v49  ;;  %v1563_v37 = vld [vmem:[%s10417_s29 + $0xbf8] sm:$0x3f] }
 0x3aa   : > { %v11899_v23 = vmax.f32 %v4259_v12, %v4260_v31  ;;  %v11901_v47 = vmax.f32 %v4266_v13, %v4267_v30  ;;  %v4270_v51 = vrot.slane %v4269_v28, 4  ;;  %v4277_v41 = vrot.slane %v4276_v40, 4 }
 0x3ab   : > { %13827 = vst [vmem:[#allocation342_spill] sm:$0xff] %v11895_v48  ;;  %13828 = vst [vmem:[#allocation343_spill] sm:$0xff] %v11897_v36  ;;  %v4284_v55 = vrot.slane %v4283_v29, 4  ;;  %v4291_v46 = vrot.slane %v4290_v52, 4  ;;  %v4297_v53 = vsel %vm1692_vm0, %v1552_v50, -inf  ;;  %v4304_v6 = vsel %vm1692_vm0, %v1553_v56, -inf }
 0x3ac   : > { %13829 = vst [vmem:[#allocation344_spill] sm:$0xff] %v11899_v23  ;;  %13830 = vst [vmem:[#allocation345_spill] sm:$0xff] %v11901_v47  ;;  %v4311_v54 = vsel %vm1692_vm0, %v1554_v26, -inf  ;;  %v4318_v4 = vsel %vm1692_vm0, %v1555_v3, -inf  ;;  %v4271_v2 = vmax.f32 %v4269_v28, %v4270_v51  ;;  %v4278_v22 = vmax.f32 %v4276_v40, %v4277_v41 }
 0x3ad   : > { %v4285_v49 = vmax.f32 %v4283_v29, %v4284_v55  ;;  %v4292_v5 = vmax.f32 %v4290_v52, %v4291_v46  ;;  %v4298_v31 = vrot.slane %v4297_v53, 4  ;;  %v4305_v57 = vrot.slane %v4304_v6, 4  ;;  %v1556_v46 = vld [vmem:[%s10417_s29 + $0xbc0] sm:$0x3f] }
 0x3ae   : > { %v4312_v30 = vrot.slane %v4311_v54, 4  ;;  %v4319_v7 = vrot.slane %v4318_v4, 4  ;;  %v4272_v27 = vrot.slane %v4271_v2, 2  ;;  %v4279_v39 = vrot.slane %v4278_v22, 2 }
 0x3af   : > { %v4286_v12 = vrot.slane %v4285_v49, 2  ;;  %v4293_v13 = vrot.slane %v4292_v5, 2  ;;  %v4299_v50 = vmax.f32 %v4297_v53, %v4298_v31  ;;  %v4306_v23 = vmax.f32 %v4304_v6, %v4305_v57  ;;  %v1558_v31 = vld [vmem:[%s10417_s29 + $0xbd0] sm:$0x3f]  ;;  %v1560_v57 = vld [vmem:[%s10417_s29 + $0xbe0] sm:$0x3f] }
 0x3b0   : > { %v4313_v56 = vmax.f32 %v4311_v54, %v4312_v30  ;;  %v4320_v26 = vmax.f32 %v4318_v4, %v4319_v7  ;;  %v4273_v3 = vmax.f32 %v4271_v2, %v4272_v27  ;;  %v4280_v28 = vmax.f32 %v4278_v22, %v4279_v39  ;;  %v1557_v54 = vld [vmem:[%s10417_s29 + $0xbc8] sm:$0x3f]  ;;  %v1559_v4 = vld [vmem:[%s10417_s29 + $0xbd8] sm:$0x3f] }
 0x3b1   : > { %v4287_v40 = vmax.f32 %v4285_v49, %v4286_v12  ;;  %v4294_v29 = vmax.f32 %v4292_v5, %v4293_v13  ;;  %v4300_v52 = vrot.slane %v4299_v50, 2  ;;  %v4307_v51 = vrot.slane %v4306_v23, 2  ;;  %v1561_v30 = vld [vmem:[%s10417_s29 + $0xbe8] sm:$0x3f]  ;;  %v1562_v13 = vld [vmem:[%s10417_s29 + $0xbf0] sm:$0x3f] }
 0x3b2   : > { %v4314_v41 = vrot.slane %v4313_v56, 2  ;;  %v4321_v55 = vrot.slane %v4320_v26, 2  ;;  %v4274_v47 = vrot.slane %v4273_v3, 1  ;;  %v4281_v48 = vrot.slane %v4280_v28, 1 }
 0x3b3   : > { %v4288_v53 = vrot.slane %v4287_v40, 1  ;;  %v4295_v6 = vrot.slane %v4294_v29, 1  ;;  %v4301_v2 = vmax.f32 %v4299_v50, %v4300_v52  ;;  %v4308_v22 = vmax.f32 %v4306_v23, %v4307_v51 }
 0x3b4   : > { %v4315_v49 = vmax.f32 %v4313_v56, %v4314_v41  ;;  %v4322_v5 = vmax.f32 %v4320_v26, %v4321_v55  ;;  %v11913_v7 = vmax.f32 %v4273_v3, %v4274_v47  ;;  %v11915_v27 = vmax.f32 %v4280_v28, %v4281_v48 }
 0x3b5   : > { %v11917_v39 = vmax.f32 %v4287_v40, %v4288_v53  ;;  %v11919_v12 = vmax.f32 %v4294_v29, %v4295_v6  ;;  %v4302_v36 = vrot.slane %v4301_v2, 1  ;;  %v4309_v38 = vrot.slane %v4308_v22, 1 }
 0x3b6   : > { %13831 = vst [vmem:[#allocation346_spill] sm:$0xff] %v11913_v7  ;;  %13832 = vst [vmem:[#allocation347_spill] sm:$0xff] %v11915_v27  ;;  %v4316_v25 = vrot.slane %v4315_v49, 1  ;;  %v4323_v24 = vrot.slane %v4322_v5, 1  ;;  %v4325_v23 = vsel %vm1692_vm0, %v1556_v46, -inf  ;;  %v4332_v50 = vsel %vm1692_vm0, %v1557_v54, -inf }
 0x3b7   : > { %13833 = vst [vmem:[#allocation348_spill] sm:$0xff] %v11917_v39  ;;  %13834 = vst [vmem:[#allocation349_spill] sm:$0xff] %v11919_v12  ;;  %v4339_v56 = vsel %vm1692_vm0, %v1558_v31, -inf  ;;  %v4346_v47 = vsel %vm1692_vm0, %v1559_v4, -inf  ;;  %v11927_v48 = vmax.f32 %v4301_v2, %v4302_v36  ;;  %v11929_v26 = vmax.f32 %v4308_v22, %v4309_v38  ;;  %v1571_v27 = vld [vmem:[%s10417_s29 + $0xc38] sm:$0x3f] }
 0x3b8   : > { %v11931_v3 = vmax.f32 %v4315_v49, %v4316_v25  ;;  %v11933_v28 = vmax.f32 %v4322_v5, %v4323_v24  ;;  %v4326_v40 = vrot.slane %v4325_v23, 4  ;;  %v4333_v29 = vrot.slane %v4332_v50, 4 }
 0x3b9   : > { %13835 = vst [vmem:[#allocation350_spill] sm:$0xff] %v11927_v48  ;;  %13836 = vst [vmem:[#allocation351_spill] sm:$0xff] %v11929_v26  ;;  %v4340_v52 = vrot.slane %v4339_v56, 4  ;;  %v4347_v51 = vrot.slane %v4346_v47, 4  ;;  %v4353_v41 = vsel %vm1692_vm0, %v1560_v57, -inf  ;;  %v4360_v55 = vsel %vm1692_vm0, %v1561_v30, -inf }
 0x3ba   : > { %13837 = vst [vmem:[#allocation352_spill] sm:$0xff] %v11931_v3  ;;  %13838 = vst [vmem:[#allocation353_spill] sm:$0xff] %v11933_v28  ;;  %v4367_v46 = vsel %vm1692_vm0, %v1562_v13, -inf  ;;  %v4374_v53 = vsel %vm1692_vm0, %v1563_v37, -inf  ;;  %v4327_v36 = vmax.f32 %v4325_v23, %v4326_v40  ;;  %v4334_v6 = vmax.f32 %v4332_v50, %v4333_v29 }
 0x3bb   : > { %v4341_v38 = vmax.f32 %v4339_v56, %v4340_v52  ;;  %v4348_v54 = vmax.f32 %v4346_v47, %v4347_v51  ;;  %v4354_v25 = vrot.slane %v4353_v41, 4  ;;  %v4361_v31 = vrot.slane %v4360_v55, 4  ;;  %v1564_v51 = vld [vmem:[%s10417_s29 + $0xc00] sm:$0x3f] }
 0x3bc   : > { %v4368_v24 = vrot.slane %v4367_v46, 4  ;;  %v4375_v4 = vrot.slane %v4374_v53, 4  ;;  %v4328_v2 = vrot.slane %v4327_v36, 2  ;;  %v4335_v22 = vrot.slane %v4334_v6, 2 }
 0x3bd   : > { %v4342_v49 = vrot.slane %v4341_v38, 2  ;;  %v4349_v5 = vrot.slane %v4348_v54, 2  ;;  %v4355_v57 = vmax.f32 %v4353_v41, %v4354_v25  ;;  %v4362_v3 = vmax.f32 %v4360_v55, %v4361_v31  ;;  %v1566_v25 = vld [vmem:[%s10417_s29 + $0xc10] sm:$0x3f]  ;;  %v1568_v31 = vld [vmem:[%s10417_s29 + $0xc20] sm:$0x3f] }
 0x3be   : > { %v4369_v30 = vmax.f32 %v4367_v46, %v4368_v24  ;;  %v4376_v13 = vmax.f32 %v4374_v53, %v4375_v4  ;;  %v4329_v37 = vmax.f32 %v4327_v36, %v4328_v2  ;;  %v4336_v23 = vmax.f32 %v4334_v6, %v4335_v22  ;;  %v1565_v46 = vld [vmem:[%s10417_s29 + $0xc08] sm:$0x3f]  ;;  %v1567_v53 = vld [vmem:[%s10417_s29 + $0xc18] sm:$0x3f] }
 0x3bf   : > { %v4343_v50 = vmax.f32 %v4341_v38, %v4342_v49  ;;  %v4350_v56 = vmax.f32 %v4348_v54, %v4349_v5  ;;  %v4356_v47 = vrot.slane %v4355_v57, 2  ;;  %v4363_v40 = vrot.slane %v4362_v3, 2  ;;  %v1569_v24 = vld [vmem:[%s10417_s29 + $0xc28] sm:$0x3f]  ;;  %v1570_v5 = vld [vmem:[%s10417_s29 + $0xc30] sm:$0x3f] }
 0x3c0   : > { %v4370_v29 = vrot.slane %v4369_v30, 2  ;;  %v4377_v52 = vrot.slane %v4376_v13, 2  ;;  %v4330_v28 = vrot.slane %v4329_v37, 1  ;;  %v4337_v48 = vrot.slane %v4336_v23, 1 }
 0x3c1   : > { %v4344_v41 = vrot.slane %v4343_v50, 1  ;;  %v4351_v55 = vrot.slane %v4350_v56, 1  ;;  %v4357_v36 = vmax.f32 %v4355_v57, %v4356_v47  ;;  %v4364_v6 = vmax.f32 %v4362_v3, %v4363_v40 }
 0x3c2   : > { %v4371_v38 = vmax.f32 %v4369_v30, %v4370_v29  ;;  %v4378_v54 = vmax.f32 %v4376_v13, %v4377_v52  ;;  %v11945_v4 = vmax.f32 %v4329_v37, %v4330_v28  ;;  %v11947_v2 = vmax.f32 %v4336_v23, %v4337_v48 }
 0x3c3   : > { %v11949_v22 = vmax.f32 %v4343_v50, %v4344_v41  ;;  %v11951_v49 = vmax.f32 %v4350_v56, %v4351_v55  ;;  %v4358_v26 = vrot.slane %v4357_v36, 1  ;;  %v4365_v39 = vrot.slane %v4364_v6, 1 }
 0x3c4   : > { %13839 = vst [vmem:[#allocation354_spill] sm:$0xff] %v11945_v4  ;;  %13840 = vst [vmem:[#allocation355_spill] sm:$0xff] %v11947_v2  ;;  %v4372_v12 = vrot.slane %v4371_v38, 1  ;;  %v4379_v7 = vrot.slane %v4378_v54, 1  ;;  %v4381_v3 = vsel %vm1692_vm0, %v1564_v51, -inf  ;;  %v4388_v57 = vsel %vm1692_vm0, %v1565_v46, -inf }
 0x3c5   : > { %13841 = vst [vmem:[#allocation356_spill] sm:$0xff] %v11949_v22  ;;  %13842 = vst [vmem:[#allocation357_spill] sm:$0xff] %v11951_v49  ;;  %v4395_v30 = vsel %vm1692_vm0, %v1566_v25, -inf  ;;  %v4402_v28 = vsel %vm1692_vm0, %v1567_v53, -inf  ;;  %v11959_v48 = vmax.f32 %v4357_v36, %v4358_v26  ;;  %v11961_v13 = vmax.f32 %v4364_v6, %v4365_v39  ;;  %v1579_v2 = vld [vmem:[%s10417_s29 + $0xc78] sm:$0x3f] }
 0x3c6   : > { %v11963_v37 = vmax.f32 %v4371_v38, %v4372_v12  ;;  %v11965_v23 = vmax.f32 %v4378_v54, %v4379_v7  ;;  %v4382_v50 = vrot.slane %v4381_v3, 4  ;;  %v4389_v56 = vrot.slane %v4388_v57, 4 }
 0x3c7   : > { %13843 = vst [vmem:[#allocation358_spill] sm:$0xff] %v11959_v48  ;;  %13844 = vst [vmem:[#allocation359_spill] sm:$0xff] %v11961_v13  ;;  %v4396_v47 = vrot.slane %v4395_v30, 4  ;;  %v4403_v40 = vrot.slane %v4402_v28, 4  ;;  %v4409_v29 = vsel %vm1692_vm0, %v1568_v31, -inf  ;;  %v4416_v52 = vsel %vm1692_vm0, %v1569_v24, -inf }
 0x3c8   : > { %13845 = vst [vmem:[#allocation360_spill] sm:$0xff] %v11963_v37  ;;  %13846 = vst [vmem:[#allocation361_spill] sm:$0xff] %v11965_v23  ;;  %v4423_v51 = vsel %vm1692_vm0, %v1570_v5, -inf  ;;  %v4430_v41 = vsel %vm1692_vm0, %v1571_v27, -inf  ;;  %v4383_v26 = vmax.f32 %v4381_v3, %v4382_v50  ;;  %v4390_v55 = vmax.f32 %v4388_v57, %v4389_v56 }
 0x3c9   : > { %v4397_v39 = vmax.f32 %v4395_v30, %v4396_v47  ;;  %v4404_v46 = vmax.f32 %v4402_v28, %v4403_v40  ;;  %v4410_v12 = vrot.slane %v4409_v29, 4  ;;  %v4417_v25 = vrot.slane %v4416_v52, 4  ;;  %v1572_v40 = vld [vmem:[%s10417_s29 + $0xc40] sm:$0x3f] }
 0x3ca   : > { %v4424_v7 = vrot.slane %v4423_v51, 4  ;;  %v4431_v53 = vrot.slane %v4430_v41, 4  ;;  %v4384_v36 = vrot.slane %v4383_v26, 2  ;;  %v4391_v6 = vrot.slane %v4390_v55, 2 }
 0x3cb   : > { %v4398_v38 = vrot.slane %v4397_v39, 2  ;;  %v4405_v54 = vrot.slane %v4404_v46, 2  ;;  %v4411_v31 = vmax.f32 %v4409_v29, %v4410_v12  ;;  %v4418_v37 = vmax.f32 %v4416_v52, %v4417_v25  ;;  %v1574_v12 = vld [vmem:[%s10417_s29 + $0xc50] sm:$0x3f]  ;;  %v1576_v25 = vld [vmem:[%s10417_s29 + $0xc60] sm:$0x3f] }
 0x3cc   : > { %v4425_v24 = vmax.f32 %v4423_v51, %v4424_v7  ;;  %v4432_v5 = vmax.f32 %v4430_v41, %v4431_v53  ;;  %v4385_v27 = vmax.f32 %v4383_v26, %v4384_v36  ;;  %v4392_v3 = vmax.f32 %v4390_v55, %v4391_v6  ;;  %v1573_v51 = vld [vmem:[%s10417_s29 + $0xc48] sm:$0x3f]  ;;  %v1575_v41 = vld [vmem:[%s10417_s29 + $0xc58] sm:$0x3f] }
 0x3cd   : > { %v4399_v57 = vmax.f32 %v4397_v39, %v4398_v38  ;;  %v4406_v30 = vmax.f32 %v4404_v46, %v4405_v54  ;;  %v4412_v28 = vrot.slane %v4411_v31, 2  ;;  %v4419_v50 = vrot.slane %v4418_v37, 2  ;;  %v1577_v7 = vld [vmem:[%s10417_s29 + $0xc68] sm:$0x3f]  ;;  %v1578_v54 = vld [vmem:[%s10417_s29 + $0xc70] sm:$0x3f] }
 0x3ce   : > { %v4426_v56 = vrot.slane %v4425_v24, 2  ;;  %v4433_v47 = vrot.slane %v4432_v5, 2  ;;  %v4386_v23 = vrot.slane %v4385_v27, 1  ;;  %v4393_v48 = vrot.slane %v4392_v3, 1 }
 0x3cf   : > { %v4400_v29 = vrot.slane %v4399_v57, 1  ;;  %v4407_v52 = vrot.slane %v4406_v30, 1  ;;  %v4413_v26 = vmax.f32 %v4411_v31, %v4412_v28  ;;  %v4420_v55 = vmax.f32 %v4418_v37, %v4419_v50 }
 0x3d0   : > { %v4427_v39 = vmax.f32 %v4425_v24, %v4426_v56  ;;  %v4434_v46 = vmax.f32 %v4432_v5, %v4433_v47  ;;  %v11977_v53 = vmax.f32 %v4385_v27, %v4386_v23  ;;  %v11979_v36 = vmax.f32 %v4392_v3, %v4393_v48 }
 0x3d1   : > { %v11981_v6 = vmax.f32 %v4399_v57, %v4400_v29  ;;  %v11983_v38 = vmax.f32 %v4406_v30, %v4407_v52  ;;  %v4414_v13 = vrot.slane %v4413_v26, 1  ;;  %v4421_v22 = vrot.slane %v4420_v55, 1 }
 0x3d2   : > { %13847 = vst [vmem:[#allocation362_spill] sm:$0xff] %v11977_v53  ;;  %13848 = vst [vmem:[#allocation363_spill] sm:$0xff] %v11979_v36  ;;  %v4428_v49 = vrot.slane %v4427_v39, 1  ;;  %v4435_v4 = vrot.slane %v4434_v46, 1  ;;  %v4437_v37 = vsel %vm1692_vm0, %v1572_v40, -inf  ;;  %v4444_v31 = vsel %vm1692_vm0, %v1573_v51, -inf }
 0x3d3   : > { %13849 = vst [vmem:[#allocation364_spill] sm:$0xff] %v11981_v6  ;;  %13850 = vst [vmem:[#allocation365_spill] sm:$0xff] %v11983_v38  ;;  %v4451_v24 = vsel %vm1692_vm0, %v1574_v12, -inf  ;;  %v4458_v23 = vsel %vm1692_vm0, %v1575_v41, -inf  ;;  %v11991_v48 = vmax.f32 %v4413_v26, %v4414_v13  ;;  %v11993_v5 = vmax.f32 %v4420_v55, %v4421_v22  ;;  %v1587_v36 = vld [vmem:[%s10417_s29 + $0xcb8] sm:$0x3f] }
 0x3d4   : > { %v11995_v27 = vmax.f32 %v4427_v39, %v4428_v49  ;;  %v11997_v3 = vmax.f32 %v4434_v46, %v4435_v4  ;;  %v4438_v57 = vrot.slane %v4437_v37, 4  ;;  %v4445_v30 = vrot.slane %v4444_v31, 4 }
 0x3d5   : > { %13851 = vst [vmem:[#allocation366_spill] sm:$0xff] %v11991_v48  ;;  %13852 = vst [vmem:[#allocation367_spill] sm:$0xff] %v11993_v5  ;;  %v4452_v28 = vrot.slane %v4451_v24, 4  ;;  %v4459_v50 = vrot.slane %v4458_v23, 4  ;;  %v4465_v56 = vsel %vm1692_vm0, %v1576_v25, -inf  ;;  %v4472_v47 = vsel %vm1692_vm0, %v1577_v7, -inf }
 0x3d6   : > { %13853 = vst [vmem:[#allocation368_spill] sm:$0xff] %v11995_v27  ;;  %13854 = vst [vmem:[#allocation369_spill] sm:$0xff] %v11997_v3  ;;  %v4479_v40 = vsel %vm1692_vm0, %v1578_v54, -inf  ;;  %v4486_v29 = vsel %vm1692_vm0, %v1579_v2, -inf  ;;  %v4439_v13 = vmax.f32 %v4437_v37, %v4438_v57  ;;  %v4446_v52 = vmax.f32 %v4444_v31, %v4445_v30 }
 0x3d7   : > { %v4453_v22 = vmax.f32 %v4451_v24, %v4452_v28  ;;  %v4460_v51 = vmax.f32 %v4458_v23, %v4459_v50  ;;  %v4466_v49 = vrot.slane %v4465_v56, 4  ;;  %v4473_v12 = vrot.slane %v4472_v47, 4  ;;  %v1580_v50 = vld [vmem:[%s10417_s29 + $0xc80] sm:$0x3f] }
 0x3d8   : > { %v4480_v4 = vrot.slane %v4479_v40, 4  ;;  %v4487_v41 = vrot.slane %v4486_v29, 4  ;;  %v4440_v26 = vrot.slane %v4439_v13, 2  ;;  %v4447_v55 = vrot.slane %v4446_v52, 2 }
 0x3d9   : > { %v4454_v39 = vrot.slane %v4453_v22, 2  ;;  %v4461_v46 = vrot.slane %v4460_v51, 2  ;;  %v4467_v25 = vmax.f32 %v4465_v56, %v4466_v49  ;;  %v4474_v27 = vmax.f32 %v4472_v47, %v4473_v12  ;;  %v1582_v49 = vld [vmem:[%s10417_s29 + $0xc90] sm:$0x3f]  ;;  %v1584_v12 = vld [vmem:[%s10417_s29 + $0xca0] sm:$0x3f] }
 0x3da   : > { %v4481_v7 = vmax.f32 %v4479_v40, %v4480_v4  ;;  %v4488_v54 = vmax.f32 %v4486_v29, %v4487_v41  ;;  %v4441_v2 = vmax.f32 %v4439_v13, %v4440_v26  ;;  %v4448_v37 = vmax.f32 %v4446_v52, %v4447_v55  ;;  %v1581_v40 = vld [vmem:[%s10417_s29 + $0xc88] sm:$0x3f]  ;;  %v1583_v29 = vld [vmem:[%s10417_s29 + $0xc98] sm:$0x3f] }
 0x3db   : > { %v4455_v31 = vmax.f32 %v4453_v22, %v4454_v39  ;;  %v4462_v24 = vmax.f32 %v4460_v51, %v4461_v46  ;;  %v4468_v23 = vrot.slane %v4467_v25, 2  ;;  %v4475_v57 = vrot.slane %v4474_v27, 2  ;;  %v1585_v4 = vld [vmem:[%s10417_s29 + $0xca8] sm:$0x3f]  ;;  %v1586_v46 = vld [vmem:[%s10417_s29 + $0xcb0] sm:$0x3f] }
 0x3dc   : > { %v4482_v30 = vrot.slane %v4481_v7, 2  ;;  %v4489_v28 = vrot.slane %v4488_v54, 2  ;;  %v4442_v3 = vrot.slane %v4441_v2, 1  ;;  %v4449_v48 = vrot.slane %v4448_v37, 1 }
 0x3dd   : > { %v4456_v56 = vrot.slane %v4455_v31, 1  ;;  %v4463_v47 = vrot.slane %v4462_v24, 1  ;;  %v4469_v13 = vmax.f32 %v4467_v25, %v4468_v23  ;;  %v4476_v52 = vmax.f32 %v4474_v27, %v4475_v57 }
 0x3de   : > { %v4483_v22 = vmax.f32 %v4481_v7, %v4482_v30  ;;  %v4490_v51 = vmax.f32 %v4488_v54, %v4489_v28  ;;  %v12009_v41 = vmax.f32 %v4441_v2, %v4442_v3  ;;  %v12011_v26 = vmax.f32 %v4448_v37, %v4449_v48 }
 0x3df   : > { %v12013_v55 = vmax.f32 %v4455_v31, %v4456_v56  ;;  %v12015_v39 = vmax.f32 %v4462_v24, %v4463_v47  ;;  %v4470_v5 = vrot.slane %v4469_v13, 1  ;;  %v4477_v6 = vrot.slane %v4476_v52, 1 }
 0x3e0   : > { %13855 = vst [vmem:[#allocation370_spill] sm:$0xff] %v12009_v41  ;;  %13856 = vst [vmem:[#allocation371_spill] sm:$0xff] %v12011_v26  ;;  %v4484_v38 = vrot.slane %v4483_v22, 1  ;;  %v4491_v53 = vrot.slane %v4490_v51, 1  ;;  %v4493_v27 = vsel %vm1692_vm0, %v1580_v50, -inf  ;;  %v4500_v25 = vsel %vm1692_vm0, %v1581_v40, -inf }
 0x3e1   : > { %13857 = vst [vmem:[#allocation372_spill] sm:$0xff] %v12013_v55  ;;  %13858 = vst [vmem:[#allocation373_spill] sm:$0xff] %v12015_v39  ;;  %v4507_v7 = vsel %vm1692_vm0, %v1582_v49, -inf  ;;  %v4514_v3 = vsel %vm1692_vm0, %v1583_v29, -inf  ;;  %v12023_v48 = vmax.f32 %v4469_v13, %v4470_v5  ;;  %v12025_v54 = vmax.f32 %v4476_v52, %v4477_v6  ;;  %v1595_v26 = vld [vmem:[%s10417_s29 + $0xcf8] sm:$0x3f] }
 0x3e2   : > { %v12027_v2 = vmax.f32 %v4483_v22, %v4484_v38  ;;  %v12029_v37 = vmax.f32 %v4490_v51, %v4491_v53  ;;  %v4494_v31 = vrot.slane %v4493_v27, 4  ;;  %v4501_v24 = vrot.slane %v4500_v25, 4 }
 0x3e3   : > { %13859 = vst [vmem:[#allocation374_spill] sm:$0xff] %v12023_v48  ;;  %13860 = vst [vmem:[#allocation375_spill] sm:$0xff] %v12025_v54  ;;  %v4508_v23 = vrot.slane %v4507_v7, 4  ;;  %v4515_v57 = vrot.slane %v4514_v3, 4  ;;  %v4521_v30 = vsel %vm1692_vm0, %v1584_v12, -inf  ;;  %v4528_v28 = vsel %vm1692_vm0, %v1585_v4, -inf }
 0x3e4   : > { %13861 = vst [vmem:[#allocation376_spill] sm:$0xff] %v12027_v2  ;;  %13862 = vst [vmem:[#allocation377_spill] sm:$0xff] %v12029_v37  ;;  %v4535_v50 = vsel %vm1692_vm0, %v1586_v46, -inf  ;;  %v4542_v56 = vsel %vm1692_vm0, %v1587_v36, -inf  ;;  %v4495_v5 = vmax.f32 %v4493_v27, %v4494_v31  ;;  %v4502_v47 = vmax.f32 %v4500_v25, %v4501_v24 }
 0x3e5   : > { %v4509_v6 = vmax.f32 %v4507_v7, %v4508_v23  ;;  %v4516_v40 = vmax.f32 %v4514_v3, %v4515_v57  ;;  %v4522_v38 = vrot.slane %v4521_v30, 4  ;;  %v4529_v49 = vrot.slane %v4528_v28, 4  ;;  %v1588_v57 = vld [vmem:[%s10417_s29 + $0xcc0] sm:$0x3f] }
 0x3e6   : > { %v4536_v53 = vrot.slane %v4535_v50, 4  ;;  %v4543_v29 = vrot.slane %v4542_v56, 4  ;;  %v4496_v13 = vrot.slane %v4495_v5, 2  ;;  %v4503_v52 = vrot.slane %v4502_v47, 2 }
 0x3e7   : > { %v4510_v22 = vrot.slane %v4509_v6, 2  ;;  %v4517_v51 = vrot.slane %v4516_v40, 2  ;;  %v4523_v12 = vmax.f32 %v4521_v30, %v4522_v38  ;;  %v4530_v2 = vmax.f32 %v4528_v28, %v4529_v49  ;;  %v1590_v38 = vld [vmem:[%s10417_s29 + $0xcd0] sm:$0x3f]  ;;  %v1592_v49 = vld [vmem:[%s10417_s29 + $0xce0] sm:$0x3f] }
 0x3e8   : > { %v4537_v4 = vmax.f32 %v4535_v50, %v4536_v53  ;;  %v4544_v46 = vmax.f32 %v4542_v56, %v4543_v29  ;;  %v4497_v36 = vmax.f32 %v4495_v5, %v4496_v13  ;;  %v4504_v27 = vmax.f32 %v4502_v47, %v4503_v52  ;;  %v1589_v50 = vld [vmem:[%s10417_s29 + $0xcc8] sm:$0x3f]  ;;  %v1591_v56 = vld [vmem:[%s10417_s29 + $0xcd8] sm:$0x3f] }
 0x3e9   : > { %v4511_v25 = vmax.f32 %v4509_v6, %v4510_v22  ;;  %v4518_v7 = vmax.f32 %v4516_v40, %v4517_v51  ;;  %v4524_v3 = vrot.slane %v4523_v12, 2  ;;  %v4531_v31 = vrot.slane %v4530_v2, 2  ;;  %v1593_v53 = vld [vmem:[%s10417_s29 + $0xce8] sm:$0x3f]  ;;  %v1594_v51 = vld [vmem:[%s10417_s29 + $0xcf0] sm:$0x3f] }
 0x3ea   : > { %v4538_v24 = vrot.slane %v4537_v4, 2  ;;  %v4545_v23 = vrot.slane %v4544_v46, 2  ;;  %v4498_v37 = vrot.slane %v4497_v36, 1  ;;  %v4505_v48 = vrot.slane %v4504_v27, 1 }
 0x3eb   : > { %v4512_v30 = vrot.slane %v4511_v25, 1  ;;  %v4519_v28 = vrot.slane %v4518_v7, 1  ;;  %v4525_v5 = vmax.f32 %v4523_v12, %v4524_v3  ;;  %v4532_v47 = vmax.f32 %v4530_v2, %v4531_v31 }
 0x3ec   : > { %v4539_v6 = vmax.f32 %v4537_v4, %v4538_v24  ;;  %v4546_v40 = vmax.f32 %v4544_v46, %v4545_v23  ;;  %v12041_v29 = vmax.f32 %v4497_v36, %v4498_v37  ;;  %v12043_v13 = vmax.f32 %v4504_v27, %v4505_v48 }
 0x3ed   : > { %v12045_v52 = vmax.f32 %v4511_v25, %v4512_v30  ;;  %v12047_v22 = vmax.f32 %v4518_v7, %v4519_v28  ;;  %v4526_v54 = vrot.slane %v4525_v5, 1  ;;  %v4533_v55 = vrot.slane %v4532_v47, 1 }
 0x3ee   : > { %13863 = vst [vmem:[#allocation378_spill] sm:$0xff] %v12041_v29  ;;  %13864 = vst [vmem:[#allocation379_spill] sm:$0xff] %v12043_v13  ;;  %v4540_v39 = vrot.slane %v4539_v6, 1  ;;  %v4547_v41 = vrot.slane %v4546_v40, 1  ;;  %v4549_v2 = vsel %vm1692_vm0, %v1588_v57, -inf  ;;  %v4556_v12 = vsel %vm1692_vm0, %v1589_v50, -inf }
 0x3ef   : > { %13865 = vst [vmem:[#allocation380_spill] sm:$0xff] %v12045_v52  ;;  %13866 = vst [vmem:[#allocation381_spill] sm:$0xff] %v12047_v22  ;;  %v4563_v4 = vsel %vm1692_vm0, %v1590_v38, -inf  ;;  %v4570_v37 = vsel %vm1692_vm0, %v1591_v56, -inf  ;;  %v12055_v48 = vmax.f32 %v4525_v5, %v4526_v54  ;;  %v12057_v46 = vmax.f32 %v4532_v47, %v4533_v55  ;;  %v1603_v13 = vld [vmem:[%s10417_s29 + $0xd38] sm:$0x3f] }
 0x3f0   : > { %v12059_v36 = vmax.f32 %v4539_v6, %v4540_v39  ;;  %v12061_v27 = vmax.f32 %v4546_v40, %v4547_v41  ;;  %v4550_v25 = vrot.slane %v4549_v2, 4  ;;  %v4557_v7 = vrot.slane %v4556_v12, 4 }
 0x3f1   : > { %13867 = vst [vmem:[#allocation382_spill] sm:$0xff] %v12055_v48  ;;  %13868 = vst [vmem:[#allocation383_spill] sm:$0xff] %v12057_v46  ;;  %v4564_v3 = vrot.slane %v4563_v4, 4  ;;  %v4571_v31 = vrot.slane %v4570_v37, 4  ;;  %v4577_v24 = vsel %vm1692_vm0, %v1592_v49, -inf  ;;  %v4584_v23 = vsel %vm1692_vm0, %v1593_v53, -inf }
 0x3f2   : > { %13869 = vst [vmem:[#allocation384_spill] sm:$0xff] %v12059_v36  ;;  %13870 = vst [vmem:[#allocation385_spill] sm:$0xff] %v12061_v27  ;;  %v4591_v57 = vsel %vm1692_vm0, %v1594_v51, -inf  ;;  %v4598_v30 = vsel %vm1692_vm0, %v1595_v26, -inf  ;;  %v4551_v54 = vmax.f32 %v4549_v2, %v4550_v25  ;;  %v4558_v28 = vmax.f32 %v4556_v12, %v4557_v7 }
 0x3f3   : > { %v4565_v55 = vmax.f32 %v4563_v4, %v4564_v3  ;;  %v4572_v50 = vmax.f32 %v4570_v37, %v4571_v31  ;;  %v4578_v39 = vrot.slane %v4577_v24, 4  ;;  %v4585_v38 = vrot.slane %v4584_v23, 4  ;;  %v1596_v31 = vld [vmem:[%s10417_s29 + $0xd00] sm:$0x3f] }
 0x3f4   : > { %v4592_v41 = vrot.slane %v4591_v57, 4  ;;  %v4599_v56 = vrot.slane %v4598_v30, 4  ;;  %v4552_v5 = vrot.slane %v4551_v54, 2  ;;  %v4559_v47 = vrot.slane %v4558_v28, 2 }
 0x3f5   : > { %v4566_v6 = vrot.slane %v4565_v55, 2  ;;  %v4573_v40 = vrot.slane %v4572_v50, 2  ;;  %v4579_v49 = vmax.f32 %v4577_v24, %v4578_v39  ;;  %v4586_v36 = vmax.f32 %v4584_v23, %v4585_v38  ;;  %v1598_v39 = vld [vmem:[%s10417_s29 + $0xd10] sm:$0x3f]  ;;  %v1600_v38 = vld [vmem:[%s10417_s29 + $0xd20] sm:$0x3f] }
 0x3f6   : > { %v4593_v53 = vmax.f32 %v4591_v57, %v4592_v41  ;;  %v4600_v51 = vmax.f32 %v4598_v30, %v4599_v56  ;;  %v4553_v26 = vmax.f32 %v4551_v54, %v4552_v5  ;;  %v4560_v2 = vmax.f32 %v4558_v28, %v4559_v47  ;;  %v1597_v57 = vld [vmem:[%s10417_s29 + $0xd08] sm:$0x3f]  ;;  %v1599_v30 = vld [vmem:[%s10417_s29 + $0xd18] sm:$0x3f] }
 0x3f7   : > { %v4567_v12 = vmax.f32 %v4565_v55, %v4566_v6  ;;  %v4574_v4 = vmax.f32 %v4572_v50, %v4573_v40  ;;  %v4580_v37 = vrot.slane %v4579_v49, 2  ;;  %v4587_v25 = vrot.slane %v4586_v36, 2  ;;  %v1601_v41 = vld [vmem:[%s10417_s29 + $0xd28] sm:$0x3f]  ;;  %v1602_v40 = vld [vmem:[%s10417_s29 + $0xd30] sm:$0x3f] }
 0x3f8   : > { %v4594_v7 = vrot.slane %v4593_v53, 2  ;;  %v4601_v3 = vrot.slane %v4600_v51, 2  ;;  %v4554_v27 = vrot.slane %v4553_v26, 1  ;;  %v4561_v48 = vrot.slane %v4560_v2, 1 }
 0x3f9   : > { %v4568_v24 = vrot.slane %v4567_v12, 1  ;;  %v4575_v23 = vrot.slane %v4574_v4, 1  ;;  %v4581_v54 = vmax.f32 %v4579_v49, %v4580_v37  ;;  %v4588_v28 = vmax.f32 %v4586_v36, %v4587_v25 }
 0x3fa   : > { %v4595_v55 = vmax.f32 %v4593_v53, %v4594_v7  ;;  %v4602_v50 = vmax.f32 %v4600_v51, %v4601_v3  ;;  %v12073_v56 = vmax.f32 %v4553_v26, %v4554_v27  ;;  %v12075_v5 = vmax.f32 %v4560_v2, %v4561_v48 }
 0x3fb   : > { %v12077_v47 = vmax.f32 %v4567_v12, %v4568_v24  ;;  %v12079_v6 = vmax.f32 %v4574_v4, %v4575_v23  ;;  %v4582_v46 = vrot.slane %v4581_v54, 1  ;;  %v4589_v52 = vrot.slane %v4588_v28, 1 }
 0x3fc   : > { %13871 = vst [vmem:[#allocation386_spill] sm:$0xff] %v12073_v56  ;;  %13872 = vst [vmem:[#allocation387_spill] sm:$0xff] %v12075_v5  ;;  %v4596_v22 = vrot.slane %v4595_v55, 1  ;;  %v4603_v29 = vrot.slane %v4602_v50, 1  ;;  %v4605_v36 = vsel %vm1692_vm0, %v1596_v31, -inf  ;;  %v4612_v49 = vsel %vm1692_vm0, %v1597_v57, -inf }
 0x3fd   : > { %13873 = vst [vmem:[#allocation388_spill] sm:$0xff] %v12077_v47  ;;  %13874 = vst [vmem:[#allocation389_spill] sm:$0xff] %v12079_v6  ;;  %v4619_v53 = vsel %vm1692_vm0, %v1598_v39, -inf  ;;  %v4626_v27 = vsel %vm1692_vm0, %v1599_v30, -inf  ;;  %v12087_v48 = vmax.f32 %v4581_v54, %v4582_v46  ;;  %v12089_v51 = vmax.f32 %v4588_v28, %v4589_v52  ;;  %v1611_v5 = vld [vmem:[%s10417_s29 + $0xd78] sm:$0x3f] }
 0x3fe   : > { %v12091_v26 = vmax.f32 %v4595_v55, %v4596_v22  ;;  %v12093_v2 = vmax.f32 %v4602_v50, %v4603_v29  ;;  %v4606_v12 = vrot.slane %v4605_v36, 4  ;;  %v4613_v4 = vrot.slane %v4612_v49, 4 }
 0x3ff   : > { %13875 = vst [vmem:[#allocation390_spill] sm:$0xff] %v12087_v48  ;;  %13876 = vst [vmem:[#allocation391_spill] sm:$0xff] %v12089_v51  ;;  %v4620_v37 = vrot.slane %v4619_v53, 4  ;;  %v4627_v25 = vrot.slane %v4626_v27, 4  ;;  %v4633_v7 = vsel %vm1692_vm0, %v1600_v38, -inf  ;;  %v4640_v3 = vsel %vm1692_vm0, %v1601_v41, -inf }
 0x400   : > { %13877 = vst [vmem:[#allocation392_spill] sm:$0xff] %v12091_v26  ;;  %13878 = vst [vmem:[#allocation393_spill] sm:$0xff] %v12093_v2  ;;  %v4647_v31 = vsel %vm1692_vm0, %v1602_v40, -inf  ;;  %v4654_v24 = vsel %vm1692_vm0, %v1603_v13, -inf  ;;  %v4607_v46 = vmax.f32 %v4605_v36, %v4606_v12  ;;  %v4614_v23 = vmax.f32 %v4612_v49, %v4613_v4 }
 0x401   : > { %v4621_v52 = vmax.f32 %v4619_v53, %v4620_v37  ;;  %v4628_v57 = vmax.f32 %v4626_v27, %v4627_v25  ;;  %v4634_v22 = vrot.slane %v4633_v7, 4  ;;  %v4641_v39 = vrot.slane %v4640_v3, 4  ;;  %v1604_v25 = vld [vmem:[%s10417_s29 + $0xd40] sm:$0x3f] }
 0x402   : > { %v4648_v29 = vrot.slane %v4647_v31, 4  ;;  %v4655_v30 = vrot.slane %v4654_v24, 4  ;;  %v4608_v54 = vrot.slane %v4607_v46, 2  ;;  %v4615_v28 = vrot.slane %v4614_v23, 2 }
 0x403   : > { %v4622_v55 = vrot.slane %v4621_v52, 2  ;;  %v4629_v50 = vrot.slane %v4628_v57, 2  ;;  %v4635_v38 = vmax.f32 %v4633_v7, %v4634_v22  ;;  %v4642_v26 = vmax.f32 %v4640_v3, %v4641_v39  ;;  %v1606_v22 = vld [vmem:[%s10417_s29 + $0xd50] sm:$0x3f]  ;;  %v1608_v39 = vld [vmem:[%s10417_s29 + $0xd60] sm:$0x3f] }
 0x404   : > { %v4649_v41 = vmax.f32 %v4647_v31, %v4648_v29  ;;  %v4656_v40 = vmax.f32 %v4654_v24, %v4655_v30  ;;  %v4609_v13 = vmax.f32 %v4607_v46, %v4608_v54  ;;  %v4616_v36 = vmax.f32 %v4614_v23, %v4615_v28  ;;  %v1605_v31 = vld [vmem:[%s10417_s29 + $0xd48] sm:$0x3f]  ;;  %v1607_v24 = vld [vmem:[%s10417_s29 + $0xd58] sm:$0x3f] }
 0x405   : > { %v4623_v49 = vmax.f32 %v4621_v52, %v4622_v55  ;;  %v4630_v53 = vmax.f32 %v4628_v57, %v4629_v50  ;;  %v4636_v27 = vrot.slane %v4635_v38, 2  ;;  %v4643_v12 = vrot.slane %v4642_v26, 2  ;;  %v1609_v29 = vld [vmem:[%s10417_s29 + $0xd68] sm:$0x3f]  ;;  %v1610_v50 = vld [vmem:[%s10417_s29 + $0xd70] sm:$0x3f] }
 0x406   : > { %v4650_v4 = vrot.slane %v4649_v41, 2  ;;  %v4657_v37 = vrot.slane %v4656_v40, 2  ;;  %v4610_v2 = vrot.slane %v4609_v13, 1  ;;  %v4617_v48 = vrot.slane %v4616_v36, 1 }
 0x407   : > { %v4624_v7 = vrot.slane %v4623_v49, 1  ;;  %v4631_v3 = vrot.slane %v4630_v53, 1  ;;  %v4637_v46 = vmax.f32 %v4635_v38, %v4636_v27  ;;  %v4644_v23 = vmax.f32 %v4642_v26, %v4643_v12 }
 0x408   : > { %v4651_v52 = vmax.f32 %v4649_v41, %v4650_v4  ;;  %v4658_v57 = vmax.f32 %v4656_v40, %v4657_v37  ;;  %v12105_v30 = vmax.f32 %v4609_v13, %v4610_v2  ;;  %v12107_v54 = vmax.f32 %v4616_v36, %v4617_v48 }
 0x409   : > { %v12109_v28 = vmax.f32 %v4623_v49, %v4624_v7  ;;  %v12111_v55 = vmax.f32 %v4630_v53, %v4631_v3  ;;  %v4638_v51 = vrot.slane %v4637_v46, 1  ;;  %v4645_v47 = vrot.slane %v4644_v23, 1 }
 0x40a   : > { %13879 = vst [vmem:[#allocation394_spill] sm:$0xff] %v12105_v30  ;;  %13880 = vst [vmem:[#allocation395_spill] sm:$0xff] %v12107_v54  ;;  %v4652_v6 = vrot.slane %v4651_v52, 1  ;;  %v4659_v56 = vrot.slane %v4658_v57, 1  ;;  %v4661_v26 = vsel %vm1692_vm0, %v1604_v25, -inf  ;;  %v4668_v38 = vsel %vm1692_vm0, %v1605_v31, -inf }
 0x40b   : > { %13881 = vst [vmem:[#allocation396_spill] sm:$0xff] %v12109_v28  ;;  %13882 = vst [vmem:[#allocation397_spill] sm:$0xff] %v12111_v55  ;;  %v4675_v41 = vsel %vm1692_vm0, %v1606_v22, -inf  ;;  %v4682_v2 = vsel %vm1692_vm0, %v1607_v24, -inf  ;;  %v12119_v48 = vmax.f32 %v4637_v46, %v4638_v51  ;;  %v12121_v40 = vmax.f32 %v4644_v23, %v4645_v47  ;;  %v1619_v54 = vld [vmem:[%s10417_s29 + $0xdb8] sm:$0x3f] }
 0x40c   : > { %v12123_v13 = vmax.f32 %v4651_v52, %v4652_v6  ;;  %v12125_v36 = vmax.f32 %v4658_v57, %v4659_v56  ;;  %v4662_v49 = vrot.slane %v4661_v26, 4  ;;  %v4669_v53 = vrot.slane %v4668_v38, 4 }
 0x40d   : > { %13883 = vst [vmem:[#allocation398_spill] sm:$0xff] %v12119_v48  ;;  %13884 = vst [vmem:[#allocation399_spill] sm:$0xff] %v12121_v40  ;;  %v4676_v27 = vrot.slane %v4675_v41, 4  ;;  %v4683_v12 = vrot.slane %v4682_v2, 4  ;;  %v4689_v4 = vsel %vm1692_vm0, %v1608_v39, -inf  ;;  %v4696_v37 = vsel %vm1692_vm0, %v1609_v29, -inf }
 0x40e   : > { %13885 = vst [vmem:[#allocation400_spill] sm:$0xff] %v12123_v13  ;;  %13886 = vst [vmem:[#allocation401_spill] sm:$0xff] %v12125_v36  ;;  %v4703_v25 = vsel %vm1692_vm0, %v1610_v50, -inf  ;;  %v4710_v7 = vsel %vm1692_vm0, %v1611_v5, -inf  ;;  %v4663_v51 = vmax.f32 %v4661_v26, %v4662_v49  ;;  %v4670_v3 = vmax.f32 %v4668_v38, %v4669_v53 }
 0x40f   : > { %v4677_v47 = vmax.f32 %v4675_v41, %v4676_v27  ;;  %v4684_v31 = vmax.f32 %v4682_v2, %v4683_v12  ;;  %v4690_v6 = vrot.slane %v4689_v4, 4  ;;  %v4697_v22 = vrot.slane %v4696_v37, 4  ;;  %v1612_v12 = vld [vmem:[%s10417_s29 + $0xd80] sm:$0x3f] }
 0x410   : > { %v4704_v56 = vrot.slane %v4703_v25, 4  ;;  %v4711_v24 = vrot.slane %v4710_v7, 4  ;;  %v4664_v46 = vrot.slane %v4663_v51, 2  ;;  %v4671_v23 = vrot.slane %v4670_v3, 2 }
 0x411   : > { %v4678_v52 = vrot.slane %v4677_v47, 2  ;;  %v4685_v57 = vrot.slane %v4684_v31, 2  ;;  %v4691_v39 = vmax.f32 %v4689_v4, %v4690_v6  ;;  %v4698_v13 = vmax.f32 %v4696_v37, %v4697_v22  ;;  %v1614_v6 = vld [vmem:[%s10417_s29 + $0xd90] sm:$0x3f]  ;;  %v1616_v22 = vld [vmem:[%s10417_s29 + $0xda0] sm:$0x3f] }
 0x412   : > { %v4705_v29 = vmax.f32 %v4703_v25, %v4704_v56  ;;  %v4712_v50 = vmax.f32 %v4710_v7, %v4711_v24  ;;  %v4665_v5 = vmax.f32 %v4663_v51, %v4664_v46  ;;  %v4672_v26 = vmax.f32 %v4670_v3, %v4671_v23  ;;  %v1613_v25 = vld [vmem:[%s10417_s29 + $0xd88] sm:$0x3f]  ;;  %v1615_v7 = vld [vmem:[%s10417_s29 + $0xd98] sm:$0x3f] }
 0x413   : > { %v4679_v38 = vmax.f32 %v4677_v47, %v4678_v52  ;;  %v4686_v41 = vmax.f32 %v4684_v31, %v4685_v57  ;;  %v4692_v2 = vrot.slane %v4691_v39, 2  ;;  %v4699_v49 = vrot.slane %v4698_v13, 2  ;;  %v1617_v56 = vld [vmem:[%s10417_s29 + $0xda8] sm:$0x3f]  ;;  %v1618_v57 = vld [vmem:[%s10417_s29 + $0xdb0] sm:$0x3f] }
 0x414   : > { %v4706_v53 = vrot.slane %v4705_v29, 2  ;;  %v4713_v27 = vrot.slane %v4712_v50, 2  ;;  %v4666_v36 = vrot.slane %v4665_v5, 1  ;;  %v4673_v48 = vrot.slane %v4672_v26, 1 }
 0x415   : > { %v4680_v4 = vrot.slane %v4679_v38, 1  ;;  %v4687_v37 = vrot.slane %v4686_v41, 1  ;;  %v4693_v51 = vmax.f32 %v4691_v39, %v4692_v2  ;;  %v4700_v3 = vmax.f32 %v4698_v13, %v4699_v49 }
 0x416   : > { %v4707_v47 = vmax.f32 %v4705_v29, %v4706_v53  ;;  %v4714_v31 = vmax.f32 %v4712_v50, %v4713_v27  ;;  %v12137_v24 = vmax.f32 %v4665_v5, %v4666_v36  ;;  %v12139_v46 = vmax.f32 %v4672_v26, %v4673_v48 }
 0x417   : > { %v12141_v23 = vmax.f32 %v4679_v38, %v4680_v4  ;;  %v12143_v52 = vmax.f32 %v4686_v41, %v4687_v37  ;;  %v4694_v40 = vrot.slane %v4693_v51, 1  ;;  %v4701_v28 = vrot.slane %v4700_v3, 1 }
 0x418   : > { %13887 = vst [vmem:[#allocation402_spill] sm:$0xff] %v12137_v24  ;;  %13888 = vst [vmem:[#allocation403_spill] sm:$0xff] %v12139_v46  ;;  %v4708_v55 = vrot.slane %v4707_v47, 1  ;;  %v4715_v30 = vrot.slane %v4714_v31, 1  ;;  %v4717_v13 = vsel %vm1692_vm0, %v1612_v12, -inf  ;;  %v4724_v39 = vsel %vm1692_vm0, %v1613_v25, -inf }
 0x419   : > { %13889 = vst [vmem:[#allocation404_spill] sm:$0xff] %v12141_v23  ;;  %13890 = vst [vmem:[#allocation405_spill] sm:$0xff] %v12143_v52  ;;  %v4731_v29 = vsel %vm1692_vm0, %v1614_v6, -inf  ;;  %v4738_v36 = vsel %vm1692_vm0, %v1615_v7, -inf  ;;  %v12151_v48 = vmax.f32 %v4693_v51, %v4694_v40  ;;  %v12153_v50 = vmax.f32 %v4700_v3, %v4701_v28  ;;  %v1627_v46 = vld [vmem:[%s10417_s29 + $0xdf8] sm:$0x3f] }
 0x41a   : > { %v12155_v5 = vmax.f32 %v4707_v47, %v4708_v55  ;;  %v12157_v26 = vmax.f32 %v4714_v31, %v4715_v30  ;;  %v4718_v38 = vrot.slane %v4717_v13, 4  ;;  %v4725_v41 = vrot.slane %v4724_v39, 4 }
 0x41b   : > { %13891 = vst [vmem:[#allocation406_spill] sm:$0xff] %v12151_v48  ;;  %13892 = vst [vmem:[#allocation407_spill] sm:$0xff] %v12153_v50  ;;  %v4732_v2 = vrot.slane %v4731_v29, 4  ;;  %v4739_v49 = vrot.slane %v4738_v36, 4  ;;  %v4745_v53 = vsel %vm1692_vm0, %v1616_v22, -inf  ;;  %v4752_v27 = vsel %vm1692_vm0, %v1617_v56, -inf }
 0x41c   : > { %13893 = vst [vmem:[#allocation408_spill] sm:$0xff] %v12155_v5  ;;  %13894 = vst [vmem:[#allocation409_spill] sm:$0xff] %v12157_v26  ;;  %v4759_v12 = vsel %vm1692_vm0, %v1618_v57, -inf  ;;  %v4766_v4 = vsel %vm1692_vm0, %v1619_v54, -inf  ;;  %v4719_v40 = vmax.f32 %v4717_v13, %v4718_v38  ;;  %v4726_v37 = vmax.f32 %v4724_v39, %v4725_v41 }
 0x41d   : > { %v4733_v28 = vmax.f32 %v4731_v29, %v4732_v2  ;;  %v4740_v25 = vmax.f32 %v4738_v36, %v4739_v49  ;;  %v4746_v55 = vrot.slane %v4745_v53, 4  ;;  %v4753_v6 = vrot.slane %v4752_v27, 4  ;;  %v1620_v49 = vld [vmem:[%s10417_s29 + $0xdc0] sm:$0x3f] }
 0x41e   : > { %v4760_v30 = vrot.slane %v4759_v12, 4  ;;  %v4767_v7 = vrot.slane %v4766_v4, 4  ;;  %v4720_v51 = vrot.slane %v4719_v40, 2  ;;  %v4727_v3 = vrot.slane %v4726_v37, 2 }
 0x41f   : > { %v4734_v47 = vrot.slane %v4733_v28, 2  ;;  %v4741_v31 = vrot.slane %v4740_v25, 2  ;;  %v4747_v22 = vmax.f32 %v4745_v53, %v4746_v55  ;;  %v4754_v5 = vmax.f32 %v4752_v27, %v4753_v6  ;;  %v1622_v55 = vld [vmem:[%s10417_s29 + $0xdd0] sm:$0x3f]  ;;  %v1624_v6 = vld [vmem:[%s10417_s29 + $0xde0] sm:$0x3f] }
 0x420   : > { %v4761_v56 = vmax.f32 %v4759_v12, %v4760_v30  ;;  %v4768_v57 = vmax.f32 %v4766_v4, %v4767_v7  ;;  %v4721_v54 = vmax.f32 %v4719_v40, %v4720_v51  ;;  %v4728_v13 = vmax.f32 %v4726_v37, %v4727_v3  ;;  %v1621_v12 = vld [vmem:[%s10417_s29 + $0xdc8] sm:$0x3f]  ;;  %v1623_v4 = vld [vmem:[%s10417_s29 + $0xdd8] sm:$0x3f] }
 0x421   : > { %v4735_v39 = vmax.f32 %v4733_v28, %v4734_v47  ;;  %v4742_v29 = vmax.f32 %v4740_v25, %v4741_v31  ;;  %v4748_v36 = vrot.slane %v4747_v22, 2  ;;  %v4755_v38 = vrot.slane %v4754_v5, 2  ;;  %v1625_v30 = vld [vmem:[%s10417_s29 + $0xde8] sm:$0x3f]  ;;  %v1626_v31 = vld [vmem:[%s10417_s29 + $0xdf0] sm:$0x3f] }
 0x422   : > { %v4762_v41 = vrot.slane %v4761_v56, 2  ;;  %v4769_v2 = vrot.slane %v4768_v57, 2  ;;  %v4722_v26 = vrot.slane %v4721_v54, 1  ;;  %v4729_v48 = vrot.slane %v4728_v13, 1 }
 0x423   : > { %v4736_v53 = vrot.slane %v4735_v39, 1  ;;  %v4743_v27 = vrot.slane %v4742_v29, 1  ;;  %v4749_v40 = vmax.f32 %v4747_v22, %v4748_v36  ;;  %v4756_v37 = vmax.f32 %v4754_v5, %v4755_v38 }
 0x424   : > { %v4763_v28 = vmax.f32 %v4761_v56, %v4762_v41  ;;  %v4770_v25 = vmax.f32 %v4768_v57, %v4769_v2  ;;  %v12169_v7 = vmax.f32 %v4721_v54, %v4722_v26  ;;  %v12171_v51 = vmax.f32 %v4728_v13, %v4729_v48 }
 0x425   : > { %v12173_v3 = vmax.f32 %v4735_v39, %v4736_v53  ;;  %v12175_v47 = vmax.f32 %v4742_v29, %v4743_v27  ;;  %v4750_v50 = vrot.slane %v4749_v40, 1  ;;  %v4757_v23 = vrot.slane %v4756_v37, 1 }
 0x426   : > { %13895 = vst [vmem:[#allocation410_spill] sm:$0xff] %v12169_v7  ;;  %13896 = vst [vmem:[#allocation411_spill] sm:$0xff] %v12171_v51  ;;  %v4764_v52 = vrot.slane %v4763_v28, 1  ;;  %v4771_v24 = vrot.slane %v4770_v25, 1  ;;  %v4773_v5 = vsel %vm1692_vm0, %v1620_v49, -inf  ;;  %v4780_v22 = vsel %vm1692_vm0, %v1621_v12, -inf }
 0x427   : > { %13897 = vst [vmem:[#allocation412_spill] sm:$0xff] %v12173_v3  ;;  %13898 = vst [vmem:[#allocation413_spill] sm:$0xff] %v12175_v47  ;;  %v4787_v56 = vsel %vm1692_vm0, %v1622_v55, -inf  ;;  %v4794_v26 = vsel %vm1692_vm0, %v1623_v4, -inf  ;;  %v12183_v48 = vmax.f32 %v4749_v40, %v4750_v50  ;;  %v12185_v57 = vmax.f32 %v4756_v37, %v4757_v23  ;;  %v1635_v51 = vld [vmem:[%s10417_s29 + $0xe38] sm:$0x3f] }
 0x428   : > { %v12187_v54 = vmax.f32 %v4763_v28, %v4764_v52  ;;  %v12189_v13 = vmax.f32 %v4770_v25, %v4771_v24  ;;  %v4774_v39 = vrot.slane %v4773_v5, 4  ;;  %v4781_v29 = vrot.slane %v4780_v22, 4 }
 0x429   : > { %13899 = vst [vmem:[#allocation414_spill] sm:$0xff] %v12183_v48  ;;  %13900 = vst [vmem:[#allocation415_spill] sm:$0xff] %v12185_v57  ;;  %v4788_v36 = vrot.slane %v4787_v56, 4  ;;  %v4795_v38 = vrot.slane %v4794_v26, 4  ;;  %v4801_v41 = vsel %vm1692_vm0, %v1624_v6, -inf  ;;  %v4808_v2 = vsel %vm1692_vm0, %v1625_v30, -inf }
 0x42a   : > { %13901 = vst [vmem:[#allocation416_spill] sm:$0xff] %v12187_v54  ;;  %13902 = vst [vmem:[#allocation417_spill] sm:$0xff] %v12189_v13  ;;  %v4815_v49 = vsel %vm1692_vm0, %v1626_v31, -inf  ;;  %v4822_v53 = vsel %vm1692_vm0, %v1627_v46, -inf  ;;  %v4775_v50 = vmax.f32 %v4773_v5, %v4774_v39  ;;  %v4782_v27 = vmax.f32 %v4780_v22, %v4781_v29 }
 0x42b   : > { %v4789_v23 = vmax.f32 %v4787_v56, %v4788_v36  ;;  %v4796_v12 = vmax.f32 %v4794_v26, %v4795_v38  ;;  %v4802_v52 = vrot.slane %v4801_v41, 4  ;;  %v4809_v55 = vrot.slane %v4808_v2, 4  ;;  %v1628_v38 = vld [vmem:[%s10417_s29 + $0xe00] sm:$0x3f] }
 0x42c   : > { %v4816_v24 = vrot.slane %v4815_v49, 4  ;;  %v4823_v4 = vrot.slane %v4822_v53, 4  ;;  %v4776_v40 = vrot.slane %v4775_v50, 2  ;;  %v4783_v37 = vrot.slane %v4782_v27, 2 }
 0x42d   : > { %v4790_v28 = vrot.slane %v4789_v23, 2  ;;  %v4797_v25 = vrot.slane %v4796_v12, 2  ;;  %v4803_v6 = vmax.f32 %v4801_v41, %v4802_v52  ;;  %v4810_v54 = vmax.f32 %v4808_v2, %v4809_v55  ;;  %v1630_v52 = vld [vmem:[%s10417_s29 + $0xe10] sm:$0x3f]  ;;  %v1632_v55 = vld [vmem:[%s10417_s29 + $0xe20] sm:$0x3f] }
 0x42e   : > { %v4817_v30 = vmax.f32 %v4815_v49, %v4816_v24  ;;  %v4824_v31 = vmax.f32 %v4822_v53, %v4823_v4  ;;  %v4777_v46 = vmax.f32 %v4775_v50, %v4776_v40  ;;  %v4784_v5 = vmax.f32 %v4782_v27, %v4783_v37  ;;  %v1629_v49 = vld [vmem:[%s10417_s29 + $0xe08] sm:$0x3f]  ;;  %v1631_v53 = vld [vmem:[%s10417_s29 + $0xe18] sm:$0x3f] }
 0x42f   : > { %v4791_v22 = vmax.f32 %v4789_v23, %v4790_v28  ;;  %v4798_v56 = vmax.f32 %v4796_v12, %v4797_v25  ;;  %v4804_v26 = vrot.slane %v4803_v6, 2  ;;  %v4811_v39 = vrot.slane %v4810_v54, 2  ;;  %v1633_v24 = vld [vmem:[%s10417_s29 + $0xe28] sm:$0x3f]  ;;  %v1634_v25 = vld [vmem:[%s10417_s29 + $0xe30] sm:$0x3f] }
 0x430   : > { %v4818_v29 = vrot.slane %v4817_v30, 2  ;;  %v4825_v36 = vrot.slane %v4824_v31, 2  ;;  %v4778_v13 = vrot.slane %v4777_v46, 1  ;;  %v4785_v48 = vrot.slane %v4784_v5, 1 }
 0x431   : > { %v4792_v41 = vrot.slane %v4791_v22, 1  ;;  %v4799_v2 = vrot.slane %v4798_v56, 1  ;;  %v4805_v50 = vmax.f32 %v4803_v6, %v4804_v26  ;;  %v4812_v27 = vmax.f32 %v4810_v54, %v4811_v39 }
 0x432   : > { %v4819_v23 = vmax.f32 %v4817_v30, %v4818_v29  ;;  %v4826_v12 = vmax.f32 %v4824_v31, %v4825_v36  ;;  %v12201_v4 = vmax.f32 %v4777_v46, %v4778_v13  ;;  %v12203_v40 = vmax.f32 %v4784_v5, %v4785_v48 }
 0x433   : > { %v12205_v37 = vmax.f32 %v4791_v22, %v4792_v41  ;;  %v12207_v28 = vmax.f32 %v4798_v56, %v4799_v2  ;;  %v4806_v57 = vrot.slane %v4805_v50, 1  ;;  %v4813_v3 = vrot.slane %v4812_v27, 1 }
 0x434   : > { %13903 = vst [vmem:[#allocation418_spill] sm:$0xff] %v12201_v4  ;;  %13904 = vst [vmem:[#allocation419_spill] sm:$0xff] %v12203_v40  ;;  %v4820_v47 = vrot.slane %v4819_v23, 1  ;;  %v4827_v7 = vrot.slane %v4826_v12, 1  ;;  %v4829_v54 = vsel %vm1692_vm0, %v1628_v38, -inf  ;;  %v4836_v6 = vsel %vm1692_vm0, %v1629_v49, -inf }
 0x435   : > { %13905 = vst [vmem:[#allocation420_spill] sm:$0xff] %v12205_v37  ;;  %13906 = vst [vmem:[#allocation421_spill] sm:$0xff] %v12207_v28  ;;  %v4843_v30 = vsel %vm1692_vm0, %v1630_v52, -inf  ;;  %v4850_v13 = vsel %vm1692_vm0, %v1631_v53, -inf  ;;  %v12215_v48 = vmax.f32 %v4805_v50, %v4806_v57  ;;  %v12217_v31 = vmax.f32 %v4812_v27, %v4813_v3  ;;  %v1643_v40 = vld [vmem:[%s10417_s29 + $0xe78] sm:$0x3f] }
 0x436   : > { %v12219_v46 = vmax.f32 %v4819_v23, %v4820_v47  ;;  %v12221_v5 = vmax.f32 %v4826_v12, %v4827_v7  ;;  %v4830_v22 = vrot.slane %v4829_v54, 4  ;;  %v4837_v56 = vrot.slane %v4836_v6, 4 }
 0x437   : > { %13907 = vst [vmem:[#allocation422_spill] sm:$0xff] %v12215_v48  ;;  %13908 = vst [vmem:[#allocation423_spill] sm:$0xff] %v12217_v31  ;;  %v4844_v26 = vrot.slane %v4843_v30, 4  ;;  %v4851_v39 = vrot.slane %v4850_v13, 4  ;;  %v4857_v29 = vsel %vm1692_vm0, %v1632_v55, -inf  ;;  %v4864_v36 = vsel %vm1692_vm0, %v1633_v24, -inf }
 0x438   : > { %13909 = vst [vmem:[#allocation424_spill] sm:$0xff] %v12219_v46  ;;  %13910 = vst [vmem:[#allocation425_spill] sm:$0xff] %v12221_v5  ;;  %v4871_v38 = vsel %vm1692_vm0, %v1634_v25, -inf  ;;  %v4878_v41 = vsel %vm1692_vm0, %v1635_v51, -inf  ;;  %v4831_v57 = vmax.f32 %v4829_v54, %v4830_v22  ;;  %v4838_v2 = vmax.f32 %v4836_v6, %v4837_v56 }
 0x439   : > { %v4845_v3 = vmax.f32 %v4843_v30, %v4844_v26  ;;  %v4852_v49 = vmax.f32 %v4850_v13, %v4851_v39  ;;  %v4858_v47 = vrot.slane %v4857_v29, 4  ;;  %v4865_v52 = vrot.slane %v4864_v36, 4  ;;  %v1636_v39 = vld [vmem:[%s10417_s29 + $0xe40] sm:$0x3f] }
 0x43a   : > { %v4872_v7 = vrot.slane %v4871_v38, 4  ;;  %v4879_v53 = vrot.slane %v4878_v41, 4  ;;  %v4832_v50 = vrot.slane %v4831_v57, 2  ;;  %v4839_v27 = vrot.slane %v4838_v2, 2 }
 0x43b   : > { %v4846_v23 = vrot.slane %v4845_v3, 2  ;;  %v4853_v12 = vrot.slane %v4852_v49, 2  ;;  %v4859_v55 = vmax.f32 %v4857_v29, %v4858_v47  ;;  %v4866_v46 = vmax.f32 %v4864_v36, %v4865_v52  ;;  %v1638_v47 = vld [vmem:[%s10417_s29 + $0xe50] sm:$0x3f]  ;;  %v1640_v52 = vld [vmem:[%s10417_s29 + $0xe60] sm:$0x3f] }
 0x43c   : > { %v4873_v24 = vmax.f32 %v4871_v38, %v4872_v7  ;;  %v4880_v25 = vmax.f32 %v4878_v41, %v4879_v53  ;;  %v4833_v51 = vmax.f32 %v4831_v57, %v4832_v50  ;;  %v4840_v54 = vmax.f32 %v4838_v2, %v4839_v27  ;;  %v1637_v38 = vld [vmem:[%s10417_s29 + $0xe48] sm:$0x3f]  ;;  %v1639_v41 = vld [vmem:[%s10417_s29 + $0xe58] sm:$0x3f] }
 0x43d   : > { %v4847_v6 = vmax.f32 %v4845_v3, %v4846_v23  ;;  %v4854_v30 = vmax.f32 %v4852_v49, %v4853_v12  ;;  %v4860_v13 = vrot.slane %v4859_v55, 2  ;;  %v4867_v22 = vrot.slane %v4866_v46, 2  ;;  %v1641_v7 = vld [vmem:[%s10417_s29 + $0xe68] sm:$0x3f]  ;;  %v1642_v12 = vld [vmem:[%s10417_s29 + $0xe70] sm:$0x3f] }
 0x43e   : > { %v4874_v56 = vrot.slane %v4873_v24, 2  ;;  %v4881_v26 = vrot.slane %v4880_v25, 2  ;;  %v4834_v5 = vrot.slane %v4833_v51, 1  ;;  %v4841_v48 = vrot.slane %v4840_v54, 1 }
 0x43f   : > { %v4848_v29 = vrot.slane %v4847_v6, 1  ;;  %v4855_v36 = vrot.slane %v4854_v30, 1  ;;  %v4861_v57 = vmax.f32 %v4859_v55, %v4860_v13  ;;  %v4868_v2 = vmax.f32 %v4866_v46, %v4867_v22 }
 0x440   : > { %v4875_v3 = vmax.f32 %v4873_v24, %v4874_v56  ;;  %v4882_v49 = vmax.f32 %v4880_v25, %v4881_v26  ;;  %v12233_v53 = vmax.f32 %v4833_v51, %v4834_v5  ;;  %v12235_v50 = vmax.f32 %v4840_v54, %v4841_v48 }
 0x441   : > { %v12237_v27 = vmax.f32 %v4847_v6, %v4848_v29  ;;  %v12239_v23 = vmax.f32 %v4854_v30, %v4855_v36  ;;  %v4862_v31 = vrot.slane %v4861_v57, 1  ;;  %v4869_v37 = vrot.slane %v4868_v2, 1 }
 0x442   : > { %13911 = vst [vmem:[#allocation426_spill] sm:$0xff] %v12233_v53  ;;  %13912 = vst [vmem:[#allocation427_spill] sm:$0xff] %v12235_v50  ;;  %v4876_v28 = vrot.slane %v4875_v3, 1  ;;  %v4883_v4 = vrot.slane %v4882_v49, 1  ;;  %v4885_v46 = vsel %vm1692_vm0, %v1636_v39, -inf  ;;  %v4892_v55 = vsel %vm1692_vm0, %v1637_v38, -inf }
 0x443   : > { %13913 = vst [vmem:[#allocation428_spill] sm:$0xff] %v12237_v27  ;;  %13914 = vst [vmem:[#allocation429_spill] sm:$0xff] %v12239_v23  ;;  %v4899_v24 = vsel %vm1692_vm0, %v1638_v47, -inf  ;;  %v4906_v5 = vsel %vm1692_vm0, %v1639_v41, -inf  ;;  %v12247_v48 = vmax.f32 %v4861_v57, %v4862_v31  ;;  %v12249_v25 = vmax.f32 %v4868_v2, %v4869_v37  ;;  %v1651_v50 = vld [vmem:[%s10417_s29 + $0xeb8] sm:$0x3f] }
 0x444   : > { %v12251_v51 = vmax.f32 %v4875_v3, %v4876_v28  ;;  %v12253_v54 = vmax.f32 %v4882_v49, %v4883_v4  ;;  %v4886_v6 = vrot.slane %v4885_v46, 4  ;;  %v4893_v30 = vrot.slane %v4892_v55, 4 }
 0x445   : > { %13915 = vst [vmem:[#allocation430_spill] sm:$0xff] %v12247_v48  ;;  %13916 = vst [vmem:[#allocation431_spill] sm:$0xff] %v12249_v25  ;;  %v4900_v13 = vrot.slane %v4899_v24, 4  ;;  %v4907_v22 = vrot.slane %v4906_v5, 4  ;;  %v4913_v56 = vsel %vm1692_vm0, %v1640_v52, -inf  ;;  %v4920_v26 = vsel %vm1692_vm0, %v1641_v7, -inf }
 0x446   : > { %13917 = vst [vmem:[#allocation432_spill] sm:$0xff] %v12251_v51  ;;  %13918 = vst [vmem:[#allocation433_spill] sm:$0xff] %v12253_v54  ;;  %v4927_v39 = vsel %vm1692_vm0, %v1642_v12, -inf  ;;  %v4934_v29 = vsel %vm1692_vm0, %v1643_v40, -inf  ;;  %v4887_v31 = vmax.f32 %v4885_v46, %v4886_v6  ;;  %v4894_v36 = vmax.f32 %v4892_v55, %v4893_v30 }
 0x447   : > { %v4901_v37 = vmax.f32 %v4899_v24, %v4900_v13  ;;  %v4908_v38 = vmax.f32 %v4906_v5, %v4907_v22  ;;  %v4914_v28 = vrot.slane %v4913_v56, 4  ;;  %v4921_v47 = vrot.slane %v4920_v26, 4  ;;  %v1644_v22 = vld [vmem:[%s10417_s29 + $0xe80] sm:$0x3f] }
 0x448   : > { %v4928_v4 = vrot.slane %v4927_v39, 4  ;;  %v4935_v41 = vrot.slane %v4934_v29, 4  ;;  %v4888_v57 = vrot.slane %v4887_v31, 2  ;;  %v4895_v2 = vrot.slane %v4894_v36, 2 }
 0x449   : > { %v4902_v3 = vrot.slane %v4901_v37, 2  ;;  %v4909_v49 = vrot.slane %v4908_v38, 2  ;;  %v4915_v52 = vmax.f32 %v4913_v56, %v4914_v28  ;;  %v4922_v51 = vmax.f32 %v4920_v26, %v4921_v47  ;;  %v1646_v28 = vld [vmem:[%s10417_s29 + $0xe90] sm:$0x3f]  ;;  %v1648_v47 = vld [vmem:[%s10417_s29 + $0xea0] sm:$0x3f] }
 0x44a   : > { %v4929_v7 = vmax.f32 %v4927_v39, %v4928_v4  ;;  %v4936_v12 = vmax.f32 %v4934_v29, %v4935_v41  ;;  %v4889_v40 = vmax.f32 %v4887_v31, %v4888_v57  ;;  %v4896_v46 = vmax.f32 %v4894_v36, %v4895_v2  ;;  %v1645_v39 = vld [vmem:[%s10417_s29 + $0xe88] sm:$0x3f]  ;;  %v1647_v29 = vld [vmem:[%s10417_s29 + $0xe98] sm:$0x3f] }
 0x44b   : > { %v4903_v55 = vmax.f32 %v4901_v37, %v4902_v3  ;;  %v4910_v24 = vmax.f32 %v4908_v38, %v4909_v49  ;;  %v4916_v5 = vrot.slane %v4915_v52, 2  ;;  %v4923_v6 = vrot.slane %v4922_v51, 2  ;;  %v1649_v4 = vld [vmem:[%s10417_s29 + $0xea8] sm:$0x3f]  ;;  %v1650_v49 = vld [vmem:[%s10417_s29 + $0xeb0] sm:$0x3f] }
 0x44c   : > { %v4930_v30 = vrot.slane %v4929_v7, 2  ;;  %v4937_v13 = vrot.slane %v4936_v12, 2  ;;  %v4890_v54 = vrot.slane %v4889_v40, 1  ;;  %v4897_v48 = vrot.slane %v4896_v46, 1 }
 0x44d   : > { %v4904_v56 = vrot.slane %v4903_v55, 1  ;;  %v4911_v26 = vrot.slane %v4910_v24, 1  ;;  %v4917_v31 = vmax.f32 %v4915_v52, %v4916_v5  ;;  %v4924_v36 = vmax.f32 %v4922_v51, %v4923_v6 }
 0x44e   : > { %v4931_v37 = vmax.f32 %v4929_v7, %v4930_v30  ;;  %v4938_v38 = vmax.f32 %v4936_v12, %v4937_v13  ;;  %v12265_v41 = vmax.f32 %v4889_v40, %v4890_v54  ;;  %v12267_v57 = vmax.f32 %v4896_v46, %v4897_v48 }
 0x44f   : > { %v12269_v2 = vmax.f32 %v4903_v55, %v4904_v56  ;;  %v12271_v3 = vmax.f32 %v4910_v24, %v4911_v26  ;;  %v4918_v25 = vrot.slane %v4917_v31, 1  ;;  %v4925_v27 = vrot.slane %v4924_v36, 1 }
 0x450   : > { %13919 = vst [vmem:[#allocation434_spill] sm:$0xff] %v12265_v41  ;;  %13920 = vst [vmem:[#allocation435_spill] sm:$0xff] %v12267_v57  ;;  %v4932_v23 = vrot.slane %v4931_v37, 1  ;;  %v4939_v53 = vrot.slane %v4938_v38, 1  ;;  %v4941_v51 = vsel %vm1692_vm0, %v1644_v22, -inf  ;;  %v4948_v52 = vsel %vm1692_vm0, %v1645_v39, -inf }
 0x451   : > { %13921 = vst [vmem:[#allocation436_spill] sm:$0xff] %v12269_v2  ;;  %13922 = vst [vmem:[#allocation437_spill] sm:$0xff] %v12271_v3  ;;  %v4955_v7 = vsel %vm1692_vm0, %v1646_v28, -inf  ;;  %v4962_v54 = vsel %vm1692_vm0, %v1647_v29, -inf  ;;  %v12279_v48 = vmax.f32 %v4917_v31, %v4918_v25  ;;  %v12281_v12 = vmax.f32 %v4924_v36, %v4925_v27  ;;  %v1659_v57 = vld [vmem:[%s10417_s29 + $0xef8] sm:$0x3f] }
 0x452   : > { %v12283_v40 = vmax.f32 %v4931_v37, %v4932_v23  ;;  %v12285_v46 = vmax.f32 %v4938_v38, %v4939_v53  ;;  %v4942_v55 = vrot.slane %v4941_v51, 4  ;;  %v4949_v24 = vrot.slane %v4948_v52, 4 }
 0x453   : > { %13923 = vst [vmem:[#allocation438_spill] sm:$0xff] %v12279_v48  ;;  %13924 = vst [vmem:[#allocation439_spill] sm:$0xff] %v12281_v12  ;;  %v4956_v5 = vrot.slane %v4955_v7, 4  ;;  %v4963_v6 = vrot.slane %v4962_v54, 4  ;;  %v4969_v30 = vsel %vm1692_vm0, %v1648_v47, -inf  ;;  %v4976_v13 = vsel %vm1692_vm0, %v1649_v4, -inf }
 0x454   : > { %13925 = vst [vmem:[#allocation440_spill] sm:$0xff] %v12283_v40  ;;  %13926 = vst [vmem:[#allocation441_spill] sm:$0xff] %v12285_v46  ;;  %v4983_v22 = vsel %vm1692_vm0, %v1650_v49, -inf  ;;  %v4990_v56 = vsel %vm1692_vm0, %v1651_v50, -inf  ;;  %v4943_v25 = vmax.f32 %v4941_v51, %v4942_v55  ;;  %v4950_v26 = vmax.f32 %v4948_v52, %v4949_v24 }
 0x455   : > { %v4957_v27 = vmax.f32 %v4955_v7, %v4956_v5  ;;  %v4964_v39 = vmax.f32 %v4962_v54, %v4963_v6  ;;  %v4970_v23 = vrot.slane %v4969_v30, 4  ;;  %v4977_v28 = vrot.slane %v4976_v13, 4  ;;  %v1652_v6 = vld [vmem:[%s10417_s29 + $0xec0] sm:$0x3f] }
 0x456   : > { %v4984_v53 = vrot.slane %v4983_v22, 4  ;;  %v4991_v29 = vrot.slane %v4990_v56, 4  ;;  %v4944_v31 = vrot.slane %v4943_v25, 2  ;;  %v4951_v36 = vrot.slane %v4950_v26, 2 }
 0x457   : > { %v4958_v37 = vrot.slane %v4957_v27, 2  ;;  %v4965_v38 = vrot.slane %v4964_v39, 2  ;;  %v4971_v47 = vmax.f32 %v4969_v30, %v4970_v23  ;;  %v4978_v40 = vmax.f32 %v4976_v13, %v4977_v28  ;;  %v1654_v23 = vld [vmem:[%s10417_s29 + $0xed0] sm:$0x3f]  ;;  %v1656_v28 = vld [vmem:[%s10417_s29 + $0xee0] sm:$0x3f] }
 0x458   : > { %v4985_v4 = vmax.f32 %v4983_v22, %v4984_v53  ;;  %v4992_v49 = vmax.f32 %v4990_v56, %v4991_v29  ;;  %v4945_v50 = vmax.f32 %v4943_v25, %v4944_v31  ;;  %v4952_v51 = vmax.f32 %v4950_v26, %v4951_v36  ;;  %v1653_v22 = vld [vmem:[%s10417_s29 + $0xec8] sm:$0x3f]  ;;  %v1655_v56 = vld [vmem:[%s10417_s29 + $0xed8] sm:$0x3f] }
 0x459   : > { %v4959_v52 = vmax.f32 %v4957_v27, %v4958_v37  ;;  %v4966_v7 = vmax.f32 %v4964_v39, %v4965_v38  ;;  %v4972_v54 = vrot.slane %v4971_v47, 2  ;;  %v4979_v55 = vrot.slane %v4978_v40, 2  ;;  %v1657_v53 = vld [vmem:[%s10417_s29 + $0xee8] sm:$0x3f]  ;;  %v1658_v38 = vld [vmem:[%s10417_s29 + $0xef0] sm:$0x3f] }
 0x45a   : > { %v4986_v24 = vrot.slane %v4985_v4, 2  ;;  %v4993_v5 = vrot.slane %v4992_v49, 2  ;;  %v4946_v46 = vrot.slane %v4945_v50, 1  ;;  %v4953_v48 = vrot.slane %v4952_v51, 1 }
 0x45b   : > { %v4960_v30 = vrot.slane %v4959_v52, 1  ;;  %v4967_v13 = vrot.slane %v4966_v7, 1  ;;  %v4973_v25 = vmax.f32 %v4971_v47, %v4972_v54  ;;  %v4980_v26 = vmax.f32 %v4978_v40, %v4979_v55 }
 0x45c   : > { %v4987_v27 = vmax.f32 %v4985_v4, %v4986_v24  ;;  %v4994_v39 = vmax.f32 %v4992_v49, %v4993_v5  ;;  %v12297_v29 = vmax.f32 %v4945_v50, %v4946_v46  ;;  %v12299_v31 = vmax.f32 %v4952_v51, %v4953_v48 }
 0x45d   : > { %v12301_v36 = vmax.f32 %v4959_v52, %v4960_v30  ;;  %v12303_v37 = vmax.f32 %v4966_v7, %v4967_v13  ;;  %v4974_v12 = vrot.slane %v4973_v25, 1  ;;  %v4981_v2 = vrot.slane %v4980_v26, 1 }
 0x45e   : > { %13927 = vst [vmem:[#allocation442_spill] sm:$0xff] %v12297_v29  ;;  %13928 = vst [vmem:[#allocation443_spill] sm:$0xff] %v12299_v31  ;;  %v4988_v3 = vrot.slane %v4987_v27, 1  ;;  %v4995_v41 = vrot.slane %v4994_v39, 1  ;;  %v4997_v40 = vsel %vm1692_vm0, %v1652_v6, -inf  ;;  %v5004_v47 = vsel %vm1692_vm0, %v1653_v22, -inf }
 0x45f   : > { %13929 = vst [vmem:[#allocation444_spill] sm:$0xff] %v12301_v36  ;;  %13930 = vst [vmem:[#allocation445_spill] sm:$0xff] %v12303_v37  ;;  %v5011_v4 = vsel %vm1692_vm0, %v1654_v23, -inf  ;;  %v5018_v46 = vsel %vm1692_vm0, %v1655_v56, -inf  ;;  %v12311_v48 = vmax.f32 %v4973_v25, %v4974_v12  ;;  %v12313_v49 = vmax.f32 %v4980_v26, %v4981_v2  ;;  %v1667_v31 = vld [vmem:[%s10417_s29 + $0xf38] sm:$0x3f] }
 0x460   : > { %v12315_v50 = vmax.f32 %v4987_v27, %v4988_v3  ;;  %v12317_v51 = vmax.f32 %v4994_v39, %v4995_v41  ;;  %v4998_v52 = vrot.slane %v4997_v40, 4  ;;  %v5005_v7 = vrot.slane %v5004_v47, 4 }
 0x461   : > { %13931 = vst [vmem:[#allocation446_spill] sm:$0xff] %v12311_v48  ;;  %13932 = vst [vmem:[#allocation447_spill] sm:$0xff] %v12313_v49  ;;  %v5012_v54 = vrot.slane %v5011_v4, 4  ;;  %v5019_v55 = vrot.slane %v5018_v46, 4  ;;  %v5025_v24 = vsel %vm1692_vm0, %v1656_v28, -inf  ;;  %v5032_v5 = vsel %vm1692_vm0, %v1657_v53, -inf }
 0x462   : > { %13933 = vst [vmem:[#allocation448_spill] sm:$0xff] %v12315_v50  ;;  %13934 = vst [vmem:[#allocation449_spill] sm:$0xff] %v12317_v51  ;;  %v5039_v6 = vsel %vm1692_vm0, %v1658_v38, -inf  ;;  %v5046_v30 = vsel %vm1692_vm0, %v1659_v57, -inf  ;;  %v4999_v12 = vmax.f32 %v4997_v40, %v4998_v52  ;;  %v5006_v13 = vmax.f32 %v5004_v47, %v5005_v7 }
 0x463   : > { %v5013_v2 = vmax.f32 %v5011_v4, %v5012_v54  ;;  %v5020_v22 = vmax.f32 %v5018_v46, %v5019_v55  ;;  %v5026_v3 = vrot.slane %v5025_v24, 4  ;;  %v5033_v23 = vrot.slane %v5032_v5, 4  ;;  %v1660_v55 = vld [vmem:[%s10417_s29 + $0xf00] sm:$0x3f] }
 0x464   : > { %v5040_v41 = vrot.slane %v5039_v6, 4  ;;  %v5047_v56 = vrot.slane %v5046_v30, 4  ;;  %v5000_v25 = vrot.slane %v4999_v12, 2  ;;  %v5007_v26 = vrot.slane %v5006_v13, 2 }
 0x465   : > { %v5014_v27 = vrot.slane %v5013_v2, 2  ;;  %v5021_v39 = vrot.slane %v5020_v22, 2  ;;  %v5027_v28 = vmax.f32 %v5025_v24, %v5026_v3  ;;  %v5034_v50 = vmax.f32 %v5032_v5, %v5033_v23  ;;  %v1662_v3 = vld [vmem:[%s10417_s29 + $0xf10] sm:$0x3f]  ;;  %v1664_v23 = vld [vmem:[%s10417_s29 + $0xf20] sm:$0x3f] }
 0x466   : > { %v5041_v53 = vmax.f32 %v5039_v6, %v5040_v41  ;;  %v5048_v38 = vmax.f32 %v5046_v30, %v5047_v56  ;;  %v5001_v57 = vmax.f32 %v4999_v12, %v5000_v25  ;;  %v5008_v40 = vmax.f32 %v5006_v13, %v5007_v26  ;;  %v1661_v6 = vld [vmem:[%s10417_s29 + $0xf08] sm:$0x3f]  ;;  %v1663_v30 = vld [vmem:[%s10417_s29 + $0xf18] sm:$0x3f] }
 0x467   : > { %v5015_v47 = vmax.f32 %v5013_v2, %v5014_v27  ;;  %v5022_v4 = vmax.f32 %v5020_v22, %v5021_v39  ;;  %v5028_v46 = vrot.slane %v5027_v28, 2  ;;  %v5035_v52 = vrot.slane %v5034_v50, 2  ;;  %v1665_v41 = vld [vmem:[%s10417_s29 + $0xf28] sm:$0x3f]  ;;  %v1666_v39 = vld [vmem:[%s10417_s29 + $0xf30] sm:$0x3f] }
 0x468   : > { %v5042_v7 = vrot.slane %v5041_v53, 2  ;;  %v5049_v54 = vrot.slane %v5048_v38, 2  ;;  %v5002_v51 = vrot.slane %v5001_v57, 1  ;;  %v5009_v48 = vrot.slane %v5008_v40, 1 }
 0x469   : > { %v5016_v24 = vrot.slane %v5015_v47, 1  ;;  %v5023_v5 = vrot.slane %v5022_v4, 1  ;;  %v5029_v12 = vmax.f32 %v5027_v28, %v5028_v46  ;;  %v5036_v13 = vmax.f32 %v5034_v50, %v5035_v52 }
 0x46a   : > { %v5043_v2 = vmax.f32 %v5041_v53, %v5042_v7  ;;  %v5050_v22 = vmax.f32 %v5048_v38, %v5049_v54  ;;  %v12329_v56 = vmax.f32 %v5001_v57, %v5002_v51  ;;  %v12331_v25 = vmax.f32 %v5008_v40, %v5009_v48 }
 0x46b   : > { %v12333_v26 = vmax.f32 %v5015_v47, %v5016_v24  ;;  %v12335_v27 = vmax.f32 %v5022_v4, %v5023_v5  ;;  %v5030_v49 = vrot.slane %v5029_v12, 1  ;;  %v5037_v36 = vrot.slane %v5036_v13, 1 }
 0x46c   : > { %13935 = vst [vmem:[#allocation450_spill] sm:$0xff] %v12329_v56  ;;  %13936 = vst [vmem:[#allocation451_spill] sm:$0xff] %v12331_v25  ;;  %v5044_v37 = vrot.slane %v5043_v2, 1  ;;  %v5051_v29 = vrot.slane %v5050_v22, 1  ;;  %v5053_v50 = vsel %vm1692_vm0, %v1660_v55, -inf  ;;  %v5060_v28 = vsel %vm1692_vm0, %v1661_v6, -inf }
 0x46d   : > { %13937 = vst [vmem:[#allocation452_spill] sm:$0xff] %v12333_v26  ;;  %13938 = vst [vmem:[#allocation453_spill] sm:$0xff] %v12335_v27  ;;  %v5067_v53 = vsel %vm1692_vm0, %v1662_v3, -inf  ;;  %v5074_v51 = vsel %vm1692_vm0, %v1663_v30, -inf  ;;  %v12343_v48 = vmax.f32 %v5029_v12, %v5030_v49  ;;  %v12345_v38 = vmax.f32 %v5036_v13, %v5037_v36  ;;  %v1675_v25 = vld [vmem:[%s10417_s29 + $0xf78] sm:$0x3f] }
 0x46e   : > { %v12347_v57 = vmax.f32 %v5043_v2, %v5044_v37  ;;  %v12349_v40 = vmax.f32 %v5050_v22, %v5051_v29  ;;  %v5054_v47 = vrot.slane %v5053_v50, 4  ;;  %v5061_v4 = vrot.slane %v5060_v28, 4 }
 0x46f   : > { %13939 = vst [vmem:[#allocation454_spill] sm:$0xff] %v12343_v48  ;;  %13940 = vst [vmem:[#allocation455_spill] sm:$0xff] %v12345_v38  ;;  %v5068_v46 = vrot.slane %v5067_v53, 4  ;;  %v5075_v52 = vrot.slane %v5074_v51, 4  ;;  %v5081_v7 = vsel %vm1692_vm0, %v1664_v23, -inf  ;;  %v5088_v54 = vsel %vm1692_vm0, %v1665_v41, -inf }
 0x470   : > { %13941 = vst [vmem:[#allocation456_spill] sm:$0xff] %v12347_v57  ;;  %13942 = vst [vmem:[#allocation457_spill] sm:$0xff] %v12349_v40  ;;  %v5095_v55 = vsel %vm1692_vm0, %v1666_v39, -inf  ;;  %v5102_v24 = vsel %vm1692_vm0, %v1667_v31, -inf  ;;  %v5055_v49 = vmax.f32 %v5053_v50, %v5054_v47  ;;  %v5062_v5 = vmax.f32 %v5060_v28, %v5061_v4 }
 0x471   : > { %v5069_v36 = vmax.f32 %v5067_v53, %v5068_v46  ;;  %v5076_v6 = vmax.f32 %v5074_v51, %v5075_v52  ;;  %v5082_v37 = vrot.slane %v5081_v7, 4  ;;  %v5089_v3 = vrot.slane %v5088_v54, 4  ;;  %v1668_v52 = vld [vmem:[%s10417_s29 + $0xf40] sm:$0x3f] }
 0x472   : > { %v5096_v29 = vrot.slane %v5095_v55, 4  ;;  %v5103_v30 = vrot.slane %v5102_v24, 4  ;;  %v5056_v12 = vrot.slane %v5055_v49, 2  ;;  %v5063_v13 = vrot.slane %v5062_v5, 2 }
 0x473   : > { %v5070_v2 = vrot.slane %v5069_v36, 2  ;;  %v5077_v22 = vrot.slane %v5076_v6, 2  ;;  %v5083_v23 = vmax.f32 %v5081_v7, %v5082_v37  ;;  %v5090_v57 = vmax.f32 %v5088_v54, %v5089_v3  ;;  %v1670_v37 = vld [vmem:[%s10417_s29 + $0xf50] sm:$0x3f]  ;;  %v1672_v3 = vld [vmem:[%s10417_s29 + $0xf60] sm:$0x3f] }
 0x474   : > { %v5097_v41 = vmax.f32 %v5095_v55, %v5096_v29  ;;  %v5104_v39 = vmax.f32 %v5102_v24, %v5103_v30  ;;  %v5057_v31 = vmax.f32 %v5055_v49, %v5056_v12  ;;  %v5064_v50 = vmax.f32 %v5062_v5, %v5063_v13  ;;  %v1669_v55 = vld [vmem:[%s10417_s29 + $0xf48] sm:$0x3f]  ;;  %v1671_v24 = vld [vmem:[%s10417_s29 + $0xf58] sm:$0x3f] }
 0x475   : > { %v5071_v28 = vmax.f32 %v5069_v36, %v5070_v2  ;;  %v5078_v53 = vmax.f32 %v5076_v6, %v5077_v22  ;;  %v5084_v51 = vrot.slane %v5083_v23, 2  ;;  %v5091_v47 = vrot.slane %v5090_v57, 2  ;;  %v1673_v29 = vld [vmem:[%s10417_s29 + $0xf68] sm:$0x3f]  ;;  %v1674_v22 = vld [vmem:[%s10417_s29 + $0xf70] sm:$0x3f] }
 0x476   : > { %v5098_v4 = vrot.slane %v5097_v41, 2  ;;  %v5105_v46 = vrot.slane %v5104_v39, 2  ;;  %v5058_v40 = vrot.slane %v5057_v31, 1  ;;  %v5065_v48 = vrot.slane %v5064_v50, 1 }
 0x477   : > { %v5072_v7 = vrot.slane %v5071_v28, 1  ;;  %v5079_v54 = vrot.slane %v5078_v53, 1  ;;  %v5085_v49 = vmax.f32 %v5083_v23, %v5084_v51  ;;  %v5092_v5 = vmax.f32 %v5090_v57, %v5091_v47 }
 0x478   : > { %v5099_v36 = vmax.f32 %v5097_v41, %v5098_v4  ;;  %v5106_v6 = vmax.f32 %v5104_v39, %v5105_v46  ;;  %v12361_v30 = vmax.f32 %v5057_v31, %v5058_v40  ;;  %v12363_v12 = vmax.f32 %v5064_v50, %v5065_v48 }
 0x479   : > { %v12365_v13 = vmax.f32 %v5071_v28, %v5072_v7  ;;  %v12367_v2 = vmax.f32 %v5078_v53, %v5079_v54  ;;  %v5086_v38 = vrot.slane %v5085_v49, 1  ;;  %v5093_v26 = vrot.slane %v5092_v5, 1 }
 0x47a   : > { %13943 = vst [vmem:[#allocation458_spill] sm:$0xff] %v12361_v30  ;;  %13944 = vst [vmem:[#allocation459_spill] sm:$0xff] %v12363_v12  ;;  %v5100_v27 = vrot.slane %v5099_v36, 1  ;;  %v5107_v56 = vrot.slane %v5106_v6, 1  ;;  %v5109_v57 = vsel %vm1692_vm0, %v1668_v52, -inf  ;;  %v5116_v23 = vsel %vm1692_vm0, %v1669_v55, -inf }
 0x47b   : > { %13945 = vst [vmem:[#allocation460_spill] sm:$0xff] %v12365_v13  ;;  %13946 = vst [vmem:[#allocation461_spill] sm:$0xff] %v12367_v2  ;;  %v5123_v41 = vsel %vm1692_vm0, %v1670_v37, -inf  ;;  %v5130_v40 = vsel %vm1692_vm0, %v1671_v24, -inf  ;;  %v12375_v48 = vmax.f32 %v5085_v49, %v5086_v38  ;;  %v12377_v39 = vmax.f32 %v5092_v5, %v5093_v26  ;;  %v1683_v12 = vld [vmem:[%s10417_s29 + $0xfb8] sm:$0x3f] }
 0x47c   : > { %v12379_v31 = vmax.f32 %v5099_v36, %v5100_v27  ;;  %v12381_v50 = vmax.f32 %v5106_v6, %v5107_v56  ;;  %v5110_v28 = vrot.slane %v5109_v57, 4  ;;  %v5117_v53 = vrot.slane %v5116_v23, 4 }
 0x47d   : > { %13947 = vst [vmem:[#allocation462_spill] sm:$0xff] %v12375_v48  ;;  %13948 = vst [vmem:[#allocation463_spill] sm:$0xff] %v12377_v39  ;;  %v5124_v51 = vrot.slane %v5123_v41, 4  ;;  %v5131_v47 = vrot.slane %v5130_v40, 4  ;;  %v5137_v4 = vsel %vm1692_vm0, %v1672_v3, -inf  ;;  %v5144_v46 = vsel %vm1692_vm0, %v1673_v29, -inf }
 0x47e   : > { %13949 = vst [vmem:[#allocation464_spill] sm:$0xff] %v12379_v31  ;;  %13950 = vst [vmem:[#allocation465_spill] sm:$0xff] %v12381_v50  ;;  %v5151_v52 = vsel %vm1692_vm0, %v1674_v22, -inf  ;;  %v5158_v7 = vsel %vm1692_vm0, %v1675_v25, -inf  ;;  %v5111_v38 = vmax.f32 %v5109_v57, %v5110_v28  ;;  %v5118_v54 = vmax.f32 %v5116_v23, %v5117_v53 }
 0x47f   : > { %v5125_v26 = vmax.f32 %v5123_v41, %v5124_v51  ;;  %v5132_v55 = vmax.f32 %v5130_v40, %v5131_v47  ;;  %v5138_v27 = vrot.slane %v5137_v4, 4  ;;  %v5145_v37 = vrot.slane %v5144_v46, 4  ;;  %v1676_v47 = vld [vmem:[%s10417_s29 + $0xf80] sm:$0x3f] }
 0x480   : > { %v5152_v56 = vrot.slane %v5151_v52, 4  ;;  %v5159_v24 = vrot.slane %v5158_v7, 4  ;;  %v5112_v49 = vrot.slane %v5111_v38, 2  ;;  %v5119_v5 = vrot.slane %v5118_v54, 2 }
 0x481   : > { %v5126_v36 = vrot.slane %v5125_v26, 2  ;;  %v5133_v6 = vrot.slane %v5132_v55, 2  ;;  %v5139_v3 = vmax.f32 %v5137_v4, %v5138_v27  ;;  %v5146_v31 = vmax.f32 %v5144_v46, %v5145_v37  ;;  %v1678_v27 = vld [vmem:[%s10417_s29 + $0xf90] sm:$0x3f]  ;;  %v1680_v37 = vld [vmem:[%s10417_s29 + $0xfa0] sm:$0x3f] }
 0x482   : > { %v5153_v29 = vmax.f32 %v5151_v52, %v5152_v56  ;;  %v5160_v22 = vmax.f32 %v5158_v7, %v5159_v24  ;;  %v5113_v25 = vmax.f32 %v5111_v38, %v5112_v49  ;;  %v5120_v57 = vmax.f32 %v5118_v54, %v5119_v5  ;;  %v1677_v52 = vld [vmem:[%s10417_s29 + $0xf88] sm:$0x3f]  ;;  %v1679_v7 = vld [vmem:[%s10417_s29 + $0xf98] sm:$0x3f] }
 0x483   : > { %v5127_v23 = vmax.f32 %v5125_v26, %v5126_v36  ;;  %v5134_v41 = vmax.f32 %v5132_v55, %v5133_v6  ;;  %v5140_v40 = vrot.slane %v5139_v3, 2  ;;  %v5147_v28 = vrot.slane %v5146_v31, 2  ;;  %v1681_v56 = vld [vmem:[%s10417_s29 + $0xfa8] sm:$0x3f]  ;;  %v1682_v6 = vld [vmem:[%s10417_s29 + $0xfb0] sm:$0x3f] }
 0x484   : > { %v5154_v53 = vrot.slane %v5153_v29, 2  ;;  %v5161_v51 = vrot.slane %v5160_v22, 2  ;;  %v5114_v50 = vrot.slane %v5113_v25, 1  ;;  %v5121_v48 = vrot.slane %v5120_v57, 1 }
 0x485   : > { %v5128_v4 = vrot.slane %v5127_v23, 1  ;;  %v5135_v46 = vrot.slane %v5134_v41, 1  ;;  %v5141_v38 = vmax.f32 %v5139_v3, %v5140_v40  ;;  %v5148_v54 = vmax.f32 %v5146_v31, %v5147_v28 }
 0x486   : > { %v5155_v26 = vmax.f32 %v5153_v29, %v5154_v53  ;;  %v5162_v55 = vmax.f32 %v5160_v22, %v5161_v51  ;;  %v12393_v24 = vmax.f32 %v5113_v25, %v5114_v50  ;;  %v12395_v49 = vmax.f32 %v5120_v57, %v5121_v48 }
 0x487   : > { %v12397_v5 = vmax.f32 %v5127_v23, %v5128_v4  ;;  %v12399_v36 = vmax.f32 %v5134_v41, %v5135_v46  ;;  %v5142_v39 = vrot.slane %v5141_v38, 1  ;;  %v5149_v13 = vrot.slane %v5148_v54, 1 }
 0x488   : > { %13951 = vst [vmem:[#allocation466_spill] sm:$0xff] %v12393_v24  ;;  %13952 = vst [vmem:[#allocation467_spill] sm:$0xff] %v12395_v49  ;;  %v5156_v2 = vrot.slane %v5155_v26, 1  ;;  %v5163_v30 = vrot.slane %v5162_v55, 1  ;;  %v5165_v31 = vsel %vm1692_vm0, %v1676_v47, -inf  ;;  %v5172_v3 = vsel %vm1692_vm0, %v1677_v52, -inf }
 0x489   : > { %13953 = vst [vmem:[#allocation468_spill] sm:$0xff] %v12397_v5  ;;  %13954 = vst [vmem:[#allocation469_spill] sm:$0xff] %v12399_v36  ;;  %v5179_v29 = vsel %vm1692_vm0, %v1678_v27, -inf  ;;  %v5186_v50 = vsel %vm1692_vm0, %v1679_v7, -inf  ;;  %v12407_v48 = vmax.f32 %v5141_v38, %v5142_v39  ;;  %v12409_v22 = vmax.f32 %v5148_v54, %v5149_v13  ;;  %v1691_v49 = vld [vmem:[%s10417_s29 + $0xff8] sm:$0x3f] }
 0x48a   : > { %v12411_v25 = vmax.f32 %v5155_v26, %v5156_v2  ;;  %v12413_v57 = vmax.f32 %v5162_v55, %v5163_v30  ;;  %v5166_v23 = vrot.slane %v5165_v31, 4  ;;  %v5173_v41 = vrot.slane %v5172_v3, 4 }
 0x48b   : > { %13955 = vst [vmem:[#allocation470_spill] sm:$0xff] %v12407_v48  ;;  %13956 = vst [vmem:[#allocation471_spill] sm:$0xff] %v12409_v22  ;;  %v5180_v40 = vrot.slane %v5179_v29, 4  ;;  %v5187_v28 = vrot.slane %v5186_v50, 4  ;;  %v5193_v53 = vsel %vm1692_vm0, %v1680_v37, -inf  ;;  %v5200_v51 = vsel %vm1692_vm0, %v1681_v56, -inf }
 0x48c   : > { %13957 = vst [vmem:[#allocation472_spill] sm:$0xff] %v12411_v25  ;;  %13958 = vst [vmem:[#allocation473_spill] sm:$0xff] %v12413_v57  ;;  %v5207_v47 = vsel %vm1692_vm0, %v1682_v6, -inf  ;;  %v5214_v4 = vsel %vm1692_vm0, %v1683_v12, -inf  ;;  %v5167_v39 = vmax.f32 %v5165_v31, %v5166_v23  ;;  %v5174_v46 = vmax.f32 %v5172_v3, %v5173_v41 }
 0x48d   : > { %v5181_v13 = vmax.f32 %v5179_v29, %v5180_v40  ;;  %v5188_v52 = vmax.f32 %v5186_v50, %v5187_v28  ;;  %v5194_v2 = vrot.slane %v5193_v53, 4  ;;  %v5201_v27 = vrot.slane %v5200_v51, 4  ;;  %v1684_v28 = vld [vmem:[%s10417_s29 + $0xfc0] sm:$0x3f] }
 0x48e   : > { %v5208_v30 = vrot.slane %v5207_v47, 4  ;;  %v5215_v7 = vrot.slane %v5214_v4, 4  ;;  %v5168_v38 = vrot.slane %v5167_v39, 2  ;;  %v5175_v54 = vrot.slane %v5174_v46, 2 }
 0x48f   : > { %v5182_v26 = vrot.slane %v5181_v13, 2  ;;  %v5189_v55 = vrot.slane %v5188_v52, 2  ;;  %v5195_v37 = vmax.f32 %v5193_v53, %v5194_v2  ;;  %v5202_v25 = vmax.f32 %v5200_v51, %v5201_v27  ;;  %v1686_v2 = vld [vmem:[%s10417_s29 + $0xfd0] sm:$0x3f]  ;;  %v1688_v27 = vld [vmem:[%s10417_s29 + $0xfe0] sm:$0x3f] }
 0x490   : > { %v5209_v56 = vmax.f32 %v5207_v47, %v5208_v30  ;;  %v5216_v6 = vmax.f32 %v5214_v4, %v5215_v7  ;;  %v5169_v12 = vmax.f32 %v5167_v39, %v5168_v38  ;;  %v5176_v31 = vmax.f32 %v5174_v46, %v5175_v54  ;;  %v1685_v47 = vld [vmem:[%s10417_s29 + $0xfc8] sm:$0x3f]  ;;  %v1687_v4 = vld [vmem:[%s10417_s29 + $0xfd8] sm:$0x3f] }
 0x491   : > { %v5183_v3 = vmax.f32 %v5181_v13, %v5182_v26  ;;  %v5190_v29 = vmax.f32 %v5188_v52, %v5189_v55  ;;  %v5196_v50 = vrot.slane %v5195_v37, 2  ;;  %v5203_v23 = vrot.slane %v5202_v25, 2  ;;  %v1689_v30 = vld [vmem:[%s10417_s29 + $0xfe8] sm:$0x3f]  ;;  %v1690_v55 = vld [vmem:[%s10417_s29 + $0xff0] sm:$0x3f] }
 0x492   : > { %v5210_v41 = vrot.slane %v5209_v56, 2  ;;  %v5217_v40 = vrot.slane %v5216_v6, 2  ;;  %v5170_v57 = vrot.slane %v5169_v12, 1  ;;  %v5177_v48 = vrot.slane %v5176_v31, 1 }
 0x493   : > { %v5184_v53 = vrot.slane %v5183_v3, 1  ;;  %v5191_v51 = vrot.slane %v5190_v29, 1  ;;  %v5197_v39 = vmax.f32 %v5195_v37, %v5196_v50  ;;  %v5204_v46 = vmax.f32 %v5202_v25, %v5203_v23 }
 0x494   : > { %v5211_v13 = vmax.f32 %v5209_v56, %v5210_v41  ;;  %v5218_v52 = vmax.f32 %v5216_v6, %v5217_v40  ;;  %v12425_v7 = vmax.f32 %v5169_v12, %v5170_v57  ;;  %v12427_v38 = vmax.f32 %v5176_v31, %v5177_v48 }
 0x495   : > { %v12429_v54 = vmax.f32 %v5183_v3, %v5184_v53  ;;  %v12431_v26 = vmax.f32 %v5190_v29, %v5191_v51  ;;  %v5198_v22 = vrot.slane %v5197_v39, 1  ;;  %v5205_v5 = vrot.slane %v5204_v46, 1 }
 0x496   : > { %13959 = vst [vmem:[#allocation474_spill] sm:$0xff] %v12425_v7  ;;  %13960 = vst [vmem:[#allocation475_spill] sm:$0xff] %v12427_v38  ;;  %v5212_v36 = vrot.slane %v5211_v13, 1  ;;  %v5219_v24 = vrot.slane %v5218_v52, 1  ;;  %v5221_v25 = vsel %vm1692_vm0, %v1684_v28, -inf  ;;  %v5228_v37 = vsel %vm1692_vm0, %v1685_v47, -inf }
 0x497   : > { %13961 = vst [vmem:[#allocation476_spill] sm:$0xff] %v12429_v54  ;;  %13962 = vst [vmem:[#allocation477_spill] sm:$0xff] %v12431_v26  ;;  %v5235_v56 = vsel %vm1692_vm0, %v1686_v2, -inf  ;;  %v5242_v57 = vsel %vm1692_vm0, %v1687_v4, -inf  ;;  %v12439_v48 = vmax.f32 %v5197_v39, %v5198_v22  ;;  %v12441_v6 = vmax.f32 %v5204_v46, %v5205_v5 }
 0x498   : > { %v12443_v12 = vmax.f32 %v5211_v13, %v5212_v36  ;;  %v12445_v31 = vmax.f32 %v5218_v52, %v5219_v24  ;;  %v5222_v3 = vrot.slane %v5221_v25, 4  ;;  %v5229_v29 = vrot.slane %v5228_v37, 4 }
 0x499   : > { %13963 = vst [vmem:[#allocation478_spill] sm:$0xff] %v12439_v48  ;;  %13964 = vst [vmem:[#allocation479_spill] sm:$0xff] %v12441_v6  ;;  %v5236_v50 = vrot.slane %v5235_v56, 4  ;;  %v5243_v23 = vrot.slane %v5242_v57, 4  ;;  %v5249_v41 = vsel %vm1692_vm0, %v1688_v27, -inf  ;;  %v5256_v40 = vsel %vm1692_vm0, %v1689_v30, -inf }
 0x49a   : > { %13965 = vst [vmem:[#allocation480_spill] sm:$0xff] %v12443_v12  ;;  %13966 = vst [vmem:[#allocation481_spill] sm:$0xff] %v12445_v31  ;;  %v5263_v28 = vsel %vm1692_vm0, %v1690_v55, -inf  ;;  %v5270_v53 = vsel %vm1692_vm0, %v1691_v49, -inf  ;;  %v5223_v22 = vmax.f32 %v5221_v25, %v5222_v3  ;;  %v5230_v51 = vmax.f32 %v5228_v37, %v5229_v29 }
 0x49b   : > { %v5237_v5 = vmax.f32 %v5235_v56, %v5236_v50  ;;  %v5244_v47 = vmax.f32 %v5242_v57, %v5243_v23  ;;  %v5250_v36 = vrot.slane %v5249_v41, 4  ;;  %v5257_v2 = vrot.slane %v5256_v40, 4 }
 0x49c   : > { %v5264_v24 = vrot.slane %v5263_v28, 4  ;;  %v5271_v4 = vrot.slane %v5270_v53, 4  ;;  %v5224_v39 = vrot.slane %v5223_v22, 2  ;;  %v5231_v46 = vrot.slane %v5230_v51, 2 }
 0x49d   : > { %v5238_v13 = vrot.slane %v5237_v5, 2  ;;  %v5245_v52 = vrot.slane %v5244_v47, 2  ;;  %v5251_v12 = vmax.f32 %v5249_v41, %v5250_v36  ;;  %v5258_v27 = vmax.f32 %v5256_v40, %v5257_v2 }
 0x49e   : > { %v5265_v31 = vmax.f32 %v5263_v28, %v5264_v24  ;;  %v5272_v30 = vmax.f32 %v5270_v53, %v5271_v4  ;;  %v5225_v48 = vmax.f32 %v5223_v22, %v5224_v39  ;;  %v5232_v55 = vmax.f32 %v5230_v51, %v5231_v46 }
 0x49f   : > { %v5239_v6 = vmax.f32 %v5237_v5, %v5238_v13  ;;  %v5246_v49 = vmax.f32 %v5244_v47, %v5245_v52  ;;  %v5252_v25 = vrot.slane %v5251_v12, 2  ;;  %v5259_v37 = vrot.slane %v5258_v27, 2  ;;  %v13980_v52 = vld [vmem:[#allocation18_spill] sm:$0xff] }
 0x4a0   : > { %v5266_v56 = vrot.slane %v5265_v31, 2  ;;  %v5273_v57 = vrot.slane %v5272_v30, 2  ;;  %v5226_v3 = vrot.slane %v5225_v48, 1  ;;  %v5233_v29 = vrot.slane %v5232_v55, 1 }
 0x4a1   : > { %v5240_v50 = vrot.slane %v5239_v6, 1  ;;  %v5247_v23 = vrot.slane %v5246_v49, 1  ;;  %v5253_v54 = vmax.f32 %v5251_v12, %v5252_v25  ;;  %v5260_v26 = vmax.f32 %v5258_v27, %v5259_v37  ;;  %v13983_v25 = vld [vmem:[#allocation23_spill] sm:$0xff]  ;;  %v13984_v37 = vld [vmem:[#allocation22_spill] sm:$0xff] }
 0x4a2   : > { %v5267_v7 = vmax.f32 %v5265_v31, %v5266_v56  ;;  %v5274_v38 = vmax.f32 %v5272_v30, %v5273_v57  ;;  %v12451_v41 = vmax.f32 %v5225_v48, %v5226_v3  ;;  %v12453_v40 = vmax.f32 %v5232_v55, %v5233_v29  ;;  %v13981_v30 = vld [vmem:[#allocation21_spill] sm:$0xff]  ;;  %v13982_v55 = vld [vmem:[#allocation20_spill] sm:$0xff] }
 0x4a3   : > { %v12455_v28 = vmax.f32 %v5239_v6, %v5240_v50  ;;  %v12457_v53 = vmax.f32 %v5246_v49, %v5247_v23  ;;  %v5254_v22 = vrot.slane %v5253_v54, 1  ;;  %v5261_v51 = vrot.slane %v5260_v26, 1  ;;  %v13985_v57 = vld [vmem:[#allocation25_spill] sm:$0xff]  ;;  %v13986_v3 = vld [vmem:[#allocation24_spill] sm:$0xff]  ;;  %v13987_v50 = vld [vmem:[#allocation27_spill] sm:$0xff] }
 0x4a4   : > { %v5268_v5 = vrot.slane %v5267_v7, 1  ;;  %v5275_v47 = vrot.slane %v5274_v38, 1  ;;  %v5789_v36 = vcombine.low %v10441_v58, %v10443_v59  ;;  %v5790_v12 = vcombine.low %v10445_v60, %v10447_v61  ;;  %v13988_v23 = vld [vmem:[#allocation26_spill] sm:$0xff] }
 0x4a5   : > { %v5791_v48 = vcombine.low %v10455_v8, %v10457_v9  ;;  %v5792_v31 = vcombine.low %v10459_v10, %v10461_v11  ;;  %v12467_v6 = vmax.f32 %v5253_v54, %v5254_v22  ;;  %v12469_v2 = vmax.f32 %v5260_v26, %v5261_v51  ;;  %v13989_v51 = vld [vmem:[#allocation29_spill] sm:$0xff] }
 0x4a6   : > { %v12471_v24 = vmax.f32 %v5267_v7, %v5268_v5  ;;  %v12473_v4 = vmax.f32 %v5274_v38, %v5275_v47  ;;  %v5796_v39 = vlaneseq  ;;  %v5838_v58 = vcombine.low %v10473_v62, %v10475_v63  ;;  %v13990_v5 = vld [vmem:[#allocation28_spill] sm:$0xff] }
 0x4a7   : > { %v5839_v59 = vcombine.low %v10477_v0, %v10479_v1  ;;  %v9306_v60 = vmov 1966171168   ;;  %v5840_v8 = vcombine.low %v10487_v16, %v10489_v17  ;;  %v5841_v9 = vcombine.low %v10491_v18, %v10493_v19  ;;  %v13967_v17 = vld [vmem:[#allocation7_spill] sm:$0xff]  ;;  %v13968_v18 = vld [vmem:[#allocation6_spill] sm:$0xff] }
 0x4a8   : > { %v5794_v61 = vunpack.c.l.s4 %v9306_v60  ;;  %v5887_v10 = vcombine.low %v10505_v14, %v10507_v15  ;;  %v5797_v11 = vshrl.u32 %v5796_v39, 7  ;;  %v5888_v7 = vcombine.low %v10509_v20, %v10511_v21  ;;  %v13969_v14 = vld [vmem:[#allocation9_spill] sm:$0xff]  ;;  %v13970_v15 = vld [vmem:[#allocation8_spill] sm:$0xff]  ;;  %v13971_v20 = vld [vmem:[#allocation11_spill] sm:$0xff] }
 0x4a9   : > { %v5889_v62 = vcombine.low %v10519_v32, %v10521_v33  ;;  %v5890_v63 = vcombine.low %v10523_v34, %v10525_v35  ;;  %v5936_v1 = vcombine.low %v10537_v42, %v10539_v43  ;;  %v5937_v16 = vcombine.low %v10541_v44, %v10543_v45  ;;  %v13972_v21 = vld [vmem:[#allocation10_spill] sm:$0xff]  ;;  %v13973_v32 = vld [vmem:[#allocation13_spill] sm:$0xff]  ;;  %v13974_v33 = vld [vmem:[#allocation12_spill] sm:$0xff] }
 0x4aa   : > { %v5795_v0 = vunpack.c.0.s8 %v5794_v61  ;;  %v5938_v19 = vcombine.low %v13968_v18, %v13967_v17  ;;  %v5939_v38 = vcombine.low %v13970_v15, %v13969_v14  ;;  %v5985_v54 = vcombine.low %v13972_v21, %v13971_v20  ;;  %v13975_v34 = vld [vmem:[#allocation15_spill] sm:$0xff]  ;;  %v13976_v35 = vld [vmem:[#allocation14_spill] sm:$0xff]  ;;  %v13977_v42 = vld [vmem:[#allocation17_spill] sm:$0xff] }
 0x4ab   : > { %v5986_v26 = vcombine.low %v13974_v33, %v13973_v32  ;;  %v5987_v46 = vcombine.low %v13976_v35, %v13975_v34  ;;  %v13978_v43 = vld [vmem:[#allocation16_spill] sm:$0xff]  ;;  %v13979_v45 = vld [vmem:[#allocation19_spill] sm:$0xff]  ;;  %v6035_v49 = vcombine.low %v13982_v55, %v13981_v30  ;;  %v6036_v56 = vcombine.low %v13984_v37, %v13983_v25 }
 0x4ac   : > { %v12505_v13 = vsub.s32 %v5795_v0, %v5797_v11  ;;  %v5988_v44 = vcombine.low %v13978_v43, %v13977_v42  ;;  %v6034_v27 = vcombine.low %v13980_v52, %v13979_v45  ;;  %v6037_v29 = vcombine.low %v13986_v3, %v13985_v57 }
 0x4ad   : > { %v6083_v22 = vcombine.low %v13988_v23, %v13987_v50  ;;  %v6084_v47 = vcombine.low %v13990_v5, %v13989_v51  ;;  %v13991_v23 = vld [vmem:[#allocation31_spill] sm:$0xff]  ;;  %v13992_v51 = vld [vmem:[#allocation30_spill] sm:$0xff] }
 0x4ae   : > { %v5799_v39 = vrot.slane %v5789_v36, %v12505_v13  ;;  %v5806_v60 = vrot.slane %v5790_v12, %v12505_v13  ;;  %v5813_v61 = vrot.slane %v5791_v48, %v12505_v13  ;;  %v5820_v11 = vrot.slane %v5792_v31, %v12505_v13 }
 0x4af   : > { %v5848_v0 = vrot.slane %v5838_v58, %v12505_v13  ;;  %v5855_v17 = vrot.slane %v5839_v59, %v12505_v13  ;;  %v5862_v18 = vrot.slane %v5840_v8, %v12505_v13  ;;  %v5869_v14 = vrot.slane %v5841_v9, %v12505_v13 }
 0x4b0   : > { %v5821_v15 = vcombine.low %v5799_v39, %v5806_v60  ;;  %v5822_v20 = vcombine.low %v5813_v61, %v5820_v11  ;;  %v5897_v21 = vrot.slane %v5887_v10, %v12505_v13  ;;  %v5904_v36 = vrot.slane %v5888_v7, %v12505_v13  ;;  %v13993_v39 = vld [vmem:[#allocation33_spill] sm:$0xff]  ;;  %v13994_v60 = vld [vmem:[#allocation32_spill] sm:$0xff] }
 0x4b1   : > { %v5870_v12 = vcombine.low %v5848_v0, %v5855_v17  ;;  %v5871_v32 = vcombine.low %v5862_v18, %v5869_v14  ;;  %v5911_v48 = vrot.slane %v5889_v62, %v12505_v13  ;;  %v5918_v31 = vrot.slane %v5890_v63, %v12505_v13 }
 0x4b2   : > { %v5829_v58 = vrot.slane %v5821_v15, %v12505_v13  ;;  %v5836_v59 = vrot.slane %v5822_v20, %v12505_v13  ;;  %v5919_v8 = vcombine.low %v5897_v21, %v5904_v36  ;;  %v5946_v9 = vrot.slane %v5936_v1, %v12505_v13  ;;  %v13995_v20 = vld [vmem:[#allocation35_spill] sm:$0xff]  ;;  %v13996_v21 = vld [vmem:[#allocation34_spill] sm:$0xff] }
 0x4b3   : > { %v5878_v33 = vrot.slane %v5870_v12, %v12505_v13  ;;  %v5885_v34 = vrot.slane %v5871_v32, %v12505_v13  ;;  %v5920_v10 = vcombine.low %v5911_v48, %v5918_v31  ;;  %v5953_v7 = vrot.slane %v5937_v16, %v12505_v13  ;;  %v13997_v12 = vld [vmem:[#allocation37_spill] sm:$0xff]  ;;  %v13998_v32 = vld [vmem:[#allocation36_spill] sm:$0xff] }
 0x4b4   : > { %v5837_v35 = vcombine.low %v5829_v58, %v5836_v59  ;;  %v5927_v42 = vrot.slane %v5919_v8, %v12505_v13  ;;  %v5960_v62 = vrot.slane %v5938_v19, %v12505_v13  ;;  %v5967_v63 = vrot.slane %v5939_v38, %v12505_v13  ;;  %v13999_v58 = vld [vmem:[#allocation39_spill] sm:$0xff]  ;;  %v14000_v59 = vld [vmem:[#allocation38_spill] sm:$0xff] }
 0x4b5   : > { %v5886_v43 = vcombine.low %v5878_v33, %v5885_v34  ;;  %v5934_v45 = vrot.slane %v5920_v10, %v12505_v13  ;;  %v5968_v52 = vcombine.low %v5946_v9, %v5953_v7  ;;  %v5995_v1 = vrot.slane %v5985_v54, %v12505_v13  ;;  %v14001_v9 = vld [vmem:[#allocation41_spill] sm:$0xff] }
 0x4b6   : > { %v5969_v30 = vcombine.low %v5960_v62, %v5967_v63  ;;  %v6002_v55 = vrot.slane %v5986_v26, %v12505_v13  ;;  %v6009_v25 = vrot.slane %v5987_v46, %v12505_v13  ;;  %v6016_v16 = vrot.slane %v5988_v44, %v12505_v13  ;;  %8989 = vst [vmem:[%s12548_s2] sm:$0xff] %v5837_v35  ;;  %v14003_v35 = vld [vmem:[#allocation43_spill] sm:$0xff] }
 0x4b7   : > { %v5935_v19 = vcombine.low %v5927_v42, %v5934_v45  ;;  %v5976_v38 = vrot.slane %v5968_v52, %v12505_v13  ;;  %v6044_v37 = vrot.slane %v6034_v27, %v12505_v13  ;;  %v6051_v54 = vrot.slane %v6035_v49, %v12505_v13  ;;  %8990 = vst [vmem:[%s12548_s2 + $0x8] sm:$0xff] %v5886_v43  ;;  %v14004_v42 = vld [vmem:[#allocation42_spill] sm:$0xff] }
 0x4b8   : > { %v5983_v26 = vrot.slane %v5969_v30, %v12505_v13  ;;  %v6017_v57 = vcombine.low %v5995_v1, %v6002_v55  ;;  %v6018_v46 = vcombine.low %v6009_v25, %v6016_v16  ;;  %v6058_v44 = vrot.slane %v6036_v56, %v12505_v13  ;;  %v14005_v55 = vld [vmem:[#allocation45_spill] sm:$0xff]  ;;  %v14006_v25 = vld [vmem:[#allocation44_spill] sm:$0xff] }
 0x4b9   : > { %v6065_v3 = vrot.slane %v6037_v29, %v12505_v13  ;;  %v6066_v50 = vcombine.low %v6044_v37, %v6051_v54  ;;  %v6085_v5 = vcombine.low %v13992_v51, %v13991_v23  ;;  %v6086_v61 = vcombine.low %v13994_v60, %v13993_v39  ;;  %8991 = vst [vmem:[%s12548_s2 + $0x10] sm:$0xff] %v5935_v19  ;;  %v14007_v19 = vld [vmem:[#allocation47_spill] sm:$0xff] }
 0x4ba   : > { %v5984_v27 = vcombine.low %v5976_v38, %v5983_v26  ;;  %v6025_v49 = vrot.slane %v6017_v57, %v12505_v13  ;;  %v6032_v11 = vrot.slane %v6018_v46, %v12505_v13  ;;  %v6093_v0 = vrot.slane %v6083_v22, %v12505_v13  ;;  %v14008_v38 = vld [vmem:[#allocation46_spill] sm:$0xff]  ;;  %v14009_v26 = vld [vmem:[#allocation49_spill] sm:$0xff]  ;;  %v14010_v57 = vld [vmem:[#allocation48_spill] sm:$0xff] }
 0x4bb   : > { %v6067_v17 = vcombine.low %v6058_v44, %v6065_v3  ;;  %v6074_v56 = vrot.slane %v6066_v50, %v12505_v13  ;;  %v6100_v29 = vrot.slane %v6084_v47, %v12505_v13  ;;  %v6107_v18 = vrot.slane %v6085_v5, %v12505_v13  ;;  %v14002_v47 = vld [vmem:[#allocation40_spill] sm:$0xff]  ;;  %v14011_v3 = vld [vmem:[#allocation51_spill] sm:$0xff]  ;;  %v14012_v50 = vld [vmem:[#allocation50_spill] sm:$0xff] }
 0x4bc   : > { %v6033_v14 = vcombine.low %v6025_v49, %v6032_v11  ;;  %v6114_v15 = vrot.slane %v6086_v61, %v12505_v13  ;;  %v6132_v36 = vcombine.low %v13996_v21, %v13995_v20  ;;  %v6133_v48 = vcombine.low %v13998_v32, %v13997_v12  ;;  %8992 = vst [vmem:[%s12548_s2 + $0x18] sm:$0xff] %v5984_v27  ;;  %v14013_v49 = vld [vmem:[#allocation53_spill] sm:$0xff]  ;;  %v14014_v11 = vld [vmem:[#allocation52_spill] sm:$0xff]  ;;  %v14020_v12 = vld [vmem:[#allocation58_spill] sm:$0xff] }
 0x4bd   : > { %v6081_v22 = vrot.slane %v6067_v17, %v12505_v13  ;;  %v6115_v31 = vcombine.low %v6093_v0, %v6100_v29  ;;  %v6134_v8 = vcombine.low %v14000_v59, %v13999_v58  ;;  %v6135_v33 = vcombine.low %v14002_v47, %v14001_v9  ;;  %v14015_v17 = vld [vmem:[#allocation55_spill] sm:$0xff]  ;;  %v14021_v9 = vld [vmem:[#allocation61_spill] sm:$0xff]  ;;  %v14022_v47 = vld [vmem:[#allocation60_spill] sm:$0xff] }
 0x4be   : > { %v6116_v34 = vcombine.low %v6107_v18, %v6114_v15  ;;  %v6142_v10 = vrot.slane %v6132_v36, %v12505_v13  ;;  %v6149_v7 = vrot.slane %v6133_v48, %v12505_v13  ;;  %v6181_v62 = vcombine.low %v14004_v42, %v14003_v35  ;;  %8993 = vst [vmem:[%s12548_s2 + $0x20] sm:$0xff] %v6033_v14  ;;  %v14017_v14 = vld [vmem:[#allocation57_spill] sm:$0xff]  ;;  %v14018_v15 = vld [vmem:[#allocation56_spill] sm:$0xff]  ;;  %v14019_v36 = vld [vmem:[#allocation59_spill] sm:$0xff] }
 0x4bf   : > { %v6082_v63 = vcombine.low %v6074_v56, %v6081_v22  ;;  %v6123_v43 = vrot.slane %v6115_v31, %v12505_v13  ;;  %v6156_v45 = vrot.slane %v6134_v8, %v12505_v13  ;;  %v6163_v52 = vrot.slane %v6135_v33, %v12505_v13  ;;  %v14016_v56 = vld [vmem:[#allocation54_spill] sm:$0xff] }
 0x4c0   : > { %v6130_v1 = vrot.slane %v6116_v34, %v12505_v13  ;;  %v6164_v30 = vcombine.low %v6142_v10, %v6149_v7  ;;  %v6182_v16 = vcombine.low %v14006_v25, %v14005_v55  ;;  %v6183_v37 = vcombine.low %v14008_v38, %v14007_v19  ;;  %v14023_v34 = vld [vmem:[#allocation63_spill] sm:$0xff]  ;;  %v14024_v10 = vld [vmem:[#allocation62_spill] sm:$0xff] }
 0x4c1   : > { %v6165_v54 = vcombine.low %v6156_v45, %v6163_v52  ;;  %v6184_v46 = vcombine.low %v14010_v57, %v14009_v26  ;;  %v6191_v44 = vrot.slane %v6181_v62, %v12505_v13  ;;  %v6230_v23 = vcombine.low %v14012_v50, %v14011_v3  ;;  %8994 = vst [vmem:[%s12548_s2 + $0x28] sm:$0xff] %v6082_v63  ;;  %v14025_v62 = vld [vmem:[#allocation65_spill] sm:$0xff]  ;;  %v14026_v63 = vld [vmem:[#allocation64_spill] sm:$0xff]  ;;  %v14027_v55 = vld [vmem:[#allocation67_spill] sm:$0xff] }
 0x4c2   : > { %v6131_v51 = vcombine.low %v6123_v43, %v6130_v1  ;;  %v6172_v5 = vrot.slane %v6164_v30, %v12505_v13  ;;  %v6198_v39 = vrot.slane %v6182_v16, %v12505_v13  ;;  %v6205_v60 = vrot.slane %v6183_v37, %v12505_v13  ;;  %v14028_v25 = vld [vmem:[#allocation66_spill] sm:$0xff]  ;;  %v14030_v26 = vld [vmem:[#allocation68_spill] sm:$0xff]  ;;  %v14031_v3 = vld [vmem:[#allocation71_spill] sm:$0xff] }
 0x4c3   : > { %v6179_v61 = vrot.slane %v6165_v54, %v12505_v13  ;;  %v6212_v27 = vrot.slane %v6184_v46, %v12505_v13  ;;  %v6231_v0 = vcombine.low %v14014_v11, %v14013_v49  ;;  %v6232_v29 = vcombine.low %v14016_v56, %v14015_v17  ;;  %v14029_v54 = vld [vmem:[#allocation69_spill] sm:$0xff]  ;;  %v14032_v50 = vld [vmem:[#allocation70_spill] sm:$0xff]  ;;  %v14035_v49 = vld [vmem:[#allocation75_spill] sm:$0xff] }
 0x4c4   : > { %v6213_v18 = vcombine.low %v6191_v44, %v6198_v39  ;;  %v6233_v20 = vcombine.low %v14018_v15, %v14017_v14  ;;  %v6240_v21 = vrot.slane %v6230_v23, %v12505_v13  ;;  %v6279_v32 = vcombine.low %v14020_v12, %v14019_v36  ;;  %8995 = vst [vmem:[%s12548_s2 + $0x30] sm:$0xff] %v6131_v51  ;;  %v14033_v51 = vld [vmem:[#allocation73_spill] sm:$0xff]  ;;  %v14036_v11 = vld [vmem:[#allocation74_spill] sm:$0xff]  ;;  %v14039_v12 = vld [vmem:[#allocation79_spill] sm:$0xff] }
 0x4c5   : > { %v6180_v48 = vcombine.low %v6172_v5, %v6179_v61  ;;  %v6214_v22 = vcombine.low %v6205_v60, %v6212_v27  ;;  %v6247_v31 = vrot.slane %v6231_v0, %v12505_v13  ;;  %v6254_v58 = vrot.slane %v6232_v29, %v12505_v13  ;;  %v14034_v5 = vld [vmem:[#allocation72_spill] sm:$0xff] }
 0x4c6   : > { %v6221_v59 = vrot.slane %v6213_v18, %v12505_v13  ;;  %v6261_v8 = vrot.slane %v6233_v20, %v12505_v13  ;;  %v6280_v33 = vcombine.low %v14022_v47, %v14021_v9  ;;  %v6281_v7 = vcombine.low %v14024_v10, %v14023_v34  ;;  %v14037_v20 = vld [vmem:[#allocation77_spill] sm:$0xff]  ;;  %v14043_v9 = vld [vmem:[#allocation83_spill] sm:$0xff]  ;;  %v14044_v47 = vld [vmem:[#allocation82_spill] sm:$0xff] }
 0x4c7   : > { %v6228_v35 = vrot.slane %v6214_v22, %v12505_v13  ;;  %v6262_v42 = vcombine.low %v6240_v21, %v6247_v31  ;;  %v6282_v43 = vcombine.low %v14026_v63, %v14025_v62  ;;  %v6289_v45 = vrot.slane %v6279_v32, %v12505_v13  ;;  %8996 = vst [vmem:[%s12548_s2 + $0x38] sm:$0xff] %v6180_v48  ;;  %v14038_v21 = vld [vmem:[#allocation76_spill] sm:$0xff]  ;;  %v14040_v32 = vld [vmem:[#allocation78_spill] sm:$0xff]  ;;  %v14041_v31 = vld [vmem:[#allocation81_spill] sm:$0xff] }
 0x4c8   : > { %v6263_v52 = vcombine.low %v6254_v58, %v6261_v8  ;;  %v6296_v1 = vrot.slane %v6280_v33, %v12505_v13  ;;  %v6303_v30 = vrot.slane %v6281_v7, %v12505_v13  ;;  %v6328_v16 = vcombine.low %v14028_v25, %v14027_v55  ;;  %v14042_v58 = vld [vmem:[#allocation80_spill] sm:$0xff]  ;;  %v14045_v63 = vld [vmem:[#allocation85_spill] sm:$0xff] }
 0x4c9   : > { %v6229_v19 = vcombine.low %v6221_v59, %v6228_v35  ;;  %v6270_v38 = vrot.slane %v6262_v42, %v12505_v13  ;;  %v6310_v37 = vrot.slane %v6282_v43, %v12505_v13  ;;  %v6329_v57 = vcombine.low %v14030_v26, %v14029_v54  ;;  %v14046_v43 = vld [vmem:[#allocation84_spill] sm:$0xff]  ;;  %v14049_v25 = vld [vmem:[#allocation89_spill] sm:$0xff]  ;;  %v14052_v54 = vld [vmem:[#allocation90_spill] sm:$0xff] }
 0x4ca   : > { %v6277_v46 = vrot.slane %v6263_v52, %v12505_v13  ;;  %v6311_v44 = vcombine.low %v6289_v45, %v6296_v1  ;;  %v6330_v23 = vcombine.low %v14032_v50, %v14031_v3  ;;  %v6331_v39 = vcombine.low %v14034_v5, %v14033_v51  ;;  %v14047_v52 = vld [vmem:[#allocation87_spill] sm:$0xff]  ;;  %v14048_v1 = vld [vmem:[#allocation86_spill] sm:$0xff]  ;;  %v14053_v51 = vld [vmem:[#allocation93_spill] sm:$0xff] }
 0x4cb   : > { %v6312_v60 = vcombine.low %v6303_v30, %v6310_v37  ;;  %v6338_v61 = vrot.slane %v6328_v16, %v12505_v13  ;;  %v6345_v27 = vrot.slane %v6329_v57, %v12505_v13  ;;  %v6377_v0 = vcombine.low %v14036_v11, %v14035_v49  ;;  %8997 = vst [vmem:[%s12548_s2 + $0x40] sm:$0xff] %v6229_v19  ;;  %v14050_v16 = vld [vmem:[#allocation88_spill] sm:$0xff]  ;;  %v14051_v37 = vld [vmem:[#allocation91_spill] sm:$0xff] }
 0x4cc   : > { %v6278_v17 = vcombine.low %v6270_v38, %v6277_v46  ;;  %v6319_v56 = vrot.slane %v6311_v44, %v12505_v13  ;;  %v6352_v29 = vrot.slane %v6330_v23, %v12505_v13  ;;  %v6359_v18 = vrot.slane %v6331_v39, %v12505_v13  ;;  %v14054_v5 = vld [vmem:[#allocation92_spill] sm:$0xff] }
 0x4cd   : > { %v6326_v14 = vrot.slane %v6312_v60, %v12505_v13  ;;  %v6360_v15 = vcombine.low %v6338_v61, %v6345_v27  ;;  %v6378_v36 = vcombine.low %v14038_v21, %v14037_v20  ;;  %v6379_v48 = vcombine.low %v14040_v32, %v14039_v12  ;;  %v14055_v60 = vld [vmem:[#allocation95_spill] sm:$0xff]  ;;  %v14056_v61 = vld [vmem:[#allocation94_spill] sm:$0xff] }
 0x4ce   : > { %v6361_v22 = vcombine.low %v6352_v29, %v6359_v18  ;;  %v6380_v59 = vcombine.low %v14042_v58, %v14041_v31  ;;  %v6387_v8 = vrot.slane %v6377_v0, %v12505_v13  ;;  %v6426_v33 = vcombine.low %v14044_v47, %v14043_v9  ;;  %8998 = vst [vmem:[%s12548_s2 + $0x48] sm:$0xff] %v6278_v17  ;;  %v14057_v0 = vld [vmem:[#allocation97_spill] sm:$0xff]  ;;  %v14058_v17 = vld [vmem:[#allocation96_spill] sm:$0xff]  ;;  %v14059_v20 = vld [vmem:[#allocation99_spill] sm:$0xff] }
 0x4cf   : > { %v6327_v34 = vcombine.low %v6319_v56, %v6326_v14  ;;  %v6368_v10 = vrot.slane %v6360_v15, %v12505_v13  ;;  %v6394_v7 = vrot.slane %v6378_v36, %v12505_v13  ;;  %v6401_v35 = vrot.slane %v6379_v48, %v12505_v13  ;;  %v14060_v21 = vld [vmem:[#allocation98_spill] sm:$0xff]  ;;  %v14062_v31 = vld [vmem:[#allocation100_spill] sm:$0xff]  ;;  %v14063_v9 = vld [vmem:[#allocation103_spill] sm:$0xff] }
 0x4d0   : > { %v6375_v42 = vrot.slane %v6361_v22, %v12505_v13  ;;  %v6408_v62 = vrot.slane %v6380_v59, %v12505_v13  ;;  %v6427_v45 = vcombine.low %v14046_v43, %v14045_v63  ;;  %v6428_v30 = vcombine.low %v14048_v1, %v14047_v52  ;;  %v14061_v22 = vld [vmem:[#allocation101_spill] sm:$0xff]  ;;  %v14064_v47 = vld [vmem:[#allocation102_spill] sm:$0xff]  ;;  %v14067_v63 = vld [vmem:[#allocation107_spill] sm:$0xff] }
 0x4d1   : > { %v6409_v55 = vcombine.low %v6387_v8, %v6394_v7  ;;  %v6429_v19 = vcombine.low %v14050_v16, %v14049_v25  ;;  %v6436_v38 = vrot.slane %v6426_v33, %v12505_v13  ;;  %v6475_v26 = vcombine.low %v14052_v54, %v14051_v37  ;;  %8999 = vst [vmem:[%s12548_s2 + $0x50] sm:$0xff] %v6327_v34  ;;  %v14065_v34 = vld [vmem:[#allocation105_spill] sm:$0xff]  ;;  %v14068_v43 = vld [vmem:[#allocation106_spill] sm:$0xff]  ;;  %v14071_v54 = vld [vmem:[#allocation111_spill] sm:$0xff] }
 0x4d2   : > { %v6376_v57 = vcombine.low %v6368_v10, %v6375_v42  ;;  %v6410_v46 = vcombine.low %v6401_v35, %v6408_v62  ;;  %v6443_v44 = vrot.slane %v6427_v45, %v12505_v13  ;;  %v6450_v3 = vrot.slane %v6428_v30, %v12505_v13  ;;  %v14066_v10 = vld [vmem:[#allocation104_spill] sm:$0xff] }
 0x4d3   : > { %v6417_v50 = vrot.slane %v6409_v55, %v12505_v13  ;;  %v6457_v23 = vrot.slane %v6429_v19, %v12505_v13  ;;  %v6476_v39 = vcombine.low %v14054_v5, %v14053_v51  ;;  %v6477_v27 = vcombine.low %v14056_v61, %v14055_v60  ;;  %v14069_v19 = vld [vmem:[#allocation109_spill] sm:$0xff]  ;;  %v14075_v51 = vld [vmem:[#allocation115_spill] sm:$0xff]  ;;  %v14076_v5 = vld [vmem:[#allocation114_spill] sm:$0xff] }
 0x4d4   : > { %v6424_v49 = vrot.slane %v6410_v46, %v12505_v13  ;;  %v6458_v11 = vcombine.low %v6436_v38, %v6443_v44  ;;  %v6478_v56 = vcombine.low %v14058_v17, %v14057_v0  ;;  %v6485_v29 = vrot.slane %v6475_v26, %v12505_v13  ;;  %9000 = vst [vmem:[%s12548_s2 + $0x58] sm:$0xff] %v6376_v57  ;;  %v14070_v38 = vld [vmem:[#allocation108_spill] sm:$0xff]  ;;  %v14072_v26 = vld [vmem:[#allocation110_spill] sm:$0xff]  ;;  %v14073_v44 = vld [vmem:[#allocation113_spill] sm:$0xff] }
 0x4d5   : > { %v6459_v18 = vcombine.low %v6450_v3, %v6457_v23  ;;  %v6492_v14 = vrot.slane %v6476_v39, %v12505_v13  ;;  %v6499_v15 = vrot.slane %v6477_v27, %v12505_v13  ;;  %v6524_v36 = vcombine.low %v14060_v21, %v14059_v20  ;;  %v14074_v3 = vld [vmem:[#allocation112_spill] sm:$0xff]  ;;  %v14077_v17 = vld [vmem:[#allocation117_spill] sm:$0xff] }
 0x4d6   : > { %v6425_v12 = vcombine.low %v6417_v50, %v6424_v49  ;;  %v6466_v32 = vrot.slane %v6458_v11, %v12505_v13  ;;  %v6506_v48 = vrot.slane %v6478_v56, %v12505_v13  ;;  %v6525_v58 = vcombine.low %v14062_v31, %v14061_v22  ;;  %v14078_v56 = vld [vmem:[#allocation116_spill] sm:$0xff]  ;;  %v14081_v21 = vld [vmem:[#allocation121_spill] sm:$0xff]  ;;  %v14084_v22 = vld [vmem:[#allocation122_spill] sm:$0xff] }
 0x4d7   : > { %v6473_v59 = vrot.slane %v6459_v18, %v12505_v13  ;;  %v6507_v8 = vcombine.low %v6485_v29, %v6492_v14  ;;  %v6526_v33 = vcombine.low %v14064_v47, %v14063_v9  ;;  %v6527_v7 = vcombine.low %v14066_v10, %v14065_v34  ;;  %v14079_v18 = vld [vmem:[#allocation119_spill] sm:$0xff]  ;;  %v14080_v14 = vld [vmem:[#allocation118_spill] sm:$0xff]  ;;  %v14085_v34 = vld [vmem:[#allocation125_spill] sm:$0xff] }
 0x4d8   : > { %v6508_v35 = vcombine.low %v6499_v15, %v6506_v48  ;;  %v6534_v42 = vrot.slane %v6524_v36, %v12505_v13  ;;  %v6541_v62 = vrot.slane %v6525_v58, %v12505_v13  ;;  %v6573_v45 = vcombine.low %v14068_v43, %v14067_v63  ;;  %9001 = vst [vmem:[%s12548_s2 + $0x60] sm:$0xff] %v6425_v12  ;;  %v14082_v36 = vld [vmem:[#allocation120_spill] sm:$0xff]  ;;  %v14083_v48 = vld [vmem:[#allocation123_spill] sm:$0xff] }
 0x4d9   : > { %v6474_v52 = vcombine.low %v6466_v32, %v6473_v59  ;;  %v6515_v1 = vrot.slane %v6507_v8, %v12505_v13  ;;  %v6548_v30 = vrot.slane %v6526_v33, %v12505_v13  ;;  %v6555_v55 = vrot.slane %v6527_v7, %v12505_v13  ;;  %v14086_v10 = vld [vmem:[#allocation124_spill] sm:$0xff] }
 0x4da   : > { %v6522_v25 = vrot.slane %v6508_v35, %v12505_v13  ;;  %v6556_v16 = vcombine.low %v6534_v42, %v6541_v62  ;;  %v6574_v37 = vcombine.low %v14070_v38, %v14069_v19  ;;  %v6575_v57 = vcombine.low %v14072_v26, %v14071_v54  ;;  %v14087_v35 = vld [vmem:[#allocation127_spill] sm:$0xff]  ;;  %v14088_v42 = vld [vmem:[#allocation126_spill] sm:$0xff] }
 0x4db   : > { %v6557_v46 = vcombine.low %v6548_v30, %v6555_v55  ;;  %v6576_v50 = vcombine.low %v14074_v3, %v14073_v44  ;;  %v6583_v23 = vrot.slane %v6573_v45, %v12505_v13  ;;  %v6622_v39 = vcombine.low %v14076_v5, %v14075_v51  ;;  %9002 = vst [vmem:[%s12548_s2 + $0x68] sm:$0xff] %v6474_v52  ;;  %v14089_v45 = vld [vmem:[#allocation129_spill] sm:$0xff]  ;;  %v14090_v52 = vld [vmem:[#allocation128_spill] sm:$0xff]  ;;  %v14091_v19 = vld [vmem:[#allocation131_spill] sm:$0xff] }
 0x4dc   : > { %v6523_v60 = vcombine.low %v6515_v1, %v6522_v25  ;;  %v6564_v61 = vrot.slane %v6556_v16, %v12505_v13  ;;  %v6590_v27 = vrot.slane %v6574_v37, %v12505_v13  ;;  %v6597_v49 = vrot.slane %v6575_v57, %v12505_v13  ;;  %v14092_v38 = vld [vmem:[#allocation130_spill] sm:$0xff]  ;;  %v14094_v44 = vld [vmem:[#allocation132_spill] sm:$0xff]  ;;  %v14095_v51 = vld [vmem:[#allocation135_spill] sm:$0xff] }
 0x4dd   : > { %v6571_v11 = vrot.slane %v6557_v46, %v12505_v13  ;;  %v6604_v0 = vrot.slane %v6576_v50, %v12505_v13  ;;  %v6623_v29 = vcombine.low %v14078_v56, %v14077_v17  ;;  %v6624_v15 = vcombine.low %v14080_v14, %v14079_v18  ;;  %v14093_v46 = vld [vmem:[#allocation133_spill] sm:$0xff]  ;;  %v14096_v5 = vld [vmem:[#allocation134_spill] sm:$0xff]  ;;  %v14099_v17 = vld [vmem:[#allocation139_spill] sm:$0xff] }
 0x4de   : > { %v6605_v20 = vcombine.low %v6583_v23, %v6590_v27  ;;  %v6625_v12 = vcombine.low %v14082_v36, %v14081_v21  ;;  %v6632_v32 = vrot.slane %v6622_v39, %v12505_v13  ;;  %v6671_v31 = vcombine.low %v14084_v22, %v14083_v48  ;;  %9003 = vst [vmem:[%s12548_s2 + $0x70] sm:$0xff] %v6523_v60  ;;  %v14097_v60 = vld [vmem:[#allocation137_spill] sm:$0xff]  ;;  %v14100_v56 = vld [vmem:[#allocation138_spill] sm:$0xff]  ;;  %v14103_v22 = vld [vmem:[#allocation143_spill] sm:$0xff] }
 0x4df   : > { %v6572_v58 = vcombine.low %v6564_v61, %v6571_v11  ;;  %v6606_v59 = vcombine.low %v6597_v49, %v6604_v0  ;;  %v6639_v8 = vrot.slane %v6623_v29, %v12505_v13  ;;  %v6646_v9 = vrot.slane %v6624_v15, %v12505_v13  ;;  %v14098_v61 = vld [vmem:[#allocation136_spill] sm:$0xff] }
 0x4e0   : > { %v6613_v47 = vrot.slane %v6605_v20, %v12505_v13  ;;  %v6653_v33 = vrot.slane %v6625_v12, %v12505_v13  ;;  %v6672_v7 = vcombine.low %v14086_v10, %v14085_v34  ;;  %v6673_v62 = vcombine.low %v14088_v42, %v14087_v35  ;;  %v14101_v12 = vld [vmem:[#allocation141_spill] sm:$0xff]  ;;  %v14107_v34 = vld [vmem:[#allocation147_spill] sm:$0xff]  ;;  %v14108_v10 = vld [vmem:[#allocation146_spill] sm:$0xff] }
 0x4e1   : > { %v6620_v63 = vrot.slane %v6606_v59, %v12505_v13  ;;  %v6654_v43 = vcombine.low %v6632_v32, %v6639_v8  ;;  %v6674_v1 = vcombine.low %v14090_v52, %v14089_v45  ;;  %v6681_v30 = vrot.slane %v6671_v31, %v12505_v13  ;;  %9004 = vst [vmem:[%s12548_s2 + $0x78] sm:$0xff] %v6572_v58  ;;  %v14102_v32 = vld [vmem:[#allocation140_spill] sm:$0xff]  ;;  %v14104_v31 = vld [vmem:[#allocation142_spill] sm:$0xff]  ;;  %v14105_v8 = vld [vmem:[#allocation145_spill] sm:$0xff] }
 0x4e2   : > { %v6655_v55 = vcombine.low %v6646_v9, %v6653_v33  ;;  %v6688_v25 = vrot.slane %v6672_v7, %v12505_v13  ;;  %v6695_v16 = vrot.slane %v6673_v62, %v12505_v13  ;;  %v6720_v37 = vcombine.low %v14092_v38, %v14091_v19  ;;  %v14106_v9 = vld [vmem:[#allocation144_spill] sm:$0xff]  ;;  %v14109_v52 = vld [vmem:[#allocation149_spill] sm:$0xff] }
 0x4e3   : > { %v6621_v54 = vcombine.low %v6613_v47, %v6620_v63  ;;  %v6662_v26 = vrot.slane %v6654_v43, %v12505_v13  ;;  %v6702_v57 = vrot.slane %v6674_v1, %v12505_v13  ;;  %v6721_v3 = vcombine.low %v14094_v44, %v14093_v46  ;;  %v14110_v1 = vld [vmem:[#allocation148_spill] sm:$0xff]  ;;  %v14113_v38 = vld [vmem:[#allocation153_spill] sm:$0xff]  ;;  %v14116_v46 = vld [vmem:[#allocation154_spill] sm:$0xff] }
 0x4e4   : > { %v6669_v50 = vrot.slane %v6655_v55, %v12505_v13  ;;  %v6703_v23 = vcombine.low %v6681_v30, %v6688_v25  ;;  %v6722_v39 = vcombine.low %v14096_v5, %v14095_v51  ;;  %v6723_v27 = vcombine.low %v14098_v61, %v14097_v60  ;;  %v14111_v55 = vld [vmem:[#allocation151_spill] sm:$0xff]  ;;  %v14112_v25 = vld [vmem:[#allocation150_spill] sm:$0xff]  ;;  %v14117_v60 = vld [vmem:[#allocation157_spill] sm:$0xff] }
 0x4e5   : > { %v6704_v49 = vcombine.low %v6695_v16, %v6702_v57  ;;  %v6730_v11 = vrot.slane %v6720_v37, %v12505_v13  ;;  %v6737_v0 = vrot.slane %v6721_v3, %v12505_v13  ;;  %v6769_v29 = vcombine.low %v14100_v56, %v14099_v17  ;;  %9005 = vst [vmem:[%s12548_s2 + $0x80] sm:$0xff] %v6621_v54  ;;  %v14114_v37 = vld [vmem:[#allocation152_spill] sm:$0xff]  ;;  %v14115_v57 = vld [vmem:[#allocation155_spill] sm:$0xff] }
 0x4e6   : > { %v6670_v18 = vcombine.low %v6662_v26, %v6669_v50  ;;  %v6711_v14 = vrot.slane %v6703_v23, %v12505_v13  ;;  %v6744_v15 = vrot.slane %v6722_v39, %v12505_v13  ;;  %v6751_v20 = vrot.slane %v6723_v27, %v12505_v13  ;;  %v14118_v61 = vld [vmem:[#allocation156_spill] sm:$0xff] }
 0x4e7   : > { %v6718_v21 = vrot.slane %v6704_v49, %v12505_v13  ;;  %v6752_v36 = vcombine.low %v6730_v11, %v6737_v0  ;;  %v6770_v48 = vcombine.low %v14102_v32, %v14101_v12  ;;  %v6771_v58 = vcombine.low %v14104_v31, %v14103_v22  ;;  %v14119_v49 = vld [vmem:[#allocation159_spill] sm:$0xff]  ;;  %v14120_v11 = vld [vmem:[#allocation158_spill] sm:$0xff] }
 0x4e8   : > { %v6753_v59 = vcombine.low %v6744_v15, %v6751_v20  ;;  %v6772_v47 = vcombine.low %v14106_v9, %v14105_v8  ;;  %v6779_v33 = vrot.slane %v6769_v29, %v12505_v13  ;;  %v6818_v7 = vcombine.low %v14108_v10, %v14107_v34  ;;  %9006 = vst [vmem:[%s12548_s2 + $0x88] sm:$0xff] %v6670_v18  ;;  %v14121_v29 = vld [vmem:[#allocation161_spill] sm:$0xff]  ;;  %v14122_v18 = vld [vmem:[#allocation160_spill] sm:$0xff]  ;;  %v14123_v12 = vld [vmem:[#allocation163_spill] sm:$0xff] }
 0x4e9   : > { %v6719_v35 = vcombine.low %v6711_v14, %v6718_v21  ;;  %v6760_v42 = vrot.slane %v6752_v36, %v12505_v13  ;;  %v6786_v62 = vrot.slane %v6770_v48, %v12505_v13  ;;  %v6793_v63 = vrot.slane %v6771_v58, %v12505_v13  ;;  %v14124_v32 = vld [vmem:[#allocation162_spill] sm:$0xff]  ;;  %v14126_v8 = vld [vmem:[#allocation164_spill] sm:$0xff]  ;;  %v14127_v34 = vld [vmem:[#allocation167_spill] sm:$0xff] }
 0x4ea   : > { %v6767_v43 = vrot.slane %v6753_v59, %v12505_v13  ;;  %v6800_v45 = vrot.slane %v6772_v47, %v12505_v13  ;;  %v6819_v30 = vcombine.low %v14110_v1, %v14109_v52  ;;  %v6820_v16 = vcombine.low %v14112_v25, %v14111_v55  ;;  %v14125_v59 = vld [vmem:[#allocation165_spill] sm:$0xff]  ;;  %v14128_v10 = vld [vmem:[#allocation166_spill] sm:$0xff]  ;;  %v14131_v52 = vld [vmem:[#allocation171_spill] sm:$0xff] }
 0x4eb   : > { %v6801_v19 = vcombine.low %v6779_v33, %v6786_v62  ;;  %v6821_v54 = vcombine.low %v14114_v37, %v14113_v38  ;;  %v6828_v26 = vrot.slane %v6818_v7, %v12505_v13  ;;  %v6867_v44 = vcombine.low %v14116_v46, %v14115_v57  ;;  %9007 = vst [vmem:[%s12548_s2 + $0x90] sm:$0xff] %v6719_v35  ;;  %v14129_v35 = vld [vmem:[#allocation169_spill] sm:$0xff]  ;;  %v14132_v1 = vld [vmem:[#allocation170_spill] sm:$0xff]  ;;  %v14135_v46 = vld [vmem:[#allocation175_spill] sm:$0xff] }
 0x4ec   : > { %v6768_v3 = vcombine.low %v6760_v42, %v6767_v43  ;;  %v6802_v50 = vcombine.low %v6793_v63, %v6800_v45  ;;  %v6835_v23 = vrot.slane %v6819_v30, %v12505_v13  ;;  %v6842_v51 = vrot.slane %v6820_v16, %v12505_v13  ;;  %v14130_v42 = vld [vmem:[#allocation168_spill] sm:$0xff] }
 0x4ed   : > { %v6809_v5 = vrot.slane %v6801_v19, %v12505_v13  ;;  %v6849_v39 = vrot.slane %v6821_v54, %v12505_v13  ;;  %v6868_v27 = vcombine.low %v14118_v61, %v14117_v60  ;;  %v6869_v0 = vcombine.low %v14120_v11, %v14119_v49  ;;  %v14133_v54 = vld [vmem:[#allocation173_spill] sm:$0xff]  ;;  %v14139_v60 = vld [vmem:[#allocation179_spill] sm:$0xff]  ;;  %v14140_v61 = vld [vmem:[#allocation178_spill] sm:$0xff] }
 0x4ee   : > { %v6816_v17 = vrot.slane %v6802_v50, %v12505_v13  ;;  %v6850_v56 = vcombine.low %v6828_v26, %v6835_v23  ;;  %v6870_v14 = vcombine.low %v14122_v18, %v14121_v29  ;;  %v6877_v15 = vrot.slane %v6867_v44, %v12505_v13  ;;  %9008 = vst [vmem:[%s12548_s2 + $0x98] sm:$0xff] %v6768_v3  ;;  %v14134_v26 = vld [vmem:[#allocation172_spill] sm:$0xff]  ;;  %v14136_v44 = vld [vmem:[#allocation174_spill] sm:$0xff]  ;;  %v14137_v23 = vld [vmem:[#allocation177_spill] sm:$0xff] }
 0x4ef   : > { %v6851_v20 = vcombine.low %v6842_v51, %v6849_v39  ;;  %v6884_v21 = vrot.slane %v6868_v27, %v12505_v13  ;;  %v6891_v36 = vrot.slane %v6869_v0, %v12505_v13  ;;  %v6916_v48 = vcombine.low %v14124_v32, %v14123_v12  ;;  %v14138_v51 = vld [vmem:[#allocation176_spill] sm:$0xff]  ;;  %v14141_v18 = vld [vmem:[#allocation181_spill] sm:$0xff] }
 0x4f0   : > { %v6817_v22 = vcombine.low %v6809_v5, %v6816_v17  ;;  %v6858_v31 = vrot.slane %v6850_v56, %v12505_v13  ;;  %v6898_v58 = vrot.slane %v6870_v14, %v12505_v13  ;;  %v6917_v9 = vcombine.low %v14126_v8, %v14125_v59  ;;  %v14142_v14 = vld [vmem:[#allocation180_spill] sm:$0xff]  ;;  %v14145_v32 = vld [vmem:[#allocation185_spill] sm:$0xff]  ;;  %v14148_v59 = vld [vmem:[#allocation186_spill] sm:$0xff] }
 0x4f1   : > { %v6865_v47 = vrot.slane %v6851_v20, %v12505_v13  ;;  %v6899_v33 = vcombine.low %v6877_v15, %v6884_v21  ;;  %v6918_v7 = vcombine.low %v14128_v10, %v14127_v34  ;;  %v6919_v62 = vcombine.low %v14130_v42, %v14129_v35  ;;  %v14143_v20 = vld [vmem:[#allocation183_spill] sm:$0xff]  ;;  %v14144_v21 = vld [vmem:[#allocation182_spill] sm:$0xff]  ;;  %v14149_v35 = vld [vmem:[#allocation189_spill] sm:$0xff] }
 0x4f2   : > { %v6900_v63 = vcombine.low %v6891_v36, %v6898_v58  ;;  %v6926_v43 = vrot.slane %v6916_v48, %v12505_v13  ;;  %v6933_v45 = vrot.slane %v6917_v9, %v12505_v13  ;;  %v6965_v30 = vcombine.low %v14132_v1, %v14131_v52  ;;  %9009 = vst [vmem:[%s12548_s2 + $0xa0] sm:$0xff] %v6817_v22  ;;  %v14146_v48 = vld [vmem:[#allocation184_spill] sm:$0xff]  ;;  %v14147_v58 = vld [vmem:[#allocation187_spill] sm:$0xff] }
 0x4f3   : > { %v6866_v55 = vcombine.low %v6858_v31, %v6865_v47  ;;  %v6907_v25 = vrot.slane %v6899_v33, %v12505_v13  ;;  %v6940_v16 = vrot.slane %v6918_v7, %v12505_v13  ;;  %v6947_v19 = vrot.slane %v6919_v62, %v12505_v13  ;;  %v14150_v42 = vld [vmem:[#allocation188_spill] sm:$0xff] }
 0x4f4   : > { %v6914_v38 = vrot.slane %v6900_v63, %v12505_v13  ;;  %v6948_v37 = vcombine.low %v6926_v43, %v6933_v45  ;;  %v6966_v57 = vcombine.low %v14134_v26, %v14133_v54  ;;  %v6967_v3 = vcombine.low %v14136_v44, %v14135_v46  ;;  %v14151_v63 = vld [vmem:[#allocation191_spill] sm:$0xff]  ;;  %v14152_v43 = vld [vmem:[#allocation190_spill] sm:$0xff] }
 0x4f5   : > { %v6949_v50 = vcombine.low %v6940_v16, %v6947_v19  ;;  %v6968_v5 = vcombine.low %v14138_v51, %v14137_v23  ;;  %v6975_v39 = vrot.slane %v6965_v30, %v12505_v13  ;;  %v7014_v27 = vcombine.low %v14140_v61, %v14139_v60  ;;  %9010 = vst [vmem:[%s12548_s2 + $0xa8] sm:$0xff] %v6866_v55  ;;  %v14153_v30 = vld [vmem:[#allocation193_spill] sm:$0xff]  ;;  %v14154_v55 = vld [vmem:[#allocation192_spill] sm:$0xff]  ;;  %v14155_v54 = vld [vmem:[#allocation195_spill] sm:$0xff] }
 0x4f6   : > { %v6915_v49 = vcombine.low %v6907_v25, %v6914_v38  ;;  %v6956_v11 = vrot.slane %v6948_v37, %v12505_v13  ;;  %v6982_v0 = vrot.slane %v6966_v57, %v12505_v13  ;;  %v6989_v17 = vrot.slane %v6967_v3, %v12505_v13  ;;  %v14156_v26 = vld [vmem:[#allocation194_spill] sm:$0xff]  ;;  %v14158_v23 = vld [vmem:[#allocation196_spill] sm:$0xff]  ;;  %v14159_v60 = vld [vmem:[#allocation199_spill] sm:$0xff] }
 0x4f7   : > { %v6963_v56 = vrot.slane %v6949_v50, %v12505_v13  ;;  %v6996_v29 = vrot.slane %v6968_v5, %v12505_v13  ;;  %v7015_v15 = vcombine.low %v14142_v14, %v14141_v18  ;;  %v7016_v36 = vcombine.low %v14144_v21, %v14143_v20  ;;  %v14157_v50 = vld [vmem:[#allocation197_spill] sm:$0xff]  ;;  %v14160_v61 = vld [vmem:[#allocation198_spill] sm:$0xff]  ;;  %v14163_v18 = vld [vmem:[#allocation203_spill] sm:$0xff] }
 0x4f8   : > { %v6997_v12 = vcombine.low %v6975_v39, %v6982_v0  ;;  %v7017_v22 = vcombine.low %v14146_v48, %v14145_v32  ;;  %v7024_v31 = vrot.slane %v7014_v27, %v12505_v13  ;;  %v7063_v8 = vcombine.low %v14148_v59, %v14147_v58  ;;  %9011 = vst [vmem:[%s12548_s2 + $0xb0] sm:$0xff] %v6915_v49  ;;  %v14161_v49 = vld [vmem:[#allocation201_spill] sm:$0xff]  ;;  %v14164_v14 = vld [vmem:[#allocation202_spill] sm:$0xff]  ;;  %v14167_v59 = vld [vmem:[#allocation207_spill] sm:$0xff] }
 0x4f9   : > { %v6964_v9 = vcombine.low %v6956_v11, %v6963_v56  ;;  %v6998_v47 = vcombine.low %v6989_v17, %v6996_v29  ;;  %v7031_v33 = vrot.slane %v7015_v15, %v12505_v13  ;;  %v7038_v34 = vrot.slane %v7016_v36, %v12505_v13  ;;  %v14162_v11 = vld [vmem:[#allocation200_spill] sm:$0xff] }
 0x4fa   : > { %v7005_v10 = vrot.slane %v6997_v12, %v12505_v13  ;;  %v7045_v7 = vrot.slane %v7017_v22, %v12505_v13  ;;  %v7064_v62 = vcombine.low %v14150_v42, %v14149_v35  ;;  %v7065_v45 = vcombine.low %v14152_v43, %v14151_v63  ;;  %v14165_v22 = vld [vmem:[#allocation205_spill] sm:$0xff]  ;;  %v14171_v35 = vld [vmem:[#allocation211_spill] sm:$0xff]  ;;  %v14172_v42 = vld [vmem:[#allocation210_spill] sm:$0xff] }
 0x4fb   : > { %v7012_v52 = vrot.slane %v6998_v47, %v12505_v13  ;;  %v7046_v1 = vcombine.low %v7024_v31, %v7031_v33  ;;  %v7066_v25 = vcombine.low %v14154_v55, %v14153_v30  ;;  %v7073_v16 = vrot.slane %v7063_v8, %v12505_v13  ;;  %9012 = vst [vmem:[%s12548_s2 + $0xb8] sm:$0xff] %v6964_v9  ;;  %v14166_v31 = vld [vmem:[#allocation204_spill] sm:$0xff]  ;;  %v14168_v8 = vld [vmem:[#allocation206_spill] sm:$0xff]  ;;  %v14169_v33 = vld [vmem:[#allocation209_spill] sm:$0xff] }
 0x4fc   : > { %v7047_v19 = vcombine.low %v7038_v34, %v7045_v7  ;;  %v7080_v38 = vrot.slane %v7064_v62, %v12505_v13  ;;  %v7087_v37 = vrot.slane %v7065_v45, %v12505_v13  ;;  %v7112_v57 = vcombine.low %v14156_v26, %v14155_v54  ;;  %v14170_v34 = vld [vmem:[#allocation208_spill] sm:$0xff]  ;;  %v14173_v55 = vld [vmem:[#allocation213_spill] sm:$0xff] }
 0x4fd   : > { %v7013_v46 = vcombine.low %v7005_v10, %v7012_v52  ;;  %v7054_v44 = vrot.slane %v7046_v1, %v12505_v13  ;;  %v7094_v3 = vrot.slane %v7066_v25, %v12505_v13  ;;  %v7113_v51 = vcombine.low %v14158_v23, %v14157_v50  ;;  %v14174_v25 = vld [vmem:[#allocation212_spill] sm:$0xff]  ;;  %v14177_v26 = vld [vmem:[#allocation217_spill] sm:$0xff]  ;;  %v14180_v50 = vld [vmem:[#allocation218_spill] sm:$0xff] }
 0x4fe   : > { %v7061_v5 = vrot.slane %v7047_v19, %v12505_v13  ;;  %v7095_v39 = vcombine.low %v7073_v16, %v7080_v38  ;;  %v7114_v27 = vcombine.low %v14160_v61, %v14159_v60  ;;  %v7115_v0 = vcombine.low %v14162_v11, %v14161_v49  ;;  %v14175_v19 = vld [vmem:[#allocation215_spill] sm:$0xff]  ;;  %v14176_v38 = vld [vmem:[#allocation214_spill] sm:$0xff]  ;;  %v14181_v49 = vld [vmem:[#allocation221_spill] sm:$0xff] }
 0x4ff   : > { %v7096_v17 = vcombine.low %v7087_v37, %v7094_v3  ;;  %v7122_v56 = vrot.slane %v7112_v57, %v12505_v13  ;;  %v7129_v29 = vrot.slane %v7113_v51, %v12505_v13  ;;  %v7161_v15 = vcombine.low %v14164_v14, %v14163_v18  ;;  %9013 = vst [vmem:[%s12548_s2 + $0xc0] sm:$0xff] %v7013_v46  ;;  %v14178_v57 = vld [vmem:[#allocation216_spill] sm:$0xff]  ;;  %v14179_v3 = vld [vmem:[#allocation219_spill] sm:$0xff] }
 0x500   : > { %v7062_v20 = vcombine.low %v7054_v44, %v7061_v5  ;;  %v7103_v21 = vrot.slane %v7095_v39, %v12505_v13  ;;  %v7136_v36 = vrot.slane %v7114_v27, %v12505_v13  ;;  %v7143_v12 = vrot.slane %v7115_v0, %v12505_v13  ;;  %v14182_v11 = vld [vmem:[#allocation220_spill] sm:$0xff] }
 0x501   : > { %v7110_v32 = vrot.slane %v7096_v17, %v12505_v13  ;;  %v7144_v48 = vcombine.low %v7122_v56, %v7129_v29  ;;  %v7162_v58 = vcombine.low %v14166_v31, %v14165_v22  ;;  %v7163_v9 = vcombine.low %v14168_v8, %v14167_v59  ;;  %v14183_v17 = vld [vmem:[#allocation223_spill] sm:$0xff]  ;;  %v14184_v56 = vld [vmem:[#allocation222_spill] sm:$0xff] }
 0x502   : > { %v7145_v47 = vcombine.low %v7136_v36, %v7143_v12  ;;  %v7164_v10 = vcombine.low %v14170_v34, %v14169_v33  ;;  %v7171_v7 = vrot.slane %v7161_v15, %v12505_v13  ;;  %v7210_v62 = vcombine.low %v14172_v42, %v14171_v35  ;;  %9014 = vst [vmem:[%s12548_s2 + $0xc8] sm:$0xff] %v7062_v20  ;;  %v14185_v15 = vld [vmem:[#allocation225_spill] sm:$0xff]  ;;  %v14186_v20 = vld [vmem:[#allocation224_spill] sm:$0xff]  ;;  %v14187_v22 = vld [vmem:[#allocation227_spill] sm:$0xff] }
 0x503   : > { %v7111_v63 = vcombine.low %v7103_v21, %v7110_v32  ;;  %v7152_v43 = vrot.slane %v7144_v48, %v12505_v13  ;;  %v7178_v45 = vrot.slane %v7162_v58, %v12505_v13  ;;  %v7185_v52 = vrot.slane %v7163_v9, %v12505_v13  ;;  %v14188_v31 = vld [vmem:[#allocation226_spill] sm:$0xff]  ;;  %v14190_v33 = vld [vmem:[#allocation228_spill] sm:$0xff]  ;;  %v14191_v35 = vld [vmem:[#allocation231_spill] sm:$0xff] }
 0x504   : > { %v7159_v1 = vrot.slane %v7145_v47, %v12505_v13  ;;  %v7192_v30 = vrot.slane %v7164_v10, %v12505_v13  ;;  %v7211_v16 = vcombine.low %v14174_v25, %v14173_v55  ;;  %v7212_v37 = vcombine.low %v14176_v38, %v14175_v19  ;;  %v14189_v47 = vld [vmem:[#allocation229_spill] sm:$0xff]  ;;  %v14192_v42 = vld [vmem:[#allocation230_spill] sm:$0xff]  ;;  %v14195_v55 = vld [vmem:[#allocation235_spill] sm:$0xff] }
 0x505   : > { %v7193_v54 = vcombine.low %v7171_v7, %v7178_v45  ;;  %v7213_v46 = vcombine.low %v14178_v57, %v14177_v26  ;;  %v7220_v44 = vrot.slane %v7210_v62, %v12505_v13  ;;  %v7259_v23 = vcombine.low %v14180_v50, %v14179_v3  ;;  %9015 = vst [vmem:[%s12548_s2 + $0xd0] sm:$0xff] %v7111_v63  ;;  %v14193_v63 = vld [vmem:[#allocation233_spill] sm:$0xff]  ;;  %v14196_v25 = vld [vmem:[#allocation234_spill] sm:$0xff]  ;;  %v14199_v50 = vld [vmem:[#allocation239_spill] sm:$0xff] }
 0x506   : > { %v7160_v51 = vcombine.low %v7152_v43, %v7159_v1  ;;  %v7194_v5 = vcombine.low %v7185_v52, %v7192_v30  ;;  %v7227_v39 = vrot.slane %v7211_v16, %v12505_v13  ;;  %v7234_v60 = vrot.slane %v7212_v37, %v12505_v13  ;;  %v14194_v43 = vld [vmem:[#allocation232_spill] sm:$0xff] }
 0x507   : > { %v7201_v61 = vrot.slane %v7193_v54, %v12505_v13  ;;  %v7241_v27 = vrot.slane %v7213_v46, %v12505_v13  ;;  %v7260_v0 = vcombine.low %v14182_v11, %v14181_v49  ;;  %v7261_v29 = vcombine.low %v14184_v56, %v14183_v17  ;;  %v14197_v46 = vld [vmem:[#allocation237_spill] sm:$0xff]  ;;  %v14203_v49 = vld [vmem:[#allocation243_spill] sm:$0xff]  ;;  %v14204_v11 = vld [vmem:[#allocation242_spill] sm:$0xff] }
 0x508   : > { %v7208_v18 = vrot.slane %v7194_v5, %v12505_v13  ;;  %v7242_v14 = vcombine.low %v7220_v44, %v7227_v39  ;;  %v7262_v21 = vcombine.low %v14186_v20, %v14185_v15  ;;  %v7269_v36 = vrot.slane %v7259_v23, %v12505_v13  ;;  %9016 = vst [vmem:[%s12548_s2 + $0xd8] sm:$0xff] %v7160_v51  ;;  %v14198_v44 = vld [vmem:[#allocation236_spill] sm:$0xff]  ;;  %v14200_v23 = vld [vmem:[#allocation238_spill] sm:$0xff]  ;;  %v14201_v39 = vld [vmem:[#allocation241_spill] sm:$0xff] }
 0x509   : > { %v7243_v12 = vcombine.low %v7234_v60, %v7241_v27  ;;  %v7276_v32 = vrot.slane %v7260_v0, %v12505_v13  ;;  %v7283_v48 = vrot.slane %v7261_v29, %v12505_v13  ;;  %v7308_v58 = vcombine.low %v14188_v31, %v14187_v22  ;;  %v14202_v60 = vld [vmem:[#allocation240_spill] sm:$0xff]  ;;  %v14205_v20 = vld [vmem:[#allocation245_spill] sm:$0xff] }
 0x50a   : > { %v7209_v59 = vcombine.low %v7201_v61, %v7208_v18  ;;  %v7250_v8 = vrot.slane %v7242_v14, %v12505_v13  ;;  %v7290_v9 = vrot.slane %v7262_v21, %v12505_v13  ;;  %v7309_v34 = vcombine.low %v14190_v33, %v14189_v47  ;;  %v14206_v21 = vld [vmem:[#allocation244_spill] sm:$0xff]  ;;  %v14209_v31 = vld [vmem:[#allocation249_spill] sm:$0xff]  ;;  %v14212_v47 = vld [vmem:[#allocation250_spill] sm:$0xff] }
 0x50b   : > { %v7257_v10 = vrot.slane %v7243_v12, %v12505_v13  ;;  %v7291_v7 = vcombine.low %v7269_v36, %v7276_v32  ;;  %v7310_v62 = vcombine.low %v14192_v42, %v14191_v35  ;;  %v7311_v45 = vcombine.low %v14194_v43, %v14193_v63  ;;  %v14207_v12 = vld [vmem:[#allocation247_spill] sm:$0xff]  ;;  %v14208_v32 = vld [vmem:[#allocation246_spill] sm:$0xff]  ;;  %v14213_v63 = vld [vmem:[#allocation253_spill] sm:$0xff] }
 0x50c   : > { %v7292_v52 = vcombine.low %v7283_v48, %v7290_v9  ;;  %v7318_v1 = vrot.slane %v7308_v58, %v12505_v13  ;;  %v7325_v30 = vrot.slane %v7309_v34, %v12505_v13  ;;  %v7357_v16 = vcombine.low %v14196_v25, %v14195_v55  ;;  %9017 = vst [vmem:[%s12548_s2 + $0xe0] sm:$0xff] %v7209_v59  ;;  %v14210_v58 = vld [vmem:[#allocation248_spill] sm:$0xff]  ;;  %v14211_v9 = vld [vmem:[#allocation251_spill] sm:$0xff] }
 0x50d   : > { %v7258_v19 = vcombine.low %v7250_v8, %v7257_v10  ;;  %v7299_v38 = vrot.slane %v7291_v7, %v12505_v13  ;;  %v7332_v37 = vrot.slane %v7310_v62, %v12505_v13  ;;  %v7339_v54 = vrot.slane %v7311_v45, %v12505_v13  ;;  %v14214_v43 = vld [vmem:[#allocation252_spill] sm:$0xff] }
 0x50e   : > { %v7306_v26 = vrot.slane %v7292_v52, %v12505_v13  ;;  %v7340_v57 = vcombine.low %v7318_v1, %v7325_v30  ;;  %v7358_v3 = vcombine.low %v14198_v44, %v14197_v46  ;;  %v7359_v51 = vcombine.low %v14200_v23, %v14199_v50  ;;  %v14215_v52 = vld [vmem:[#allocation255_spill] sm:$0xff]  ;;  %v14216_v1 = vld [vmem:[#allocation254_spill] sm:$0xff] }
 0x50f   : > { %v7341_v5 = vcombine.low %v7332_v37, %v7339_v54  ;;  %v7360_v61 = vcombine.low %v14202_v60, %v14201_v39  ;;  %v7367_v27 = vrot.slane %v7357_v16, %v12505_v13  ;;  %v7406_v0 = vcombine.low %v14204_v11, %v14203_v49  ;;  %9018 = vst [vmem:[%s12548_s2 + $0xe8] sm:$0xff] %v7258_v19  ;;  %v14217_v16 = vld [vmem:[#allocation257_spill] sm:$0xff]  ;;  %v14218_v19 = vld [vmem:[#allocation256_spill] sm:$0xff]  ;;  %v14219_v46 = vld [vmem:[#allocation259_spill] sm:$0xff] }
 0x510   : > { %v7307_v17 = vcombine.low %v7299_v38, %v7306_v26  ;;  %v7348_v56 = vrot.slane %v7340_v57, %v12505_v13  ;;  %v7374_v29 = vrot.slane %v7358_v3, %v12505_v13  ;;  %v7381_v18 = vrot.slane %v7359_v51, %v12505_v13  ;;  %v14220_v44 = vld [vmem:[#allocation258_spill] sm:$0xff]  ;;  %v14222_v39 = vld [vmem:[#allocation260_spill] sm:$0xff]  ;;  %v14223_v49 = vld [vmem:[#allocation263_spill] sm:$0xff] }
 0x511   : > { %v7355_v14 = vrot.slane %v7341_v5, %v12505_v13  ;;  %v7388_v15 = vrot.slane %v7360_v61, %v12505_v13  ;;  %v7407_v36 = vcombine.low %v14206_v21, %v14205_v20  ;;  %v7408_v48 = vcombine.low %v14208_v32, %v14207_v12  ;;  %v14221_v5 = vld [vmem:[#allocation261_spill] sm:$0xff]  ;;  %v14224_v11 = vld [vmem:[#allocation262_spill] sm:$0xff]  ;;  %v14227_v20 = vld [vmem:[#allocation267_spill] sm:$0xff] }
 0x512   : > { %v7389_v22 = vcombine.low %v7367_v27, %v7374_v29  ;;  %v7409_v59 = vcombine.low %v14210_v58, %v14209_v31  ;;  %v7416_v8 = vrot.slane %v7406_v0, %v12505_v13  ;;  %v7455_v33 = vcombine.low %v14212_v47, %v14211_v9  ;;  %9019 = vst [vmem:[%s12548_s2 + $0xf0] sm:$0xff] %v7307_v17  ;;  %v14225_v17 = vld [vmem:[#allocation265_spill] sm:$0xff]  ;;  %v14228_v21 = vld [vmem:[#allocation266_spill] sm:$0xff]  ;;  %v14231_v47 = vld [vmem:[#allocation271_spill] sm:$0xff] }
 0x513   : > { %v7356_v34 = vcombine.low %v7348_v56, %v7355_v14  ;;  %v7390_v10 = vcombine.low %v7381_v18, %v7388_v15  ;;  %v7423_v7 = vrot.slane %v7407_v36, %v12505_v13  ;;  %v7430_v35 = vrot.slane %v7408_v48, %v12505_v13  ;;  %v14226_v56 = vld [vmem:[#allocation264_spill] sm:$0xff] }
 0x514   : > { %v7397_v42 = vrot.slane %v7389_v22, %v12505_v13  ;;  %v7437_v62 = vrot.slane %v7409_v59, %v12505_v13  ;;  %v7456_v45 = vcombine.low %v14214_v43, %v14213_v63  ;;  %v7457_v30 = vcombine.low %v14216_v1, %v14215_v52  ;;  %v14229_v59 = vld [vmem:[#allocation269_spill] sm:$0xff]  ;;  %v14235_v63 = vld [vmem:[#allocation275_spill] sm:$0xff]  ;;  %v14236_v43 = vld [vmem:[#allocation274_spill] sm:$0xff] }
 0x515   : > { %v7404_v55 = vrot.slane %v7390_v10, %v12505_v13  ;;  %v7438_v25 = vcombine.low %v7416_v8, %v7423_v7  ;;  %v7458_v38 = vcombine.low %v14218_v19, %v14217_v16  ;;  %v7465_v37 = vrot.slane %v7455_v33, %v12505_v13  ;;  %9020 = vst [vmem:[%s12548_s2 + $0xf8] sm:$0xff] %v7356_v34  ;;  %v14230_v8 = vld [vmem:[#allocation268_spill] sm:$0xff]  ;;  %v14232_v33 = vld [vmem:[#allocation270_spill] sm:$0xff]  ;;  %v14233_v7 = vld [vmem:[#allocation273_spill] sm:$0xff] }
 0x516   : > { %v7439_v54 = vcombine.low %v7430_v35, %v7437_v62  ;;  %v7472_v26 = vrot.slane %v7456_v45, %v12505_v13  ;;  %v7479_v57 = vrot.slane %v7457_v30, %v12505_v13  ;;  %v7504_v3 = vcombine.low %v14220_v44, %v14219_v46  ;;  %v14234_v35 = vld [vmem:[#allocation272_spill] sm:$0xff]  ;;  %v14237_v19 = vld [vmem:[#allocation277_spill] sm:$0xff] }
 0x517   : > { %v7405_v50 = vcombine.low %v7397_v42, %v7404_v55  ;;  %v7446_v23 = vrot.slane %v7438_v25, %v12505_v13  ;;  %v7486_v51 = vrot.slane %v7458_v38, %v12505_v13  ;;  %v7505_v60 = vcombine.low %v14222_v39, %v14221_v5  ;;  %v14238_v38 = vld [vmem:[#allocation276_spill] sm:$0xff]  ;;  %v14241_v44 = vld [vmem:[#allocation281_spill] sm:$0xff]  ;;  %v14244_v5 = vld [vmem:[#allocation282_spill] sm:$0xff] }
 0x518   : > { %v7453_v61 = vrot.slane %v7439_v54, %v12505_v13  ;;  %v7487_v27 = vcombine.low %v7465_v37, %v7472_v26  ;;  %v7506_v0 = vcombine.low %v14224_v11, %v14223_v49  ;;  %v7507_v29 = vcombine.low %v14226_v56, %v14225_v17  ;;  %v14239_v54 = vld [vmem:[#allocation279_spill] sm:$0xff]  ;;  %v14240_v26 = vld [vmem:[#allocation278_spill] sm:$0xff]  ;;  %v14245_v17 = vld [vmem:[#allocation285_spill] sm:$0xff] }
 0x519   : > { %v7488_v18 = vcombine.low %v7479_v57, %v7486_v51  ;;  %v7514_v14 = vrot.slane %v7504_v3, %v12505_v13  ;;  %v7521_v15 = vrot.slane %v7505_v60, %v12505_v13  ;;  %v7553_v36 = vcombine.low %v14228_v21, %v14227_v20  ;;  %9021 = vst [vmem:[%s12548_s2 + $0x100] sm:$0xff] %v7405_v50  ;;  %v14242_v3 = vld [vmem:[#allocation280_spill] sm:$0xff]  ;;  %v14243_v51 = vld [vmem:[#allocation283_spill] sm:$0xff] }
 0x51a   : > { %v7454_v12 = vcombine.low %v7446_v23, %v7453_v61  ;;  %v7495_v32 = vrot.slane %v7487_v27, %v12505_v13  ;;  %v7528_v48 = vrot.slane %v7506_v0, %v12505_v13  ;;  %v7535_v22 = vrot.slane %v7507_v29, %v12505_v13  ;;  %v14246_v56 = vld [vmem:[#allocation284_spill] sm:$0xff] }
 0x51b   : > { %v7502_v31 = vrot.slane %v7488_v18, %v12505_v13  ;;  %v7536_v58 = vcombine.low %v7514_v14, %v7521_v15  ;;  %v7554_v9 = vcombine.low %v14230_v8, %v14229_v59  ;;  %v7555_v34 = vcombine.low %v14232_v33, %v14231_v47  ;;  %v14247_v18 = vld [vmem:[#allocation287_spill] sm:$0xff]  ;;  %v14248_v14 = vld [vmem:[#allocation286_spill] sm:$0xff] }
 0x51c   : > { %v7537_v10 = vcombine.low %v7528_v48, %v7535_v22  ;;  %v7556_v42 = vcombine.low %v14234_v35, %v14233_v7  ;;  %v7563_v62 = vrot.slane %v7553_v36, %v12505_v13  ;;  %v7602_v45 = vcombine.low %v14236_v43, %v14235_v63  ;;  %9022 = vst [vmem:[%s12548_s2 + $0x108] sm:$0xff] %v7454_v12  ;;  %v14249_v36 = vld [vmem:[#allocation289_spill] sm:$0xff]  ;;  %v14250_v12 = vld [vmem:[#allocation288_spill] sm:$0xff]  ;;  %v14251_v59 = vld [vmem:[#allocation291_spill] sm:$0xff] }
 0x51d   : > { %v7503_v52 = vcombine.low %v7495_v32, %v7502_v31  ;;  %v7544_v1 = vrot.slane %v7536_v58, %v12505_v13  ;;  %v7570_v30 = vrot.slane %v7554_v9, %v12505_v13  ;;  %v7577_v55 = vrot.slane %v7555_v34, %v12505_v13  ;;  %v14252_v8 = vld [vmem:[#allocation290_spill] sm:$0xff]  ;;  %v14254_v7 = vld [vmem:[#allocation292_spill] sm:$0xff]  ;;  %v14255_v63 = vld [vmem:[#allocation295_spill] sm:$0xff] }
 0x51e   : > { %v7551_v25 = vrot.slane %v7537_v10, %v12505_v13  ;;  %v7584_v16 = vrot.slane %v7556_v42, %v12505_v13  ;;  %v7603_v37 = vcombine.low %v14238_v38, %v14237_v19  ;;  %v7604_v57 = vcombine.low %v14240_v26, %v14239_v54  ;;  %v14253_v10 = vld [vmem:[#allocation293_spill] sm:$0xff]  ;;  %v14256_v43 = vld [vmem:[#allocation294_spill] sm:$0xff]  ;;  %v14259_v19 = vld [vmem:[#allocation299_spill] sm:$0xff] }
 0x51f   : > { %v7585_v46 = vcombine.low %v7563_v62, %v7570_v30  ;;  %v7605_v50 = vcombine.low %v14242_v3, %v14241_v44  ;;  %v7612_v23 = vrot.slane %v7602_v45, %v12505_v13  ;;  %v7651_v39 = vcombine.low %v14244_v5, %v14243_v51  ;;  %9023 = vst [vmem:[%s12548_s2 + $0x110] sm:$0xff] %v7503_v52  ;;  %v14257_v52 = vld [vmem:[#allocation297_spill] sm:$0xff]  ;;  %v14260_v38 = vld [vmem:[#allocation298_spill] sm:$0xff]  ;;  %v14263_v5 = vld [vmem:[#allocation303_spill] sm:$0xff] }
 0x520   : > { %v7552_v60 = vcombine.low %v7544_v1, %v7551_v25  ;;  %v7586_v61 = vcombine.low %v7577_v55, %v7584_v16  ;;  %v7619_v27 = vrot.slane %v7603_v37, %v12505_v13  ;;  %v7626_v49 = vrot.slane %v7604_v57, %v12505_v13  ;;  %v14258_v1 = vld [vmem:[#allocation296_spill] sm:$0xff] }
 0x521   : > { %v7593_v11 = vrot.slane %v7585_v46, %v12505_v13  ;;  %v7633_v0 = vrot.slane %v7605_v50, %v12505_v13  ;;  %v7652_v29 = vcombine.low %v14246_v56, %v14245_v17  ;;  %v7653_v15 = vcombine.low %v14248_v14, %v14247_v18  ;;  %v14261_v50 = vld [vmem:[#allocation301_spill] sm:$0xff]  ;;  %v14267_v17 = vld [vmem:[#allocation307_spill] sm:$0xff]  ;;  %v14268_v56 = vld [vmem:[#allocation306_spill] sm:$0xff] }
 0x522   : > { %v7600_v20 = vrot.slane %v7586_v61, %v12505_v13  ;;  %v7634_v21 = vcombine.low %v7612_v23, %v7619_v27  ;;  %v7654_v32 = vcombine.low %v14250_v12, %v14249_v36  ;;  %v7661_v48 = vrot.slane %v7651_v39, %v12505_v13  ;;  %9024 = vst [vmem:[%s12548_s2 + $0x118] sm:$0xff] %v7552_v60  ;;  %v14262_v23 = vld [vmem:[#allocation300_spill] sm:$0xff]  ;;  %v14264_v39 = vld [vmem:[#allocation302_spill] sm:$0xff]  ;;  %v14265_v27 = vld [vmem:[#allocation305_spill] sm:$0xff] }
 0x523   : > { %v7635_v22 = vcombine.low %v7626_v49, %v7633_v0  ;;  %v7668_v31 = vrot.slane %v7652_v29, %v12505_v13  ;;  %v7675_v58 = vrot.slane %v7653_v15, %v12505_v13  ;;  %v7700_v9 = vcombine.low %v14252_v8, %v14251_v59  ;;  %v14266_v49 = vld [vmem:[#allocation304_spill] sm:$0xff]  ;;  %v14269_v12 = vld [vmem:[#allocation309_spill] sm:$0xff] }
 0x524   : > { %v7601_v47 = vcombine.low %v7593_v11, %v7600_v20  ;;  %v7642_v33 = vrot.slane %v7634_v21, %v12505_v13  ;;  %v7682_v34 = vrot.slane %v7654_v32, %v12505_v13  ;;  %v7701_v35 = vcombine.low %v14254_v7, %v14253_v10  ;;  %v14270_v32 = vld [vmem:[#allocation308_spill] sm:$0xff]  ;;  %v14273_v8 = vld [vmem:[#allocation313_spill] sm:$0xff]  ;;  %v14276_v10 = vld [vmem:[#allocation314_spill] sm:$0xff] }
 0x525   : > { %v7649_v42 = vrot.slane %v7635_v22, %v12505_v13  ;;  %v7683_v62 = vcombine.low %v7661_v48, %v7668_v31  ;;  %v7702_v45 = vcombine.low %v14256_v43, %v14255_v63  ;;  %v7703_v30 = vcombine.low %v14258_v1, %v14257_v52  ;;  %v14271_v22 = vld [vmem:[#allocation311_spill] sm:$0xff]  ;;  %v14272_v31 = vld [vmem:[#allocation310_spill] sm:$0xff]  ;;  %v14277_v52 = vld [vmem:[#allocation317_spill] sm:$0xff] }
 0x526   : > { %v7684_v55 = vcombine.low %v7675_v58, %v7682_v34  ;;  %v7710_v25 = vrot.slane %v7700_v9, %v12505_v13  ;;  %v7717_v16 = vrot.slane %v7701_v35, %v12505_v13  ;;  %v7749_v37 = vcombine.low %v14260_v38, %v14259_v19  ;;  %9025 = vst [vmem:[%s12548_s2 + $0x120] sm:$0xff] %v7601_v47  ;;  %v14274_v9 = vld [vmem:[#allocation312_spill] sm:$0xff]  ;;  %v14275_v34 = vld [vmem:[#allocation315_spill] sm:$0xff] }
 0x527   : > { %v7650_v54 = vcombine.low %v7642_v33, %v7649_v42  ;;  %v7691_v26 = vrot.slane %v7683_v62, %v12505_v13  ;;  %v7724_v57 = vrot.slane %v7702_v45, %v12505_v13  ;;  %v7731_v46 = vrot.slane %v7703_v30, %v12505_v13  ;;  %v14278_v1 = vld [vmem:[#allocation316_spill] sm:$0xff] }
 0x528   : > { %v7698_v44 = vrot.slane %v7684_v55, %v12505_v13  ;;  %v7732_v3 = vcombine.low %v7710_v25, %v7717_v16  ;;  %v7750_v51 = vcombine.low %v14262_v23, %v14261_v50  ;;  %v7751_v60 = vcombine.low %v14264_v39, %v14263_v5  ;;  %v14279_v55 = vld [vmem:[#allocation319_spill] sm:$0xff]  ;;  %v14280_v25 = vld [vmem:[#allocation318_spill] sm:$0xff] }
 0x529   : > { %v7733_v61 = vcombine.low %v7724_v57, %v7731_v46  ;;  %v7752_v11 = vcombine.low %v14266_v49, %v14265_v27  ;;  %v7759_v0 = vrot.slane %v7749_v37, %v12505_v13  ;;  %v7798_v29 = vcombine.low %v14268_v56, %v14267_v17  ;;  %9026 = vst [vmem:[%s12548_s2 + $0x128] sm:$0xff] %v7650_v54  ;;  %v14281_v37 = vld [vmem:[#allocation321_spill] sm:$0xff]  ;;  %v14282_v54 = vld [vmem:[#allocation320_spill] sm:$0xff]  ;;  %v14283_v50 = vld [vmem:[#allocation323_spill] sm:$0xff] }
 0x52a   : > { %v7699_v18 = vcombine.low %v7691_v26, %v7698_v44  ;;  %v7740_v14 = vrot.slane %v7732_v3, %v12505_v13  ;;  %v7766_v15 = vrot.slane %v7750_v51, %v12505_v13  ;;  %v7773_v20 = vrot.slane %v7751_v60, %v12505_v13  ;;  %v14284_v23 = vld [vmem:[#allocation322_spill] sm:$0xff]  ;;  %v14286_v27 = vld [vmem:[#allocation324_spill] sm:$0xff]  ;;  %v14287_v17 = vld [vmem:[#allocation327_spill] sm:$0xff] }
 0x52b   : > { %v7747_v21 = vrot.slane %v7733_v61, %v12505_v13  ;;  %v7780_v36 = vrot.slane %v7752_v11, %v12505_v13  ;;  %v7799_v48 = vcombine.low %v14270_v32, %v14269_v12  ;;  %v7800_v58 = vcombine.low %v14272_v31, %v14271_v22  ;;  %v14285_v61 = vld [vmem:[#allocation325_spill] sm:$0xff]  ;;  %v14288_v56 = vld [vmem:[#allocation326_spill] sm:$0xff]  ;;  %v14291_v12 = vld [vmem:[#allocation331_spill] sm:$0xff] }
 0x52c   : > { %v7781_v59 = vcombine.low %v7759_v0, %v7766_v15  ;;  %v7801_v47 = vcombine.low %v14274_v9, %v14273_v8  ;;  %v7808_v33 = vrot.slane %v7798_v29, %v12505_v13  ;;  %v7847_v7 = vcombine.low %v14276_v10, %v14275_v34  ;;  %9027 = vst [vmem:[%s12548_s2 + $0x130] sm:$0xff] %v7699_v18  ;;  %v14289_v18 = vld [vmem:[#allocation329_spill] sm:$0xff]  ;;  %v14292_v32 = vld [vmem:[#allocation330_spill] sm:$0xff]  ;;  %v14295_v10 = vld [vmem:[#allocation335_spill] sm:$0xff] }
 0x52d   : > { %v7748_v35 = vcombine.low %v7740_v14, %v7747_v21  ;;  %v7782_v42 = vcombine.low %v7773_v20, %v7780_v36  ;;  %v7815_v62 = vrot.slane %v7799_v48, %v12505_v13  ;;  %v7822_v63 = vrot.slane %v7800_v58, %v12505_v13  ;;  %v14290_v14 = vld [vmem:[#allocation328_spill] sm:$0xff] }
 0x52e   : > { %v7789_v43 = vrot.slane %v7781_v59, %v12505_v13  ;;  %v7829_v45 = vrot.slane %v7801_v47, %v12505_v13  ;;  %v7848_v30 = vcombine.low %v14278_v1, %v14277_v52  ;;  %v7849_v16 = vcombine.low %v14280_v25, %v14279_v55  ;;  %v14293_v47 = vld [vmem:[#allocation333_spill] sm:$0xff]  ;;  %v14299_v52 = vld [vmem:[#allocation339_spill] sm:$0xff]  ;;  %v14300_v1 = vld [vmem:[#allocation338_spill] sm:$0xff] }
 0x52f   : > { %v7796_v19 = vrot.slane %v7782_v42, %v12505_v13  ;;  %v7830_v38 = vcombine.low %v7808_v33, %v7815_v62  ;;  %v7850_v26 = vcombine.low %v14282_v54, %v14281_v37  ;;  %v7857_v57 = vrot.slane %v7847_v7, %v12505_v13  ;;  %9028 = vst [vmem:[%s12548_s2 + $0x138] sm:$0xff] %v7748_v35  ;;  %v14294_v33 = vld [vmem:[#allocation332_spill] sm:$0xff]  ;;  %v14296_v7 = vld [vmem:[#allocation334_spill] sm:$0xff]  ;;  %v14297_v62 = vld [vmem:[#allocation337_spill] sm:$0xff] }
 0x530   : > { %v7831_v46 = vcombine.low %v7822_v63, %v7829_v45  ;;  %v7864_v44 = vrot.slane %v7848_v30, %v12505_v13  ;;  %v7871_v3 = vrot.slane %v7849_v16, %v12505_v13  ;;  %v7896_v51 = vcombine.low %v14284_v23, %v14283_v50  ;;  %v14298_v63 = vld [vmem:[#allocation336_spill] sm:$0xff]  ;;  %v14301_v54 = vld [vmem:[#allocation341_spill] sm:$0xff] }
 0x531   : > { %v7797_v5 = vcombine.low %v7789_v43, %v7796_v19  ;;  %v7838_v39 = vrot.slane %v7830_v38, %v12505_v13  ;;  %v7878_v60 = vrot.slane %v7850_v26, %v12505_v13  ;;  %v7897_v49 = vcombine.low %v14286_v27, %v14285_v61  ;;  %v14302_v26 = vld [vmem:[#allocation340_spill] sm:$0xff]  ;;  %v14305_v23 = vld [vmem:[#allocation345_spill] sm:$0xff]  ;;  %v14308_v61 = vld [vmem:[#allocation346_spill] sm:$0xff] }
 0x532   : > { %v7845_v11 = vrot.slane %v7831_v46, %v12505_v13  ;;  %v7879_v0 = vcombine.low %v7857_v57, %v7864_v44  ;;  %v7898_v29 = vcombine.low %v14288_v56, %v14287_v17  ;;  %v7899_v15 = vcombine.low %v14290_v14, %v14289_v18  ;;  %v14303_v46 = vld [vmem:[#allocation343_spill] sm:$0xff]  ;;  %v14304_v44 = vld [vmem:[#allocation342_spill] sm:$0xff]  ;;  %v14309_v18 = vld [vmem:[#allocation349_spill] sm:$0xff] }
 0x533   : > { %v7880_v20 = vcombine.low %v7871_v3, %v7878_v60  ;;  %v7906_v21 = vrot.slane %v7896_v51, %v12505_v13  ;;  %v7913_v36 = vrot.slane %v7897_v49, %v12505_v13  ;;  %v7945_v48 = vcombine.low %v14292_v32, %v14291_v12  ;;  %9029 = vst [vmem:[%s12548_s2 + $0x140] sm:$0xff] %v7797_v5  ;;  %v14306_v51 = vld [vmem:[#allocation344_spill] sm:$0xff]  ;;  %v14307_v60 = vld [vmem:[#allocation347_spill] sm:$0xff] }
 0x534   : > { %v7846_v22 = vcombine.low %v7838_v39, %v7845_v11  ;;  %v7887_v31 = vrot.slane %v7879_v0, %v12505_v13  ;;  %v7920_v58 = vrot.slane %v7898_v29, %v12505_v13  ;;  %v7927_v59 = vrot.slane %v7899_v15, %v12505_v13  ;;  %v14310_v14 = vld [vmem:[#allocation348_spill] sm:$0xff] }
 0x535   : > { %v7894_v8 = vrot.slane %v7880_v20, %v12505_v13  ;;  %v7928_v9 = vcombine.low %v7906_v21, %v7913_v36  ;;  %v7946_v34 = vcombine.low %v14294_v33, %v14293_v47  ;;  %v7947_v35 = vcombine.low %v14296_v7, %v14295_v10  ;;  %v14311_v20 = vld [vmem:[#allocation351_spill] sm:$0xff]  ;;  %v14312_v21 = vld [vmem:[#allocation350_spill] sm:$0xff] }
 0x536   : > { %v7929_v42 = vcombine.low %v7920_v58, %v7927_v59  ;;  %v7948_v43 = vcombine.low %v14298_v63, %v14297_v62  ;;  %v7955_v45 = vrot.slane %v7945_v48, %v12505_v13  ;;  %v7994_v30 = vcombine.low %v14300_v1, %v14299_v52  ;;  %9030 = vst [vmem:[%s12548_s2 + $0x148] sm:$0xff] %v7846_v22  ;;  %v14313_v48 = vld [vmem:[#allocation353_spill] sm:$0xff]  ;;  %v14314_v22 = vld [vmem:[#allocation352_spill] sm:$0xff]  ;;  %v14315_v47 = vld [vmem:[#allocation355_spill] sm:$0xff] }
 0x537   : > { %v7895_v55 = vcombine.low %v7887_v31, %v7894_v8  ;;  %v7936_v25 = vrot.slane %v7928_v9, %v12505_v13  ;;  %v7962_v16 = vrot.slane %v7946_v34, %v12505_v13  ;;  %v7969_v19 = vrot.slane %v7947_v35, %v12505_v13  ;;  %v14316_v33 = vld [vmem:[#allocation354_spill] sm:$0xff]  ;;  %v14318_v62 = vld [vmem:[#allocation356_spill] sm:$0xff]  ;;  %v14319_v52 = vld [vmem:[#allocation359_spill] sm:$0xff] }
 0x538   : > { %v7943_v38 = vrot.slane %v7929_v42, %v12505_v13  ;;  %v7976_v37 = vrot.slane %v7948_v43, %v12505_v13  ;;  %v7995_v57 = vcombine.low %v14302_v26, %v14301_v54  ;;  %v7996_v3 = vcombine.low %v14304_v44, %v14303_v46  ;;  %v14317_v42 = vld [vmem:[#allocation357_spill] sm:$0xff]  ;;  %v14320_v1 = vld [vmem:[#allocation358_spill] sm:$0xff]  ;;  %v14323_v54 = vld [vmem:[#allocation363_spill] sm:$0xff] }
 0x539   : > { %v7977_v50 = vcombine.low %v7955_v45, %v7962_v16  ;;  %v7997_v5 = vcombine.low %v14306_v51, %v14305_v23  ;;  %v8004_v39 = vrot.slane %v7994_v30, %v12505_v13  ;;  %v8043_v27 = vcombine.low %v14308_v61, %v14307_v60  ;;  %9031 = vst [vmem:[%s12548_s2 + $0x150] sm:$0xff] %v7895_v55  ;;  %v14321_v55 = vld [vmem:[#allocation361_spill] sm:$0xff]  ;;  %v14324_v26 = vld [vmem:[#allocation362_spill] sm:$0xff]  ;;  %v14327_v61 = vld [vmem:[#allocation367_spill] sm:$0xff] }
 0x53a   : > { %v7944_v49 = vcombine.low %v7936_v25, %v7943_v38  ;;  %v7978_v11 = vcombine.low %v7969_v19, %v7976_v37  ;;  %v8011_v0 = vrot.slane %v7995_v57, %v12505_v13  ;;  %v8018_v17 = vrot.slane %v7996_v3, %v12505_v13  ;;  %v14322_v25 = vld [vmem:[#allocation360_spill] sm:$0xff] }
 0x53b   : > { %v7985_v56 = vrot.slane %v7977_v50, %v12505_v13  ;;  %v8025_v29 = vrot.slane %v7997_v5, %v12505_v13  ;;  %v8044_v15 = vcombine.low %v14310_v14, %v14309_v18  ;;  %v8045_v36 = vcombine.low %v14312_v21, %v14311_v20  ;;  %v14325_v5 = vld [vmem:[#allocation365_spill] sm:$0xff]  ;;  %v14331_v18 = vld [vmem:[#allocation371_spill] sm:$0xff]  ;;  %v14332_v14 = vld [vmem:[#allocation370_spill] sm:$0xff] }
 0x53c   : > { %v7992_v12 = vrot.slane %v7978_v11, %v12505_v13  ;;  %v8026_v32 = vcombine.low %v8004_v39, %v8011_v0  ;;  %v8046_v31 = vcombine.low %v14314_v22, %v14313_v48  ;;  %v8053_v58 = vrot.slane %v8043_v27, %v12505_v13  ;;  %9032 = vst [vmem:[%s12548_s2 + $0x158] sm:$0xff] %v7944_v49  ;;  %v14326_v39 = vld [vmem:[#allocation364_spill] sm:$0xff]  ;;  %v14328_v27 = vld [vmem:[#allocation366_spill] sm:$0xff]  ;;  %v14329_v0 = vld [vmem:[#allocation369_spill] sm:$0xff] }
 0x53d   : > { %v8027_v59 = vcombine.low %v8018_v17, %v8025_v29  ;;  %v8060_v8 = vrot.slane %v8044_v15, %v12505_v13  ;;  %v8067_v9 = vrot.slane %v8045_v36, %v12505_v13  ;;  %v8092_v34 = vcombine.low %v14316_v33, %v14315_v47  ;;  %v14330_v17 = vld [vmem:[#allocation368_spill] sm:$0xff]  ;;  %v14333_v22 = vld [vmem:[#allocation373_spill] sm:$0xff] }
 0x53e   : > { %v7993_v10 = vcombine.low %v7985_v56, %v7992_v12  ;;  %v8034_v7 = vrot.slane %v8026_v32, %v12505_v13  ;;  %v8074_v35 = vrot.slane %v8046_v31, %v12505_v13  ;;  %v8093_v63 = vcombine.low %v14318_v62, %v14317_v42  ;;  %v14334_v31 = vld [vmem:[#allocation372_spill] sm:$0xff]  ;;  %v14337_v33 = vld [vmem:[#allocation377_spill] sm:$0xff]  ;;  %v14340_v42 = vld [vmem:[#allocation378_spill] sm:$0xff] }
 0x53f   : > { %v8041_v43 = vrot.slane %v8027_v59, %v12505_v13  ;;  %v8075_v45 = vcombine.low %v8053_v58, %v8060_v8  ;;  %v8094_v30 = vcombine.low %v14320_v1, %v14319_v52  ;;  %v8095_v16 = vcombine.low %v14322_v25, %v14321_v55  ;;  %v14335_v59 = vld [vmem:[#allocation375_spill] sm:$0xff]  ;;  %v14336_v8 = vld [vmem:[#allocation374_spill] sm:$0xff]  ;;  %v14341_v55 = vld [vmem:[#allocation381_spill] sm:$0xff] }
 0x540   : > { %v8076_v19 = vcombine.low %v8067_v9, %v8074_v35  ;;  %v8102_v38 = vrot.slane %v8092_v34, %v12505_v13  ;;  %v8109_v37 = vrot.slane %v8093_v63, %v12505_v13  ;;  %v8141_v57 = vcombine.low %v14324_v26, %v14323_v54  ;;  %9033 = vst [vmem:[%s12548_s2 + $0x160] sm:$0xff] %v7993_v10  ;;  %v14338_v34 = vld [vmem:[#allocation376_spill] sm:$0xff]  ;;  %v14339_v35 = vld [vmem:[#allocation379_spill] sm:$0xff] }
 0x541   : > { %v8042_v46 = vcombine.low %v8034_v7, %v8041_v43  ;;  %v8083_v44 = vrot.slane %v8075_v45, %v12505_v13  ;;  %v8116_v3 = vrot.slane %v8094_v30, %v12505_v13  ;;  %v8123_v50 = vrot.slane %v8095_v16, %v12505_v13  ;;  %v14342_v25 = vld [vmem:[#allocation380_spill] sm:$0xff] }
 0x542   : > { %v8090_v23 = vrot.slane %v8076_v19, %v12505_v13  ;;  %v8124_v51 = vcombine.low %v8102_v38, %v8109_v37  ;;  %v8142_v60 = vcombine.low %v14326_v39, %v14325_v5  ;;  %v8143_v49 = vcombine.low %v14328_v27, %v14327_v61  ;;  %v14343_v19 = vld [vmem:[#allocation383_spill] sm:$0xff]  ;;  %v14344_v38 = vld [vmem:[#allocation382_spill] sm:$0xff] }
 0x543   : > { %v8125_v11 = vcombine.low %v8116_v3, %v8123_v50  ;;  %v8144_v56 = vcombine.low %v14330_v17, %v14329_v0  ;;  %v8151_v29 = vrot.slane %v8141_v57, %v12505_v13  ;;  %v8190_v15 = vcombine.low %v14332_v14, %v14331_v18  ;;  %9034 = vst [vmem:[%s12548_s2 + $0x168] sm:$0xff] %v8042_v46  ;;  %v14345_v57 = vld [vmem:[#allocation385_spill] sm:$0xff]  ;;  %v14346_v46 = vld [vmem:[#allocation384_spill] sm:$0xff]  ;;  %v14347_v5 = vld [vmem:[#allocation387_spill] sm:$0xff] }
 0x544   : > { %v8091_v20 = vcombine.low %v8083_v44, %v8090_v23  ;;  %v8132_v21 = vrot.slane %v8124_v51, %v12505_v13  ;;  %v8158_v36 = vrot.slane %v8142_v60, %v12505_v13  ;;  %v8165_v12 = vrot.slane %v8143_v49, %v12505_v13  ;;  %v14348_v39 = vld [vmem:[#allocation386_spill] sm:$0xff]  ;;  %v14350_v0 = vld [vmem:[#allocation388_spill] sm:$0xff]  ;;  %v14351_v18 = vld [vmem:[#allocation391_spill] sm:$0xff] }
 0x545   : > { %v8139_v32 = vrot.slane %v8125_v11, %v12505_v13  ;;  %v8172_v48 = vrot.slane %v8144_v56, %v12505_v13  ;;  %v8191_v58 = vcombine.low %v14334_v31, %v14333_v22  ;;  %v8192_v9 = vcombine.low %v14336_v8, %v14335_v59  ;;  %v14349_v11 = vld [vmem:[#allocation389_spill] sm:$0xff]  ;;  %v14352_v14 = vld [vmem:[#allocation390_spill] sm:$0xff]  ;;  %v14355_v22 = vld [vmem:[#allocation395_spill] sm:$0xff] }
 0x546   : > { %v8173_v47 = vcombine.low %v8151_v29, %v8158_v36  ;;  %v8193_v10 = vcombine.low %v14338_v34, %v14337_v33  ;;  %v8200_v7 = vrot.slane %v8190_v15, %v12505_v13  ;;  %v8239_v62 = vcombine.low %v14340_v42, %v14339_v35  ;;  %9035 = vst [vmem:[%s12548_s2 + $0x170] sm:$0xff] %v8091_v20  ;;  %v14353_v20 = vld [vmem:[#allocation393_spill] sm:$0xff]  ;;  %v14356_v31 = vld [vmem:[#allocation394_spill] sm:$0xff]  ;;  %v14359_v42 = vld [vmem:[#allocation399_spill] sm:$0xff] }
 0x547   : > { %v8140_v63 = vcombine.low %v8132_v21, %v8139_v32  ;;  %v8174_v43 = vcombine.low %v8165_v12, %v8172_v48  ;;  %v8207_v45 = vrot.slane %v8191_v58, %v12505_v13  ;;  %v8214_v52 = vrot.slane %v8192_v9, %v12505_v13  ;;  %v14354_v21 = vld [vmem:[#allocation392_spill] sm:$0xff] }
 0x548   : > { %v8181_v1 = vrot.slane %v8173_v47, %v12505_v13  ;;  %v8221_v30 = vrot.slane %v8193_v10, %v12505_v13  ;;  %v8240_v16 = vcombine.low %v14342_v25, %v14341_v55  ;;  %v8241_v37 = vcombine.low %v14344_v38, %v14343_v19  ;;  %v14357_v10 = vld [vmem:[#allocation397_spill] sm:$0xff]  ;;  %v14363_v55 = vld [vmem:[#allocation403_spill] sm:$0xff]  ;;  %v14364_v25 = vld [vmem:[#allocation402_spill] sm:$0xff] }
 0x549   : > { %v8188_v54 = vrot.slane %v8174_v43, %v12505_v13  ;;  %v8222_v26 = vcombine.low %v8200_v7, %v8207_v45  ;;  %v8242_v44 = vcombine.low %v14346_v46, %v14345_v57  ;;  %v8249_v3 = vrot.slane %v8239_v62, %v12505_v13  ;;  %9036 = vst [vmem:[%s12548_s2 + $0x178] sm:$0xff] %v8140_v63  ;;  %v14358_v7 = vld [vmem:[#allocation396_spill] sm:$0xff]  ;;  %v14360_v62 = vld [vmem:[#allocation398_spill] sm:$0xff]  ;;  %v14361_v45 = vld [vmem:[#allocation401_spill] sm:$0xff] }
 0x54a   : > { %v8223_v50 = vcombine.low %v8214_v52, %v8221_v30  ;;  %v8256_v23 = vrot.slane %v8240_v16, %v12505_v13  ;;  %v8263_v51 = vrot.slane %v8241_v37, %v12505_v13  ;;  %v8288_v60 = vcombine.low %v14348_v39, %v14347_v5  ;;  %v14362_v52 = vld [vmem:[#allocation400_spill] sm:$0xff]  ;;  %v14365_v46 = vld [vmem:[#allocation405_spill] sm:$0xff] }
 0x54b   : > { %v8189_v61 = vcombine.low %v8181_v1, %v8188_v54  ;;  %v8230_v27 = vrot.slane %v8222_v26, %v12505_v13  ;;  %v8270_v49 = vrot.slane %v8242_v44, %v12505_v13  ;;  %v8289_v17 = vcombine.low %v14350_v0, %v14349_v11  ;;  %v14366_v44 = vld [vmem:[#allocation404_spill] sm:$0xff]  ;;  %v14369_v39 = vld [vmem:[#allocation409_spill] sm:$0xff]  ;;  %v14372_v11 = vld [vmem:[#allocation410_spill] sm:$0xff] }
 0x54c   : > { %v8237_v56 = vrot.slane %v8223_v50, %v12505_v13  ;;  %v8271_v29 = vcombine.low %v8249_v3, %v8256_v23  ;;  %v8290_v15 = vcombine.low %v14352_v14, %v14351_v18  ;;  %v8291_v36 = vcombine.low %v14354_v21, %v14353_v20  ;;  %v14367_v50 = vld [vmem:[#allocation407_spill] sm:$0xff]  ;;  %v14368_v23 = vld [vmem:[#allocation406_spill] sm:$0xff]  ;;  %v14373_v20 = vld [vmem:[#allocation413_spill] sm:$0xff] }
 0x54d   : > { %v8272_v12 = vcombine.low %v8263_v51, %v8270_v49  ;;  %v8298_v32 = vrot.slane %v8288_v60, %v12505_v13  ;;  %v8305_v48 = vrot.slane %v8289_v17, %v12505_v13  ;;  %v8337_v58 = vcombine.low %v14356_v31, %v14355_v22  ;;  %9037 = vst [vmem:[%s12548_s2 + $0x180] sm:$0xff] %v8189_v61  ;;  %v14370_v60 = vld [vmem:[#allocation408_spill] sm:$0xff]  ;;  %v14371_v49 = vld [vmem:[#allocation411_spill] sm:$0xff] }
 0x54e   : > { %v8238_v59 = vcombine.low %v8230_v27, %v8237_v56  ;;  %v8279_v8 = vrot.slane %v8271_v29, %v12505_v13  ;;  %v8312_v9 = vrot.slane %v8290_v15, %v12505_v13  ;;  %v8319_v47 = vrot.slane %v8291_v36, %v12505_v13  ;;  %v14374_v21 = vld [vmem:[#allocation412_spill] sm:$0xff] }
 0x54f   : > { %v8286_v33 = vrot.slane %v8272_v12, %v12505_v13  ;;  %v8320_v34 = vcombine.low %v8298_v32, %v8305_v48  ;;  %v8338_v35 = vcombine.low %v14358_v7, %v14357_v10  ;;  %v8339_v63 = vcombine.low %v14360_v62, %v14359_v42  ;;  %v14375_v12 = vld [vmem:[#allocation415_spill] sm:$0xff]  ;;  %v14376_v32 = vld [vmem:[#allocation414_spill] sm:$0xff] }
 0x550   : > { %v8321_v43 = vcombine.low %v8312_v9, %v8319_v47  ;;  %v8340_v1 = vcombine.low %v14362_v52, %v14361_v45  ;;  %v8347_v30 = vrot.slane %v8337_v58, %v12505_v13  ;;  %v8386_v16 = vcombine.low %v14364_v25, %v14363_v55  ;;  %9038 = vst [vmem:[%s12548_s2 + $0x188] sm:$0xff] %v8238_v59  ;;  %v14377_v58 = vld [vmem:[#allocation417_spill] sm:$0xff]  ;;  %v14378_v59 = vld [vmem:[#allocation416_spill] sm:$0xff]  ;;  %v14379_v10 = vld [vmem:[#allocation419_spill] sm:$0xff] }
 0x551   : > { %v8287_v19 = vcombine.low %v8279_v8, %v8286_v33  ;;  %v8328_v38 = vrot.slane %v8320_v34, %v12505_v13  ;;  %v8354_v37 = vrot.slane %v8338_v35, %v12505_v13  ;;  %v8361_v54 = vrot.slane %v8339_v63, %v12505_v13  ;;  %v14380_v7 = vld [vmem:[#allocation418_spill] sm:$0xff]  ;;  %v14382_v45 = vld [vmem:[#allocation420_spill] sm:$0xff]  ;;  %v14383_v55 = vld [vmem:[#allocation423_spill] sm:$0xff] }
 0x552   : > { %v8335_v26 = vrot.slane %v8321_v43, %v12505_v13  ;;  %v8368_v57 = vrot.slane %v8340_v1, %v12505_v13  ;;  %v8387_v3 = vcombine.low %v14366_v44, %v14365_v46  ;;  %v8388_v51 = vcombine.low %v14368_v23, %v14367_v50  ;;  %v14381_v43 = vld [vmem:[#allocation421_spill] sm:$0xff]  ;;  %v14384_v25 = vld [vmem:[#allocation422_spill] sm:$0xff]  ;;  %v14387_v46 = vld [vmem:[#allocation427_spill] sm:$0xff] }
 0x553   : > { %v8369_v5 = vcombine.low %v8347_v30, %v8354_v37  ;;  %v8389_v61 = vcombine.low %v14370_v60, %v14369_v39  ;;  %v8396_v27 = vrot.slane %v8386_v16, %v12505_v13  ;;  %v8435_v0 = vcombine.low %v14372_v11, %v14371_v49  ;;  %9039 = vst [vmem:[%s12548_s2 + $0x190] sm:$0xff] %v8287_v19  ;;  %v14385_v19 = vld [vmem:[#allocation425_spill] sm:$0xff]  ;;  %v14388_v44 = vld [vmem:[#allocation426_spill] sm:$0xff]  ;;  %v14391_v11 = vld [vmem:[#allocation431_spill] sm:$0xff] }
 0x554   : > { %v8336_v17 = vcombine.low %v8328_v38, %v8335_v26  ;;  %v8370_v56 = vcombine.low %v8361_v54, %v8368_v57  ;;  %v8403_v29 = vrot.slane %v8387_v3, %v12505_v13  ;;  %v8410_v18 = vrot.slane %v8388_v51, %v12505_v13  ;;  %v14386_v38 = vld [vmem:[#allocation424_spill] sm:$0xff] }
 0x555   : > { %v8377_v14 = vrot.slane %v8369_v5, %v12505_v13  ;;  %v8417_v15 = vrot.slane %v8389_v61, %v12505_v13  ;;  %v8436_v36 = vcombine.low %v14374_v21, %v14373_v20  ;;  %v8437_v48 = vcombine.low %v14376_v32, %v14375_v12  ;;  %v14389_v61 = vld [vmem:[#allocation429_spill] sm:$0xff]  ;;  %v14395_v20 = vld [vmem:[#allocation435_spill] sm:$0xff]  ;;  %v14396_v21 = vld [vmem:[#allocation434_spill] sm:$0xff] }
 0x556   : > { %v8384_v22 = vrot.slane %v8370_v56, %v12505_v13  ;;  %v8418_v31 = vcombine.low %v8396_v27, %v8403_v29  ;;  %v8438_v8 = vcombine.low %v14378_v59, %v14377_v58  ;;  %v8445_v9 = vrot.slane %v8435_v0, %v12505_v13  ;;  %9040 = vst [vmem:[%s12548_s2 + $0x198] sm:$0xff] %v8336_v17  ;;  %v14390_v27 = vld [vmem:[#allocation428_spill] sm:$0xff]  ;;  %v14392_v0 = vld [vmem:[#allocation430_spill] sm:$0xff]  ;;  %v14393_v29 = vld [vmem:[#allocation433_spill] sm:$0xff] }
 0x557   : > { %v8419_v47 = vcombine.low %v8410_v18, %v8417_v15  ;;  %v8452_v33 = vrot.slane %v8436_v36, %v12505_v13  ;;  %v8459_v34 = vrot.slane %v8437_v48, %v12505_v13  ;;  %v8484_v35 = vcombine.low %v14380_v7, %v14379_v10  ;;  %v14394_v18 = vld [vmem:[#allocation432_spill] sm:$0xff]  ;;  %v14397_v59 = vld [vmem:[#allocation437_spill] sm:$0xff] }
 0x558   : > { %v8385_v42 = vcombine.low %v8377_v14, %v8384_v22  ;;  %v8426_v62 = vrot.slane %v8418_v31, %v12505_v13  ;;  %v8466_v63 = vrot.slane %v8438_v8, %v12505_v13  ;;  %v8485_v52 = vcombine.low %v14382_v45, %v14381_v43  ;;  %v14398_v8 = vld [vmem:[#allocation436_spill] sm:$0xff]  ;;  %v14401_v7 = vld [vmem:[#allocation441_spill] sm:$0xff]  ;;  %v14404_v43 = vld [vmem:[#allocation442_spill] sm:$0xff] }
 0x559   : > { %v8433_v1 = vrot.slane %v8419_v47, %v12505_v13  ;;  %v8467_v30 = vcombine.low %v8445_v9, %v8452_v33  ;;  %v8486_v16 = vcombine.low %v14384_v25, %v14383_v55  ;;  %v8487_v37 = vcombine.low %v14386_v38, %v14385_v19  ;;  %v14399_v47 = vld [vmem:[#allocation439_spill] sm:$0xff]  ;;  %v14400_v33 = vld [vmem:[#allocation438_spill] sm:$0xff]  ;;  %v14405_v19 = vld [vmem:[#allocation445_spill] sm:$0xff] }
 0x55a   : > { %v8468_v54 = vcombine.low %v8459_v34, %v8466_v63  ;;  %v8494_v26 = vrot.slane %v8484_v35, %v12505_v13  ;;  %v8501_v57 = vrot.slane %v8485_v52, %v12505_v13  ;;  %v8533_v3 = vcombine.low %v14388_v44, %v14387_v46  ;;  %9041 = vst [vmem:[%s12548_s2 + $0x1a0] sm:$0xff] %v8385_v42  ;;  %v14402_v35 = vld [vmem:[#allocation440_spill] sm:$0xff]  ;;  %v14403_v63 = vld [vmem:[#allocation443_spill] sm:$0xff] }
 0x55b   : > { %v8434_v50 = vcombine.low %v8426_v62, %v8433_v1  ;;  %v8475_v23 = vrot.slane %v8467_v30, %v12505_v13  ;;  %v8508_v51 = vrot.slane %v8486_v16, %v12505_v13  ;;  %v8515_v5 = vrot.slane %v8487_v37, %v12505_v13  ;;  %v14406_v38 = vld [vmem:[#allocation444_spill] sm:$0xff] }
 0x55c   : > { %v8482_v39 = vrot.slane %v8468_v54, %v12505_v13  ;;  %v8516_v60 = vcombine.low %v8494_v26, %v8501_v57  ;;  %v8534_v49 = vcombine.low %v14390_v27, %v14389_v61  ;;  %v8535_v17 = vcombine.low %v14392_v0, %v14391_v11  ;;  %v14407_v54 = vld [vmem:[#allocation447_spill] sm:$0xff]  ;;  %v14408_v26 = vld [vmem:[#allocation446_spill] sm:$0xff] }
 0x55d   : > { %v8517_v56 = vcombine.low %v8508_v51, %v8515_v5  ;;  %v8536_v14 = vcombine.low %v14394_v18, %v14393_v29  ;;  %v8543_v15 = vrot.slane %v8533_v3, %v12505_v13  ;;  %v8582_v36 = vcombine.low %v14396_v21, %v14395_v20  ;;  %9042 = vst [vmem:[%s12548_s2 + $0x1a8] sm:$0xff] %v8434_v50  ;;  %v14409_v3 = vld [vmem:[#allocation449_spill] sm:$0xff]  ;;  %v14410_v50 = vld [vmem:[#allocation448_spill] sm:$0xff]  ;;  %v14411_v61 = vld [vmem:[#allocation451_spill] sm:$0xff] }
 0x55e   : > { %v8483_v12 = vcombine.low %v8475_v23, %v8482_v39  ;;  %v8524_v32 = vrot.slane %v8516_v60, %v12505_v13  ;;  %v8550_v48 = vrot.slane %v8534_v49, %v12505_v13  ;;  %v8557_v22 = vrot.slane %v8535_v17, %v12505_v13  ;;  %v14412_v27 = vld [vmem:[#allocation450_spill] sm:$0xff]  ;;  %v14414_v29 = vld [vmem:[#allocation452_spill] sm:$0xff]  ;;  %v14415_v20 = vld [vmem:[#allocation455_spill] sm:$0xff] }
 0x55f   : > { %v8531_v31 = vrot.slane %v8517_v56, %v12505_v13  ;;  %v8564_v58 = vrot.slane %v8536_v14, %v12505_v13  ;;  %v8583_v9 = vcombine.low %v14398_v8, %v14397_v59  ;;  %v8584_v34 = vcombine.low %v14400_v33, %v14399_v47  ;;  %v14413_v56 = vld [vmem:[#allocation453_spill] sm:$0xff]  ;;  %v14416_v21 = vld [vmem:[#allocation454_spill] sm:$0xff]  ;;  %v14419_v59 = vld [vmem:[#allocation459_spill] sm:$0xff] }
 0x560   : > { %v8565_v10 = vcombine.low %v8543_v15, %v8550_v48  ;;  %v8585_v42 = vcombine.low %v14402_v35, %v14401_v7  ;;  %v8592_v62 = vrot.slane %v8582_v36, %v12505_v13  ;;  %v8631_v45 = vcombine.low %v14404_v43, %v14403_v63  ;;  %9043 = vst [vmem:[%s12548_s2 + $0x1b0] sm:$0xff] %v8483_v12  ;;  %v14417_v12 = vld [vmem:[#allocation457_spill] sm:$0xff]  ;;  %v14420_v8 = vld [vmem:[#allocation458_spill] sm:$0xff]  ;;  %v14423_v43 = vld [vmem:[#allocation463_spill] sm:$0xff] }
 0x561   : > { %v8532_v52 = vcombine.low %v8524_v32, %v8531_v31  ;;  %v8566_v1 = vcombine.low %v8557_v22, %v8564_v58  ;;  %v8599_v30 = vrot.slane %v8583_v9, %v12505_v13  ;;  %v8606_v55 = vrot.slane %v8584_v34, %v12505_v13  ;;  %v14418_v32 = vld [vmem:[#allocation456_spill] sm:$0xff] }
 0x562   : > { %v8573_v25 = vrot.slane %v8565_v10, %v12505_v13  ;;  %v8613_v16 = vrot.slane %v8585_v42, %v12505_v13  ;;  %v8632_v37 = vcombine.low %v14406_v38, %v14405_v19  ;;  %v8633_v57 = vcombine.low %v14408_v26, %v14407_v54  ;;  %v14421_v42 = vld [vmem:[#allocation461_spill] sm:$0xff]  ;;  %v14427_v19 = vld [vmem:[#allocation467_spill] sm:$0xff]  ;;  %v14428_v38 = vld [vmem:[#allocation466_spill] sm:$0xff] }
 0x563   : > { %v8580_v46 = vrot.slane %v8566_v1, %v12505_v13  ;;  %v8614_v44 = vcombine.low %v8592_v62, %v8599_v30  ;;  %v8634_v23 = vcombine.low %v14410_v50, %v14409_v3  ;;  %v8641_v51 = vrot.slane %v8631_v45, %v12505_v13  ;;  %9044 = vst [vmem:[%s12548_s2 + $0x1b8] sm:$0xff] %v8532_v52  ;;  %v14422_v62 = vld [vmem:[#allocation460_spill] sm:$0xff]  ;;  %v14424_v45 = vld [vmem:[#allocation462_spill] sm:$0xff]  ;;  %v14425_v30 = vld [vmem:[#allocation465_spill] sm:$0xff] }
 0x564   : > { %v8615_v5 = vcombine.low %v8606_v55, %v8613_v16  ;;  %v8648_v39 = vrot.slane %v8632_v37, %v12505_v13  ;;  %v8655_v60 = vrot.slane %v8633_v57, %v12505_v13  ;;  %v8680_v49 = vcombine.low %v14412_v27, %v14411_v61  ;;  %v14426_v55 = vld [vmem:[#allocation464_spill] sm:$0xff]  ;;  %v14429_v50 = vld [vmem:[#allocation469_spill] sm:$0xff] }
 0x565   : > { %v8581_v11 = vcombine.low %v8573_v25, %v8580_v46  ;;  %v8622_v0 = vrot.slane %v8614_v44, %v12505_v13  ;;  %v8662_v17 = vrot.slane %v8634_v23, %v12505_v13  ;;  %v8681_v18 = vcombine.low %v14414_v29, %v14413_v56  ;;  %v14430_v23 = vld [vmem:[#allocation468_spill] sm:$0xff]  ;;  %v14433_v27 = vld [vmem:[#allocation473_spill] sm:$0xff]  ;;  %v14436_v56 = vld [vmem:[#allocation474_spill] sm:$0xff] }
 0x566   : > { %v8629_v14 = vrot.slane %v8615_v5, %v12505_v13  ;;  %v8663_v15 = vcombine.low %v8641_v51, %v8648_v39  ;;  %v8682_v36 = vcombine.low %v14416_v21, %v14415_v20  ;;  %v8683_v48 = vcombine.low %v14418_v32, %v14417_v12  ;;  %v14431_v5 = vld [vmem:[#allocation471_spill] sm:$0xff]  ;;  %v14432_v39 = vld [vmem:[#allocation470_spill] sm:$0xff]  ;;  %v14437_v12 = vld [vmem:[#allocation477_spill] sm:$0xff] }
 0x567   : > { %v8664_v22 = vcombine.low %v8655_v60, %v8662_v17  ;;  %v8690_v31 = vrot.slane %v8680_v49, %v12505_v13  ;;  %v8697_v58 = vrot.slane %v8681_v18, %v12505_v13  ;;  %v8729_v9 = vcombine.low %v14420_v8, %v14419_v59  ;;  %9045 = vst [vmem:[%s12548_s2 + $0x1c0] sm:$0xff] %v8581_v11  ;;  %v14434_v49 = vld [vmem:[#allocation472_spill] sm:$0xff]  ;;  %v14435_v17 = vld [vmem:[#allocation475_spill] sm:$0xff] }
 0x568   : > { %v8630_v47 = vcombine.low %v8622_v0, %v8629_v14  ;;  %v8671_v33 = vrot.slane %v8663_v15, %v12505_v13  ;;  %v8704_v34 = vrot.slane %v8682_v36, %v12505_v13  ;;  %v8711_v10 = vrot.slane %v8683_v48, %v12505_v13  ;;  %v14438_v32 = vld [vmem:[#allocation476_spill] sm:$0xff] }
 0x569   : > { %v8678_v7 = vrot.slane %v8664_v22, %v12505_v13  ;;  %v8712_v35 = vcombine.low %v8690_v31, %v8697_v58  ;;  %v8730_v63 = vcombine.low %v14422_v62, %v14421_v42  ;;  %v8731_v52 = vcombine.low %v14424_v45, %v14423_v43  ;;  %v14439_v22 = vld [vmem:[#allocation479_spill] sm:$0xff]  ;;  %v14440_v31 = vld [vmem:[#allocation478_spill] sm:$0xff] }
 0x56a   : > { %v8713_v1 = vcombine.low %v8704_v34, %v8711_v10  ;;  %v8732_v25 = vcombine.low %v14426_v55, %v14425_v30  ;;  %v8739_v16 = vrot.slane %v8729_v9, %v12505_v13  ;;  %v8778_v37 = vcombine.low %v14428_v38, %v14427_v19  ;;  %9046 = vst [vmem:[%s12548_s2 + $0x1c8] sm:$0xff] %v8630_v47  ;;  %v14441_v9 = vld [vmem:[#allocation481_spill] sm:$0xff]  ;;  %v14442_v47 = vld [vmem:[#allocation480_spill] sm:$0xff] }
 0x56b   : > { %v8679_v54 = vcombine.low %v8671_v33, %v8678_v7  ;;  %v8720_v26 = vrot.slane %v8712_v35, %v12505_v13  ;;  %v8746_v57 = vrot.slane %v8730_v63, %v12505_v13  ;;  %v8753_v46 = vrot.slane %v8731_v52, %v12505_v13 }
 0x56c   : > { %v8727_v44 = vrot.slane %v8713_v1, %v12505_v13  ;;  %v8760_v3 = vrot.slane %v8732_v25, %v12505_v13  ;;  %v8779_v51 = vcombine.low %v14430_v23, %v14429_v50  ;;  %v8780_v60 = vcombine.low %v14432_v39, %v14431_v5 }
 0x56d   : > { %v8761_v61 = vcombine.low %v8739_v16, %v8746_v57  ;;  %v8781_v11 = vcombine.low %v14434_v49, %v14433_v27  ;;  %v8788_v0 = vrot.slane %v8778_v37, %v12505_v13  ;;  %v8827_v29 = vcombine.low %v14436_v56, %v14435_v17  ;;  %9047 = vst [vmem:[%s12548_s2 + $0x1d0] sm:$0xff] %v8679_v54 }
 0x56e   : > { %v8728_v18 = vcombine.low %v8720_v26, %v8727_v44  ;;  %v8762_v14 = vcombine.low %v8753_v46, %v8760_v3  ;;  %v8795_v15 = vrot.slane %v8779_v51, %v12505_v13  ;;  %v8802_v20 = vrot.slane %v8780_v60, %v12505_v13 }
 0x56f   : > { %v8769_v21 = vrot.slane %v8761_v61, %v12505_v13  ;;  %v8809_v36 = vrot.slane %v8781_v11, %v12505_v13  ;;  %v8828_v48 = vcombine.low %v14438_v32, %v14437_v12  ;;  %v8829_v58 = vcombine.low %v14440_v31, %v14439_v22 }
 0x570   : > { %v8776_v59 = vrot.slane %v8762_v14, %v12505_v13  ;;  %v8810_v8 = vcombine.low %v8788_v0, %v8795_v15  ;;  %v8830_v33 = vcombine.low %v14442_v47, %v14441_v9  ;;  %v8837_v34 = vrot.slane %v8827_v29, %v12505_v13  ;;  %9048 = vst [vmem:[%s12548_s2 + $0x1d8] sm:$0xff] %v8728_v18 }
 0x571   : > { %v8811_v10 = vcombine.low %v8802_v20, %v8809_v36  ;;  %v8844_v7 = vrot.slane %v8828_v48, %v12505_v13  ;;  %v8851_v35 = vrot.slane %v8829_v58, %v12505_v13  ;;  %v8876_v42 = vcombine.low %v12451_v41, %v12453_v40 }
 0x572   : > { %v8777_v62 = vcombine.low %v8769_v21, %v8776_v59  ;;  %v8818_v63 = vrot.slane %v8810_v8, %v12505_v13  ;;  %v8858_v43 = vrot.slane %v8830_v33, %v12505_v13  ;;  %v8877_v45 = vcombine.low %v12455_v28, %v12457_v53 }
 0x573   : > { %v8825_v52 = vrot.slane %v8811_v10, %v12505_v13  ;;  %v8859_v1 = vcombine.low %v8837_v34, %v8844_v7  ;;  %v8878_v30 = vcombine.low %v12467_v6, %v12469_v2  ;;  %v8879_v41 = vcombine.low %v12471_v24, %v12473_v4 }
 0x574   : > { %v8860_v40 = vcombine.low %v8851_v35, %v8858_v43  ;;  %v8886_v55 = vrot.slane %v8876_v42, %v12505_v13  ;;  %v8893_v25 = vrot.slane %v8877_v45, %v12505_v13  ;;  %9049 = vst [vmem:[%s12548_s2 + $0x1e0] sm:$0xff] %v8777_v62 }
 0x575   : > { %v8826_v16 = vcombine.low %v8818_v63, %v8825_v52  ;;  %v8867_v28 = vrot.slane %v8859_v1, %v12505_v13  ;;  %v8900_v53 = vrot.slane %v8878_v30, %v12505_v13  ;;  %v8907_v19 = vrot.slane %v8879_v41, %v12505_v13 }
 0x576   : > { %v8874_v6 = vrot.slane %v8860_v40, %v12505_v13  ;;  %v8908_v2 = vcombine.low %v8886_v55, %v8893_v25 }
 0x577   : > { %v8909_v24 = vcombine.low %v8900_v53, %v8907_v19  ;;  %9050 = vst [vmem:[%s12548_s2 + $0x1e8] sm:$0xff] %v8826_v16 }
 0x578   : > { %v8875_v4 = vcombine.low %v8867_v28, %v8874_v6  ;;  %v8916_v38 = vrot.slane %v8908_v2, %v12505_v13 }
 0x579   : > { %v8923_v37 = vrot.slane %v8909_v24, %v12505_v13 }
 0x57a   : > { %9051 = vst [vmem:[%s12548_s2 + $0x1f0] sm:$0xff] %v8875_v4 }
 0x57b   : > { %v8924_v54 = vcombine.low %v8916_v38, %v8923_v37 }
 0x57d   : > { %9052 = vst [vmem:[%s12548_s2 + $0x1f8] sm:$0xff] %v8924_v54 }
 0x57e   : > { %9241 = shalt.err (!%p9238_p7)
}
 0x57f   : > { %s9242_s22 = scalar_lea.hbm %s13435_s13, 8192  ;;  %s9246_s25 = scalar_lea.hbm %s13488_s1, 16384 }
 0x580   : > { %p9243_p8 = scmp.ne.s32.totalorder %s13435_s13, %s9242_s22  ;;  %p9247_p13 = scmp.lt.s32.totalorder %s13435_s13, %s13488_s1 }
 0x581   : > { %p9248_p0 = scmp.lt.s32.totalorder %s9246_s25, %s9242_s22 }
 0x582   : > { %p9244_p11 = pnand %p9243_p8, %p9360_p5 }
 0x583   : > { %p9249_p1 = por %p9248_p0, %p9247_p13 }
 0x584   : > { %p9245_p12 = pneg %p9244_p11 }
 0x586   : > { %p9250_p2 = pnand %p9249_p1, %p9245_p12 }
 0x588   : > { %9253 = shalt.err (!%p9250_p2)
}
 0x589   : > { %s9308_s29 = smov 4096   ;;  %s9309_s30 = smov 8192  }
 0x58a   : > { %s9310_s2 = smov 256  }
 0x58b   : > { %9169 = dma.vmem_to_hbm [thread:$0]  (%p9360_p5), %s13438_s4, 8192, %s13435_s13, %s9054_s9, %s9308_s29, %s9309_s30, %s9310_s2  }
 0x58c PF: > { %s9085_s3 = sand.u32 1, %s9284_s6   ;;  %p9172_p3 = pnand %p9155_p10, %p9371_p9 }
 0x58d   : > { %s9086_s5 = scalar_lea.sflag [#allocation4], %s9085_s3 }
 0x58e   : > { %p9173_p4 = pneg %p9172_p3 }
 0x590   : > { %9279 = dma.done.wait (%p9173_p4), %s9086_s5, 8192  }
 0x591   : > { %9281 = vsyncadd (%p9173_p4), %s9086_s5, 4294959104  ;;  %s14_s11 = sadd.s32 1, %s9304_s11   ;;  %s14443_s6 = smov %s9288_s7 }
 0x592   : > { %p11_p6 = scmp.ge.s32.totalorder %s14_s11, 4   ;;  %s14444_s7 = smov %s9292_s8 }
 0x593   : > { %s14445_s8 = smov %s9369_s18  ;;  %s14446_s9 = smov %s9300_s10 }
 0x594   : > { %s14447_s10 = smov %s14449_s14  ;;  %13 = sbr.rel (!%p11_p6) target bundleno = 4 (0x4), region = 87 }
 0x599   :  { %9091 = vsyncpa [#allocation4], 1 }
 0x59a   :  { %9093 = vsyncpa [#allocation4 + $0x1], 1 }

</bundles_post_ra>
